<compile_context>
chip_gen: v7x
topology: tpu7x:2x2x1
jax: 0.10.0
libtpu: 0.0.40
codegen_flags: <defaults>
</compile_context>

<pallas_src>
import functools

import jax
import jax.numpy as jnp
import numpy as np
from jax.experimental import pallas as pl
from jax.experimental.pallas import tpu as pltpu

# ---- module hyper-parameters (defaults of the PyTorch NeRF module) ----------
D = 8
W = 256
INPUT_CH = 3
INPUT_CH_VIEWS = 3
INPUT_CH_TIMES = 1
OUTPUT_CH = 4
SKIPS = (4,)
SKIP_CONSUMER = SKIPS[0] + 1   # layer whose input is concat([pts, h])

PTS_COLS = 8        # pts features padded to 8 columns (sublane-friendly)
OUT_PAD = 128       # lanes used for the output matmul inside the kernel
MAX_TILE_N = 2048   # rows per grid step (upper bound)

# Per-generation path selection (trace-time, static).
try:
    _KIND = jax.devices()[0].device_kind.lower()
except Exception:  # pragma: no cover - conservative fallback
    _KIND = ""
# v6e / v7x: bf16-capable VPU and MXU headroom for the tiny-K pts matmul.
IS_BF16_VPU = ("v6" in _KIND) or ("v7" in _KIND)


# ------------------------------- kernel --------------------------------------
def nerf_kernel(pts_ref, wpts_ref, b0_ref, wstk_ref, bstk_ref,
                wout_ref, bout_ref, out_ref, *, use_mxu_pts, bf16_act):
    pts = pts_ref[...]                 # (T, PTS_COLS) f32; cols 3.. are zero
    b0 = b0_ref[...]                   # (1, W) f32
    tile_n = pts.shape[0]

    if use_mxu_pts:
        # v6e/v7x: one tiny-K MXU matmul covers both layer 0 and the skip-
        # concat pts contribution; lanes [0,W) -> layer 0, [W,2W) -> skip add.
        pts_mm = jnp.dot(pts.astype(jnp.bfloat16), wpts_ref[...],
                         preferred_element_type=jnp.float32)   # (T, 2W)
        z0 = pts_mm[:, :W] + b0
        skip_add = pts_mm[:, W:]
    else:
        # v5e: MXU is the bottleneck -> keep the pts work on the VPU, but
        # hoist the three pts-column lane-broadcasts and reuse them twice.
        wpts = wpts_ref[...]                                   # (8, 2W) f32
        w0 = wpts[:, :W]
        wskip = wpts[:, W:]
        pcols = [jnp.broadcast_to(pts[:, c:c + 1], (tile_n, W))
                 for c in range(INPUT_CH)]
        z0 = (pcols[0] * w0[0:1, :] + pcols[1] * w0[1:2, :]
              + pcols[2] * w0[2:3, :] + b0)
        skip_add = (pcols[0] * wskip[0:1, :] + pcols[1] * wskip[1:2, :]
                    + pcols[2] * wskip[2:3, :])

    def act(z):
        # ReLU commutes with the bf16 downcast -> identical results; on
        # bf16-capable VPUs do the cast first (half the ReLU vreg ops).
        if bf16_act:
            return jnp.maximum(z.astype(jnp.bfloat16), 0.0)
        return jnp.maximum(z, 0.0).astype(jnp.bfloat16)

    h = act(z0)                        # (T, W) bf16

    for i in range(1, D):
        wi = wstk_ref[i - 1]           # (W, W) bf16, loaded adjacent to use
        bi = bstk_ref[i - 1]           # (1, W) f32
        z = jnp.dot(h, wi, preferred_element_type=jnp.float32) + bi
        if i == SKIP_CONSUMER:
            # concat([input_pts, h]) @ Wi == pts @ Wi[:3] + h @ Wi[3:]
            z = z + skip_add
        h = act(z)

    # Output linear (no activation). Matmul on OUT_PAD lanes for MXU layout,
    # but only OUTPUT_CH lanes are written back (tiny HBM writeback, no
    # padded-slab slice needed in the wrapper).
    out = jnp.dot(h, wout_ref[...], preferred_element_type=jnp.float32)
    out_ref[...] = (out[:, :OUTPUT_CH] + bout_ref[...]).astype(out_ref.dtype)


# ------------------------------- helpers --------------------------------------
def _const_spec(shape):
    """Whole-array block, same block for every grid step (constant weights)."""
    zeros = (0,) * len(shape)
    return pl.BlockSpec(shape, lambda i, _z=zeros: _z)


def _choose_tile(n):
    """Largest tile <= MAX_TILE_N keeping >=2 grid steps when possible."""
    t = MAX_TILE_N
    while t > 512 and -(-n // t) < 2:
        t //= 2
    return t


def init_params(key):
    """Deterministic parameter init (PyTorch-Linear shapes, stored as (in, out))."""
    keys = jax.random.split(key, 2 * D + 2)
    params = {"pts_w": [], "pts_b": []}
    k = 0
    for i in range(D):
        if i == 0:
            in_ch = INPUT_CH
        elif (i - 1) in SKIPS:
            in_ch = W + INPUT_CH
        else:
            in_ch = W
        params["pts_w"].append(
            jax.random.normal(keys[k], (in_ch, W), jnp.float32) * 0.05)
        params["pts_b"].append(
            jax.random.normal(keys[k + 1], (W,), jnp.float32) * 0.05)
        k += 2
    params["out_w"] = jax.random.normal(keys[k], (W, OUTPUT_CH), jnp.float32) * 0.05
    params["out_b"] = jax.random.normal(keys[k + 1], (OUTPUT_CH,), jnp.float32) * 0.05
    return params


def pack_params(params, use_mxu_pts):
    """One-time packing of weights into kernel operands (outside the hot path)."""
    # Layer-0 weight and the pts-rows of the skip-consumer weight, packed side
    # by side into one (8, 2W) operand (bf16 on the MXU path, f32 on the VPU
    # path); rows 3.. are zero.
    w_pts = jnp.zeros((PTS_COLS, 2 * W), jnp.float32)
    w_pts = w_pts.at[:INPUT_CH, :W].set(params["pts_w"][0])
    w_pts = w_pts.at[:INPUT_CH, W:].set(
        params["pts_w"][SKIP_CONSUMER][:INPUT_CH, :])
    w_pts = w_pts.astype(jnp.bfloat16 if use_mxu_pts else jnp.float32)

    b0 = params["pts_b"][0].reshape(1, W).astype(jnp.float32)

    # Hidden layers 1..D-1: stack weights into one (D-1, W, W) bf16 operand;
    # the skip-consumer layer contributes only its h-part rows.
    ws, bs = [], []
    for i in range(1, D):
        w_full = params["pts_w"][i]
        ws.append(w_full[INPUT_CH:, :] if i == SKIP_CONSUMER else w_full)
        bs.append(params["pts_b"][i].reshape(1, W))
    w_stack = jnp.stack(ws, axis=0).astype(jnp.bfloat16)      # (D-1, W, W)
    b_stack = jnp.stack(bs, axis=0).astype(jnp.float32)       # (D-1, 1, W)

    # Output weight padded to OUT_PAD lanes for the MXU; bias kept at 4.
    w_out = jnp.zeros((W, OUT_PAD), jnp.bfloat16).at[:, :OUTPUT_CH].set(
        params["out_w"].astype(jnp.bfloat16))
    b_out = params["out_b"].reshape(1, OUTPUT_CH).astype(jnp.float32)

    return dict(w_pts=w_pts, b0=b0, w_stack=w_stack, b_stack=b_stack,
                w_out=w_out, b_out=b_out)


def nerf_reference(x, params):
    """Plain-JAX replica of the PyTorch forward (default config), in f32."""
    input_pts = x[:, :INPUT_CH]
    # input_views / input_times split off and unused (use_viewdirs/use_times False)
    h = input_pts
    for i in range(D):
        h = jnp.maximum(h @ params["pts_w"][i] + params["pts_b"][i], 0.0)
        if i in SKIPS:
            h = jnp.concatenate([input_pts, h], axis=-1)
    return h @ params["out_w"] + params["out_b"]


# ------------------------------- wrapper --------------------------------------
@functools.partial(jax.jit, static_argnames=("use_mxu_pts", "bf16_act"))
def _nerf_forward(x, packed, use_mxu_pts, bf16_act):
    n = x.shape[0]
    tile_n = _choose_tile(n)
    n_pad = pl.cdiv(n, tile_n) * tile_n          # row-pad instead of asserting

    # pts as an (n_pad, 8) array: 3 real features + zero columns (tiny DMA).
    input_pts = x[:, :INPUT_CH].astype(jnp.float32)
    pts = jnp.zeros((n_pad, PTS_COLS), jnp.float32).at[:n, :INPUT_CH].set(input_pts)

    kernel = functools.partial(nerf_kernel,
                               use_mxu_pts=use_mxu_pts, bf16_act=bf16_act)

    out = pl.pallas_call(
        kernel,
        out_shape=jax.ShapeDtypeStruct((n_pad, OUTPUT_CH), jnp.float32),
        grid_spec=pltpu.PrefetchScalarGridSpec(
            num_scalar_prefetch=0,
            grid=(n_pad // tile_n,),
            in_specs=[
                pl.BlockSpec((tile_n, PTS_COLS), lambda i: (i, 0)),
                _const_spec((PTS_COLS, 2 * W)),      # [w0[:3] | wskip[:3]]
                _const_spec((1, W)),                 # b0
                _const_spec((D - 1, W, W)),          # stacked hidden weights (bf16)
                _const_spec((D - 1, 1, W)),          # stacked hidden biases (f32)
                _const_spec((W, OUT_PAD)),           # w_out (bf16, lane-padded)
                _const_spec((1, OUTPUT_CH)),         # b_out
            ],
            out_specs=pl.BlockSpec((tile_n, OUTPUT_CH), lambda i: (i, 0)),
        ),
        compiler_params=pltpu.CompilerParams(
            dimension_semantics=("parallel",),       # shards grid over v7x TCs
            vmem_limit_bytes=48 * 1024 * 1024,       # < v7x 64 MiB physical
        ),
    )(pts, packed["w_pts"], packed["b0"], packed["w_stack"], packed["b_stack"],
      packed["w_out"], packed["b_out"])

    return out[:n]


def nerf_pallas(x, packed):
    return _nerf_forward(x, packed,
                         use_mxu_pts=IS_BF16_VPU, bf16_act=IS_BF16_VPU)


# --------------------------------- main ---------------------------------------
if __name__ == "__main__":
    key = jax.random.PRNGKey(0)
    k_x, k_p = jax.random.split(key)

    N = 1000  # not a multiple of the tile -> exercises row padding; grid = 2
    total_in = INPUT_CH + INPUT_CH_VIEWS + INPUT_CH_TIMES  # = 7
    x = jax.random.uniform(k_x, (N, total_in), jnp.float32, minval=-1.0, maxval=1.0)

    params = init_params(k_p)
    packed = pack_params(params, use_mxu_pts=IS_BF16_VPU)   # one-time packing

    out = nerf_pallas(x, packed)
    out = jax.block_until_ready(out)

    ref = nerf_reference(x, params)
    ref = jax.block_until_ready(ref)

    assert out.shape == (N, OUTPUT_CH)
    # Matmul operands are bf16 (f32 accumulation); reference is full f32.
    np.testing.assert_allclose(np.asarray(out), np.asarray(ref),
                               rtol=2e-2, atol=2e-2)
    print("KERNEL_OK")
</pallas_src>

<mosaic_0001>
module attributes {stable_mosaic.version = 11 : i64} {
  func.func @nerf_kernel(%arg0: i32, %arg1: memref<512x8xf32, #tpu.memory_space<vmem>>, %arg2: memref<8x512xf32, #tpu.memory_space<vmem>>, %arg3: memref<1x256xf32, #tpu.memory_space<vmem>>, %arg4: memref<7x256x256xbf16, #tpu.memory_space<vmem>>, %arg5: memref<7x1x256xf32, #tpu.memory_space<vmem>>, %arg6: memref<256x128xbf16, #tpu.memory_space<vmem>>, %arg7: memref<1x4xf32, #tpu.memory_space<vmem>>, %arg8: memref<512x4xf32, #tpu.memory_space<vmem>>) attributes {dimension_semantics = [#tpu.dimension_semantics<parallel>], iteration_bounds = array<i64: 2>, scalar_prefetch = 0 : i64, scratch_operands = 0 : i64, tpu.core_type = #tpu.core_type<tc>, window_params = [{transform_indices = @transform_0, window_bounds = array<i64: 512, 8>}, {pipeline_mode = #tpu.pipeline_mode<synchronous>, transform_indices = @transform_1, window_bounds = array<i64: 8, 512>}, {pipeline_mode = #tpu.pipeline_mode<synchronous>, transform_indices = @transform_2, window_bounds = array<i64: 1, 256>}, {pipeline_mode = #tpu.pipeline_mode<synchronous>, transform_indices = @transform_3, window_bounds = array<i64: 7, 256, 256>}, {pipeline_mode = #tpu.pipeline_mode<synchronous>, transform_indices = @transform_4, window_bounds = array<i64: 7, 1, 256>}, {pipeline_mode = #tpu.pipeline_mode<synchronous>, transform_indices = @transform_5, window_bounds = array<i64: 256, 128>}, {pipeline_mode = #tpu.pipeline_mode<synchronous>, transform_indices = @transform_6, window_bounds = array<i64: 1, 4>}, {transform_indices = @transform_7, window_bounds = array<i64: 512, 4>}]} {
    %c0 = arith.constant 0 : index
    %c0_0 = arith.constant 0 : index
    %0 = vector.load %arg1[%c0, %c0_0] : memref<512x8xf32, #tpu.memory_space<vmem>>, vector<512x8xf32>
    %c0_1 = arith.constant 0 : index
    %c0_2 = arith.constant 0 : index
    %1 = vector.load %arg3[%c0_1, %c0_2] : memref<1x256xf32, #tpu.memory_space<vmem>>, vector<1x256xf32>
    %c0_3 = arith.constant 0 : index
    %c0_4 = arith.constant 0 : index
    %2 = vector.load %arg2[%c0_3, %c0_4] : memref<8x512xf32, #tpu.memory_space<vmem>>, vector<8x512xf32>
    %3 = vector.extract_strided_slice %2 {offsets = [0, 0], sizes = [8, 256], strides = [1, 1]} : vector<8x512xf32> to vector<8x256xf32>
    %4 = vector.extract_strided_slice %2 {offsets = [0, 256], sizes = [8, 256], strides = [1, 1]} : vector<8x512xf32> to vector<8x256xf32>
    %5 = vector.extract_strided_slice %0 {offsets = [0, 0], sizes = [512, 1], strides = [1, 1]} : vector<512x8xf32> to vector<512x1xf32>
    %6 = vector.shape_cast %5 : vector<512x1xf32> to vector<512x1xf32>
    %7 = vector.broadcast %6 : vector<512x1xf32> to vector<512x256xf32>
    %8 = vector.extract_strided_slice %0 {offsets = [0, 1], sizes = [512, 1], strides = [1, 1]} : vector<512x8xf32> to vector<512x1xf32>
    %9 = vector.shape_cast %8 : vector<512x1xf32> to vector<512x1xf32>
    %10 = vector.broadcast %9 : vector<512x1xf32> to vector<512x256xf32>
    %11 = vector.extract_strided_slice %0 {offsets = [0, 2], sizes = [512, 1], strides = [1, 1]} : vector<512x8xf32> to vector<512x1xf32>
    %12 = vector.shape_cast %11 : vector<512x1xf32> to vector<512x1xf32>
    %13 = vector.broadcast %12 : vector<512x1xf32> to vector<512x256xf32>
    %14 = vector.extract_strided_slice %3 {offsets = [0, 0], sizes = [1, 256], strides = [1, 1]} : vector<8x256xf32> to vector<1x256xf32>
    %15 = vector.broadcast %14 : vector<1x256xf32> to vector<512x256xf32>
    %16 = arith.mulf %7, %15 : vector<512x256xf32>
    %17 = vector.extract_strided_slice %3 {offsets = [1, 0], sizes = [1, 256], strides = [1, 1]} : vector<8x256xf32> to vector<1x256xf32>
    %18 = vector.broadcast %17 : vector<1x256xf32> to vector<512x256xf32>
    %19 = arith.mulf %10, %18 : vector<512x256xf32>
    %20 = arith.addf %16, %19 : vector<512x256xf32>
    %21 = vector.extract_strided_slice %3 {offsets = [2, 0], sizes = [1, 256], strides = [1, 1]} : vector<8x256xf32> to vector<1x256xf32>
    %22 = vector.broadcast %21 : vector<1x256xf32> to vector<512x256xf32>
    %23 = arith.mulf %13, %22 : vector<512x256xf32>
    %24 = arith.addf %20, %23 : vector<512x256xf32>
    %25 = vector.broadcast %1 : vector<1x256xf32> to vector<512x256xf32>
    %26 = arith.addf %24, %25 : vector<512x256xf32>
    %27 = vector.extract_strided_slice %4 {offsets = [0, 0], sizes = [1, 256], strides = [1, 1]} : vector<8x256xf32> to vector<1x256xf32>
    %28 = vector.broadcast %27 : vector<1x256xf32> to vector<512x256xf32>
    %29 = arith.mulf %7, %28 : vector<512x256xf32>
    %30 = vector.extract_strided_slice %4 {offsets = [1, 0], sizes = [1, 256], strides = [1, 1]} : vector<8x256xf32> to vector<1x256xf32>
    %31 = vector.broadcast %30 : vector<1x256xf32> to vector<512x256xf32>
    %32 = arith.mulf %10, %31 : vector<512x256xf32>
    %33 = arith.addf %29, %32 : vector<512x256xf32>
    %34 = vector.extract_strided_slice %4 {offsets = [2, 0], sizes = [1, 256], strides = [1, 1]} : vector<8x256xf32> to vector<1x256xf32>
    %35 = vector.broadcast %34 : vector<1x256xf32> to vector<512x256xf32>
    %36 = arith.mulf %13, %35 : vector<512x256xf32>
    %37 = arith.addf %33, %36 : vector<512x256xf32>
    %cst = arith.constant 0.000000e+00 : f32
    %38 = vector.broadcast %cst : f32 to vector<512x256xf32>
    %39 = arith.maximumf %26, %38 : vector<512x256xf32>
    %40 = arith.truncf %39 : vector<512x256xf32> to vector<512x256xbf16>
    %c0_5 = arith.constant 0 : index
    %c0_6 = arith.constant 0 : index
    %c0_7 = arith.constant 0 : index
    %41 = vector.load %arg4[%c0_5, %c0_6, %c0_7] : memref<7x256x256xbf16, #tpu.memory_space<vmem>>, vector<1x256x256xbf16>
    %42 = vector.shape_cast %41 : vector<1x256x256xbf16> to vector<256x256xbf16>
    %c0_8 = arith.constant 0 : index
    %c0_9 = arith.constant 0 : index
    %c0_10 = arith.constant 0 : index
    %43 = vector.load %arg5[%c0_8, %c0_9, %c0_10] : memref<7x1x256xf32, #tpu.memory_space<vmem>>, vector<1x1x256xf32>
    %44 = vector.shape_cast %43 : vector<1x1x256xf32> to vector<1x256xf32>
    %cst_11 = arith.constant dense<0.000000e+00> : vector<512x256xf32>
    %45 = tpu.matmul %40, %42, %cst_11 {dimension_numbers = #tpu.dot_dimension_numbers<[1], [0], [0], [1], [0, 0, 1, 1], [], []>} : vector<512x256xbf16>, vector<256x256xbf16>, vector<512x256xf32> -> vector<512x256xf32>
    %46 = vector.broadcast %44 : vector<1x256xf32> to vector<512x256xf32>
    %47 = arith.addf %45, %46 : vector<512x256xf32>
    %cst_12 = arith.constant 0.000000e+00 : f32
    %48 = vector.broadcast %cst_12 : f32 to vector<512x256xf32>
    %49 = arith.maximumf %47, %48 : vector<512x256xf32>
    %50 = arith.truncf %49 : vector<512x256xf32> to vector<512x256xbf16>
    %c1 = arith.constant 1 : index
    %c0_13 = arith.constant 0 : index
    %c0_14 = arith.constant 0 : index
    %51 = vector.load %arg4[%c1, %c0_13, %c0_14] : memref<7x256x256xbf16, #tpu.memory_space<vmem>>, vector<1x256x256xbf16>
    %52 = vector.shape_cast %51 : vector<1x256x256xbf16> to vector<256x256xbf16>
    %c1_15 = arith.constant 1 : index
    %c0_16 = arith.constant 0 : index
    %c0_17 = arith.constant 0 : index
    %53 = vector.load %arg5[%c1_15, %c0_16, %c0_17] : memref<7x1x256xf32, #tpu.memory_space<vmem>>, vector<1x1x256xf32>
    %54 = vector.shape_cast %53 : vector<1x1x256xf32> to vector<1x256xf32>
    %cst_18 = arith.constant dense<0.000000e+00> : vector<512x256xf32>
    %55 = tpu.matmul %50, %52, %cst_18 {dimension_numbers = #tpu.dot_dimension_numbers<[1], [0], [0], [1], [0, 0, 1, 1], [], []>} : vector<512x256xbf16>, vector<256x256xbf16>, vector<512x256xf32> -> vector<512x256xf32>
    %56 = vector.broadcast %54 : vector<1x256xf32> to vector<512x256xf32>
    %57 = arith.addf %55, %56 : vector<512x256xf32>
    %cst_19 = arith.constant 0.000000e+00 : f32
    %58 = vector.broadcast %cst_19 : f32 to vector<512x256xf32>
    %59 = arith.maximumf %57, %58 : vector<512x256xf32>
    %60 = arith.truncf %59 : vector<512x256xf32> to vector<512x256xbf16>
    %c2 = arith.constant 2 : index
    %c0_20 = arith.constant 0 : index
    %c0_21 = arith.constant 0 : index
    %61 = vector.load %arg4[%c2, %c0_20, %c0_21] : memref<7x256x256xbf16, #tpu.memory_space<vmem>>, vector<1x256x256xbf16>
    %62 = vector.shape_cast %61 : vector<1x256x256xbf16> to vector<256x256xbf16>
    %c2_22 = arith.constant 2 : index
    %c0_23 = arith.constant 0 : index
    %c0_24 = arith.constant 0 : index
    %63 = vector.load %arg5[%c2_22, %c0_23, %c0_24] : memref<7x1x256xf32, #tpu.memory_space<vmem>>, vector<1x1x256xf32>
    %64 = vector.shape_cast %63 : vector<1x1x256xf32> to vector<1x256xf32>
    %cst_25 = arith.constant dense<0.000000e+00> : vector<512x256xf32>
    %65 = tpu.matmul %60, %62, %cst_25 {dimension_numbers = #tpu.dot_dimension_numbers<[1], [0], [0], [1], [0, 0, 1, 1], [], []>} : vector<512x256xbf16>, vector<256x256xbf16>, vector<512x256xf32> -> vector<512x256xf32>
    %66 = vector.broadcast %64 : vector<1x256xf32> to vector<512x256xf32>
    %67 = arith.addf %65, %66 : vector<512x256xf32>
    %cst_26 = arith.constant 0.000000e+00 : f32
    %68 = vector.broadcast %cst_26 : f32 to vector<512x256xf32>
    %69 = arith.maximumf %67, %68 : vector<512x256xf32>
    %70 = arith.truncf %69 : vector<512x256xf32> to vector<512x256xbf16>
    %c3 = arith.constant 3 : index
    %c0_27 = arith.constant 0 : index
    %c0_28 = arith.constant 0 : index
    %71 = vector.load %arg4[%c3, %c0_27, %c0_28] : memref<7x256x256xbf16, #tpu.memory_space<vmem>>, vector<1x256x256xbf16>
    %72 = vector.shape_cast %71 : vector<1x256x256xbf16> to vector<256x256xbf16>
    %c3_29 = arith.constant 3 : index
    %c0_30 = arith.constant 0 : index
    %c0_31 = arith.constant 0 : index
    %73 = vector.load %arg5[%c3_29, %c0_30, %c0_31] : memref<7x1x256xf32, #tpu.memory_space<vmem>>, vector<1x1x256xf32>
    %74 = vector.shape_cast %73 : vector<1x1x256xf32> to vector<1x256xf32>
    %cst_32 = arith.constant dense<0.000000e+00> : vector<512x256xf32>
    %75 = tpu.matmul %70, %72, %cst_32 {dimension_numbers = #tpu.dot_dimension_numbers<[1], [0], [0], [1], [0, 0, 1, 1], [], []>} : vector<512x256xbf16>, vector<256x256xbf16>, vector<512x256xf32> -> vector<512x256xf32>
    %76 = vector.broadcast %74 : vector<1x256xf32> to vector<512x256xf32>
    %77 = arith.addf %75, %76 : vector<512x256xf32>
    %cst_33 = arith.constant 0.000000e+00 : f32
    %78 = vector.broadcast %cst_33 : f32 to vector<512x256xf32>
    %79 = arith.maximumf %77, %78 : vector<512x256xf32>
    %80 = arith.truncf %79 : vector<512x256xf32> to vector<512x256xbf16>
    %c4 = arith.constant 4 : index
    %c0_34 = arith.constant 0 : index
    %c0_35 = arith.constant 0 : index
    %81 = vector.load %arg4[%c4, %c0_34, %c0_35] : memref<7x256x256xbf16, #tpu.memory_space<vmem>>, vector<1x256x256xbf16>
    %82 = vector.shape_cast %81 : vector<1x256x256xbf16> to vector<256x256xbf16>
    %c4_36 = arith.constant 4 : index
    %c0_37 = arith.constant 0 : index
    %c0_38 = arith.constant 0 : index
    %83 = vector.load %arg5[%c4_36, %c0_37, %c0_38] : memref<7x1x256xf32, #tpu.memory_space<vmem>>, vector<1x1x256xf32>
    %84 = vector.shape_cast %83 : vector<1x1x256xf32> to vector<1x256xf32>
    %cst_39 = arith.constant dense<0.000000e+00> : vector<512x256xf32>
    %85 = tpu.matmul %80, %82, %cst_39 {dimension_numbers = #tpu.dot_dimension_numbers<[1], [0], [0], [1], [0, 0, 1, 1], [], []>} : vector<512x256xbf16>, vector<256x256xbf16>, vector<512x256xf32> -> vector<512x256xf32>
    %86 = vector.broadcast %84 : vector<1x256xf32> to vector<512x256xf32>
    %87 = arith.addf %85, %86 : vector<512x256xf32>
    %88 = arith.addf %87, %37 : vector<512x256xf32>
    %cst_40 = arith.constant 0.000000e+00 : f32
    %89 = vector.broadcast %cst_40 : f32 to vector<512x256xf32>
    %90 = arith.maximumf %88, %89 : vector<512x256xf32>
    %91 = arith.truncf %90 : vector<512x256xf32> to vector<512x256xbf16>
    %c5 = arith.constant 5 : index
    %c0_41 = arith.constant 0 : index
    %c0_42 = arith.constant 0 : index
    %92 = vector.load %arg4[%c5, %c0_41, %c0_42] : memref<7x256x256xbf16, #tpu.memory_space<vmem>>, vector<1x256x256xbf16>
    %93 = vector.shape_cast %92 : vector<1x256x256xbf16> to vector<256x256xbf16>
    %c5_43 = arith.constant 5 : index
    %c0_44 = arith.constant 0 : index
    %c0_45 = arith.constant 0 : index
    %94 = vector.load %arg5[%c5_43, %c0_44, %c0_45] : memref<7x1x256xf32, #tpu.memory_space<vmem>>, vector<1x1x256xf32>
    %95 = vector.shape_cast %94 : vector<1x1x256xf32> to vector<1x256xf32>
    %cst_46 = arith.constant dense<0.000000e+00> : vector<512x256xf32>
    %96 = tpu.matmul %91, %93, %cst_46 {dimension_numbers = #tpu.dot_dimension_numbers<[1], [0], [0], [1], [0, 0, 1, 1], [], []>} : vector<512x256xbf16>, vector<256x256xbf16>, vector<512x256xf32> -> vector<512x256xf32>
    %97 = vector.broadcast %95 : vector<1x256xf32> to vector<512x256xf32>
    %98 = arith.addf %96, %97 : vector<512x256xf32>
    %cst_47 = arith.constant 0.000000e+00 : f32
    %99 = vector.broadcast %cst_47 : f32 to vector<512x256xf32>
    %100 = arith.maximumf %98, %99 : vector<512x256xf32>
    %101 = arith.truncf %100 : vector<512x256xf32> to vector<512x256xbf16>
    %c6 = arith.constant 6 : index
    %c0_48 = arith.constant 0 : index
    %c0_49 = arith.constant 0 : index
    %102 = vector.load %arg4[%c6, %c0_48, %c0_49] : memref<7x256x256xbf16, #tpu.memory_space<vmem>>, vector<1x256x256xbf16>
    %103 = vector.shape_cast %102 : vector<1x256x256xbf16> to vector<256x256xbf16>
    %c6_50 = arith.constant 6 : index
    %c0_51 = arith.constant 0 : index
    %c0_52 = arith.constant 0 : index
    %104 = vector.load %arg5[%c6_50, %c0_51, %c0_52] : memref<7x1x256xf32, #tpu.memory_space<vmem>>, vector<1x1x256xf32>
    %105 = vector.shape_cast %104 : vector<1x1x256xf32> to vector<1x256xf32>
    %cst_53 = arith.constant dense<0.000000e+00> : vector<512x256xf32>
    %106 = tpu.matmul %101, %103, %cst_53 {dimension_numbers = #tpu.dot_dimension_numbers<[1], [0], [0], [1], [0, 0, 1, 1], [], []>} : vector<512x256xbf16>, vector<256x256xbf16>, vector<512x256xf32> -> vector<512x256xf32>
    %107 = vector.broadcast %105 : vector<1x256xf32> to vector<512x256xf32>
    %108 = arith.addf %106, %107 : vector<512x256xf32>
    %cst_54 = arith.constant 0.000000e+00 : f32
    %109 = vector.broadcast %cst_54 : f32 to vector<512x256xf32>
    %110 = arith.maximumf %108, %109 : vector<512x256xf32>
    %111 = arith.truncf %110 : vector<512x256xf32> to vector<512x256xbf16>
    %c0_55 = arith.constant 0 : index
    %c0_56 = arith.constant 0 : index
    %112 = vector.load %arg6[%c0_55, %c0_56] : memref<256x128xbf16, #tpu.memory_space<vmem>>, vector<256x128xbf16>
    %cst_57 = arith.constant dense<0.000000e+00> : vector<512x128xf32>
    %113 = tpu.matmul %111, %112, %cst_57 {dimension_numbers = #tpu.dot_dimension_numbers<[1], [0], [0], [1], [0, 0, 1, 1], [], []>} : vector<512x256xbf16>, vector<256x128xbf16>, vector<512x128xf32> -> vector<512x128xf32>
    %114 = vector.extract_strided_slice %113 {offsets = [0, 0], sizes = [512, 4], strides = [1, 1]} : vector<512x128xf32> to vector<512x4xf32>
    %c0_58 = arith.constant 0 : index
    %c0_59 = arith.constant 0 : index
    %115 = vector.load %arg7[%c0_58, %c0_59] : memref<1x4xf32, #tpu.memory_space<vmem>>, vector<1x4xf32>
    %116 = vector.broadcast %115 : vector<1x4xf32> to vector<512x4xf32>
    %117 = arith.addf %114, %116 : vector<512x4xf32>
    %c0_60 = arith.constant 0 : index
    %c0_61 = arith.constant 0 : index
    %118 = vector.load %arg8[%c0_60, %c0_61] : memref<512x4xf32, #tpu.memory_space<vmem>>, vector<512x4xf32>
    tpu.vector_store %arg8[%c0_60, %c0_61], %117 {strides = array<i32>} : memref<512x4xf32, #tpu.memory_space<vmem>>, vector<512x4xf32>,
    return
  }
  func.func @transform_0(%arg0: i32) -> (i32, i32) {
    %c0_i32 = arith.constant 0 : i32
    %c0_i32_0 = arith.constant 0 : i32
    return %arg0, %c0_i32 : i32, i32
  }
  func.func @transform_1(%arg0: i32) -> (i32, i32) {
    %c0_i32 = arith.constant 0 : i32
    %c0_i32_0 = arith.constant 0 : i32
    %c0_i32_1 = arith.constant 0 : i32
    return %c0_i32, %c0_i32_0 : i32, i32
  }
  func.func @transform_2(%arg0: i32) -> (i32, i32) {
    %c0_i32 = arith.constant 0 : i32
    %c0_i32_0 = arith.constant 0 : i32
    %c0_i32_1 = arith.constant 0 : i32
    return %c0_i32, %c0_i32_0 : i32, i32
  }
  func.func @transform_3(%arg0: i32) -> (i32, i32, i32) {
    %c0_i32 = arith.constant 0 : i32
    %c0_i32_0 = arith.constant 0 : i32
    %c0_i32_1 = arith.constant 0 : i32
    %c0_i32_2 = arith.constant 0 : i32
    return %c0_i32, %c0_i32_0, %c0_i32_1 : i32, i32, i32
  }
  func.func @transform_4(%arg0: i32) -> (i32, i32, i32) {
    %c0_i32 = arith.constant 0 : i32
    %c0_i32_0 = arith.constant 0 : i32
    %c0_i32_1 = arith.constant 0 : i32
    %c0_i32_2 = arith.constant 0 : i32
    return %c0_i32, %c0_i32_0, %c0_i32_1 : i32, i32, i32
  }
  func.func @transform_5(%arg0: i32) -> (i32, i32) {
    %c0_i32 = arith.constant 0 : i32
    %c0_i32_0 = arith.constant 0 : i32
    %c0_i32_1 = arith.constant 0 : i32
    return %c0_i32, %c0_i32_0 : i32, i32
  }
  func.func @transform_6(%arg0: i32) -> (i32, i32) {
    %c0_i32 = arith.constant 0 : i32
    %c0_i32_0 = arith.constant 0 : i32
    %c0_i32_1 = arith.constant 0 : i32
    return %c0_i32, %c0_i32_0 : i32, i32
  }
  func.func @transform_7(%arg0: i32) -> (i32, i32) {
    %c0_i32 = arith.constant 0 : i32
    %c0_i32_0 = arith.constant 0 : i32
    return %arg0, %c0_i32 : i32, i32
  }
}

</mosaic_0001>

<bundles_post_ra>
// kernel: _nerf_forward.1
= control target key start
LH: loop header
LB: loop body
LE: loop exit
PB: predicated region body
PF: predicated region fallthrough
CT: control target
= control target key end

     0   :  { %s9817_s24 = smov 0   ;;  %s14421_s0 = inlined_call_operand.vmem [shape: f32[1024,8], index: 0, kind: input, shape index: {}]   ;;  %s14422_s1 = inlined_call_operand.vmem [shape: f32[8,512], index: 1, kind: input, shape index: {}]   ;;  %s14423_s2 = inlined_call_operand.vmem [shape: f32[1,256], index: 2, kind: input, shape index: {}]   ;;  %s14424_s3 = inlined_call_operand.vmem [shape: bf16[7,256,256], index: 3, kind: input, shape index: {}]   ;;  %s14425_s4 = inlined_call_operand.vmem [shape: f32[7,1,256], index: 4, kind: input, shape index: {}]   ;;  %s14426_s5 = inlined_call_operand.vmem [shape: bf16[256,128], index: 5, kind: input, shape index: {}]   ;;  %s14427_s6 = inlined_call_operand.vmem [shape: f32[1,4], index: 6, kind: input, shape index: {}]   ;;  %s14428_s7 = inlined_call_operand.vmem [shape: f32[1024,4], index: 7, kind: output, shape index: {}]  }
   0x1 LB: > { %s8835_s25 = sadd.s32 4294967295, %s9772_s24   ;;  %p8839_p0 = scmp.ge.s32.totalorder %s9772_s24, 1  ;;  %s9772_s24 = sphi %s9817_s24, %s17_s24  }
   0x2   : > { %p238_p1 = scmp.lt.s32.totalorder %s9772_s24, 3 }
   0x4   : > { %p239_p2 = pnand %p8839_p0, %p238_p1 }
   0x6   : > { %242 = sbr.rel (%p239_p2) target bundleno = 2531 (0x9e3), region = 48 }
   0xd   : > { %s8840_s26 = sshll.u32 %s8835_s25, 6  ;;  %v14429_v0 = vmov 2   ;;  %v14431_v1 = vmov 1   ;;  %v9400_v2 = vld [vmem:[%s14424_s3 + $0x4] ss:$8 sps:$4 sm:$0xff]   ;;  %v14433_v20 = vmov 0  }
   0xe   : > { %9297 = vset.pattern.permute.xlu0 %v14429_v0  ;;  %9296 = vset.pattern.permute.xlu1 %v14431_v1  ;;  %p271_p3 = scmp.lt.s32.totalorder %s8840_s26, 127  ;;  %v9402_v3 = vld [vmem:[%s14424_s3] ss:$8 sps:$4 sm:$0xff]   ;;  %v9403_v4 = vld [vmem:[%s14424_s3 + $0x14] ss:$8 sps:$4 sm:$0xff]   ;;  %vm8714_vm0 = vcmask 31744  }
   0xf   : > { %3047 = vmatprep.subr.bf16.mxu0 %v9400_v2  ;;  %v9405_v5 = vld [vmem:[%s14424_s3 + $0x10] ss:$8 sps:$4 sm:$0xff]   ;;  %v9406_v6 = vld [vmem:[%s14424_s3 + $0x24] ss:$8 sps:$4 sm:$0xff]   ;;  %v9408_v10 = vld [vmem:[%s14424_s3 + $0x20] ss:$8 sps:$4 sm:$0xff]  }
  0x10   : > { %s15062_s26 = smov (!%p271_p3, %s8840_s26), 127  ;;  %3048 = vmatpush1.bf16.msra.mxu0 %v9402_v3  ;;  %v9409_v11 = vld [vmem:[%s14424_s3 + $0x34] ss:$8 sps:$4 sm:$0xff]   ;;  %v9411_v13 = vld [vmem:[%s14424_s3 + $0x30] ss:$8 sps:$4 sm:$0xff]  }
  0x11   : > { %s8841_s10 = sshll.u32 %s15062_s26, 3  ;;  %3049 = vmatprep.subr.bf16.mxu0 %v9403_v4  ;;  %v9412_v14 = vld [vmem:[%s14424_s3 + $0x44] ss:$8 sps:$4 sm:$0xff]   ;;  %v9414_v16 = vld [vmem:[%s14424_s3 + $0x40] ss:$8 sps:$4 sm:$0xff]  }
  0x12   : > { %s9847_s15 = scalar_lea.vmem %s14421_s0, %s8841_s10  ;;  %v9415_v17 = vld [vmem:[%s14424_s3 + $0x54] ss:$8 sps:$4 sm:$0xff]   ;;  %v9417_v19 = vld [vmem:[%s14424_s3 + $0x50] ss:$8 sps:$4 sm:$0xff]   ;;  %v9418_v21 = vld [vmem:[%s14424_s3 + $0x64] ss:$8 sps:$4 sm:$0xff]   ;;  %s14176_s25 = scalar_lea.vmem %s14428_s7, %s8841_s10 }
  0x13   : > { %v283_v7 = vld [vmem:[%s9847_s15] sm:$0xff]  ;;  %v285_v8 = vld [vmem:[%s9847_s15 + $0x10] sm:$0xff]  ;;  %v284_v9 = vld [vmem:[%s9847_s15 + $0x8] sm:$0xff] }
  0x14   : > { %929 = vperm.xlu0 %9297, %v283_v7   ;;  %673 = vperm.xlu1 %9296, %v283_v7   ;;  %v287_v12 = vld [vmem:[%s9847_s15 + $0x20] sm:$0xff]  ;;  %v9870_v15 = vld [vmem:[%s9847_s15 + $0x30] sm:$0xff]  ;;  %v286_v24 = vld [vmem:[%s9847_s15 + $0x18] sm:$0xff] }
  0x15   : > { %3050 = vmatpush1.bf16.msra.mxu0 %v9405_v5  ;;  %v9879_v18 = vld [vmem:[%s9847_s15 + $0x40] sm:$0xff]  ;;  %v9891_v22 = vld [vmem:[%s9847_s15 + $0x50] sm:$0xff]  ;;  %v288_v35 = vld [vmem:[%s9847_s15 + $0x28] sm:$0xff] }
  0x16   : > { %3051 = vmatprep.subr.bf16.mxu0 %v9406_v6  ;;  %v9420_v23 = vld [vmem:[%s14424_s3 + $0x60] ss:$8 sps:$4 sm:$0xff]   ;;  %v9421_v25 = vld [vmem:[%s14424_s3 + $0x74] ss:$8 sps:$4 sm:$0xff]   ;;  %v9423_v27 = vld [vmem:[%s14424_s3 + $0x70] ss:$8 sps:$4 sm:$0xff]  }
  0x17   : > { %v9903_v26 = vld [vmem:[%s9847_s15 + $0x60] sm:$0xff]  ;;  %v9427_v30 = vld [vmem:[%s14424_s3 + $0x94] ss:$8 sps:$4 sm:$0xff]   ;;  %v9429_v31 = vld [vmem:[%s14424_s3 + $0x90] ss:$8 sps:$4 sm:$0xff]  }
  0x18   : > { %937 = vperm.xlu0 %9297, %v285_v8   ;;  %677 = vperm.xlu1 %9296, %v284_v9   ;;  %v9424_v28 = vld [vmem:[%s14424_s3 + $0x84] ss:$8 sps:$4 sm:$0xff]   ;;  %v9426_v29 = vld [vmem:[%s14424_s3 + $0x80] ss:$8 sps:$4 sm:$0xff]   ;;  %v9433_v34 = vld [vmem:[%s14424_s3 + $0xb4] ss:$8 sps:$4 sm:$0xff]  }
  0x19   : > { %3052 = vmatpush1.bf16.msra.mxu0 %v9408_v10  ;;  %v9430_v32 = vld [vmem:[%s14424_s3 + $0xa4] ss:$8 sps:$4 sm:$0xff]   ;;  %v9432_v33 = vld [vmem:[%s14424_s3 + $0xa0] ss:$8 sps:$4 sm:$0xff]   ;;  %v9435_v36 = vld [vmem:[%s14424_s3 + $0xb0] ss:$8 sps:$4 sm:$0xff]  }
  0x1a   : > { %3053 = vmatprep.subr.bf16.mxu0 %v9409_v11  ;;  %v9436_v37 = vld [vmem:[%s14424_s3 + $0xc4] ss:$8 sps:$4 sm:$0xff]   ;;  %v290_v38 = vld [vmem:[%s9847_s15 + $0x38] sm:$0xff]  ;;  %v9438_v39 = vld [vmem:[%s14424_s3 + $0xc0] ss:$8 sps:$4 sm:$0xff]  }
  0x1b   : > { %v9439_v40 = vld [vmem:[%s14424_s3 + $0xd4] ss:$8 sps:$4 sm:$0xff]   ;;  %v292_v41 = vld [vmem:[%s9847_s15 + $0x48] sm:$0xff]  ;;  %v9441_v42 = vld [vmem:[%s14424_s3 + $0xd0] ss:$8 sps:$4 sm:$0xff]  }
  0x1c   : > { %945 = vperm.xlu0 %9297, %v287_v12   ;;  %9298 = vset.pattern.permute.xlu1 %v14429_v0  ;;  %v9442_v43 = vld [vmem:[%s14424_s3 + $0xe4] ss:$8 sps:$4 sm:$0xff]   ;;  %v294_v44 = vld [vmem:[%s9847_s15 + $0x58] sm:$0xff]  ;;  %v9444_v45 = vld [vmem:[%s14424_s3 + $0xe0] ss:$8 sps:$4 sm:$0xff]  }
  0x1d   : > { %933 = vperm.xlu1 %9298, %v284_v9   ;;  %3054 = vmatpush1.bf16.msra.mxu0 %v9411_v13  ;;  %v9445_v46 = vld [vmem:[%s14424_s3 + $0xf4] ss:$8 sps:$4 sm:$0xff]   ;;  %v296_v47 = vld [vmem:[%s9847_s15 + $0x68] sm:$0xff]  ;;  %v9447_v48 = vld [vmem:[%s14424_s3 + $0xf0] ss:$8 sps:$4 sm:$0xff]   ;;  %v1184_v13 = vlaneseq }
  0x1e   : > { %3055 = vmatprep.subr.bf16.mxu0 %v9412_v14  ;;  %v9972_v49 = vld [vmem:[%s9847_s15 + $0x78] sm:$0xff]  ;;  %v9975_v50 = vld [vmem:[%s9847_s15 + $0x88] sm:$0xff]  ;;  %v297_v56 = vld [vmem:[%s9847_s15 + $0x70] sm:$0xff] }
  0x1f   : > { %v9979_v51 = vld [vmem:[%s9847_s15 + $0x98] sm:$0xff]  ;;  %v9984_v52 = vld [vmem:[%s9847_s15 + $0xa8] sm:$0xff]  ;;  %v10010_v57 = vld [vmem:[%s9847_s15 + $0x80] sm:$0xff] }
  0x20   : > { %953 = vperm.xlu0 %9297, %v9870_v15   ;;  %v9990_v53 = vld [vmem:[%s9847_s15 + $0xb8] sm:$0xff]  ;;  %v9996_v54 = vld [vmem:[%s9847_s15 + $0xc8] sm:$0xff]  ;;  %v10016_v58 = vld [vmem:[%s9847_s15 + $0x90] sm:$0xff] }
  0x21   : > { %9299 = vset.pattern.permute.xlu1 %v14433_v20  ;;  %3056 = vmatpush1.bf16.msra.mxu0 %v9414_v16  ;;  %v10000_v55 = vld [vmem:[%s9847_s15 + $0xd8] sm:$0xff]  ;;  %v10020_v59 = vld [vmem:[%s9847_s15 + $0xa0] sm:$0xff]  ;;  %v10025_v60 = vld [vmem:[%s9847_s15 + $0xb0] sm:$0xff] }
  0x22   : > { %364 = vperm.xlu1 %9299, %v285_v8   ;;  %3057 = vmatprep.subr.bf16.mxu0 %v9415_v17  ;;  %v10031_v61 = vld [vmem:[%s9847_s15 + $0xc0] sm:$0xff]  ;;  %v10037_v62 = vld [vmem:[%s9847_s15 + $0xd0] sm:$0xff]  ;;  %v1185_v17 = vshrl.u32 %v1184_v13, 7 }
  0x23   : > { %v10041_v63 = vld [vmem:[%s9847_s15 + $0xe0] sm:$0xff]  ;;  %v10046_v2 = vld [vmem:[%s9847_s15 + $0xf0] sm:$0xff] }
  0x24   : > { %961 = vperm.xlu0 %9297, %v9879_v18   ;;  %v315_v5 = vld [vmem:[%s9847_s15 + $0x100] sm:$0xff] }
  0x25   : > { %3058 = vmatpush1.bf16.msra.mxu0 %v9417_v19  ;;  %v319_v11 = vld [vmem:[%s9847_s15 + $0x120] sm:$0xff] }
  0x26   : > { %9300 = vset.pattern.permute.xlu1 %v14431_v1  ;;  %3059 = vmatprep.subr.bf16.mxu0 %v9418_v21  ;;  %v10086_v21 = vsub.s32 1, %v1185_v17 }
  0x27   : > { %681 = vperm.xlu1 %9300, %v285_v8   ;;  %v317_v8 = vld [vmem:[%s9847_s15 + $0x110] sm:$0xff] }
  0x28   : > { %969 = vperm.xlu0 %9297, %v9891_v22   ;;  %14687 = vst [vmem:[#allocation13_spill] sm:$0xff] %v10086_v21 }
  0x29   : > { %3060 = vmatpush1.bf16.msra.mxu0 %v9420_v23  ;;  %v348_v23 = vld [vmem:[%s14422_s1] sm:$0xff] }
  0x2a   : > { %3061 = vmatprep.subr.bf16.mxu0 %v9421_v25 }
  0x2b   : > { %685 = vperm.xlu1 %9300, %v286_v24  }
  0x2c   : > { %977 = vperm.xlu0 %9297, %v9903_v26  }
  0x2d   : > { %3062 = vmatpush1.bf16.msra.mxu0 %v9423_v27 }
  0x2e   : > { %3063 = vmatprep.subr.bf16.mxu0 %v9424_v28  ;;  %v10104_v28 = vrot.slane %v348_v23, %v10086_v21 }
  0x2f   : > { %9301 = vset.pattern.permute.xlu1 %v14429_v0 }
  0x30   : > { %9316 = vset.pattern.permute.xlu0 %v14433_v20  ;;  %941 = vperm.xlu1 %9301, %v286_v24  }
  0x31   : > { %354 = vperm.xlu0 %9316, %v283_v7   ;;  %3064 = vmatpush1.bf16.msra.mxu0 %v9426_v29 }
  0x32   : > { %3065 = vmatprep.subr.bf16.mxu0 %v9427_v30 }
  0x34   : > { %9302 = vset.pattern.permute.xlu1 %v14433_v20 }
  0x35   : > { %359 = vperm.xlu0 %9316, %v284_v9   ;;  %374 = vperm.xlu1 %9302, %v287_v12  }
  0x36   : > { %3066 = vmatpush1.bf16.msra.mxu0 %v9429_v31 }
  0x37   : > { %3067 = vmatprep.subr.bf16.mxu0 %v9430_v32 }
  0x39   : > { %369 = vperm.xlu0 %9316, %v286_v24   ;;  %9303 = vset.pattern.permute.xlu1 %v14431_v1  ;;  %v349_v24 = vld [vmem:[%s14422_s1 + $0x8] sm:$0xff] }
  0x3a   : > { %689 = vperm.xlu1 %9303, %v287_v12   ;;  %3068 = vmatpush1.bf16.msra.mxu0 %v9432_v33  ;;  %v10110_v30 = vrot.slane %v349_v24, %v10086_v21 }
  0x3b   : > { %3069 = vmatprep.subr.bf16.mxu0 %v9433_v34 }
  0x3d   : > { %379 = vperm.xlu0 %9316, %v288_v35  }
  0x3e   : > { %693 = vperm.xlu1 %9303, %v288_v35   ;;  %3070 = vmatpush1.bf16.msra.mxu0 %v9435_v36 }
  0x3f   : > { %3071 = vmatprep.subr.bf16.mxu0 %v9436_v37 }
  0x41   : > { %389 = vperm.xlu0 %9316, %v290_v38  }
  0x42   : > { %9304 = vset.pattern.permute.xlu1 %v14429_v0  ;;  %3072 = vmatpush1.bf16.msra.mxu0 %v9438_v39  ;;  %v347_v39 = vld [vmem:[%s14423_s2] sm:$0x3] }
  0x43   : > { %949 = vperm.xlu1 %9304, %v288_v35   ;;  %3073 = vmatprep.subr.bf16.mxu0 %v9439_v40 }
  0x45   : > { %399 = vperm.xlu0 %9316, %v292_v41  }
  0x46   : > { %3074 = vmatpush1.bf16.msra.mxu0 %v9441_v42 }
  0x47   : > { %9305 = vset.pattern.permute.xlu1 %v14433_v20  ;;  %3075 = vmatprep.subr.bf16.mxu0 %v9442_v43 }
  0x48   : > { %384 = vperm.xlu1 %9305, %v9870_v15  }
  0x49   : > { %409 = vperm.xlu0 %9316, %v294_v44  }
  0x4a   : > { %3076 = vmatpush1.bf16.msra.mxu0 %v9444_v45 }
  0x4b   : > { %3077 = vmatprep.subr.bf16.mxu0 %v9445_v46 }
  0x4c   : > { %9306 = vset.pattern.permute.xlu1 %v14431_v1 }
  0x4d   : > { %697 = vperm.xlu1 %9306, %v9870_v15   ;;  %419 = vperm.xlu0 %9316, %v296_v47   ;;  %v10075_v15 = vld [vmem:[%s9847_s15 + $0xe8] sm:$0xff] }
  0x4e   : > { %3078 = vmatpush1.bf16.msra.mxu0 %v9447_v48 }
  0x51   : > { %701 = vperm.xlu1 %9306, %v290_v38   ;;  %429 = vperm.xlu0 %9316, %v9972_v49  }
  0x55   : > { %9307 = vset.pattern.permute.xlu1 %v14429_v0  ;;  %439 = vperm.xlu0 %9316, %v9975_v50  }
  0x56   : > { %957 = vperm.xlu1 %9307, %v290_v38  }
  0x59   : > { %449 = vperm.xlu0 %9316, %v9979_v51  }
  0x5a   : > { %9308 = vset.pattern.permute.xlu1 %v14433_v20 }
  0x5b   : > { %394 = vperm.xlu1 %9308, %v9879_v18  }
  0x5d   : > { %459 = vperm.xlu0 %9316, %v9984_v52  }
  0x5f   : > { %9309 = vset.pattern.permute.xlu1 %v14431_v1 }
  0x60   : > { %705 = vperm.xlu1 %9309, %v9879_v18  }
  0x61   : > { %469 = vperm.xlu0 %9316, %v9990_v53  }
  0x64   : > { %709 = vperm.xlu1 %9309, %v292_v41  }
  0x65   : > { %479 = vperm.xlu0 %9316, %v9996_v54  }
  0x68   : > { %9310 = vset.pattern.permute.xlu1 %v14429_v0 }
  0x69   : > { %965 = vperm.xlu1 %9310, %v292_v41   ;;  %489 = vperm.xlu0 %9316, %v10000_v55  }
  0x6d   : > { %9311 = vset.pattern.permute.xlu1 %v14433_v20  ;;  %9337 = vset.pattern.permute.xlu0 %v14429_v0 }
  0x6e   : > { %404 = vperm.xlu1 %9311, %v9891_v22   ;;  %985 = vperm.xlu0 %9337, %v297_v56  }
  0x72   : > { %9312 = vset.pattern.permute.xlu1 %v14431_v1  ;;  %993 = vperm.xlu0 %9337, %v10010_v57  }
  0x73   : > { %713 = vperm.xlu1 %9312, %v9891_v22   ;;  %v10088_v22 = vsub.s32 0, %v1185_v17 }
  0x75   : > { %14688 = vst [vmem:[#allocation14_spill] sm:$0xff] %v10088_v22  ;;  %v10107_v29 = vrot.slane %v349_v24, %v10088_v22  ;;  %v10119_v33 = vrot.slane %v348_v23, %v10088_v22 }
  0x76   : > { %1001 = vperm.xlu0 %9337, %v10016_v58  }
  0x77   : > { %717 = vperm.xlu1 %9312, %v294_v44  }
  0x7a   : > { %1009 = vperm.xlu0 %9337, %v10020_v59  }
  0x7b   : > { %9313 = vset.pattern.permute.xlu1 %v14429_v0 }
  0x7c   : > { %973 = vperm.xlu1 %9313, %v294_v44  }
  0x7e   : > { %1017 = vperm.xlu0 %9337, %v10025_v60  }
  0x80   : > { %9314 = vset.pattern.permute.xlu1 %v14433_v20 }
  0x81   : > { %414 = vperm.xlu1 %9314, %v9903_v26  }
  0x82   : > { %1025 = vperm.xlu0 %9337, %v10031_v61  }
  0x85   : > { %9315 = vset.pattern.permute.xlu1 %v14431_v1 }
  0x86   : > { %721 = vperm.xlu1 %9315, %v9903_v26   ;;  %1033 = vperm.xlu0 %9337, %v10037_v62   ;;  %v10098_v26 = vsub.s32 2, %v1185_v17  ;;  %v10165_v17 = vrot.slane %v347_v39, %v10086_v21 }
  0x88   : > { %v10116_v32 = vrot.slane %v348_v23, %v10098_v26  ;;  %v10126_v36 = vrot.slane %v349_v24, %v10098_v26 }
  0x8a   : > { %725 = vperm.xlu1 %9315, %v296_v47   ;;  %1041 = vperm.xlu0 %9337, %v10041_v63  }
  0x8e   : > { %9317 = vset.pattern.permute.xlu1 %v14429_v0  ;;  %1049 = vperm.xlu0 %9337, %v10046_v2  }
  0x8f   : > { %981 = vperm.xlu1 %9317, %v296_v47  }
  0x92   : > { %1057 = vperm.xlu0 %9337, %v315_v5  }
  0x93   : > { %9318 = vset.pattern.permute.xlu1 %v14433_v20  ;;  %v10050_v3 = vpop.permute.xlu1 %673  ;;  %v10052_v4 = vpop.permute.xlu0 %929 }
  0x94   : > { %14676 = vst [vmem:[#allocation2_spill] sm:$0xff] %v10050_v3  ;;  %14677 = vst [vmem:[#allocation3_spill] sm:$0xff] %v10052_v4  ;;  %424 = vperm.xlu1 %9318, %v297_v56   ;;  %v1328_v35 = vmul.f32 %v10104_v28, %v10050_v3  ;;  %v1592_v40 = vmul.f32 %v10116_v32, %v10052_v4  ;;  %v1329_v43 = vmul.f32 %v10110_v30, %v10050_v3 }
  0x95   : > { %v1593_v46 = vmul.f32 %v10126_v36, %v10052_v4 }
  0x96   : > { %1065 = vperm.xlu0 %9337, %v317_v8  }
  0x97   : > { %v10055_v6 = vpop.permute.xlu1 %677  ;;  %v10057_v7 = vpop.permute.xlu0 %937 }
  0x98   : > { %14678 = vst [vmem:[#allocation4_spill] sm:$0xff] %v10055_v6  ;;  %14679 = vst [vmem:[#allocation5_spill] sm:$0xff] %v10057_v7  ;;  %9319 = vset.pattern.permute.xlu1 %v14431_v1  ;;  %v1597_v44 = vmul.f32 %v10126_v36, %v10057_v7  ;;  %v1596_v5 = vmul.f32 %v10116_v32, %v10057_v7 }
  0x99   : > { %729 = vperm.xlu1 %9319, %v297_v56  }
  0x9a   : > { %1073 = vperm.xlu0 %9337, %v319_v11  }
  0x9b   : > { %v10061_v9 = vpop.permute.xlu0 %945 }
  0x9c   : > { %14680 = vst [vmem:[#allocation6_spill] sm:$0xff] %v10061_v9  ;;  %v10063_v10 = vpop.permute.xlu1 %933  ;;  %v1601_v23 = vmul.f32 %v10126_v36, %v10061_v9 }
  0x9d   : > { %14681 = vst [vmem:[#allocation7_spill] sm:$0xff] %v10063_v10  ;;  %733 = vperm.xlu1 %9319, %v9972_v49  }
  0x9e   : > { %9354 = vset.pattern.permute.xlu0 %v14433_v20 }
  0x9f   : > { %v10067_v12 = vpop.permute.xlu0 %953  ;;  %499 = vperm.xlu0 %9354, %v10075_v15  }
  0xa0   : > { %14682 = vst [vmem:[#allocation8_spill] sm:$0xff] %v10067_v12 }
  0xa1   : > { %9320 = vset.pattern.permute.xlu1 %v14429_v0  ;;  %v10070_v14 = vpop.permute.xlu1 %364 }
  0xa2   : > { %14683 = vst [vmem:[#allocation9_spill] sm:$0xff] %v10070_v14  ;;  %989 = vperm.xlu1 %9320, %v9972_v49   ;;  %v1197_v37 = vmul.f32 %v10107_v29, %v10070_v14  ;;  %v10151_v49 = vrot.slane %v347_v39, %v10088_v22  ;;  %v1196_v8 = vmul.f32 %v10119_v33, %v10070_v14 }
  0xa3   : > { %v10077_v16 = vpop.permute.xlu0 %961 }
  0xa4   : > { %14684 = vst [vmem:[#allocation10_spill] sm:$0xff] %v10077_v16 }
  0xa6   : > { %9321 = vset.pattern.permute.xlu1 %v14433_v20  ;;  %v10081_v18 = vpop.permute.xlu1 %681 }
  0xa7   : > { %14685 = vst [vmem:[#allocation11_spill] sm:$0xff] %v10081_v18  ;;  %434 = vperm.xlu1 %9321, %v10010_v57   ;;  %v10084_v19 = vpop.permute.xlu0 %969  ;;  %v1333_v31 = vmul.f32 %v10110_v30, %v10081_v18  ;;  %v1332_v45 = vmul.f32 %v10104_v28, %v10081_v18 }
  0xa8   : > { %14686 = vst [vmem:[#allocation12_spill] sm:$0xff] %v10084_v19 }
  0xa9   : > { %v1461_v47 = vadd.f32 %v1333_v31, %v1197_v37  ;;  %v10177_v37 = vld [vmem:[%s9847_s15 + $0xf8] sm:$0xff] }
  0xaa   : > { %v10096_v25 = vpop.permute.xlu1 %685  ;;  %509 = vperm.xlu0 %9354, %v10177_v37  }
  0xab   : > { %14689 = vst [vmem:[#allocation15_spill] sm:$0xff] %v10096_v25  ;;  %9322 = vset.pattern.permute.xlu1 %v14431_v1  ;;  %v10101_v27 = vpop.permute.xlu0 %977  ;;  %v1725_v39 = vadd.f32 %v1597_v44, %v1461_v47 }
  0xac   : > { %14690 = vst [vmem:[#allocation16_spill] sm:$0xff] %v10101_v27  ;;  %737 = vperm.xlu1 %9322, %v10010_v57   ;;  %v1330_v57 = vmul.f32 %v10104_v28, %v10055_v6 }
  0xaf   : > { %v10121_v34 = vpop.permute.xlu1 %941 }
  0xb0   : > { %14691 = vst [vmem:[#allocation17_spill] sm:$0xff] %v10121_v34  ;;  %v10130_v38 = vpop.permute.xlu0 %354  ;;  %741 = vperm.xlu1 %9322, %v9975_v50  }
  0xb1   : > { %14692 = vst [vmem:[#allocation18_spill] sm:$0xff] %v10130_v38  ;;  %v1192_v41 = vmul.f32 %v10119_v33, %v10130_v38  ;;  %v1193_v42 = vmul.f32 %v10107_v29, %v10130_v38  ;;  %v1335_v38 = vmul.f32 %v10110_v30, %v10096_v25 }
  0xb3   : > { %v1457_v48 = vadd.f32 %v1329_v43, %v1193_v42  ;;  %v1456_v56 = vadd.f32 %v1328_v35, %v1192_v41  ;;  %v1331_v35 = vmul.f32 %v10110_v30, %v10055_v6  ;;  %v1460_v43 = vadd.f32 %v1332_v45, %v1196_v8 }
  0xb4   : > { %v10159_v11 = vpop.permute.xlu0 %359  ;;  %9323 = vset.pattern.permute.xlu1 %v14429_v0  ;;  %v10162_v13 = vpop.permute.xlu1 %374  ;;  %v1594_v0 = vmul.f32 %v10116_v32, %v10063_v10 }
  0xb5   : > { %14693 = vst [vmem:[#allocation19_spill] sm:$0xff] %v10159_v11  ;;  %14694 = vst [vmem:[#allocation20_spill] sm:$0xff] %v10162_v13  ;;  %v1194_v24 = vmul.f32 %v10119_v33, %v10159_v11  ;;  %997 = vperm.xlu1 %9323, %v9975_v50   ;;  %v1195_v31 = vmul.f32 %v10107_v29, %v10159_v11  ;;  %v1721_v41 = vadd.f32 %v1593_v46, %v1457_v48  ;;  %v14696_v48 = vmov 0  }
  0xb6   : > { %v1720_v42 = vadd.f32 %v1592_v40, %v1456_v56  ;;  %v1595_v50 = vmul.f32 %v10126_v36, %v10063_v10  ;;  %v1334_v11 = vmul.f32 %v10104_v28, %v10096_v25 }
  0xb7   : > { %v1459_v1 = vadd.f32 %v1331_v35, %v1195_v31  ;;  %v1458_v20 = vadd.f32 %v1330_v57, %v1194_v24  ;;  %v1860_v40 = vadd.f32 %v10165_v17, %v1721_v41  ;;  %v1201_v24 = vmul.f32 %v10107_v29, %v10162_v13 }
  0xb8   : > { %v10188_v46 = vpop.permute.xlu0 %369  ;;  %v1859_v44 = vadd.f32 %v10151_v49, %v1720_v42  ;;  %v1864_v35 = vadd.f32 %v10165_v17, %v1725_v39  ;;  %v1724_v41 = vadd.f32 %v1596_v5, %v1460_v43 }
  0xb9   : > { %14695 = vst [vmem:[#allocation21_spill] sm:$0xff] %v10188_v46  ;;  %v1198_v45 = vmul.f32 %v10119_v33, %v10188_v46  ;;  %v1199_v47 = vmul.f32 %v10107_v29, %v10188_v46  ;;  %9324 = vset.pattern.permute.xlu1 %v14696_v48  ;;  %v10197_v56 = vpop.permute.xlu1 %689  ;;  %v1723_v57 = vadd.f32 %v1595_v50, %v1459_v1  ;;  %v2652_v7 = vmax.f32 %v1860_v40, 0.0 }
  0xba   : > { %14697 = vst [vmem:[#allocation22_spill] sm:$0xff] %v10197_v56  ;;  %v1722_v8 = vadd.f32 %v1594_v0, %v1458_v20  ;;  %v1337_v31 = vmul.f32 %v10110_v30, %v10197_v56  ;;  %444 = vperm.xlu1 %9324, %v10016_v58   ;;  %v1598_v0 = vmul.f32 %v10116_v32, %v10121_v34  ;;  %v2651_v43 = vmax.f32 %v1859_v44, 0.0 }
  0xbb   : > { %v1862_v42 = vadd.f32 %v10165_v17, %v1723_v57  ;;  %v1463_v25 = vadd.f32 %v1335_v38, %v1199_v47  ;;  %v1462_v10 = vadd.f32 %v1334_v11, %v1198_v45  ;;  %v1599_v1 = vmul.f32 %v10126_v36, %v10121_v34 }
  0xbc   : > { %v1861_v46 = vadd.f32 %v10151_v49, %v1722_v8  ;;  %v1336_v20 = vmul.f32 %v10104_v28, %v10197_v56  ;;  %v10213_v50 = vpop.permute.xlu0 %379  ;;  %v1465_v8 = vadd.f32 %v1337_v31, %v1201_v24  ;;  %v14700_v45 = vmov 1  }
  0xbd   : > { %14698 = vst [vmem:[#allocation23_spill] sm:$0xff] %v10213_v50  ;;  %v10215_v39 = vpop.permute.xlu1 %693  ;;  %v2654_v5 = vmax.f32 %v1862_v42, 0.0  ;;  %v1202_v38 = vmul.f32 %v10119_v33, %v10213_v50  ;;  %v1203_v11 = vmul.f32 %v10107_v29, %v10213_v50  ;;  %v1727_v47 = vadd.f32 %v1599_v1, %v1463_v25 }
  0xbe   : > { %14699 = vst [vmem:[#allocation24_spill] sm:$0xff] %v10215_v39  ;;  %v2653_v57 = vmax.f32 %v1861_v46, 0.0  ;;  %9325 = vset.pattern.permute.xlu1 %v14700_v45  ;;  %v1726_v34 = vadd.f32 %v1598_v0, %v1462_v10  ;;  %v1338_v56 = vmul.f32 %v10104_v28, %v10215_v39  ;;  %v1339_v40 = vmul.f32 %v10110_v30, %v10215_v39 }
  0xbf   : > { %745 = vperm.xlu1 %9325, %v10016_v58   ;;  %v2780_v46 = vpack.c.bf16 %v2654_v5, %v2652_v7  ;;  %v1200_v24 = vmul.f32 %v10119_v33, %v10162_v13  ;;  %v1866_v31 = vadd.f32 %v10165_v17, %v1727_v47  ;;  %v1600_v10 = vmul.f32 %v10116_v32, %v10061_v9 }
  0xc0   : > { %v2779_v44 = vpack.c.bf16 %v2653_v57, %v2651_v43  ;;  %v1865_v42 = vadd.f32 %v10151_v49, %v1726_v34  ;;  %v1729_v25 = vadd.f32 %v1601_v23, %v1465_v8  ;;  %v2656_v1 = vmax.f32 %v1864_v35, 0.0 }
  0xc1   : > { %3079 = vmatprep.mubr.bf16.mxu0 %v2780_v46  ;;  %v2658_v39 = vmax.f32 %v1866_v31, 0.0  ;;  %v1863_v58 = vadd.f32 %v10151_v49, %v1724_v41  ;;  %v1464_v7 = vadd.f32 %v1336_v20, %v1200_v24  ;;  %v1467_v34 = vadd.f32 %v1339_v40, %v1203_v11 }
  0xc2   : > { %3080 = vmatmul.mubr.bf16.vlgmr.msra.gmra.mrb[0].mxu0 %v2779_v44  ;;  %v10233_v0 = vpop.permute.xlu1 %949  ;;  %v1466_v57 = vadd.f32 %v1338_v56, %v1202_v38  ;;  %v2657_v8 = vmax.f32 %v1865_v42, 0.0  ;;  %v1868_v35 = vadd.f32 %v10165_v17, %v1729_v25  ;;  %v14702_v44 = vmov 2  }
  0xc3   : > { %14701 = vst [vmem:[#allocation25_spill] sm:$0xff] %v10233_v0  ;;  %v1602_v5 = vmul.f32 %v10116_v32, %v10233_v0  ;;  %v1603_v43 = vmul.f32 %v10126_v36, %v10233_v0  ;;  %749 = vperm.xlu1 %9325, %v9979_v51   ;;  %v2782_v23 = vpack.c.bf16 %v2658_v39, %v2656_v1  ;;  %v2655_v41 = vmax.f32 %v1863_v58, 0.0  ;;  %v10249_v39 = vld [vmem:[%s9847_s15 + $0x108] sm:$0xff] }
  0xc4   : > { %v1728_v20 = vadd.f32 %v1600_v10, %v1464_v7  ;;  %v2660_v38 = vmax.f32 %v1868_v35, 0.0  ;;  %519 = vperm.xlu0 %9354, %v10249_v39  }
  0xc5   : > { %v1731_v47 = vadd.f32 %v1603_v43, %v1467_v34  ;;  %v1730_v46 = vadd.f32 %v1602_v5, %v1466_v57  ;;  %3089 = vmatprep.mubr.bf16.mxu0 %v2782_v23  ;;  %v2781_v11 = vpack.c.bf16 %v2657_v8, %v2655_v41  ;;  %v10265_v43 = vpop.permute.xlu0 %389  ;;  %v1604_v57 = vmul.f32 %v10116_v32, %v10067_v12 }
  0xc6   : > { %v1867_v42 = vadd.f32 %v10151_v49, %v1728_v20  ;;  %14705 = vst [vmem:[#allocation28_spill] sm:$0xff] %v10265_v43  ;;  %v1605_v23 = vmul.f32 %v10126_v36, %v10067_v12  ;;  %v1206_v41 = vmul.f32 %v10119_v33, %v10265_v43  ;;  %v1207_v20 = vmul.f32 %v10107_v29, %v10265_v43 }
  0xc7   : > { %9326 = vset.pattern.permute.xlu1 %v14702_v44  ;;  %v10243_v24 = vpop.permute.xlu1 %384  ;;  %v1870_v31 = vadd.f32 %v10165_v17, %v1731_v47  ;;  %v1869_v56 = vadd.f32 %v10151_v49, %v1730_v46 }
  0xc8   : > { %14703 = vst [vmem:[#allocation26_spill] sm:$0xff] %v10243_v24  ;;  %1005 = vperm.xlu1 %9326, %v9979_v51   ;;  %v1204_v7 = vmul.f32 %v10119_v33, %v10243_v24  ;;  %v1205_v5 = vmul.f32 %v10107_v29, %v10243_v24  ;;  %v2659_v34 = vmax.f32 %v1867_v42, 0.0 }
  0xc9   : > { %v2662_v40 = vmax.f32 %v1870_v31, 0.0  ;;  %v2661_v1 = vmax.f32 %v1869_v56, 0.0 }
  0xca   : > { %3090 = vmatmul.mubr.bf16.gmra.mrb[4].mxu0 %v2781_v11 }
  0xcb   : > { %v2784_v10 = vpack.c.bf16 %v2662_v40, %v2660_v38  ;;  %v2783_v47 = vpack.c.bf16 %v2661_v1, %v2659_v34 }
  0xcc   : > { %9327 = vset.pattern.permute.xlu1 %v14696_v48  ;;  %v10254_v25 = vpop.permute.xlu1 %697 }
  0xcd   : > { %14704 = vst [vmem:[#allocation27_spill] sm:$0xff] %v10254_v25  ;;  %v1340_v51 = vmul.f32 %v10104_v28, %v10254_v25  ;;  %v1341_v58 = vmul.f32 %v10110_v30, %v10254_v25  ;;  %454 = vperm.xlu1 %9327, %v10020_v59   ;;  %3099 = vmatprep.mubr.bf16.mxu0 %v2784_v10 }
  0xcf   : > { %v1469_v35 = vadd.f32 %v1341_v58, %v1205_v5  ;;  %v1468_v46 = vadd.f32 %v1340_v51, %v1204_v7 }
  0xd0   : > { %v10271_v8 = vpop.permute.xlu1 %701 }
  0xd1   : > { %14706 = vst [vmem:[#allocation29_spill] sm:$0xff] %v10271_v8  ;;  %9328 = vset.pattern.permute.xlu1 %v14700_v45  ;;  %v1342_v31 = vmul.f32 %v10104_v28, %v10271_v8  ;;  %v1343_v11 = vmul.f32 %v10110_v30, %v10271_v8  ;;  %v1733_v56 = vadd.f32 %v1605_v23, %v1469_v35 }
  0xd2   : > { %753 = vperm.xlu1 %9328, %v10020_v59   ;;  %3100 = vmatmul.mubr.bf16.gmra.mrb[8].mxu0 %v2783_v47  ;;  %v1732_v38 = vadd.f32 %v1604_v57, %v1468_v46  ;;  %v10299_v47 = vld [vmem:[%s9847_s15 + $0x118] sm:$0xff] }
  0xd3   : > { %v1471_v1 = vadd.f32 %v1343_v11, %v1207_v20  ;;  %v1470_v51 = vadd.f32 %v1342_v31, %v1206_v41  ;;  %v1872_v7 = vadd.f32 %v10165_v17, %v1733_v56  ;;  %529 = vperm.xlu0 %9354, %v10299_v47  }
  0xd4   : > { %v1871_v5 = vadd.f32 %v10151_v49, %v1732_v38  ;;  %v10305_v38 = vpop.permute.xlu0 %399 }
  0xd5   : > { %v10283_v40 = vpop.permute.xlu1 %957  ;;  %v2664_v35 = vmax.f32 %v1872_v7, 0.0  ;;  %14710 = vst [vmem:[#allocation33_spill] sm:$0xff] %v10305_v38  ;;  %v1609_v7 = vmul.f32 %v10126_v36, %v10077_v16 }
  0xd6   : > { %14707 = vst [vmem:[#allocation30_spill] sm:$0xff] %v10283_v40  ;;  %v1606_v42 = vmul.f32 %v10116_v32, %v10283_v40  ;;  %v1607_v10 = vmul.f32 %v10126_v36, %v10283_v40  ;;  %757 = vperm.xlu1 %9328, %v9984_v52   ;;  %v2663_v41 = vmax.f32 %v1871_v5, 0.0  ;;  %v9451_v5 = vld [vmem:[%s14424_s3 + $0x114] ss:$8 sps:$4 sm:$0xff]  }
  0xd7   : > { %v330_v40 = vld [vmem:[%s9847_s15 + $0x178] sm:$0xff] }
  0xd8   : > { %v1735_v58 = vadd.f32 %v1607_v10, %v1471_v1  ;;  %v1734_v59 = vadd.f32 %v1606_v42, %v1470_v51  ;;  %v9450_v51 = vld [vmem:[%s14424_s3 + $0x100] ss:$8 sps:$4 sm:$0xff]  }
  0xda   : > { %9329 = vset.pattern.permute.xlu1 %v14702_v44  ;;  %v10293_v34 = vpop.permute.xlu1 %394  ;;  %v1874_v57 = vadd.f32 %v10165_v17, %v1735_v58  ;;  %v1873_v23 = vadd.f32 %v10151_v49, %v1734_v59 }
  0xdb   : > { %14708 = vst [vmem:[#allocation31_spill] sm:$0xff] %v10293_v34  ;;  %1013 = vperm.xlu1 %9329, %v9984_v52   ;;  %v9448_v52 = vld [vmem:[%s14424_s3 + $0x104] ss:$8 sps:$4 sm:$0xff]   ;;  %v1209_v42 = vmul.f32 %v10107_v29, %v10293_v34  ;;  %v1208_v58 = vmul.f32 %v10119_v33, %v10293_v34 }
  0xdc   : > { %v2666_v46 = vmax.f32 %v1874_v57, 0.0  ;;  %v2665_v20 = vmax.f32 %v1873_v23, 0.0  ;;  %3798 = vmatprep.subr.bf16.mxu1 %v9448_v52  ;;  %v1608_v57 = vmul.f32 %v10116_v32, %v10077_v16 }
  0xdd   : > { %3799 = vmatpush1.bf16.msra.mxu1 %v9450_v51  ;;  %v9454_v51 = vld [vmem:[%s14424_s3 + $0x124] ss:$8 sps:$4 sm:$0xff]  }
  0xde   : > { %v2786_v31 = vpack.c.bf16 %v2666_v46, %v2664_v35  ;;  %v2785_v11 = vpack.c.bf16 %v2665_v20, %v2663_v41  ;;  %v10331_v46 = vpop.permute.xlu0 %409  ;;  %v9453_v41 = vld [vmem:[%s14424_s3 + $0x110] ss:$8 sps:$4 sm:$0xff]   ;;  %v1210_v20 = vmul.f32 %v10119_v33, %v10305_v38  ;;  %3800 = vmatprep.subr.bf16.mxu1 %v9451_v5 }
  0xdf   : > { %9330 = vset.pattern.permute.xlu1 %v14696_v48  ;;  %v10303_v56 = vpop.permute.xlu1 %705  ;;  %14712 = vst [vmem:[#allocation35_spill] sm:$0xff] %v10331_v46 }
  0xe0   : > { %14709 = vst [vmem:[#allocation32_spill] sm:$0xff] %v10303_v56  ;;  %v1344_v10 = vmul.f32 %v10104_v28, %v10303_v56  ;;  %v1345_v1 = vmul.f32 %v10110_v30, %v10303_v56  ;;  %464 = vperm.xlu1 %9330, %v10025_v60   ;;  %3109 = vmatprep.mubr.bf16.mxu0 %v2786_v31  ;;  %v9457_v56 = vld [vmem:[%s14424_s3 + $0x134] ss:$8 sps:$4 sm:$0xff]  }
  0xe1   : > { %3110 = vmatmul.mubr.bf16.gmra.mrb[12].mxu0 %v2785_v11  ;;  %v1211_v31 = vmul.f32 %v10107_v29, %v10305_v38  ;;  %3801 = vmatpush1.bf16.msra.mxu1 %v9453_v41 }
  0xe2   : > { %v1473_v59 = vadd.f32 %v1345_v1, %v1209_v42  ;;  %v1472_v35 = vadd.f32 %v1344_v10, %v1208_v58  ;;  %v10347_v42 = vld [vmem:[%s9847_s15 + $0x128] sm:$0xff]  ;;  %3802 = vmatprep.subr.bf16.mxu1 %v9454_v51 }
  0xe3   : > { %v10329_v23 = vpop.permute.xlu1 %709  ;;  %539 = vperm.xlu0 %9354, %v10347_v42  }
  0xe4   : > { %14711 = vst [vmem:[#allocation34_spill] sm:$0xff] %v10329_v23  ;;  %9331 = vset.pattern.permute.xlu1 %v14700_v45  ;;  %v1346_v11 = vmul.f32 %v10104_v28, %v10329_v23  ;;  %v1347_v52 = vmul.f32 %v10110_v30, %v10329_v23  ;;  %v1737_v10 = vadd.f32 %v1609_v7, %v1473_v59  ;;  %v9456_v23 = vld [vmem:[%s14424_s3 + $0x120] ss:$8 sps:$4 sm:$0xff]  }
  0xe5   : > { %761 = vperm.xlu1 %9331, %v10025_v60   ;;  %v1736_v1 = vadd.f32 %v1608_v57, %v1472_v35  ;;  %v10363_v57 = vpop.permute.xlu0 %419  ;;  %v10366_v35 = vld [vmem:[%s9847_s15 + $0x138] sm:$0xff]  ;;  %3803 = vmatpush1.bf16.msra.mxu1 %v9456_v23  ;;  %v9460_v23 = vld [vmem:[%s14424_s3 + $0x144] ss:$8 sps:$4 sm:$0xff]  }
  0xe6   : > { %v1475_v59 = vadd.f32 %v1347_v52, %v1211_v31  ;;  %v1474_v5 = vadd.f32 %v1346_v11, %v1210_v20  ;;  %14714 = vst [vmem:[#allocation37_spill] sm:$0xff] %v10363_v57  ;;  %v1876_v41 = vadd.f32 %v10165_v17, %v1737_v10  ;;  %v9459_v20 = vld [vmem:[%s14424_s3 + $0x130] ss:$8 sps:$4 sm:$0xff]   ;;  %3804 = vmatprep.subr.bf16.mxu1 %v9457_v56  ;;  %v10384_v10 = vld [vmem:[%s9847_s15 + $0x148] sm:$0xff] }
  0xe7   : > { %549 = vperm.xlu0 %9354, %v10366_v35  }
  0xe8   : > { %v10353_v58 = vpop.permute.xlu1 %965 }
  0xe9   : > { %14713 = vst [vmem:[#allocation36_spill] sm:$0xff] %v10353_v58  ;;  %v1610_v60 = vmul.f32 %v10116_v32, %v10353_v58  ;;  %v1611_v7 = vmul.f32 %v10126_v36, %v10353_v58  ;;  %765 = vperm.xlu1 %9331, %v9990_v53   ;;  %v1875_v58 = vadd.f32 %v10151_v49, %v1736_v1  ;;  %v2668_v1 = vmax.f32 %v1876_v41, 0.0 }
  0xea   : > { %3805 = vmatpush1.bf16.msra.mxu1 %v9459_v20  ;;  %v9463_v20 = vld [vmem:[%s14424_s3 + $0x154] ss:$8 sps:$4 sm:$0xff]  }
  0xeb   : > { %v1739_v34 = vadd.f32 %v1611_v7, %v1475_v59  ;;  %v1738_v38 = vadd.f32 %v1610_v60, %v1474_v5  ;;  %v2667_v56 = vmax.f32 %v1875_v58, 0.0  ;;  %v10389_v7 = vpop.permute.xlu0 %429  ;;  %559 = vperm.xlu0 %9354, %v10384_v10   ;;  %3806 = vmatprep.subr.bf16.mxu1 %v9460_v23  ;;  %v326_v5 = vld [vmem:[%s9847_s15 + $0x158] sm:$0xff] }
  0xec   : > { %14716 = vst [vmem:[#allocation39_spill] sm:$0xff] %v10389_v7  ;;  %v9465_v23 = vld [vmem:[%s14424_s3 + $0x150] ss:$8 sps:$4 sm:$0xff]  }
  0xed   : > { %9332 = vset.pattern.permute.xlu1 %v14702_v44  ;;  %v10378_v31 = vpop.permute.xlu1 %404  ;;  %v1878_v11 = vadd.f32 %v10165_v17, %v1739_v34  ;;  %v1877_v52 = vadd.f32 %v10151_v49, %v1738_v38 }
  0xee   : > { %14715 = vst [vmem:[#allocation38_spill] sm:$0xff] %v10378_v31  ;;  %1021 = vperm.xlu1 %9332, %v9990_v53   ;;  %v9462_v53 = vld [vmem:[%s14424_s3 + $0x140] ss:$8 sps:$4 sm:$0xff]  }
  0xef   : > { %v2670_v51 = vmax.f32 %v1878_v11, 0.0  ;;  %v2669_v60 = vmax.f32 %v1877_v52, 0.0  ;;  %v1212_v11 = vmul.f32 %v10119_v33, %v10378_v31  ;;  %v1213_v52 = vmul.f32 %v10107_v29, %v10378_v31  ;;  %3807 = vmatpush1.bf16.msra.mxu1 %v9462_v53  ;;  %569 = vperm.xlu0 %9354, %v326_v5   ;;  %v328_v53 = vld [vmem:[%s9847_s15 + $0x168] sm:$0xff] }
  0xf0   : > { %3808 = vmatprep.subr.bf16.mxu1 %v9463_v20  ;;  %v9466_v5 = vld [vmem:[%s14424_s3 + $0x164] ss:$8 sps:$4 sm:$0xff]   ;;  %v1214_v20 = vmul.f32 %v10119_v33, %v10331_v46 }
  0xf1   : > { %v2788_v34 = vpack.c.bf16 %v2670_v51, %v2668_v1  ;;  %v2787_v38 = vpack.c.bf16 %v2669_v60, %v2667_v56  ;;  %v10414_v1 = vpop.permute.xlu0 %439  ;;  %v1612_v51 = vmul.f32 %v10116_v32, %v10084_v19  ;;  %v1613_v56 = vmul.f32 %v10126_v36, %v10084_v19 }
  0xf2   : > { %9333 = vset.pattern.permute.xlu1 %v14696_v48  ;;  %v10396_v59 = vpop.permute.xlu1 %713  ;;  %14718 = vst [vmem:[#allocation41_spill] sm:$0xff] %v10414_v1 }
  0xf3   : > { %14717 = vst [vmem:[#allocation40_spill] sm:$0xff] %v10396_v59  ;;  %v1348_v58 = vmul.f32 %v10104_v28, %v10396_v59  ;;  %v1349_v41 = vmul.f32 %v10110_v30, %v10396_v59  ;;  %474 = vperm.xlu1 %9333, %v10031_v61   ;;  %3119 = vmatprep.mubr.bf16.mxu0 %v2788_v34 }
  0xf4   : > { %3120 = vmatmul.mubr.bf16.gmra.mrb[16].mxu0 %v2787_v38  ;;  %v1215_v59 = vmul.f32 %v10107_v29, %v10331_v46  ;;  %3809 = vmatpush1.bf16.msra.mxu1 %v9465_v23 }
  0xf5   : > { %v1477_v34 = vadd.f32 %v1349_v41, %v1213_v52  ;;  %v1476_v38 = vadd.f32 %v1348_v58, %v1212_v11  ;;  %v9468_v58 = vld [vmem:[%s14424_s3 + $0x160] ss:$8 sps:$4 sm:$0xff]   ;;  %579 = vperm.xlu0 %9354, %v328_v53   ;;  %3810 = vmatprep.subr.bf16.mxu1 %v9466_v5  ;;  %v10442_v43 = vpop.permute.xlu0 %449  ;;  %v9472_v53 = vld [vmem:[%s14424_s3 + $0x184] ss:$8 sps:$4 sm:$0xff]  }
  0xf6   : > { %v10420_v60 = vpop.permute.xlu1 %717  ;;  %14721 = vst [vmem:[#allocation44_spill] sm:$0xff] %v10442_v43 }
  0xf7   : > { %14719 = vst [vmem:[#allocation42_spill] sm:$0xff] %v10420_v60  ;;  %v1351_v31 = vmul.f32 %v10110_v30, %v10420_v60  ;;  %9334 = vset.pattern.permute.xlu1 %v14700_v45  ;;  %v1350_v41 = vmul.f32 %v10104_v28, %v10420_v60  ;;  %v1741_v11 = vadd.f32 %v1613_v56, %v1477_v34  ;;  %v9469_v60 = vld [vmem:[%s14424_s3 + $0x174] ss:$8 sps:$4 sm:$0xff]   ;;  %v9471_v56 = vld [vmem:[%s14424_s3 + $0x170] ss:$8 sps:$4 sm:$0xff]  }
  0xf8   : > { %769 = vperm.xlu1 %9334, %v10031_v61   ;;  %v1740_v52 = vadd.f32 %v1612_v51, %v1476_v38  ;;  %3811 = vmatpush1.bf16.msra.mxu1 %v9468_v58  ;;  %v9475_v58 = vld [vmem:[%s14424_s3 + $0x194] ss:$8 sps:$4 sm:$0xff]  }
  0xf9   : > { %v1479_v46 = vadd.f32 %v1351_v31, %v1215_v59  ;;  %v1478_v51 = vadd.f32 %v1350_v41, %v1214_v20  ;;  %589 = vperm.xlu0 %9354, %v330_v40   ;;  %3812 = vmatprep.subr.bf16.mxu1 %v9469_v60  ;;  %v1880_v59 = vadd.f32 %v10165_v17, %v1741_v11  ;;  %v9474_v40 = vld [vmem:[%s14424_s3 + $0x180] ss:$8 sps:$4 sm:$0xff]   ;;  %v10472_v60 = vld [vmem:[%s9847_s15 + $0x130] sm:$0xff] }
  0xfa   : > { %v1879_v38 = vadd.f32 %v10151_v49, %v1740_v52 }
  0xfb   : > { %v10440_v8 = vpop.permute.xlu1 %973  ;;  %v2672_v11 = vmax.f32 %v1880_v59, 0.0 }
  0xfc   : > { %14720 = vst [vmem:[#allocation43_spill] sm:$0xff] %v10440_v8  ;;  %v1614_v61 = vmul.f32 %v10116_v32, %v10440_v8  ;;  %v1615_v23 = vmul.f32 %v10126_v36, %v10440_v8  ;;  %773 = vperm.xlu1 %9334, %v9996_v54   ;;  %3813 = vmatpush1.bf16.msra.mxu1 %v9471_v56  ;;  %v10527_v8 = vld [vmem:[%s9847_s15 + $0x140] sm:$0xff] }
  0xfd   : > { %9369 = vset.pattern.permute.xlu0 %v14702_v44  ;;  %3814 = vmatprep.subr.bf16.mxu1 %v9472_v53 }
  0xfe   : > { %v1743_v31 = vadd.f32 %v1615_v23, %v1479_v46  ;;  %v1742_v34 = vadd.f32 %v1614_v61, %v1478_v51  ;;  %v10469_v46 = vpop.permute.xlu0 %459  ;;  %v2671_v61 = vmax.f32 %v1879_v38, 0.0  ;;  %1081 = vperm.xlu0 %9369, %v10472_v60   ;;  %v9478_v38 = vld [vmem:[%s14424_s3 + $0x1a4] ss:$8 sps:$4 sm:$0xff]  }
  0xff   : > { %14723 = vst [vmem:[#allocation46_spill] sm:$0xff] %v10469_v46 }
 0x100   : > { %9335 = vset.pattern.permute.xlu1 %v14702_v44  ;;  %v10461_v5 = vpop.permute.xlu1 %414  ;;  %v1882_v20 = vadd.f32 %v10165_v17, %v1743_v31  ;;  %v1881_v41 = vadd.f32 %v10151_v49, %v1742_v34  ;;  %3815 = vmatpush1.bf16.msra.mxu1 %v9474_v40  ;;  %v9480_v40 = vld [vmem:[%s14424_s3 + $0x1a0] ss:$8 sps:$4 sm:$0xff]  }
 0x101   : > { %14722 = vst [vmem:[#allocation45_spill] sm:$0xff] %v10461_v5  ;;  %1029 = vperm.xlu1 %9335, %v9996_v54   ;;  %v9477_v54 = vld [vmem:[%s14424_s3 + $0x190] ss:$8 sps:$4 sm:$0xff]   ;;  %3816 = vmatprep.subr.bf16.mxu1 %v9475_v58  ;;  %v1216_v53 = vmul.f32 %v10119_v33, %v10461_v5  ;;  %v1616_v58 = vmul.f32 %v10116_v32, %v10101_v27 }
 0x102   : > { %v2674_v52 = vmax.f32 %v1882_v20, 0.0  ;;  %v2673_v23 = vmax.f32 %v1881_v41, 0.0  ;;  %v1217_v20 = vmul.f32 %v10107_v29, %v10461_v5  ;;  %v10497_v41 = vpop.permute.xlu0 %469  ;;  %1089 = vperm.xlu0 %9369, %v10527_v8  }
 0x103   : > { %14725 = vst [vmem:[#allocation48_spill] sm:$0xff] %v10497_v41 }
 0x104   : > { %v2790_v51 = vpack.c.bf16 %v2674_v52, %v2672_v11  ;;  %v2789_v56 = vpack.c.bf16 %v2673_v23, %v2671_v61  ;;  %3817 = vmatpush1.bf16.msra.mxu1 %v9477_v54  ;;  %v1617_v11 = vmul.f32 %v10126_v36, %v10101_v27 }
 0x105   : > { %9336 = vset.pattern.permute.xlu1 %v14696_v48  ;;  %v10483_v31 = vpop.permute.xlu1 %721  ;;  %3818 = vmatprep.subr.bf16.mxu1 %v9478_v38 }
 0x106   : > { %14724 = vst [vmem:[#allocation47_spill] sm:$0xff] %v10483_v31  ;;  %v1352_v59 = vmul.f32 %v10104_v28, %v10483_v31  ;;  %v1353_v34 = vmul.f32 %v10110_v30, %v10483_v31  ;;  %484 = vperm.xlu1 %9336, %v10037_v62   ;;  %3129 = vmatprep.mubr.bf16.mxu0 %v2790_v51  ;;  %v10524_v38 = vpop.permute.xlu0 %479 }
 0x107   : > { %3130 = vmatmul.mubr.bf16.gmra.mrb[20].mxu0 %v2789_v56  ;;  %v1218_v51 = vmul.f32 %v10119_v33, %v10363_v57  ;;  %v1219_v56 = vmul.f32 %v10107_v29, %v10363_v57  ;;  %14727 = vst [vmem:[#allocation50_spill] sm:$0xff] %v10524_v38 }
 0x108   : > { %v1481_v61 = vadd.f32 %v1353_v34, %v1217_v20  ;;  %v1480_v23 = vadd.f32 %v1352_v59, %v1216_v53  ;;  %v9481_v59 = vld [vmem:[%s14424_s3 + $0x1b4] ss:$8 sps:$4 sm:$0xff]   ;;  %3819 = vmatpush1.bf16.msra.mxu1 %v9480_v40  ;;  %v9483_v34 = vld [vmem:[%s14424_s3 + $0x1b0] ss:$8 sps:$4 sm:$0xff]  }
 0x109   : > { %v10506_v52 = vpop.permute.xlu1 %725  ;;  %3820 = vmatprep.subr.bf16.mxu1 %v9481_v59 }
 0x10a   : > { %14726 = vst [vmem:[#allocation49_spill] sm:$0xff] %v10506_v52  ;;  %9338 = vset.pattern.permute.xlu1 %v14700_v45  ;;  %v1354_v54 = vmul.f32 %v10104_v28, %v10506_v52  ;;  %v1355_v5 = vmul.f32 %v10110_v30, %v10506_v52  ;;  %v1745_v53 = vadd.f32 %v1617_v11, %v1481_v61  ;;  %v9486_v11 = vld [vmem:[%s14424_s3 + $0x1c0] ss:$8 sps:$4 sm:$0xff]  }
 0x10b   : > { %777 = vperm.xlu1 %9338, %v10037_v62   ;;  %v1744_v20 = vadd.f32 %v1616_v58, %v1480_v23  ;;  %v9484_v58 = vld [vmem:[%s14424_s3 + $0x1c4] ss:$8 sps:$4 sm:$0xff]  }
 0x10c   : > { %v1483_v52 = vadd.f32 %v1355_v5, %v1219_v56  ;;  %v1482_v57 = vadd.f32 %v1354_v54, %v1218_v51  ;;  %3821 = vmatpush1.bf16.msra.mxu1 %v9483_v34  ;;  %v1884_v23 = vadd.f32 %v10165_v17, %v1745_v53  ;;  %v10548_v51 = vpop.permute.xlu0 %489 }
 0x10d   : > { %v1883_v0 = vadd.f32 %v10151_v49, %v1744_v20  ;;  %3822 = vmatprep.subr.bf16.mxu1 %v9484_v58  ;;  %14730 = vst [vmem:[#allocation53_spill] sm:$0xff] %v10548_v51 }
 0x10e   : > { %v10529_v31 = vpop.permute.xlu1 %981  ;;  %v2676_v34 = vmax.f32 %v1884_v23, 0.0 }
 0x10f   : > { %14728 = vst [vmem:[#allocation51_spill] sm:$0xff] %v10529_v31  ;;  %v1618_v62 = vmul.f32 %v10116_v32, %v10529_v31  ;;  %v1619_v40 = vmul.f32 %v10126_v36, %v10529_v31  ;;  %781 = vperm.xlu1 %9338, %v10000_v55   ;;  %v2675_v20 = vmax.f32 %v1883_v0, 0.0 }
 0x110   : > { %3823 = vmatpush1.bf16.msra.mxu1 %v9486_v11  ;;  %v10573_v23 = vpop.permute.xlu0 %985 }
 0x111   : > { %v1747_v61 = vadd.f32 %v1619_v40, %v1483_v52  ;;  %v1746_v59 = vadd.f32 %v1618_v62, %v1482_v57  ;;  %v9487_v52 = vld [vmem:[%s14424_s3 + $0x1d4] ss:$8 sps:$4 sm:$0xff]   ;;  %v9489_v57 = vld [vmem:[%s14424_s3 + $0x1d0] ss:$8 sps:$4 sm:$0xff]   ;;  %14732 = vst [vmem:[#allocation55_spill] sm:$0xff] %v10573_v23 }
 0x112   : > { %3824 = vmatprep.subr.bf16.mxu1 %v9487_v52  ;;  %v9493_v52 = vld [vmem:[%s14424_s3 + $0x1f4] ss:$8 sps:$4 sm:$0xff]  }
 0x113   : > { %9339 = vset.pattern.permute.xlu1 %v14702_v44  ;;  %v10546_v5 = vpop.permute.xlu1 %424  ;;  %v1886_v56 = vadd.f32 %v10165_v17, %v1747_v61  ;;  %v1885_v54 = vadd.f32 %v10151_v49, %v1746_v59  ;;  %v9490_v61 = vld [vmem:[%s14424_s3 + $0x1e4] ss:$8 sps:$4 sm:$0xff]  }
 0x114   : > { %14729 = vst [vmem:[#allocation52_spill] sm:$0xff] %v10546_v5  ;;  %1037 = vperm.xlu1 %9339, %v10000_v55   ;;  %3825 = vmatpush1.bf16.msra.mxu1 %v9489_v57  ;;  %v9492_v55 = vld [vmem:[%s14424_s3 + $0x1e0] ss:$8 sps:$4 sm:$0xff]  }
 0x115   : > { %v2678_v53 = vmax.f32 %v1886_v56, 0.0  ;;  %v2677_v62 = vmax.f32 %v1885_v54, 0.0  ;;  %v1220_v56 = vmul.f32 %v10119_v33, %v10546_v5  ;;  %v1221_v54 = vmul.f32 %v10107_v29, %v10546_v5  ;;  %3826 = vmatprep.subr.bf16.mxu1 %v9490_v61 }
 0x116   : > { %v1223_v61 = vmul.f32 %v10107_v29, %v10389_v7 }
 0x117   : > { %v2792_v40 = vpack.c.bf16 %v2678_v53, %v2676_v34  ;;  %v2791_v58 = vpack.c.bf16 %v2677_v62, %v2675_v20  ;;  %v1620_v53 = vmul.f32 %v10116_v32, %v10573_v23  ;;  %v1621_v20 = vmul.f32 %v10126_v36, %v10573_v23 }
 0x118   : > { %9340 = vset.pattern.permute.xlu1 %v14696_v48  ;;  %v10563_v59 = vpop.permute.xlu1 %729  ;;  %3827 = vmatpush1.bf16.msra.mxu1 %v9492_v55  ;;  %v10602_v55 = vld [vmem:[%s9847_s15 + $0x150] sm:$0xff] }
 0x119   : > { %14731 = vst [vmem:[#allocation54_spill] sm:$0xff] %v10563_v59  ;;  %v1356_v0 = vmul.f32 %v10104_v28, %v10563_v59  ;;  %v1357_v11 = vmul.f32 %v10110_v30, %v10563_v59  ;;  %494 = vperm.xlu1 %9340, %v10041_v63   ;;  %3139 = vmatprep.mubr.bf16.mxu0 %v2792_v40  ;;  %v9495_v40 = vld [vmem:[%s14424_s3 + $0x1f0] ss:$8 sps:$4 sm:$0xff]  }
 0x11a   : > { %3140 = vmatmul.mubr.bf16.gmra.mrb[24].mxu0 %v2791_v58  ;;  %v1222_v58 = vmul.f32 %v10119_v33, %v10389_v7  ;;  %3828 = vmatprep.subr.bf16.mxu1 %v9493_v52 }
 0x11b   : > { %v1484_v57 = vadd.f32 %v1356_v0, %v1220_v56  ;;  %v1485_v34 = vadd.f32 %v1357_v11, %v1221_v54  ;;  %1097 = vperm.xlu0 %9369, %v10602_v55  }
 0x11c   : > { %v10586_v62 = vpop.permute.xlu1 %733  ;;  %3829 = vmatpush1.bf16.msra.mxu1 %v9495_v40 }
 0x11d   : > { %14733 = vst [vmem:[#allocation56_spill] sm:$0xff] %v10586_v62  ;;  %9341 = vset.pattern.permute.xlu1 %v14700_v45  ;;  %v1358_v0 = vmul.f32 %v10104_v28, %v10586_v62  ;;  %v1359_v11 = vmul.f32 %v10110_v30, %v10586_v62  ;;  %v1748_v56 = vadd.f32 %v1620_v53, %v1484_v57 }
 0x11e   : > { %785 = vperm.xlu1 %9341, %v10041_v63   ;;  %v1749_v54 = vadd.f32 %v1621_v20, %v1485_v34 }
 0x11f   : > { %v1487_v62 = vadd.f32 %v1359_v11, %v1223_v61  ;;  %v1486_v63 = vadd.f32 %v1358_v0, %v1222_v58  ;;  %v1887_v57 = vadd.f32 %v10151_v49, %v1748_v56 }
 0x120   : > { %v1888_v23 = vadd.f32 %v10165_v17, %v1749_v54 }
 0x121   : > { %v10605_v5 = vpop.permute.xlu1 %989  ;;  %v2679_v61 = vmax.f32 %v1887_v57, 0.0  ;;  %v1226_v57 = vmul.f32 %v10119_v33, %v10414_v1 }
 0x122   : > { %14734 = vst [vmem:[#allocation57_spill] sm:$0xff] %v10605_v5  ;;  %v1622_v59 = vmul.f32 %v10116_v32, %v10605_v5  ;;  %v1623_v31 = vmul.f32 %v10126_v36, %v10605_v5  ;;  %789 = vperm.xlu1 %9341, %v10075_v15   ;;  %v2680_v40 = vmax.f32 %v1888_v23, 0.0 }
 0x124   : > { %v1751_v52 = vadd.f32 %v1623_v31, %v1487_v62  ;;  %v1750_v7 = vadd.f32 %v1622_v59, %v1486_v63 }
 0x126   : > { %9342 = vset.pattern.permute.xlu1 %v14702_v44  ;;  %v10615_v34 = vpop.permute.xlu1 %434  ;;  %v1890_v53 = vadd.f32 %v10165_v17, %v1751_v52  ;;  %v1889_v20 = vadd.f32 %v10151_v49, %v1750_v7 }
 0x127   : > { %14735 = vst [vmem:[#allocation58_spill] sm:$0xff] %v10615_v34  ;;  %1045 = vperm.xlu1 %9342, %v10075_v15   ;;  %v10628_v15 = vpop.permute.xlu0 %993  ;;  %v1224_v7 = vmul.f32 %v10119_v33, %v10615_v34 }
 0x128   : > { %v2682_v5 = vmax.f32 %v1890_v53, 0.0  ;;  %v2681_v58 = vmax.f32 %v1889_v20, 0.0  ;;  %14737 = vst [vmem:[#allocation60_spill] sm:$0xff] %v10628_v15  ;;  %v1624_v54 = vmul.f32 %v10116_v32, %v10628_v15  ;;  %v1625_v63 = vmul.f32 %v10126_v36, %v10628_v15 }
 0x129   : > { %v1227_v53 = vmul.f32 %v10107_v29, %v10414_v1 }
 0x12a   : > { %v2794_v31 = vpack.c.bf16 %v2682_v5, %v2680_v40  ;;  %v2793_v62 = vpack.c.bf16 %v2681_v58, %v2679_v61  ;;  %v1225_v5 = vmul.f32 %v10107_v29, %v10615_v34  ;;  %v10651_v61 = vld [vmem:[%s9847_s15 + $0x160] sm:$0xff] }
 0x12b   : > { %9343 = vset.pattern.permute.xlu1 %v14696_v48  ;;  %v10621_v59 = vpop.permute.xlu1 %737  ;;  %1105 = vperm.xlu0 %9369, %v10651_v61  }
 0x12c   : > { %14736 = vst [vmem:[#allocation59_spill] sm:$0xff] %v10621_v59  ;;  %v1360_v0 = vmul.f32 %v10104_v28, %v10621_v59  ;;  %v1361_v11 = vmul.f32 %v10110_v30, %v10621_v59  ;;  %504 = vperm.xlu1 %9343, %v10046_v2   ;;  %3149 = vmatprep.mubr.bf16.mxu0 %v2794_v31 }
 0x12d   : > { %3150 = vmatmul.mubr.bf16.gmra.mrb[28].mxu0 %v2793_v62 }
 0x12e   : > { %v1488_v23 = vadd.f32 %v1360_v0, %v1224_v7  ;;  %v1489_v56 = vadd.f32 %v1361_v11, %v1225_v5 }
 0x12f   : > { %v10638_v52 = vpop.permute.xlu1 %741 }
 0x130   : > { %14738 = vst [vmem:[#allocation61_spill] sm:$0xff] %v10638_v52  ;;  %9344 = vset.pattern.permute.xlu1 %v14700_v45  ;;  %v1362_v20 = vmul.f32 %v10104_v28, %v10638_v52  ;;  %v1363_v40 = vmul.f32 %v10110_v30, %v10638_v52  ;;  %v1752_v58 = vadd.f32 %v1624_v54, %v1488_v23 }
 0x131   : > { %793 = vperm.xlu1 %9344, %v10046_v2   ;;  %v1753_v31 = vadd.f32 %v1625_v63, %v1489_v56 }
 0x132   : > { %v1491_v7 = vadd.f32 %v1363_v40, %v1227_v53  ;;  %v1490_v5 = vadd.f32 %v1362_v20, %v1226_v57  ;;  %v1891_v59 = vadd.f32 %v10151_v49, %v1752_v58 }
 0x133   : > { %v1892_v2 = vadd.f32 %v10165_v17, %v1753_v31 }
 0x134   : > { %v10654_v62 = vpop.permute.xlu1 %997  ;;  %v2683_v57 = vmax.f32 %v1891_v59, 0.0 }
 0x135   : > { %14739 = vst [vmem:[#allocation62_spill] sm:$0xff] %v10654_v62  ;;  %v1626_v0 = vmul.f32 %v10116_v32, %v10654_v62  ;;  %v1627_v11 = vmul.f32 %v10126_v36, %v10654_v62  ;;  %797 = vperm.xlu1 %9344, %v10177_v37   ;;  %v2684_v63 = vmax.f32 %v1892_v2, 0.0 }
 0x137   : > { %v1755_v52 = vadd.f32 %v1627_v11, %v1491_v7  ;;  %v1754_v34 = vadd.f32 %v1626_v0, %v1490_v5  ;;  %v9752_v11 = vld [vmem:[%s9847_s15 + $0x100] sm:$0xff] }
 0x139   : > { %9345 = vset.pattern.permute.xlu1 %v14702_v44  ;;  %v10664_v23 = vpop.permute.xlu1 %444  ;;  %v1894_v56 = vadd.f32 %v10165_v17, %v1755_v52  ;;  %v1893_v54 = vadd.f32 %v10151_v49, %v1754_v34 }
 0x13a   : > { %14740 = vst [vmem:[#allocation63_spill] sm:$0xff] %v10664_v23  ;;  %1053 = vperm.xlu1 %9345, %v10177_v37   ;;  %v10677_v37 = vpop.permute.xlu0 %1001  ;;  %v1228_v34 = vmul.f32 %v10119_v33, %v10664_v23  ;;  %v1229_v59 = vmul.f32 %v10107_v29, %v10664_v23 }
 0x13b   : > { %v2686_v53 = vmax.f32 %v1894_v56, 0.0  ;;  %v2685_v20 = vmax.f32 %v1893_v54, 0.0  ;;  %14742 = vst [vmem:[#allocation65_spill] sm:$0xff] %v10677_v37  ;;  %v1628_v2 = vmul.f32 %v10116_v32, %v10677_v37  ;;  %v1629_v56 = vmul.f32 %v10126_v36, %v10677_v37 }
 0x13d   : > { %v2796_v40 = vpack.c.bf16 %v2686_v53, %v2684_v63  ;;  %v2795_v31 = vpack.c.bf16 %v2685_v20, %v2683_v57  ;;  %v1230_v63 = vmul.f32 %v10119_v33, %v10442_v43  ;;  %v1231_v53 = vmul.f32 %v10107_v29, %v10442_v43 }
 0x13e   : > { %9346 = vset.pattern.permute.xlu1 %v14696_v48  ;;  %v10670_v58 = vpop.permute.xlu1 %745 }
 0x13f   : > { %14741 = vst [vmem:[#allocation64_spill] sm:$0xff] %v10670_v58  ;;  %v1364_v0 = vmul.f32 %v10104_v28, %v10670_v58  ;;  %v1365_v52 = vmul.f32 %v10110_v30, %v10670_v58  ;;  %514 = vperm.xlu1 %9346, %v9752_v11   ;;  %3159 = vmatprep.mubr.bf16.mxu0 %v2796_v40  ;;  %v10699_v40 = vld [vmem:[%s9847_s15 + $0x170] sm:$0xff] }
 0x140   : > { %3160 = vmatmul.mubr.bf16.gmra.mrb[32].mxu0 %v2795_v31  ;;  %1113 = vperm.xlu0 %9369, %v10699_v40  }
 0x141   : > { %v1492_v7 = vadd.f32 %v1364_v0, %v1228_v34  ;;  %v1493_v5 = vadd.f32 %v1365_v52, %v1229_v59 }
 0x142   : > { %v10687_v54 = vpop.permute.xlu1 %749 }
 0x143   : > { %14743 = vst [vmem:[#allocation66_spill] sm:$0xff] %v10687_v54  ;;  %9347 = vset.pattern.permute.xlu1 %v14700_v45  ;;  %v1366_v57 = vmul.f32 %v10104_v28, %v10687_v54  ;;  %v1367_v20 = vmul.f32 %v10110_v30, %v10687_v54  ;;  %v1756_v31 = vadd.f32 %v1628_v2, %v1492_v7 }
 0x144   : > { %801 = vperm.xlu1 %9347, %v9752_v11   ;;  %v1757_v0 = vadd.f32 %v1629_v56, %v1493_v5 }
 0x145   : > { %v1495_v23 = vadd.f32 %v1367_v20, %v1231_v53  ;;  %v1494_v58 = vadd.f32 %v1366_v57, %v1230_v63  ;;  %v1895_v37 = vadd.f32 %v10151_v49, %v1756_v31 }
 0x146   : > { %v1896_v11 = vadd.f32 %v10165_v17, %v1757_v0  ;;  %v10728_v0 = vld [vmem:[%s9847_s15 + $0x180] sm:$0xff] }
 0x147   : > { %v10702_v52 = vpop.permute.xlu1 %1005  ;;  %1121 = vperm.xlu0 %9369, %v10728_v0  }
 0x148   : > { %14744 = vst [vmem:[#allocation67_spill] sm:$0xff] %v10702_v52  ;;  %v1630_v34 = vmul.f32 %v10116_v32, %v10702_v52  ;;  %v1631_v59 = vmul.f32 %v10126_v36, %v10702_v52  ;;  %805 = vperm.xlu1 %9347, %v10249_v39   ;;  %v2688_v56 = vmax.f32 %v1896_v11, 0.0 }
 0x14a   : > { %v1759_v54 = vadd.f32 %v1631_v59, %v1495_v23  ;;  %v1758_v62 = vadd.f32 %v1630_v34, %v1494_v58  ;;  %v2687_v23 = vmax.f32 %v1895_v37, 0.0 }
 0x14c   : > { %9348 = vset.pattern.permute.xlu1 %v14702_v44  ;;  %v10712_v7 = vpop.permute.xlu1 %454  ;;  %v1898_v5 = vadd.f32 %v10165_v17, %v1759_v54  ;;  %v1897_v2 = vadd.f32 %v10151_v49, %v1758_v62  ;;  %v9753_v62 = vld [vmem:[%s9847_s15 + $0x110] sm:$0xff] }
 0x14d   : > { %14745 = vst [vmem:[#allocation68_spill] sm:$0xff] %v10712_v7  ;;  %1061 = vperm.xlu1 %9348, %v10249_v39   ;;  %v10725_v39 = vpop.permute.xlu0 %1009  ;;  %v1232_v37 = vmul.f32 %v10119_v33, %v10712_v7  ;;  %v1233_v34 = vmul.f32 %v10107_v29, %v10712_v7 }
 0x14e   : > { %v2690_v63 = vmax.f32 %v1898_v5, 0.0  ;;  %v2689_v53 = vmax.f32 %v1897_v2, 0.0  ;;  %14747 = vst [vmem:[#allocation70_spill] sm:$0xff] %v10725_v39  ;;  %v1632_v5 = vmul.f32 %v10116_v32, %v10725_v39  ;;  %v1633_v2 = vmul.f32 %v10126_v36, %v10725_v39 }
 0x150   : > { %v2798_v57 = vpack.c.bf16 %v2690_v63, %v2688_v56  ;;  %v2797_v58 = vpack.c.bf16 %v2689_v53, %v2687_v23  ;;  %v1234_v63 = vmul.f32 %v10119_v33, %v10469_v46  ;;  %v1235_v23 = vmul.f32 %v10107_v29, %v10469_v46 }
 0x151   : > { %9349 = vset.pattern.permute.xlu1 %v14696_v48  ;;  %v10718_v20 = vpop.permute.xlu1 %753 }
 0x152   : > { %14746 = vst [vmem:[#allocation69_spill] sm:$0xff] %v10718_v20  ;;  %v1368_v31 = vmul.f32 %v10104_v28, %v10718_v20  ;;  %v1369_v54 = vmul.f32 %v10110_v30, %v10718_v20  ;;  %524 = vperm.xlu1 %9349, %v9753_v62   ;;  %3169 = vmatprep.mubr.bf16.mxu0 %v2798_v57 }
 0x153   : > { %3170 = vmatmul.mubr.bf16.gmra.mrb[36].mxu0 %v2797_v58  ;;  %v10751_v58 = vld [vmem:[%s9847_s15 + $0x190] sm:$0xff] }
 0x154   : > { %v1496_v59 = vadd.f32 %v1368_v31, %v1232_v37  ;;  %v1497_v11 = vadd.f32 %v1369_v54, %v1233_v34  ;;  %1129 = vperm.xlu0 %9369, %v10751_v58  }
 0x155   : > { %v10739_v56 = vpop.permute.xlu1 %757 }
 0x156   : > { %14748 = vst [vmem:[#allocation71_spill] sm:$0xff] %v10739_v56  ;;  %9350 = vset.pattern.permute.xlu1 %v14700_v45  ;;  %v1370_v53 = vmul.f32 %v10104_v28, %v10739_v56  ;;  %v1371_v57 = vmul.f32 %v10110_v30, %v10739_v56  ;;  %v1760_v31 = vadd.f32 %v1632_v5, %v1496_v59 }
 0x157   : > { %809 = vperm.xlu1 %9350, %v9753_v62   ;;  %v1761_v54 = vadd.f32 %v1633_v2, %v1497_v11  ;;  %v335_v62 = vld [vmem:[%s9847_s15 + $0x1a0] sm:$0xff] }
 0x158   : > { %v1499_v52 = vadd.f32 %v1371_v57, %v1235_v23  ;;  %v1498_v56 = vadd.f32 %v1370_v53, %v1234_v63  ;;  %1137 = vperm.xlu0 %9369, %v335_v62   ;;  %v1899_v11 = vadd.f32 %v10151_v49, %v1760_v31  ;;  %v10772_v63 = vld [vmem:[%s9847_s15 + $0x188] sm:$0xff] }
 0x159   : > { %v1900_v39 = vadd.f32 %v10165_v17, %v1761_v54  ;;  %v9754_v54 = vld [vmem:[%s9847_s15 + $0x120] sm:$0xff] }
 0x15a   : > { %v10754_v37 = vpop.permute.xlu1 %1013 }
 0x15b   : > { %14749 = vst [vmem:[#allocation72_spill] sm:$0xff] %v10754_v37  ;;  %v1634_v34 = vmul.f32 %v10116_v32, %v10754_v37  ;;  %v1635_v7 = vmul.f32 %v10126_v36, %v10754_v37  ;;  %813 = vperm.xlu1 %9350, %v10299_v47  }
 0x15c   : > { %9380 = vset.pattern.permute.xlu0 %v14696_v48 }
 0x15d   : > { %v1763_v20 = vadd.f32 %v1635_v7, %v1499_v52  ;;  %v1762_v59 = vadd.f32 %v1634_v34, %v1498_v56  ;;  %v2692_v52 = vmax.f32 %v1900_v39, 0.0  ;;  %v2691_v56 = vmax.f32 %v1899_v11, 0.0  ;;  %599 = vperm.xlu0 %9380, %v10772_v63   ;;  %v10783_v39 = vpop.permute.xlu0 %1017 }
 0x15e   : > { %14752 = vst [vmem:[#allocation75_spill] sm:$0xff] %v10783_v39  ;;  %v1636_v11 = vmul.f32 %v10116_v32, %v10783_v39 }
 0x15f   : > { %9351 = vset.pattern.permute.xlu1 %v14702_v44  ;;  %v10765_v5 = vpop.permute.xlu1 %464  ;;  %v1902_v2 = vadd.f32 %v10165_v17, %v1763_v20  ;;  %v1901_v37 = vadd.f32 %v10151_v49, %v1762_v59 }
 0x160   : > { %14750 = vst [vmem:[#allocation73_spill] sm:$0xff] %v10765_v5  ;;  %1069 = vperm.xlu1 %9351, %v10299_v47   ;;  %v1237_v34 = vmul.f32 %v10107_v29, %v10765_v5 }
 0x161   : > { %v2694_v7 = vmax.f32 %v1902_v2, 0.0  ;;  %v2693_v23 = vmax.f32 %v1901_v37, 0.0  ;;  %v1236_v37 = vmul.f32 %v10119_v33, %v10765_v5  ;;  %v1637_v2 = vmul.f32 %v10126_v36, %v10783_v39 }
 0x163   : > { %v2800_v53 = vpack.c.bf16 %v2694_v7, %v2692_v52  ;;  %v2799_v57 = vpack.c.bf16 %v2693_v23, %v2691_v56  ;;  %v1238_v7 = vmul.f32 %v10119_v33, %v10497_v41  ;;  %v1239_v56 = vmul.f32 %v10107_v29, %v10497_v41 }
 0x164   : > { %9352 = vset.pattern.permute.xlu1 %v14696_v48  ;;  %v10776_v20 = vpop.permute.xlu1 %761 }
 0x165   : > { %14751 = vst [vmem:[#allocation74_spill] sm:$0xff] %v10776_v20  ;;  %v1372_v31 = vmul.f32 %v10104_v28, %v10776_v20  ;;  %v1373_v47 = vmul.f32 %v10110_v30, %v10776_v20  ;;  %534 = vperm.xlu1 %9352, %v9754_v54   ;;  %3179 = vmatprep.mubr.bf16.mxu0 %v2800_v53 }
 0x166   : > { %3180 = vmatmul.mubr.bf16.gmra.mrb[40].mxu0 %v2799_v57 }
 0x167   : > { %v1500_v62 = vadd.f32 %v1372_v31, %v1236_v37  ;;  %v1501_v59 = vadd.f32 %v1373_v47, %v1237_v34 }
 0x168   : > { %v10793_v52 = vpop.permute.xlu1 %765 }
 0x169   : > { %14753 = vst [vmem:[#allocation76_spill] sm:$0xff] %v10793_v52  ;;  %9353 = vset.pattern.permute.xlu1 %v14700_v45  ;;  %v1374_v23 = vmul.f32 %v10104_v28, %v10793_v52  ;;  %v1375_v53 = vmul.f32 %v10110_v30, %v10793_v52  ;;  %v1764_v57 = vadd.f32 %v1636_v11, %v1500_v62 }
 0x16a   : > { %817 = vperm.xlu1 %9353, %v9754_v54   ;;  %v1765_v31 = vadd.f32 %v1637_v2, %v1501_v59  ;;  %v10820_v2 = vld [vmem:[%s9847_s15 + $0x198] sm:$0xff] }
 0x16b   : > { %v1503_v5 = vadd.f32 %v1375_v53, %v1239_v56  ;;  %v1502_v20 = vadd.f32 %v1374_v23, %v1238_v7  ;;  %v1903_v54 = vadd.f32 %v10151_v49, %v1764_v57  ;;  %609 = vperm.xlu0 %9380, %v10820_v2  }
 0x16c   : > { %v1904_v15 = vadd.f32 %v10165_v17, %v1765_v31 }
 0x16d   : > { %v10804_v47 = vpop.permute.xlu1 %1021 }
 0x16e   : > { %14754 = vst [vmem:[#allocation77_spill] sm:$0xff] %v10804_v47  ;;  %v1638_v37 = vmul.f32 %v10116_v32, %v10804_v47  ;;  %v1639_v34 = vmul.f32 %v10126_v36, %v10804_v47  ;;  %821 = vperm.xlu1 %9353, %v10347_v42   ;;  %v2696_v56 = vmax.f32 %v1904_v15, 0.0 }
 0x170   : > { %v1767_v39 = vadd.f32 %v1639_v34, %v1503_v5  ;;  %v1766_v52 = vadd.f32 %v1638_v37, %v1502_v20  ;;  %v2695_v5 = vmax.f32 %v1903_v54, 0.0  ;;  %v10823_v20 = vpop.permute.xlu0 %1025 }
 0x171   : > { %14756 = vst [vmem:[#allocation79_spill] sm:$0xff] %v10823_v20 }
 0x172   : > { %9355 = vset.pattern.permute.xlu1 %v14702_v44  ;;  %v10814_v62 = vpop.permute.xlu1 %474  ;;  %v1906_v59 = vadd.f32 %v10165_v17, %v1767_v39  ;;  %v1905_v11 = vadd.f32 %v10151_v49, %v1766_v52 }
 0x173   : > { %14755 = vst [vmem:[#allocation78_spill] sm:$0xff] %v10814_v62  ;;  %1077 = vperm.xlu1 %9355, %v10347_v42   ;;  %v1240_v15 = vmul.f32 %v10119_v33, %v10814_v62  ;;  %v1241_v52 = vmul.f32 %v10107_v29, %v10814_v62 }
 0x174   : > { %v2698_v7 = vmax.f32 %v1906_v59, 0.0  ;;  %v2697_v23 = vmax.f32 %v1905_v11, 0.0  ;;  %v10837_v37 = vpop.permute.xlu0 %1033  ;;  %v1640_v59 = vmul.f32 %v10116_v32, %v10823_v20  ;;  %v1641_v11 = vmul.f32 %v10126_v36, %v10823_v20 }
 0x175   : > { %14758 = vst [vmem:[#allocation81_spill] sm:$0xff] %v10837_v37 }
 0x176   : > { %v2802_v53 = vpack.c.bf16 %v2698_v7, %v2696_v56  ;;  %v2801_v57 = vpack.c.bf16 %v2697_v23, %v2695_v5  ;;  %v1242_v7 = vmul.f32 %v10119_v33, %v10524_v38  ;;  %v1243_v5 = vmul.f32 %v10107_v29, %v10524_v38 }
 0x177   : > { %9356 = vset.pattern.permute.xlu1 %v14696_v48  ;;  %v10826_v31 = vpop.permute.xlu1 %769 }
 0x178   : > { %14757 = vst [vmem:[#allocation80_spill] sm:$0xff] %v10826_v31  ;;  %v1376_v39 = vmul.f32 %v10104_v28, %v10826_v31  ;;  %v1377_v42 = vmul.f32 %v10110_v30, %v10826_v31  ;;  %544 = vperm.xlu1 %9356, %v10472_v60   ;;  %3189 = vmatprep.mubr.bf16.mxu0 %v2802_v53 }
 0x179   : > { %3190 = vmatmul.mubr.bf16.gmra.mrb[44].mxu0 %v2801_v57 }
 0x17a   : > { %v1504_v34 = vadd.f32 %v1376_v39, %v1240_v15  ;;  %v1505_v54 = vadd.f32 %v1377_v42, %v1241_v52  ;;  %v10855_v42 = vpop.permute.xlu0 %1041 }
 0x17b   : > { %v10843_v56 = vpop.permute.xlu1 %773  ;;  %14760 = vst [vmem:[#allocation83_spill] sm:$0xff] %v10855_v42 }
 0x17c   : > { %14759 = vst [vmem:[#allocation82_spill] sm:$0xff] %v10843_v56  ;;  %9357 = vset.pattern.permute.xlu1 %v14700_v45  ;;  %v1378_v23 = vmul.f32 %v10104_v28, %v10843_v56  ;;  %v1379_v53 = vmul.f32 %v10110_v30, %v10843_v56  ;;  %v1768_v57 = vadd.f32 %v1640_v59, %v1504_v34 }
 0x17d   : > { %825 = vperm.xlu1 %9357, %v10472_v60   ;;  %v1769_v39 = vadd.f32 %v1641_v11, %v1505_v54 }
 0x17e   : > { %v1507_v62 = vadd.f32 %v1379_v53, %v1243_v5  ;;  %v1506_v47 = vadd.f32 %v1378_v23, %v1242_v7  ;;  %v1907_v54 = vadd.f32 %v10151_v49, %v1768_v57  ;;  %v10875_v7 = vld [vmem:[%s9847_s15 + $0x1a8] sm:$0xff]  ;;  %v338_v57 = vld [vmem:[%s9847_s15 + $0x1b8] sm:$0xff] }
 0x17f   : > { %v1908_v60 = vadd.f32 %v10165_v17, %v1769_v39  ;;  %619 = vperm.xlu0 %9380, %v10875_v7  }
 0x180   : > { %v10857_v15 = vpop.permute.xlu1 %1029 }
 0x181   : > { %14761 = vst [vmem:[#allocation84_spill] sm:$0xff] %v10857_v15  ;;  %v1642_v52 = vmul.f32 %v10116_v32, %v10857_v15  ;;  %v1643_v31 = vmul.f32 %v10126_v36, %v10857_v15  ;;  %829 = vperm.xlu1 %9357, %v10366_v35   ;;  %v10871_v15 = vpop.permute.xlu0 %1049 }
 0x182   : > { %14763 = vst [vmem:[#allocation86_spill] sm:$0xff] %v10871_v15 }
 0x183   : > { %v1771_v56 = vadd.f32 %v1643_v31, %v1507_v62  ;;  %v1770_v34 = vadd.f32 %v1642_v52, %v1506_v47  ;;  %v2700_v62 = vmax.f32 %v1908_v60, 0.0  ;;  %v2699_v47 = vmax.f32 %v1907_v54, 0.0  ;;  %629 = vperm.xlu0 %9380, %v338_v57  }
 0x184   : > { %v1645_v54 = vmul.f32 %v10126_v36, %v10837_v37 }
 0x185   : > { %9358 = vset.pattern.permute.xlu1 %v14702_v44  ;;  %v10867_v59 = vpop.permute.xlu1 %484  ;;  %v1910_v11 = vadd.f32 %v10165_v17, %v1771_v56  ;;  %v1909_v20 = vadd.f32 %v10151_v49, %v1770_v34  ;;  %v10891_v60 = vpop.permute.xlu0 %1057  ;;  %v1644_v34 = vmul.f32 %v10116_v32, %v10837_v37 }
 0x186   : > { %14762 = vst [vmem:[#allocation85_spill] sm:$0xff] %v10867_v59  ;;  %1085 = vperm.xlu1 %9358, %v10366_v35   ;;  %v1244_v56 = vmul.f32 %v10119_v33, %v10867_v59  ;;  %v1245_v35 = vmul.f32 %v10107_v29, %v10867_v59  ;;  %14765 = vst [vmem:[#allocation88_spill] sm:$0xff] %v10891_v60 }
 0x187   : > { %v2702_v31 = vmax.f32 %v1910_v11, 0.0  ;;  %v2701_v5 = vmax.f32 %v1909_v20, 0.0 }
 0x189   : > { %v2804_v23 = vpack.c.bf16 %v2702_v31, %v2700_v62  ;;  %v2803_v53 = vpack.c.bf16 %v2701_v5, %v2699_v47  ;;  %v340_v31 = vld [vmem:[%s9847_s15 + $0x1c8] sm:$0xff]  ;;  %v1246_v5 = vmul.f32 %v10119_v33, %v10548_v51 }
 0x18a   : > { %9359 = vset.pattern.permute.xlu1 %v14696_v48  ;;  %v10882_v39 = vpop.permute.xlu1 %777  ;;  %639 = vperm.xlu0 %9380, %v340_v31  }
 0x18b   : > { %14764 = vst [vmem:[#allocation87_spill] sm:$0xff] %v10882_v39  ;;  %v1380_v52 = vmul.f32 %v10104_v28, %v10882_v39  ;;  %v1381_v20 = vmul.f32 %v10110_v30, %v10882_v39  ;;  %554 = vperm.xlu1 %9359, %v10527_v8   ;;  %3199 = vmatprep.mubr.bf16.mxu0 %v2804_v23  ;;  %v2875_v23 = vld [vmem:[%s14425_s4] sm:$0x3] }
 0x18c   : > { %3200 = vmatmul.mubr.bf16.gmra.mrb[48].mxu0 %v2803_v53  ;;  %v1247_v53 = vmul.f32 %v10107_v29, %v10548_v51  ;;  %v10916_v59 = vrot.slane %v2875_v23, %v10088_v22  ;;  %v10921_v37 = vrot.slane %v2875_v23, %v10086_v21  ;;  %v342_v51 = vld [vmem:[%s9847_s15 + $0x1d8] sm:$0xff] }
 0x18d   : > { %v1509_v11 = vadd.f32 %v1381_v20, %v1245_v35  ;;  %v1508_v62 = vadd.f32 %v1380_v52, %v1244_v56  ;;  %v10913_v35 = vpop.permute.xlu0 %1065 }
 0x18e   : > { %v10898_v47 = vpop.permute.xlu1 %781  ;;  %14767 = vst [vmem:[#allocation90_spill] sm:$0xff] %v10913_v35  ;;  %649 = vperm.xlu0 %9380, %v342_v51  }
 0x18f   : > { %14766 = vst [vmem:[#allocation89_spill] sm:$0xff] %v10898_v47  ;;  %9360 = vset.pattern.permute.xlu1 %v14700_v45  ;;  %v1382_v57 = vmul.f32 %v10104_v28, %v10898_v47  ;;  %v1383_v56 = vmul.f32 %v10110_v30, %v10898_v47  ;;  %v1773_v52 = vadd.f32 %v1645_v54, %v1509_v11 }
 0x190   : > { %833 = vperm.xlu1 %9360, %v10527_v8   ;;  %v1772_v20 = vadd.f32 %v1644_v34, %v1508_v62 }
 0x191   : > { %v1511_v31 = vadd.f32 %v1383_v56, %v1247_v53  ;;  %v1510_v54 = vadd.f32 %v1382_v57, %v1246_v5  ;;  %v1912_v11 = vadd.f32 %v10165_v17, %v1773_v52  ;;  %v10932_v1 = vpop.permute.xlu0 %1073 }
 0x192   : > { %v1911_v62 = vadd.f32 %v10151_v49, %v1772_v20  ;;  %14769 = vst [vmem:[#allocation92_spill] sm:$0xff] %v10932_v1  ;;  %9389 = vset.pattern.permute.xlu0 %v14702_v44 }
 0x193   : > { %v10918_v39 = vpop.permute.xlu1 %1037  ;;  %v2704_v52 = vmax.f32 %v1912_v11, 0.0 }
 0x194   : > { %14768 = vst [vmem:[#allocation91_spill] sm:$0xff] %v10918_v39  ;;  %v1646_v38 = vmul.f32 %v10116_v32, %v10918_v39  ;;  %v1647_v8 = vmul.f32 %v10126_v36, %v10918_v39  ;;  %837 = vperm.xlu1 %9360, %v10384_v10  }
 0x195   : > { %v3081_v34 = vpop.f32.mrb[0].mxu0 }
 0x196   : > { %v3082_v23 = vadd.f32 %v3081_v34, %v10916_v59  ;;  %v3083_v47 = vpop.f32.mrb[1].mxu0  ;;  %v1775_v41 = vadd.f32 %v1647_v8, %v1511_v31  ;;  %v1774_v46 = vadd.f32 %v1646_v38, %v1510_v54  ;;  %v2703_v38 = vmax.f32 %v1911_v62, 0.0  ;;  %v10944_v8 = vld [vmem:[%s9847_s15 + $0x1b0] sm:$0xff] }
 0x197   : > { %v3085_v43 = vpop.f32.mrb[2].mxu0  ;;  %v3084_v39 = vadd.f32 %v3083_v47, %v10921_v37  ;;  %1145 = vperm.xlu0 %9389, %v10944_v8  }
 0x198   : > { %v3086_v53 = vadd.f32 %v3085_v43, %v10916_v59  ;;  %v3087_v5 = vpop.f32.mrb[3].mxu0  ;;  %9361 = vset.pattern.permute.xlu1 %v14702_v44  ;;  %v10937_v57 = vpop.permute.xlu1 %494  ;;  %v1914_v51 = vadd.f32 %v10165_v17, %v1775_v41  ;;  %v1913_v56 = vadd.f32 %v10151_v49, %v1774_v46  ;;  %v3400_v43 = vmax.f32 %v3082_v23, 0.0 }
 0x199   : > { %14770 = vst [vmem:[#allocation93_spill] sm:$0xff] %v10937_v57  ;;  %1093 = vperm.xlu1 %9361, %v10384_v10   ;;  %v3088_v20 = vadd.f32 %v3087_v5, %v10921_v37  ;;  %v3401_v34 = vmax.f32 %v3084_v39, 0.0  ;;  %v1249_v10 = vmul.f32 %v10107_v29, %v10937_v57 }
 0x19a   : > { %v3402_v47 = vmax.f32 %v3086_v53, 0.0  ;;  %v2706_v31 = vmax.f32 %v1914_v51, 0.0  ;;  %v2705_v54 = vmax.f32 %v1913_v56, 0.0  ;;  %v10959_v56 = vpop.permute.xlu0 %499 }
 0x19b   : > { %v3403_v41 = vmax.f32 %v3088_v20, 0.0  ;;  %14772 = vst [vmem:[#allocation95_spill] sm:$0xff] %v10959_v56 }
 0x19c   : > { %v2806_v24 = vpack.c.bf16 %v2706_v31, %v2704_v52  ;;  %v2805_v46 = vpack.c.bf16 %v2705_v54, %v2703_v38  ;;  %v3528_v25 = vpack.c.bf16 %v3402_v47, %v3400_v43  ;;  %v1248_v52 = vmul.f32 %v10119_v33, %v10937_v57 }
 0x19d   : > { %v3091_v11 = vpop.f32.mrb[4].mxu0  ;;  %9362 = vset.pattern.permute.xlu1 %v14696_v48  ;;  %v10951_v62 = vpop.permute.xlu1 %785  ;;  %v3529_v5 = vpack.c.bf16 %v3403_v41, %v3401_v34  ;;  %v1648_v43 = vmul.f32 %v10116_v32, %v10855_v42  ;;  %v1649_v47 = vmul.f32 %v10126_v36, %v10855_v42  ;;  %v1250_v41 = vmul.f32 %v10119_v33, %v10959_v56 }
 0x19e   : > { %14771 = vst [vmem:[#allocation94_spill] sm:$0xff] %v10951_v62  ;;  %v3092_v23 = vadd.f32 %v3091_v11, %v10916_v59  ;;  %v1384_v53 = vmul.f32 %v10104_v28, %v10951_v62  ;;  %v1385_v39 = vmul.f32 %v10110_v30, %v10951_v62  ;;  %v3093_v51 = vpop.f32.mrb[5].mxu0  ;;  %564 = vperm.xlu1 %9362, %v10602_v55  }
 0x19f   : > { %3209 = vmatprep.mubr.bf16.mxu0 %v2806_v24  ;;  %v3094_v38 = vadd.f32 %v3093_v51, %v10921_v37  ;;  %v3095_v20 = vpop.f32.mrb[6].mxu0  ;;  %3830 = vmatprep.mubr.bf16.mxu1 %v3529_v5 }
 0x1a0   : > { %3210 = vmatmul.mubr.bf16.gmra.mrb[52].mxu0 %v2805_v46  ;;  %v3096_v31 = vadd.f32 %v3095_v20, %v10916_v59  ;;  %v3097_v54 = vpop.f32.mrb[7].mxu0  ;;  %3831 = vmatmul.mubr.bf16.vlgmr.msra.gmra.mrb[0].mxu1 %v3528_v25  ;;  %v1513_v24 = vadd.f32 %v1385_v39, %v1249_v10  ;;  %v1251_v46 = vmul.f32 %v10107_v29, %v10959_v56  ;;  %v3404_v51 = vmax.f32 %v3092_v23, 0.0  ;;  %v10983_v56 = vld [vmem:[%s9847_s15 + $0x1c0] sm:$0xff] }
 0x1a1   : > { %v3098_v34 = vadd.f32 %v3097_v54, %v10921_v37  ;;  %v10974_v11 = vpop.permute.xlu1 %789  ;;  %v1512_v5 = vadd.f32 %v1384_v53, %v1248_v52  ;;  %v3405_v10 = vmax.f32 %v3094_v38, 0.0  ;;  %1153 = vperm.xlu0 %9389, %v10983_v56  }
 0x1a2   : > { %14773 = vst [vmem:[#allocation96_spill] sm:$0xff] %v10974_v11  ;;  %v3406_v62 = vmax.f32 %v3096_v31, 0.0  ;;  %v1386_v20 = vmul.f32 %v10104_v28, %v10974_v11  ;;  %v1387_v25 = vmul.f32 %v10110_v30, %v10974_v11  ;;  %9363 = vset.pattern.permute.xlu1 %v14700_v45  ;;  %v1777_v57 = vadd.f32 %v1649_v47, %v1513_v24 }
 0x1a3   : > { %v3407_v39 = vmax.f32 %v3098_v34, 0.0  ;;  %841 = vperm.xlu1 %9363, %v10602_v55   ;;  %v1776_v52 = vadd.f32 %v1648_v43, %v1512_v5  ;;  %v9755_v43 = vld [vmem:[%s9847_s15 + $0x158] sm:$0xff] }
 0x1a4   : > { %v3530_v54 = vpack.c.bf16 %v3406_v62, %v3404_v51  ;;  %v1515_v50 = vadd.f32 %v1387_v25, %v1251_v46  ;;  %v1514_v38 = vadd.f32 %v1386_v20, %v1250_v41  ;;  %v1916_v51 = vadd.f32 %v10165_v17, %v1777_v57 }
 0x1a5   : > { %v3101_v53 = vpop.f32.mrb[8].mxu0  ;;  %v3531_v23 = vpack.c.bf16 %v3407_v39, %v3405_v10  ;;  %v1915_v20 = vadd.f32 %v10151_v49, %v1776_v52 }
 0x1a6   : > { %v3102_v31 = vadd.f32 %v3101_v53, %v10916_v59  ;;  %v3103_v42 = vpop.f32.mrb[9].mxu0  ;;  %v10987_v11 = vpop.permute.xlu1 %1045 }
 0x1a7   : > { %14774 = vst [vmem:[#allocation97_spill] sm:$0xff] %v10987_v11  ;;  %v3104_v34 = vadd.f32 %v3103_v42, %v10921_v37  ;;  %v1650_v55 = vmul.f32 %v10116_v32, %v10987_v11  ;;  %v1651_v62 = vmul.f32 %v10126_v36, %v10987_v11  ;;  %v3105_v47 = vpop.f32.mrb[10].mxu0  ;;  %3840 = vmatprep.mubr.bf16.mxu1 %v3531_v23  ;;  %v2708_v11 = vmax.f32 %v1916_v51, 0.0  ;;  %v11016_v51 = vpop.permute.xlu0 %509 }
 0x1a8   : > { %845 = vperm.xlu1 %9363, %v9755_v43   ;;  %v3106_v24 = vadd.f32 %v3105_v47, %v10916_v59  ;;  %v3107_v5 = vpop.f32.mrb[11].mxu0  ;;  %3841 = vmatmul.mubr.bf16.gmra.mrb[4].mxu1 %v3530_v54  ;;  %v3408_v25 = vmax.f32 %v3102_v31, 0.0  ;;  %14777 = vst [vmem:[#allocation100_spill] sm:$0xff] %v11016_v51 }
 0x1a9   : > { %v3108_v41 = vadd.f32 %v3107_v5, %v10921_v37  ;;  %v1779_v46 = vadd.f32 %v1651_v62, %v1515_v50  ;;  %v1778_v42 = vadd.f32 %v1650_v55, %v1514_v38  ;;  %v3409_v39 = vmax.f32 %v3104_v34, 0.0 }
 0x1aa   : > { %v3410_v10 = vmax.f32 %v3106_v24, 0.0  ;;  %v2707_v38 = vmax.f32 %v1915_v20, 0.0 }
 0x1ab   : > { %v3411_v53 = vmax.f32 %v3108_v41, 0.0  ;;  %v11000_v23 = vpop.permute.xlu1 %504  ;;  %v1918_v47 = vadd.f32 %v10165_v17, %v1779_v46  ;;  %v1917_v54 = vadd.f32 %v10151_v49, %v1778_v42  ;;  %v1653_v41 = vmul.f32 %v10126_v36, %v10871_v15 }
 0x1ac   : > { %9364 = vset.pattern.permute.xlu1 %v14702_v44  ;;  %14775 = vst [vmem:[#allocation98_spill] sm:$0xff] %v11000_v23  ;;  %v3532_v57 = vpack.c.bf16 %v3410_v10, %v3408_v25  ;;  %v1253_v62 = vmul.f32 %v10107_v29, %v11000_v23  ;;  %v1652_v42 = vmul.f32 %v10116_v32, %v10871_v15 }
 0x1ad   : > { %1101 = vperm.xlu1 %9364, %v9755_v43   ;;  %v3533_v5 = vpack.c.bf16 %v3411_v53, %v3409_v39  ;;  %v2710_v50 = vmax.f32 %v1918_v47, 0.0  ;;  %v2709_v55 = vmax.f32 %v1917_v54, 0.0  ;;  %v1255_v39 = vmul.f32 %v10107_v29, %v11016_v51 }
 0x1af   : > { %3850 = vmatprep.mubr.bf16.mxu1 %v3533_v5  ;;  %v2808_v52 = vpack.c.bf16 %v2710_v50, %v2708_v11  ;;  %v2807_v31 = vpack.c.bf16 %v2709_v55, %v2707_v38  ;;  %v1252_v11 = vmul.f32 %v10119_v33, %v11000_v23 }
 0x1b0   : > { %3851 = vmatmul.mubr.bf16.gmra.mrb[8].mxu1 %v3532_v57  ;;  %v11005_v34 = vpop.permute.xlu1 %793  ;;  %v1254_v57 = vmul.f32 %v10119_v33, %v11016_v51 }
 0x1b1   : > { %9365 = vset.pattern.permute.xlu1 %v14696_v48  ;;  %14776 = vst [vmem:[#allocation99_spill] sm:$0xff] %v11005_v34  ;;  %v1388_v43 = vmul.f32 %v10104_v28, %v11005_v34  ;;  %v1389_v24 = vmul.f32 %v10110_v30, %v11005_v34  ;;  %3219 = vmatprep.mubr.bf16.mxu0 %v2808_v52 }
 0x1b2   : > { %574 = vperm.xlu1 %9365, %v10651_v61   ;;  %3220 = vmatmul.mubr.bf16.gmra.mrb[56].mxu0 %v2807_v31 }
 0x1b3   : > { %v1517_v46 = vadd.f32 %v1389_v24, %v1253_v62  ;;  %v1516_v10 = vadd.f32 %v1388_v43, %v1252_v11  ;;  %v11038_v62 = vld [vmem:[%s9847_s15 + $0x1d0] sm:$0xff] }
 0x1b4   : > { %v3111_v20 = vpop.f32.mrb[12].mxu0  ;;  %v11022_v25 = vpop.permute.xlu1 %797  ;;  %1161 = vperm.xlu0 %9389, %v11038_v62  }
 0x1b5   : > { %14778 = vst [vmem:[#allocation101_spill] sm:$0xff] %v11022_v25  ;;  %v3112_v53 = vadd.f32 %v3111_v20, %v10916_v59  ;;  %v1391_v47 = vmul.f32 %v10110_v30, %v11022_v25  ;;  %v3113_v54 = vpop.f32.mrb[13].mxu0  ;;  %v1390_v5 = vmul.f32 %v10104_v28, %v11022_v25  ;;  %v1781_v31 = vadd.f32 %v1653_v41, %v1517_v46  ;;  %v9756_v46 = vld [vmem:[%s9847_s15 + $0x168] sm:$0xff] }
 0x1b6   : > { %9366 = vset.pattern.permute.xlu1 %v14700_v45  ;;  %v3114_v50 = vadd.f32 %v3113_v54, %v10921_v37  ;;  %v3115_v38 = vpop.f32.mrb[14].mxu0  ;;  %v1780_v24 = vadd.f32 %v1652_v42, %v1516_v10 }
 0x1b7   : > { %849 = vperm.xlu1 %9366, %v10651_v61   ;;  %v3116_v55 = vadd.f32 %v3115_v38, %v10916_v59  ;;  %v3117_v52 = vpop.f32.mrb[15].mxu0  ;;  %v3412_v11 = vmax.f32 %v3112_v53, 0.0  ;;  %v1519_v54 = vadd.f32 %v1391_v47, %v1255_v39  ;;  %v1518_v38 = vadd.f32 %v1390_v5, %v1254_v57 }
 0x1b8   : > { %v3118_v43 = vadd.f32 %v3117_v52, %v10921_v37  ;;  %v3413_v20 = vmax.f32 %v3114_v50, 0.0  ;;  %v1920_v42 = vadd.f32 %v10165_v17, %v1781_v31 }
 0x1b9   : > { %v3414_v25 = vmax.f32 %v3116_v55, 0.0  ;;  %v11042_v51 = vpop.permute.xlu1 %1053  ;;  %v1919_v55 = vadd.f32 %v10151_v49, %v1780_v24 }
 0x1ba   : > { %14779 = vst [vmem:[#allocation102_spill] sm:$0xff] %v11042_v51  ;;  %v3415_v15 = vmax.f32 %v3118_v43, 0.0  ;;  %v1654_v61 = vmul.f32 %v10116_v32, %v11042_v51  ;;  %v1655_v41 = vmul.f32 %v10126_v36, %v11042_v51  ;;  %v2712_v57 = vmax.f32 %v1920_v42, 0.0 }
 0x1bb   : > { %853 = vperm.xlu1 %9366, %v9756_v46   ;;  %v3534_v52 = vpack.c.bf16 %v3414_v25, %v3412_v11  ;;  %v2711_v5 = vmax.f32 %v1919_v55, 0.0  ;;  %v1656_v42 = vmul.f32 %v10116_v32, %v10891_v60 }
 0x1bc   : > { %v3535_v10 = vpack.c.bf16 %v3415_v15, %v3413_v20  ;;  %v1783_v53 = vadd.f32 %v1655_v41, %v1519_v54  ;;  %v1782_v50 = vadd.f32 %v1654_v61, %v1518_v38  ;;  %v1657_v38 = vmul.f32 %v10126_v36, %v10891_v60 }
 0x1be   : > { %3860 = vmatprep.mubr.bf16.mxu1 %v3535_v10  ;;  %v11052_v39 = vpop.permute.xlu1 %514  ;;  %v1922_v47 = vadd.f32 %v10165_v17, %v1783_v53  ;;  %v1921_v43 = vadd.f32 %v10151_v49, %v1782_v50 }
 0x1bf   : > { %9367 = vset.pattern.permute.xlu1 %v14702_v44  ;;  %14780 = vst [vmem:[#allocation103_spill] sm:$0xff] %v11052_v39  ;;  %3861 = vmatmul.mubr.bf16.gmra.mrb[12].mxu1 %v3534_v52  ;;  %v1257_v20 = vmul.f32 %v10107_v29, %v11052_v39  ;;  %v1256_v41 = vmul.f32 %v10119_v33, %v11052_v39 }
 0x1c0   : > { %1109 = vperm.xlu1 %9367, %v9756_v46   ;;  %v2714_v25 = vmax.f32 %v1922_v47, 0.0  ;;  %v2713_v31 = vmax.f32 %v1921_v43, 0.0  ;;  %v11068_v46 = vpop.permute.xlu0 %519 }
 0x1c1   : > { %14782 = vst [vmem:[#allocation105_spill] sm:$0xff] %v11068_v46  ;;  %v1259_v55 = vmul.f32 %v10107_v29, %v11068_v46 }
 0x1c2   : > { %v2810_v15 = vpack.c.bf16 %v2714_v25, %v2712_v57  ;;  %v2809_v11 = vpack.c.bf16 %v2713_v31, %v2711_v5  ;;  %v1258_v25 = vmul.f32 %v10119_v33, %v11068_v46 }
 0x1c3   : > { %v11057_v24 = vpop.permute.xlu1 %801 }
 0x1c4   : > { %9368 = vset.pattern.permute.xlu1 %v14696_v48  ;;  %14781 = vst [vmem:[#allocation104_spill] sm:$0xff] %v11057_v24  ;;  %v1392_v54 = vmul.f32 %v10104_v28, %v11057_v24  ;;  %v1393_v61 = vmul.f32 %v10110_v30, %v11057_v24  ;;  %3229 = vmatprep.mubr.bf16.mxu0 %v2810_v15 }
 0x1c5   : > { %584 = vperm.xlu1 %9368, %v10699_v40   ;;  %3230 = vmatmul.mubr.bf16.gmra.mrb[60].mxu0 %v2809_v11 }
 0x1c6   : > { %v1521_v52 = vadd.f32 %v1393_v61, %v1257_v20  ;;  %v1520_v50 = vadd.f32 %v1392_v54, %v1256_v41  ;;  %v11090_v61 = vld [vmem:[%s9847_s15 + $0x1e0] sm:$0xff] }
 0x1c7   : > { %v3121_v10 = vpop.f32.mrb[16].mxu0  ;;  %v11074_v53 = vpop.permute.xlu1 %805  ;;  %1169 = vperm.xlu0 %9389, %v11090_v61  }
 0x1c8   : > { %14783 = vst [vmem:[#allocation106_spill] sm:$0xff] %v11074_v53  ;;  %v3122_v47 = vadd.f32 %v3121_v10, %v10916_v59  ;;  %v1395_v43 = vmul.f32 %v10110_v30, %v11074_v53  ;;  %v3123_v57 = vpop.f32.mrb[17].mxu0  ;;  %v1394_v5 = vmul.f32 %v10104_v28, %v11074_v53  ;;  %v1785_v54 = vadd.f32 %v1657_v38, %v1521_v52  ;;  %v9757_v52 = vld [vmem:[%s9847_s15 + $0x178] sm:$0xff] }
 0x1c9   : > { %9370 = vset.pattern.permute.xlu1 %v14700_v45  ;;  %v3124_v31 = vadd.f32 %v3123_v57, %v10921_v37  ;;  %v3125_v15 = vpop.f32.mrb[18].mxu0  ;;  %v1784_v10 = vadd.f32 %v1656_v42, %v1520_v50 }
 0x1ca   : > { %857 = vperm.xlu1 %9370, %v10699_v40   ;;  %v3126_v11 = vadd.f32 %v3125_v15, %v10916_v59  ;;  %v3127_v20 = vpop.f32.mrb[19].mxu0  ;;  %v3416_v46 = vmax.f32 %v3122_v47, 0.0  ;;  %v1523_v57 = vadd.f32 %v1395_v43, %v1259_v55  ;;  %v1522_v15 = vadd.f32 %v1394_v5, %v1258_v25  ;;  %v344_v5 = vld [vmem:[%s9847_s15 + $0x1e8] sm:$0xff] }
 0x1cb   : > { %v3128_v41 = vadd.f32 %v3127_v20, %v10921_v37  ;;  %v3417_v60 = vmax.f32 %v3124_v31, 0.0  ;;  %v1924_v42 = vadd.f32 %v10165_v17, %v1785_v54  ;;  %9394 = vset.pattern.permute.xlu0 %v14696_v48  ;;  %v11110_v54 = vpop.permute.xlu0 %529 }
 0x1cc   : > { %v3418_v53 = vmax.f32 %v3126_v11, 0.0  ;;  %v11094_v39 = vpop.permute.xlu1 %1061  ;;  %v1923_v11 = vadd.f32 %v10151_v49, %v1784_v10  ;;  %14786 = vst [vmem:[#allocation109_spill] sm:$0xff] %v11110_v54  ;;  %659 = vperm.xlu0 %9394, %v344_v5  }
 0x1cd   : > { %14784 = vst [vmem:[#allocation107_spill] sm:$0xff] %v11094_v39  ;;  %v3419_v24 = vmax.f32 %v3128_v41, 0.0  ;;  %v1658_v40 = vmul.f32 %v10116_v32, %v11094_v39  ;;  %v1659_v38 = vmul.f32 %v10126_v36, %v11094_v39 }
 0x1ce   : > { %861 = vperm.xlu1 %9370, %v9757_v52   ;;  %v3536_v20 = vpack.c.bf16 %v3418_v53, %v3416_v46  ;;  %v2716_v46 = vmax.f32 %v1924_v42, 0.0  ;;  %v1661_v42 = vmul.f32 %v10126_v36, %v10913_v35 }
 0x1cf   : > { %v3537_v50 = vpack.c.bf16 %v3419_v24, %v3417_v60  ;;  %v1787_v47 = vadd.f32 %v1659_v38, %v1523_v57  ;;  %v1786_v31 = vadd.f32 %v1658_v40, %v1522_v15  ;;  %v2715_v24 = vmax.f32 %v1923_v11, 0.0 }
 0x1d1   : > { %3870 = vmatprep.mubr.bf16.mxu1 %v3537_v50  ;;  %v11105_v55 = vpop.permute.xlu1 %524  ;;  %v1926_v43 = vadd.f32 %v10165_v17, %v1787_v47  ;;  %v1925_v25 = vadd.f32 %v10151_v49, %v1786_v31  ;;  %v1660_v47 = vmul.f32 %v10116_v32, %v10913_v35 }
 0x1d2   : > { %9371 = vset.pattern.permute.xlu1 %v14702_v44  ;;  %14785 = vst [vmem:[#allocation108_spill] sm:$0xff] %v11105_v55  ;;  %3871 = vmatmul.mubr.bf16.gmra.mrb[16].mxu1 %v3536_v20  ;;  %v1261_v40 = vmul.f32 %v10107_v29, %v11105_v55  ;;  %v1260_v15 = vmul.f32 %v10119_v33, %v11105_v55  ;;  %v11124_v20 = vpop.permute.xlu0 %539  ;;  %v346_v55 = vld [vmem:[%s9847_s15 + $0x1f8] sm:$0xff] }
 0x1d3   : > { %1117 = vperm.xlu1 %9371, %v9757_v52   ;;  %v2718_v60 = vmax.f32 %v1926_v43, 0.0  ;;  %v2717_v53 = vmax.f32 %v1925_v25, 0.0  ;;  %14788 = vst [vmem:[#allocation111_spill] sm:$0xff] %v11124_v20  ;;  %v1263_v25 = vmul.f32 %v10107_v29, %v11110_v54  ;;  %669 = vperm.xlu0 %9394, %v346_v55  }
 0x1d5   : > { %v2812_v41 = vpack.c.bf16 %v2718_v60, %v2716_v46  ;;  %v2811_v10 = vpack.c.bf16 %v2717_v53, %v2715_v24  ;;  %v1262_v53 = vmul.f32 %v10119_v33, %v11110_v54 }
 0x1d6   : > { %v11113_v57 = vpop.permute.xlu1 %809 }
 0x1d7   : > { %9372 = vset.pattern.permute.xlu1 %v14696_v48  ;;  %14787 = vst [vmem:[#allocation110_spill] sm:$0xff] %v11113_v57  ;;  %v1396_v38 = vmul.f32 %v10104_v28, %v11113_v57  ;;  %v1397_v52 = vmul.f32 %v10110_v30, %v11113_v57  ;;  %3239 = vmatprep.mubr.bf16.mxu0 %v2812_v41 }
 0x1d8   : > { %594 = vperm.xlu1 %9372, %v10728_v0   ;;  %3240 = vmatmul.mubr.bf16.gmra.mrb[64].mxu0 %v2811_v10 }
 0x1d9   : > { %v1525_v50 = vadd.f32 %v1397_v52, %v1261_v40  ;;  %v1524_v43 = vadd.f32 %v1396_v38, %v1260_v15  ;;  %9398 = vset.pattern.permute.xlu0 %v14702_v44 }
 0x1da   : > { %v3131_v31 = vpop.f32.mrb[20].mxu0  ;;  %v11130_v11 = vpop.permute.xlu1 %813 }
 0x1db   : > { %14789 = vst [vmem:[#allocation112_spill] sm:$0xff] %v11130_v11  ;;  %v3132_v46 = vadd.f32 %v3131_v31, %v10916_v59  ;;  %v1399_v60 = vmul.f32 %v10110_v30, %v11130_v11  ;;  %v3133_v24 = vpop.f32.mrb[21].mxu0  ;;  %v1398_v5 = vmul.f32 %v10104_v28, %v11130_v11  ;;  %v1789_v52 = vadd.f32 %v1661_v42, %v1525_v50  ;;  %v11146_v31 = vpop.permute.xlu0 %549 }
 0x1dc   : > { %9373 = vset.pattern.permute.xlu1 %v14700_v45  ;;  %v3134_v41 = vadd.f32 %v3133_v24, %v10921_v37  ;;  %v3135_v10 = vpop.f32.mrb[22].mxu0  ;;  %v1788_v35 = vadd.f32 %v1660_v47, %v1524_v43 }
 0x1dd   : > { %865 = vperm.xlu1 %9373, %v10728_v0   ;;  %v3136_v40 = vadd.f32 %v3135_v10, %v10916_v59  ;;  %v3137_v38 = vpop.f32.mrb[23].mxu0  ;;  %v3420_v57 = vmax.f32 %v3132_v46, 0.0  ;;  %v1527_v11 = vadd.f32 %v1399_v60, %v1263_v25  ;;  %v1526_v50 = vadd.f32 %v1398_v5, %v1262_v53 }
 0x1de   : > { %v3138_v15 = vadd.f32 %v3137_v38, %v10921_v37  ;;  %v3421_v54 = vmax.f32 %v3134_v41, 0.0  ;;  %v1928_v43 = vadd.f32 %v10165_v17, %v1789_v52  ;;  %v1927_v25 = vadd.f32 %v10151_v49, %v1788_v35 }
 0x1df   : > { %v3422_v39 = vmax.f32 %v3136_v40, 0.0  ;;  %v11149_v51 = vpop.permute.xlu1 %1069  ;;  %v11164_v5 = vpop.permute.xlu0 %559 }
 0x1e0   : > { %14790 = vst [vmem:[#allocation113_spill] sm:$0xff] %v11149_v51  ;;  %v3423_v24 = vmax.f32 %v3138_v15, 0.0  ;;  %v1662_v0 = vmul.f32 %v10116_v32, %v11149_v51  ;;  %v1663_v42 = vmul.f32 %v10126_v36, %v11149_v51  ;;  %v2719_v35 = vmax.f32 %v1927_v25, 0.0 }
 0x1e1   : > { %869 = vperm.xlu1 %9373, %v10772_v63   ;;  %v3538_v47 = vpack.c.bf16 %v3422_v39, %v3420_v57  ;;  %v345_v39 = vld [vmem:[%s9847_s15 + $0x1f0] sm:$0xff]  ;;  %v1267_v25 = vmul.f32 %v10107_v29, %v11124_v20 }
 0x1e2   : > { %v3539_v46 = vpack.c.bf16 %v3423_v24, %v3421_v54  ;;  %v1791_v41 = vadd.f32 %v1663_v42, %v1527_v11  ;;  %v1790_v10 = vadd.f32 %v1662_v0, %v1526_v50  ;;  %v2720_v54 = vmax.f32 %v1928_v43, 0.0  ;;  %1177 = vperm.xlu0 %9398, %v345_v39  }
 0x1e3   : > { %v11178_v0 = vpop.permute.xlu0 %569  ;;  %v1665_v50 = vmul.f32 %v10126_v36, %v10932_v1  ;;  %v1664_v43 = vmul.f32 %v10116_v32, %v10932_v1 }
 0x1e4   : > { %3880 = vmatprep.mubr.bf16.mxu1 %v3539_v46  ;;  %v11160_v55 = vpop.permute.xlu1 %534  ;;  %v1930_v60 = vadd.f32 %v10165_v17, %v1791_v41  ;;  %v1929_v53 = vadd.f32 %v10151_v49, %v1790_v10 }
 0x1e5   : > { %9374 = vset.pattern.permute.xlu1 %v14702_v44  ;;  %14791 = vst [vmem:[#allocation114_spill] sm:$0xff] %v11160_v55  ;;  %3881 = vmatmul.mubr.bf16.gmra.mrb[20].mxu1 %v3538_v47  ;;  %v1265_v15 = vmul.f32 %v10107_v29, %v11160_v55  ;;  %v1264_v42 = vmul.f32 %v10119_v33, %v11160_v55 }
 0x1e6   : > { %1125 = vperm.xlu1 %9374, %v10772_v63   ;;  %v2722_v57 = vmax.f32 %v1930_v60, 0.0  ;;  %v2721_v11 = vmax.f32 %v1929_v53, 0.0 }
 0x1e8   : > { %v2814_v40 = vpack.c.bf16 %v2722_v57, %v2720_v54  ;;  %v2813_v38 = vpack.c.bf16 %v2721_v11, %v2719_v35  ;;  %v1266_v54 = vmul.f32 %v10119_v33, %v11124_v20 }
 0x1e9   : > { %v11169_v52 = vpop.permute.xlu1 %817 }
 0x1ea   : > { %9375 = vset.pattern.permute.xlu1 %v14696_v48  ;;  %14792 = vst [vmem:[#allocation115_spill] sm:$0xff] %v11169_v52  ;;  %v1400_v24 = vmul.f32 %v10104_v28, %v11169_v52  ;;  %v1401_v63 = vmul.f32 %v10110_v30, %v11169_v52  ;;  %3249 = vmatprep.mubr.bf16.mxu0 %v2814_v40 }
 0x1eb   : > { %604 = vperm.xlu1 %9375, %v10751_v58   ;;  %3250 = vmatmul.mubr.bf16.gmra.mrb[68].mxu0 %v2813_v38 }
 0x1ec   : > { %v1529_v47 = vadd.f32 %v1401_v63, %v1265_v15  ;;  %v1528_v10 = vadd.f32 %v1400_v24, %v1264_v42  ;;  %v11201_v15 = vpop.permute.xlu0 %579 }
 0x1ed   : > { %v3141_v46 = vpop.f32.mrb[24].mxu0  ;;  %v11186_v41 = vpop.permute.xlu1 %821 }
 0x1ee   : > { %14793 = vst [vmem:[#allocation116_spill] sm:$0xff] %v11186_v41  ;;  %v3142_v60 = vadd.f32 %v3141_v46, %v10916_v59  ;;  %v1403_v53 = vmul.f32 %v10110_v30, %v11186_v41  ;;  %v3143_v39 = vpop.f32.mrb[25].mxu0  ;;  %v1402_v57 = vmul.f32 %v10104_v28, %v11186_v41  ;;  %v1793_v24 = vadd.f32 %v1665_v50, %v1529_v47 }
 0x1ef   : > { %9376 = vset.pattern.permute.xlu1 %v14700_v45  ;;  %v3144_v35 = vadd.f32 %v3143_v39, %v10921_v37  ;;  %v3145_v11 = vpop.f32.mrb[26].mxu0  ;;  %v1792_v42 = vadd.f32 %v1664_v43, %v1528_v10 }
 0x1f0   : > { %873 = vperm.xlu1 %9376, %v10751_v58   ;;  %v3146_v40 = vadd.f32 %v3145_v11, %v10916_v59  ;;  %v3147_v38 = vpop.f32.mrb[27].mxu0  ;;  %v3424_v46 = vmax.f32 %v3142_v60, 0.0  ;;  %v1531_v41 = vadd.f32 %v1403_v53, %v1267_v25  ;;  %v1530_v11 = vadd.f32 %v1402_v57, %v1266_v54 }
 0x1f1   : > { %v3148_v63 = vadd.f32 %v3147_v38, %v10921_v37  ;;  %v3425_v1 = vmax.f32 %v3144_v35, 0.0  ;;  %v1932_v47 = vadd.f32 %v10165_v17, %v1793_v24  ;;  %v1931_v35 = vadd.f32 %v10151_v49, %v1792_v42 }
 0x1f2   : > { %v3426_v20 = vmax.f32 %v3146_v40, 0.0  ;;  %v11204_v55 = vpop.permute.xlu1 %1077  ;;  %v11213_v40 = vpop.permute.xlu0 %589 }
 0x1f3   : > { %14794 = vst [vmem:[#allocation117_spill] sm:$0xff] %v11204_v55  ;;  %v3427_v52 = vmax.f32 %v3148_v63, 0.0  ;;  %v1666_v39 = vmul.f32 %v10116_v32, %v11204_v55  ;;  %v1667_v58 = vmul.f32 %v10126_v36, %v11204_v55 }
 0x1f4   : > { %877 = vperm.xlu1 %9376, %v10820_v2   ;;  %v3540_v50 = vpack.c.bf16 %v3426_v20, %v3424_v46  ;;  %v350_v46 = vld [vmem:[%s14422_s1 + $0x10] sm:$0xff] }
 0x1f5   : > { %v3541_v43 = vpack.c.bf16 %v3427_v52, %v3425_v1  ;;  %v1795_v10 = vadd.f32 %v1667_v58, %v1531_v41  ;;  %v1794_v60 = vadd.f32 %v1666_v39, %v1530_v11  ;;  %v2724_v1 = vmax.f32 %v1932_v47, 0.0  ;;  %v9758_v11 = vld [vmem:[%s9847_s15 + $0x1a0] sm:$0xff]  ;;  %v351_v47 = vld [vmem:[%s14422_s1 + $0x18] sm:$0xff] }
 0x1f6   : > { %v2723_v52 = vmax.f32 %v1931_v35, 0.0  ;;  %v11226_v42 = vpop.permute.xlu0 %1081 }
 0x1f7   : > { %3890 = vmatprep.mubr.bf16.mxu1 %v3541_v43  ;;  %v11216_v25 = vpop.permute.xlu1 %544  ;;  %v1934_v53 = vadd.f32 %v10165_v17, %v1795_v10  ;;  %v1933_v38 = vadd.f32 %v10151_v49, %v1794_v60  ;;  %14797 = vst [vmem:[#allocation120_spill] sm:$0xff] %v11226_v42  ;;  %v1668_v60 = vmul.f32 %v10116_v32, %v11226_v42 }
 0x1f8   : > { %9377 = vset.pattern.permute.xlu1 %v14702_v44  ;;  %14795 = vst [vmem:[#allocation118_spill] sm:$0xff] %v11216_v25  ;;  %3891 = vmatmul.mubr.bf16.gmra.mrb[24].mxu1 %v3540_v50  ;;  %v1268_v24 = vmul.f32 %v10119_v33, %v11216_v25  ;;  %v11239_v50 = vrot.slane %v350_v46, %v10088_v22 }
 0x1f9   : > { %1133 = vperm.xlu1 %9377, %v10820_v2   ;;  %v2726_v20 = vmax.f32 %v1934_v53, 0.0  ;;  %v2725_v41 = vmax.f32 %v1933_v38, 0.0  ;;  %v1269_v2 = vmul.f32 %v10107_v29, %v11216_v25  ;;  %v1669_v35 = vmul.f32 %v10126_v36, %v11226_v42 }
 0x1fa   : > { %v11249_v53 = vrot.slane %v351_v47, %v10088_v22  ;;  %v11252_v38 = vrot.slane %v350_v46, %v10098_v26 }
 0x1fb   : > { %v2816_v54 = vpack.c.bf16 %v2726_v20, %v2724_v1  ;;  %v2815_v57 = vpack.c.bf16 %v2725_v41, %v2723_v52  ;;  %v1270_v1 = vmul.f32 %v10119_v33, %v11146_v31  ;;  %v11257_v41 = vrot.slane %v350_v46, %v10086_v21 }
 0x1fc   : > { %v11224_v63 = vpop.permute.xlu1 %825 }
 0x1fd   : > { %9378 = vset.pattern.permute.xlu1 %v14696_v48  ;;  %14796 = vst [vmem:[#allocation119_spill] sm:$0xff] %v11224_v63  ;;  %v1404_v39 = vmul.f32 %v10104_v28, %v11224_v63  ;;  %v1405_v58 = vmul.f32 %v10110_v30, %v11224_v63  ;;  %3259 = vmatprep.mubr.bf16.mxu0 %v2816_v54 }
 0x1fe   : > { %614 = vperm.xlu1 %9378, %v9758_v11   ;;  %3260 = vmatmul.mubr.bf16.gmra.mrb[72].mxu0 %v2815_v57  ;;  %v11260_v54 = vrot.slane %v351_v47, %v10098_v26  ;;  %v1271_v57 = vmul.f32 %v10107_v29, %v11146_v31  ;;  %v11272_v26 = vrot.slane %v351_v47, %v10086_v21 }
 0x1ff   : > { %v1532_v43 = vadd.f32 %v1404_v39, %v1268_v24  ;;  %v1533_v10 = vadd.f32 %v1405_v58, %v1269_v2  ;;  %v2073_v58 = vmul.f32 %v11239_v50, %v11146_v31 }
 0x200   : > { %v3151_v20 = vpop.f32.mrb[28].mxu0  ;;  %v830_v52 = vpop.permute.xlu1 %829 }
 0x201   : > { %v3152_v24 = vadd.f32 %v3151_v20, %v10916_v59  ;;  %v1406_v2 = vmul.f32 %v10104_v28, %v830_v52  ;;  %v3153_v39 = vpop.f32.mrb[29].mxu0  ;;  %v1407_v42 = vmul.f32 %v10110_v30, %v830_v52  ;;  %v2074_v20 = vmul.f32 %v11249_v53, %v11146_v31 }
 0x202   : > { %9379 = vset.pattern.permute.xlu1 %v14700_v45  ;;  %v3154_v46 = vadd.f32 %v3153_v39, %v10921_v37  ;;  %v3155_v25 = vpop.f32.mrb[30].mxu0  ;;  %v1796_v63 = vadd.f32 %v1668_v60, %v1532_v43  ;;  %v1797_v55 = vadd.f32 %v1669_v35, %v1533_v10  ;;  %v2210_v47 = vmul.f32 %v11272_v26, %v830_v52 }
 0x203   : > { %881 = vperm.xlu1 %9379, %v9758_v11   ;;  %v3156_v51 = vadd.f32 %v3155_v25, %v10916_v59  ;;  %v3157_v23 = vpop.f32.mrb[31].mxu0  ;;  %v3428_v34 = vmax.f32 %v3152_v24, 0.0  ;;  %v1534_v19 = vadd.f32 %v1406_v2, %v1270_v1  ;;  %v1535_v39 = vadd.f32 %v1407_v42, %v1271_v57 }
 0x204   : > { %v3429_v13 = vmax.f32 %v3154_v46, 0.0  ;;  %v3158_v27 = vadd.f32 %v3157_v23, %v10921_v37  ;;  %v2209_v11 = vmul.f32 %v11257_v41, %v830_v52  ;;  %v1936_v23 = vadd.f32 %v10165_v17, %v1797_v55 }
 0x205   : > { %v3430_v16 = vmax.f32 %v3156_v51, 0.0  ;;  %v1086_v12 = vpop.permute.xlu1 %1085  ;;  %v1935_v51 = vadd.f32 %v10151_v49, %v1796_v63 }
 0x206   : > { %v3431_v9 = vmax.f32 %v3158_v27, 0.0  ;;  %v1670_v31 = vmul.f32 %v10116_v32, %v1086_v12  ;;  %v1671_v43 = vmul.f32 %v10126_v36, %v1086_v12  ;;  %v2473_v25 = vmul.f32 %v11252_v38, %v1086_v12 }
 0x207   : > { %885 = vperm.xlu1 %9379, %v10875_v7   ;;  %v3542_v10 = vpack.c.bf16 %v3430_v16, %v3428_v34  ;;  %v2337_v42 = vadd.f32 %v2209_v11, %v2073_v58  ;;  %v2474_v1 = vmul.f32 %v11260_v54, %v1086_v12  ;;  %v2338_v34 = vadd.f32 %v2210_v47, %v2074_v20 }
 0x208   : > { %v1798_v60 = vadd.f32 %v1670_v31, %v1534_v19  ;;  %v1799_v35 = vadd.f32 %v1671_v43, %v1535_v39  ;;  %v3543_v52 = vpack.c.bf16 %v3431_v9, %v3429_v13  ;;  %v2728_v55 = vmax.f32 %v1936_v23, 0.0  ;;  %v1090_v13 = vpop.permute.xlu0 %1089 }
 0x209   : > { %v11287_v27 = vadd.f32 %v2473_v25, %v2337_v42  ;;  %v2727_v63 = vmax.f32 %v1935_v51, 0.0  ;;  %v11293_v12 = vadd.f32 %v2474_v1, %v2338_v34  ;;  %v1673_v42 = vmul.f32 %v10126_v36, %v1090_v13 }
 0x20a   : > { %3900 = vmatprep.mubr.bf16.mxu1 %v3543_v52  ;;  %v555_v57 = vpop.permute.xlu1 %554  ;;  %v1938_v24 = vadd.f32 %v10165_v17, %v1799_v35  ;;  %v1937_v16 = vadd.f32 %v10151_v49, %v1798_v60 }
 0x20b   : > { %14798 = vst [vmem:[#allocation121_spill] sm:$0xff] %v11287_v27  ;;  %9381 = vset.pattern.permute.xlu1 %v14702_v44  ;;  %3901 = vmatmul.mubr.bf16.gmra.mrb[28].mxu1 %v3542_v10  ;;  %14799 = vst [vmem:[#allocation122_spill] sm:$0xff] %v11293_v12  ;;  %v1272_v46 = vmul.f32 %v10119_v33, %v555_v57  ;;  %v1273_v39 = vmul.f32 %v10107_v29, %v555_v57 }
 0x20c   : > { %1141 = vperm.xlu1 %9381, %v10875_v7   ;;  %v2730_v19 = vmax.f32 %v1938_v24, 0.0  ;;  %v2729_v2 = vmax.f32 %v1937_v16, 0.0  ;;  %v2075_v11 = vmul.f32 %v11239_v50, %v555_v57  ;;  %v2076_v25 = vmul.f32 %v11249_v53, %v555_v57 }
 0x20d   : > { %v1672_v10 = vmul.f32 %v10116_v32, %v1090_v13  ;;  %v1274_v24 = vmul.f32 %v10119_v33, %v11164_v5  ;;  %v1275_v57 = vmul.f32 %v10107_v29, %v11164_v5 }
 0x20e   : > { %v2818_v9 = vpack.c.bf16 %v2730_v19, %v2728_v55  ;;  %v2817_v58 = vpack.c.bf16 %v2729_v2, %v2727_v63 }
 0x20f   : > { %v834_v31 = vpop.permute.xlu1 %833 }
 0x210   : > { %9382 = vset.pattern.permute.xlu1 %v14696_v48  ;;  %v1408_v20 = vmul.f32 %v10104_v28, %v834_v31  ;;  %v1409_v7 = vmul.f32 %v10110_v30, %v834_v31  ;;  %v2211_v47 = vmul.f32 %v11257_v41, %v834_v31  ;;  %v2212_v43 = vmul.f32 %v11272_v26, %v834_v31 }
 0x211   : > { %624 = vperm.xlu1 %9382, %v10944_v8   ;;  %3269 = vmatprep.mubr.bf16.mxu0 %v2818_v9  ;;  %v2077_v9 = vmul.f32 %v11239_v50, %v11164_v5  ;;  %v2078_v31 = vmul.f32 %v11249_v53, %v11164_v5  ;;  %v9759_v5 = vld [vmem:[%s9847_s15 + $0x1b8] sm:$0xff] }
 0x212   : > { %v1536_v23 = vadd.f32 %v1408_v20, %v1272_v46  ;;  %v1537_v51 = vadd.f32 %v1409_v7, %v1273_v39  ;;  %3270 = vmatmul.mubr.bf16.gmra.mrb[76].mxu0 %v2817_v58  ;;  %v2339_v60 = vadd.f32 %v2211_v47, %v2075_v11  ;;  %v2340_v52 = vadd.f32 %v2212_v43, %v2076_v25 }
 0x213   : > { %v3161_v35 = vpop.f32.mrb[32].mxu0  ;;  %v838_v1 = vpop.permute.xlu1 %837  ;;  %v2475_v20 = vmul.f32 %v11252_v38, %v1090_v13  ;;  %v2476_v7 = vmul.f32 %v11260_v54, %v1090_v13 }
 0x214   : > { %v3162_v16 = vadd.f32 %v3161_v35, %v10916_v59  ;;  %v1410_v34 = vmul.f32 %v10104_v28, %v838_v1  ;;  %v3163_v55 = vpop.f32.mrb[33].mxu0  ;;  %v1411_v19 = vmul.f32 %v10110_v30, %v838_v1  ;;  %v1800_v58 = vadd.f32 %v1672_v10, %v1536_v23 }
 0x215   : > { %v3164_v63 = vadd.f32 %v3163_v55, %v10921_v37  ;;  %9383 = vset.pattern.permute.xlu1 %v14700_v45  ;;  %v3165_v2 = vpop.f32.mrb[34].mxu0  ;;  %v1801_v46 = vadd.f32 %v1673_v42, %v1537_v51 }
 0x216   : > { %v3166_v39 = vadd.f32 %v3165_v2, %v10916_v59  ;;  %889 = vperm.xlu1 %9383, %v10944_v8   ;;  %v3167_v11 = vpop.f32.mrb[35].mxu0  ;;  %v3432_v43 = vmax.f32 %v3162_v16, 0.0  ;;  %v1538_v25 = vadd.f32 %v1410_v34, %v1274_v24  ;;  %v1539_v35 = vadd.f32 %v1411_v19, %v1275_v57 }
 0x217   : > { %v3168_v47 = vadd.f32 %v3167_v11, %v10921_v37  ;;  %v3433_v51 = vmax.f32 %v3164_v63, 0.0  ;;  %v2213_v2 = vmul.f32 %v11257_v41, %v838_v1  ;;  %v1940_v13 = vadd.f32 %v10165_v17, %v1801_v46 }
 0x218   : > { %v3434_v10 = vmax.f32 %v3166_v39, 0.0  ;;  %v1094_v23 = vpop.permute.xlu1 %1093  ;;  %v1939_v11 = vadd.f32 %v10151_v49, %v1800_v58  ;;  %v2214_v24 = vmul.f32 %v11272_v26, %v838_v1  ;;  %v11338_v46 = vadd.f32 %v2476_v7, %v2340_v52 }
 0x219   : > { %v3435_v42 = vmax.f32 %v3168_v47, 0.0  ;;  %v1674_v8 = vmul.f32 %v10116_v32, %v1094_v23  ;;  %v1675_v55 = vmul.f32 %v10126_v36, %v1094_v23  ;;  %v2477_v19 = vmul.f32 %v11252_v38, %v1094_v23 }
 0x21a   : > { %893 = vperm.xlu1 %9383, %v9759_v5   ;;  %v3544_v12 = vpack.c.bf16 %v3434_v10, %v3432_v43  ;;  %v2478_v63 = vmul.f32 %v11260_v54, %v1094_v23  ;;  %v11336_v43 = vadd.f32 %v2475_v20, %v2339_v60  ;;  %14801 = vst [vmem:[#allocation124_spill] sm:$0xff] %v11338_v46  ;;  %v2732_v1 = vmax.f32 %v1940_v13, 0.0 }
 0x21b   : > { %v1802_v57 = vadd.f32 %v1674_v8, %v1538_v25  ;;  %v1803_v16 = vadd.f32 %v1675_v55, %v1539_v35  ;;  %v3545_v34 = vpack.c.bf16 %v3435_v42, %v3433_v51  ;;  %v2731_v58 = vmax.f32 %v1939_v11, 0.0  ;;  %v1098_v42 = vpop.permute.xlu0 %1097 }
 0x21c   : > { %14800 = vst [vmem:[#allocation123_spill] sm:$0xff] %v11336_v43  ;;  %v2341_v10 = vadd.f32 %v2213_v2, %v2077_v9  ;;  %v2342_v23 = vadd.f32 %v2214_v24, %v2078_v31  ;;  %v1677_v13 = vmul.f32 %v10126_v36, %v1098_v42 }
 0x21d   : > { %3910 = vmatprep.mubr.bf16.mxu1 %v3545_v34  ;;  %v565_v39 = vpop.permute.xlu1 %564  ;;  %v1942_v47 = vadd.f32 %v10165_v17, %v1803_v16  ;;  %v1941_v27 = vadd.f32 %v10151_v49, %v1802_v57 }
 0x21e   : > { %9384 = vset.pattern.permute.xlu1 %v14702_v44  ;;  %3911 = vmatmul.mubr.bf16.gmra.mrb[32].mxu1 %v3544_v12  ;;  %v11341_v55 = vadd.f32 %v2477_v19, %v2341_v10  ;;  %v11343_v57 = vadd.f32 %v2478_v63, %v2342_v23  ;;  %v1276_v60 = vmul.f32 %v10119_v33, %v565_v39 }
 0x21f   : > { %1149 = vperm.xlu1 %9384, %v9759_v5   ;;  %v2734_v25 = vmax.f32 %v1942_v47, 0.0  ;;  %v2733_v35 = vmax.f32 %v1941_v27, 0.0  ;;  %v1277_v52 = vmul.f32 %v10107_v29, %v565_v39  ;;  %v2079_v20 = vmul.f32 %v11239_v50, %v565_v39 }
 0x220   : > { %14802 = vst [vmem:[#allocation125_spill] sm:$0xff] %v11341_v55  ;;  %14803 = vst [vmem:[#allocation126_spill] sm:$0xff] %v11343_v57  ;;  %v2080_v12 = vmul.f32 %v11249_v53, %v565_v39  ;;  %v1676_v5 = vmul.f32 %v10116_v32, %v1098_v42  ;;  %v1278_v19 = vmul.f32 %v10119_v33, %v11178_v0 }
 0x221   : > { %v2820_v51 = vpack.c.bf16 %v2734_v25, %v2732_v1  ;;  %v2819_v8 = vpack.c.bf16 %v2733_v35, %v2731_v58  ;;  %v1279_v63 = vmul.f32 %v10107_v29, %v11178_v0  ;;  %v2479_v1 = vmul.f32 %v11252_v38, %v1098_v42 }
 0x222   : > { %v842_v7 = vpop.permute.xlu1 %841  ;;  %v2480_v58 = vmul.f32 %v11260_v54, %v1098_v42  ;;  %v2081_v23 = vmul.f32 %v11239_v50, %v11178_v0 }
 0x223   : > { %9385 = vset.pattern.permute.xlu1 %v14696_v48  ;;  %v1412_v27 = vmul.f32 %v10104_v28, %v842_v7  ;;  %v1413_v9 = vmul.f32 %v10110_v30, %v842_v7  ;;  %v2215_v31 = vmul.f32 %v11257_v41, %v842_v7  ;;  %v2216_v2 = vmul.f32 %v11272_v26, %v842_v7 }
 0x224   : > { %634 = vperm.xlu1 %9385, %v10983_v56   ;;  %3279 = vmatprep.mubr.bf16.mxu0 %v2820_v51  ;;  %v2082_v51 = vmul.f32 %v11249_v53, %v11178_v0 }
 0x225   : > { %v1540_v11 = vadd.f32 %v1412_v27, %v1276_v60  ;;  %v1541_v24 = vadd.f32 %v1413_v9, %v1277_v52  ;;  %3280 = vmatmul.mubr.bf16.gmra.mrb[80].mxu0 %v2819_v8  ;;  %v2343_v16 = vadd.f32 %v2215_v31, %v2079_v20  ;;  %v2344_v34 = vadd.f32 %v2216_v2, %v2080_v12 }
 0x226   : > { %v3171_v39 = vpop.f32.mrb[36].mxu0 }
 0x227   : > { %v846_v47 = vpop.permute.xlu1 %845  ;;  %v3172_v25 = vadd.f32 %v3171_v39, %v10916_v59  ;;  %v3173_v10 = vpop.f32.mrb[37].mxu0  ;;  %v1804_v20 = vadd.f32 %v1676_v5, %v1540_v11  ;;  %v1805_v42 = vadd.f32 %v1677_v13, %v1541_v24  ;;  %v11377_v55 = vadd.f32 %v2479_v1, %v2343_v16 }
 0x228   : > { %v1414_v35 = vmul.f32 %v10104_v28, %v846_v47  ;;  %v1415_v8 = vmul.f32 %v10110_v30, %v846_v47  ;;  %v3174_v60 = vadd.f32 %v3173_v10, %v10921_v37  ;;  %9386 = vset.pattern.permute.xlu1 %v14700_v45  ;;  %v3175_v52 = vpop.f32.mrb[38].mxu0  ;;  %v2217_v12 = vmul.f32 %v11257_v41, %v846_v47 }
 0x229   : > { %v3176_v7 = vadd.f32 %v3175_v52, %v10916_v59  ;;  %897 = vperm.xlu1 %9386, %v10983_v56   ;;  %v3177_v27 = vpop.f32.mrb[39].mxu0  ;;  %v3436_v9 = vmax.f32 %v3172_v25, 0.0  ;;  %v2218_v0 = vmul.f32 %v11272_v26, %v846_v47  ;;  %14804 = vst [vmem:[#allocation127_spill] sm:$0xff] %v11377_v55  ;;  %v11379_v5 = vadd.f32 %v2480_v58, %v2344_v34 }
 0x22a   : > { %v1542_v31 = vadd.f32 %v1414_v35, %v1278_v19  ;;  %v3178_v2 = vadd.f32 %v3177_v27, %v10921_v37  ;;  %v1543_v39 = vadd.f32 %v1415_v8, %v1279_v63  ;;  %v3437_v13 = vmax.f32 %v3174_v60, 0.0  ;;  %v9760_v19 = vld [vmem:[%s9847_s15 + $0x1c8] sm:$0xff] }
 0x22b   : > { %v3438_v10 = vmax.f32 %v3176_v7, 0.0  ;;  %14805 = vst [vmem:[#allocation128_spill] sm:$0xff] %v11379_v5  ;;  %v1944_v35 = vadd.f32 %v10165_v17, %v1805_v42  ;;  %v1943_v63 = vadd.f32 %v10151_v49, %v1804_v20  ;;  %v2345_v58 = vadd.f32 %v2217_v12, %v2081_v23 }
 0x22c   : > { %v1102_v57 = vpop.permute.xlu1 %1101  ;;  %v3439_v11 = vmax.f32 %v3178_v2, 0.0  ;;  %v2346_v60 = vadd.f32 %v2218_v0, %v2082_v51  ;;  %v1106_v51 = vpop.permute.xlu0 %1105 }
 0x22d   : > { %v1678_v24 = vmul.f32 %v10116_v32, %v1102_v57  ;;  %v1679_v56 = vmul.f32 %v10126_v36, %v1102_v57  ;;  %v2481_v25 = vmul.f32 %v11252_v38, %v1102_v57  ;;  %901 = vperm.xlu1 %9386, %v9760_v19   ;;  %v3546_v47 = vpack.c.bf16 %v3438_v10, %v3436_v9 }
 0x22e   : > { %v2482_v34 = vmul.f32 %v11260_v54, %v1102_v57  ;;  %v3547_v1 = vpack.c.bf16 %v3439_v11, %v3437_v13  ;;  %v2736_v9 = vmax.f32 %v1944_v35, 0.0  ;;  %v2735_v2 = vmax.f32 %v1943_v63, 0.0 }
 0x22f   : > { %v1806_v8 = vadd.f32 %v1678_v24, %v1542_v31  ;;  %v1807_v16 = vadd.f32 %v1679_v56, %v1543_v39  ;;  %v11391_v31 = vadd.f32 %v2481_v25, %v2345_v58  ;;  %v1681_v35 = vmul.f32 %v10126_v36, %v1106_v51 }
 0x230   : > { %3920 = vmatprep.mubr.bf16.mxu1 %v3547_v1  ;;  %v11393_v57 = vadd.f32 %v2482_v34, %v2346_v60  ;;  %v1282_v1 = vmul.f32 %v10119_v33, %v11201_v15  ;;  %v1283_v58 = vmul.f32 %v10107_v29, %v11201_v15 }
 0x231   : > { %v575_v52 = vpop.permute.xlu1 %574  ;;  %v1946_v7 = vadd.f32 %v10165_v17, %v1807_v16  ;;  %v1945_v27 = vadd.f32 %v10151_v49, %v1806_v8  ;;  %9387 = vset.pattern.permute.xlu1 %v14702_v44  ;;  %3921 = vmatmul.mubr.bf16.gmra.mrb[36].mxu1 %v3546_v47  ;;  %14806 = vst [vmem:[#allocation129_spill] sm:$0xff] %v11391_v31 }
 0x232   : > { %1157 = vperm.xlu1 %9387, %v9760_v19   ;;  %14807 = vst [vmem:[#allocation130_spill] sm:$0xff] %v11393_v57  ;;  %v1280_v0 = vmul.f32 %v10119_v33, %v575_v52  ;;  %v1281_v39 = vmul.f32 %v10107_v29, %v575_v52  ;;  %v2083_v10 = vmul.f32 %v11239_v50, %v575_v52 }
 0x233   : > { %v2738_v20 = vmax.f32 %v1946_v7, 0.0  ;;  %v2737_v42 = vmax.f32 %v1945_v27, 0.0  ;;  %v2084_v13 = vmul.f32 %v11249_v53, %v575_v52  ;;  %v1680_v47 = vmul.f32 %v10116_v32, %v1106_v51 }
 0x234   : > { %v2483_v7 = vmul.f32 %v11252_v38, %v1106_v51  ;;  %v2484_v27 = vmul.f32 %v11260_v54, %v1106_v51  ;;  %v9496_v51 = vld [vmem:[%s14424_s3 + $0x200] ss:$8 sps:$4 sm:$0xff]  }
 0x235   : > { %v2822_v23 = vpack.c.bf16 %v2738_v20, %v2736_v9  ;;  %v2821_v12 = vpack.c.bf16 %v2737_v42, %v2735_v2  ;;  %v2085_v42 = vmul.f32 %v11239_v50, %v11201_v15 }
 0x236   : > { %v850_v11 = vpop.permute.xlu1 %849  ;;  %9388 = vset.pattern.permute.xlu1 %v14696_v48 }
 0x237   : > { %v1416_v24 = vmul.f32 %v10104_v28, %v850_v11  ;;  %v1417_v56 = vmul.f32 %v10110_v30, %v850_v11  ;;  %v2219_v25 = vmul.f32 %v11257_v41, %v850_v11  ;;  %v2220_v19 = vmul.f32 %v11272_v26, %v850_v11  ;;  %644 = vperm.xlu1 %9388, %v11038_v62  }
 0x238   : > { %3289 = vmatprep.mubr.bf16.mxu0 %v2822_v23  ;;  %v2086_v23 = vmul.f32 %v11249_v53, %v11201_v15 }
 0x239   : > { %v1544_v63 = vadd.f32 %v1416_v24, %v1280_v0  ;;  %v1545_v8 = vadd.f32 %v1417_v56, %v1281_v39  ;;  %3290 = vmatmul.mubr.bf16.gmra.mrb[84].mxu0 %v2821_v12  ;;  %v2347_v16 = vadd.f32 %v2219_v25, %v2083_v10  ;;  %v2348_v34 = vadd.f32 %v2220_v19, %v2084_v13  ;;  %v3181_v60 = vpop.f32.mrb[40].mxu0  ;;  %v9498_v10 = vld [vmem:[%s14424_s3 + $0x204] ss:$8 sps:$4 sm:$0xff]  }
 0x23a   : > { %v854_v52 = vpop.permute.xlu1 %853  ;;  %v3182_v9 = vadd.f32 %v3181_v60, %v10916_v59  ;;  %v3183_v20 = vpop.f32.mrb[41].mxu0  ;;  %4549 = vmatprep.subr.bf16.mxu0 %v9498_v10 }
 0x23b   : > { %v1418_v2 = vmul.f32 %v10104_v28, %v854_v52  ;;  %v1419_v12 = vmul.f32 %v10110_v30, %v854_v52  ;;  %v3184_v0 = vadd.f32 %v3183_v20, %v10921_v37  ;;  %9390 = vset.pattern.permute.xlu1 %v14700_v45  ;;  %v3185_v39 = vpop.f32.mrb[42].mxu0  ;;  %v1808_v13 = vadd.f32 %v1680_v47, %v1544_v63 }
 0x23c   : > { %v1809_v11 = vadd.f32 %v1681_v35, %v1545_v8  ;;  %v2221_v24 = vmul.f32 %v11257_v41, %v854_v52  ;;  %v3186_v15 = vadd.f32 %v3185_v39, %v10916_v59  ;;  %905 = vperm.xlu1 %9390, %v11038_v62   ;;  %v3187_v56 = vpop.f32.mrb[43].mxu0  ;;  %v3440_v25 = vmax.f32 %v3182_v9, 0.0  ;;  %4550 = vmatpush1.bf16.msra.mxu0 %v9496_v51 }
 0x23d   : > { %v1546_v19 = vadd.f32 %v1418_v2, %v1282_v1  ;;  %v2222_v60 = vmul.f32 %v11272_v26, %v854_v52  ;;  %v3188_v20 = vadd.f32 %v3187_v56, %v10921_v37  ;;  %v1547_v57 = vadd.f32 %v1419_v12, %v1283_v58  ;;  %v9761_v52 = vld [vmem:[%s9847_s15 + $0x1d8] sm:$0xff] }
 0x23e   : > { %v3442_v31 = vmax.f32 %v3186_v15, 0.0  ;;  %v11433_v47 = vadd.f32 %v2483_v7, %v2347_v16  ;;  %v11435_v35 = vadd.f32 %v2484_v27, %v2348_v34  ;;  %v3441_v63 = vmax.f32 %v3184_v0, 0.0 }
 0x23f   : > { %v1110_v5 = vpop.permute.xlu1 %1109  ;;  %v3443_v8 = vmax.f32 %v3188_v20, 0.0  ;;  %v1948_v58 = vadd.f32 %v10165_v17, %v1809_v11  ;;  %v1947_v12 = vadd.f32 %v10151_v49, %v1808_v13  ;;  %v2349_v27 = vadd.f32 %v2221_v24, %v2085_v42  ;;  %v9499_v13 = vld [vmem:[%s14424_s3 + $0x210] ss:$8 sps:$4 sm:$0xff]   ;;  %v1114_v42 = vpop.permute.xlu0 %1113 }
 0x240   : > { %14808 = vst [vmem:[#allocation131_spill] sm:$0xff] %v11433_v47  ;;  %14809 = vst [vmem:[#allocation132_spill] sm:$0xff] %v11435_v35  ;;  %v1682_v62 = vmul.f32 %v10116_v32, %v1110_v5  ;;  %v1683_v9 = vmul.f32 %v10126_v36, %v1110_v5  ;;  %v2485_v1 = vmul.f32 %v11252_v38, %v1110_v5  ;;  %909 = vperm.xlu1 %9390, %v9761_v52  }
 0x241   : > { %v3548_v2 = vpack.c.bf16 %v3442_v31, %v3440_v25  ;;  %v2486_v34 = vmul.f32 %v11260_v54, %v1110_v5  ;;  %v3549_v7 = vpack.c.bf16 %v3443_v8, %v3441_v63  ;;  %v2350_v0 = vadd.f32 %v2222_v60, %v2086_v23  ;;  %v9501_v5 = vld [vmem:[%s14424_s3 + $0x214] ss:$8 sps:$4 sm:$0xff]   ;;  %v9504_v60 = vld [vmem:[%s14424_s3 + $0x224] ss:$8 sps:$4 sm:$0xff]  }
 0x242   : > { %v1810_v39 = vadd.f32 %v1682_v62, %v1546_v19  ;;  %v1811_v16 = vadd.f32 %v1683_v9, %v1547_v57  ;;  %v2740_v31 = vmax.f32 %v1948_v58, 0.0  ;;  %v2739_v56 = vmax.f32 %v1947_v12, 0.0  ;;  %4551 = vmatprep.subr.bf16.mxu0 %v9501_v5  ;;  %v9502_v62 = vld [vmem:[%s14424_s3 + $0x220] ss:$8 sps:$4 sm:$0xff]  }
 0x243   : > { %3930 = vmatprep.mubr.bf16.mxu1 %v3549_v7  ;;  %v11453_v11 = vadd.f32 %v2485_v1, %v2349_v27  ;;  %v11455_v24 = vadd.f32 %v2486_v34, %v2350_v0  ;;  %4552 = vmatpush1.bf16.msra.mxu0 %v9499_v13  ;;  %v1685_v8 = vmul.f32 %v10126_v36, %v1114_v42  ;;  %v9507_v34 = vld [vmem:[%s14424_s3 + $0x234] ss:$8 sps:$4 sm:$0xff]   ;;  %v9505_v13 = vld [vmem:[%s14424_s3 + $0x230] ss:$8 sps:$4 sm:$0xff]  }
 0x244   : > { %v585_v51 = vpop.permute.xlu1 %584  ;;  %v1950_v10 = vadd.f32 %v10165_v17, %v1811_v16  ;;  %v1949_v15 = vadd.f32 %v10151_v49, %v1810_v39  ;;  %9391 = vset.pattern.permute.xlu1 %v14702_v44  ;;  %3931 = vmatmul.mubr.bf16.gmra.mrb[40].mxu1 %v3548_v2  ;;  %v1286_v58 = vmul.f32 %v10119_v33, %v11213_v40  ;;  %v11476_v16 = vpop.permute.xlu0 %1121 }
 0x245   : > { %1165 = vperm.xlu1 %9391, %v9761_v52   ;;  %14810 = vst [vmem:[#allocation133_spill] sm:$0xff] %v11453_v11  ;;  %14811 = vst [vmem:[#allocation134_spill] sm:$0xff] %v11455_v24  ;;  %v1284_v20 = vmul.f32 %v10119_v33, %v585_v51  ;;  %v1285_v9 = vmul.f32 %v10107_v29, %v585_v51  ;;  %v1287_v12 = vmul.f32 %v10107_v29, %v11213_v40  ;;  %v9763_v11 = vld [vmem:[%s9847_s15 + $0x1e8] sm:$0xff] }
 0x246   : > { %v2742_v57 = vmax.f32 %v1950_v10, 0.0  ;;  %v2741_v23 = vmax.f32 %v1949_v15, 0.0  ;;  %v2087_v39 = vmul.f32 %v11239_v50, %v585_v51  ;;  %v1684_v0 = vmul.f32 %v10116_v32, %v1114_v42  ;;  %4553 = vmatprep.subr.bf16.mxu0 %v9504_v60 }
 0x247   : > { %v2089_v10 = vmul.f32 %v11239_v50, %v11213_v40  ;;  %v11486_v15 = vmul.f32 %v11249_v53, %v11213_v40  ;;  %4554 = vmatpush1.bf16.msra.mxu0 %v9502_v62  ;;  %v2088_v60 = vmul.f32 %v11249_v53, %v585_v51 }
 0x248   : > { %v2824_v25 = vpack.c.bf16 %v2742_v57, %v2740_v31  ;;  %v2823_v19 = vpack.c.bf16 %v2741_v23, %v2739_v56  ;;  %4555 = vmatprep.subr.bf16.mxu0 %v9507_v34 }
 0x249   : > { %v858_v63 = vpop.permute.xlu1 %857  ;;  %9392 = vset.pattern.permute.xlu1 %v14696_v48 }
 0x24a   : > { %v1420_v1 = vmul.f32 %v10104_v28, %v858_v63  ;;  %v1421_v52 = vmul.f32 %v10110_v30, %v858_v63  ;;  %v2223_v2 = vmul.f32 %v11257_v41, %v858_v63  ;;  %654 = vperm.xlu1 %9392, %v11090_v61   ;;  %3299 = vmatprep.mubr.bf16.mxu0 %v2824_v25 }
 0x24b   : > { %3300 = vmatmul.mubr.bf16.gmra.mrb[88].mxu0 %v2823_v19  ;;  %v2487_v61 = vmul.f32 %v11252_v38, %v1114_v42  ;;  %v2224_v57 = vmul.f32 %v11272_v26, %v858_v63 }
 0x24c   : > { %v1548_v7 = vadd.f32 %v1420_v1, %v1284_v20  ;;  %v1549_v27 = vadd.f32 %v1421_v52, %v1285_v9  ;;  %v3191_v31 = vpop.f32.mrb[44].mxu0  ;;  %v2351_v5 = vadd.f32 %v2223_v2, %v2087_v39  ;;  %v2488_v20 = vmul.f32 %v11260_v54, %v1114_v42  ;;  %v9762_v39 = vld [vmem:[%s9847_s15 + $0x1e0] sm:$0xff]  ;;  %4556 = vmatpush1.bf16.msra.mxu0 %v9505_v13 }
 0x24d   : > { %v862_v56 = vpop.permute.xlu1 %861  ;;  %v3192_v25 = vadd.f32 %v3191_v31, %v10916_v59  ;;  %v3193_v40 = vpop.f32.mrb[45].mxu0 }
 0x24e   : > { %v1813_v23 = vadd.f32 %v1685_v8, %v1549_v27  ;;  %v1422_v19 = vmul.f32 %v10104_v28, %v862_v56  ;;  %v1423_v62 = vmul.f32 %v10110_v30, %v862_v56  ;;  %v3194_v9 = vadd.f32 %v3193_v40, %v10921_v37  ;;  %9393 = vset.pattern.permute.xlu1 %v14700_v45  ;;  %v3195_v1 = vpop.f32.mrb[46].mxu0  ;;  %v11505_v31 = vpop.permute.xlu0 %1129 }
 0x24f   : > { %v1812_v63 = vadd.f32 %v1684_v0, %v1548_v7  ;;  %v2225_v8 = vmul.f32 %v11257_v41, %v862_v56  ;;  %v2226_v52 = vmul.f32 %v11272_v26, %v862_v56  ;;  %v3196_v2 = vadd.f32 %v3195_v1, %v10916_v59  ;;  %913 = vperm.xlu1 %9393, %v9762_v39   ;;  %v3197_v34 = vpop.f32.mrb[47].mxu0  ;;  %v9508_v7 = vld [vmem:[%s14424_s3 + $0x240] ss:$8 sps:$4 sm:$0xff]   ;;  %v9510_v0 = vld [vmem:[%s14424_s3 + $0x244] ss:$8 sps:$4 sm:$0xff]  }
 0x250   : > { %v3444_v51 = vmax.f32 %v3192_v25, 0.0  ;;  %v1550_v27 = vadd.f32 %v1422_v19, %v1286_v58  ;;  %v3198_v42 = vadd.f32 %v3197_v34, %v10921_v37  ;;  %v1952_v40 = vadd.f32 %v10165_v17, %v1813_v23  ;;  %4557 = vmatprep.subr.bf16.mxu0 %v9510_v0  ;;  %v9516_v0 = vld [vmem:[%s14424_s3 + $0x264] ss:$8 sps:$4 sm:$0xff]  }
 0x251   : > { %v1551_v56 = vadd.f32 %v1423_v62, %v1287_v12  ;;  %v3446_v1 = vmax.f32 %v3196_v2, 0.0  ;;  %v11514_v58 = vadd.f32 %v2487_v61, %v2351_v5  ;;  %v2352_v19 = vadd.f32 %v2224_v57, %v2088_v60  ;;  %4558 = vmatpush1.bf16.msra.mxu0 %v9508_v7  ;;  %v9513_v60 = vld [vmem:[%s14424_s3 + $0x254] ss:$8 sps:$4 sm:$0xff]  }
 0x252   : > { %v1118_v25 = vpop.permute.xlu1 %1117  ;;  %v3445_v39 = vmax.f32 %v3194_v9, 0.0  ;;  %v3447_v34 = vmax.f32 %v3198_v42, 0.0  ;;  %v1951_v47 = vadd.f32 %v10151_v49, %v1812_v63  ;;  %v9511_v9 = vld [vmem:[%s14424_s3 + $0x250] ss:$8 sps:$4 sm:$0xff]   ;;  %v2353_v2 = vadd.f32 %v2225_v8, %v2089_v10  ;;  %v11530_v63 = vpop.permute.xlu0 %1137  ;;  %4559 = vmatprep.subr.bf16.mxu0 %v9513_v60 }
 0x253   : > { %14812 = vst [vmem:[#allocation135_spill] sm:$0xff] %v11514_v58  ;;  %v1686_v24 = vmul.f32 %v10116_v32, %v1118_v25  ;;  %v1687_v13 = vmul.f32 %v10126_v36, %v1118_v25  ;;  %v2489_v23 = vmul.f32 %v11252_v38, %v1118_v25  ;;  %917 = vperm.xlu1 %9393, %v9763_v11   ;;  %v2744_v42 = vmax.f32 %v1952_v40, 0.0  ;;  %v9514_v40 = vld [vmem:[%s14424_s3 + $0x260] ss:$8 sps:$4 sm:$0xff]  }
 0x254   : > { %v3550_v35 = vpack.c.bf16 %v3446_v1, %v3444_v51  ;;  %v11521_v12 = vadd.f32 %v2488_v20, %v2352_v19  ;;  %v2490_v5 = vmul.f32 %v11260_v54, %v1118_v25  ;;  %v3551_v57 = vpack.c.bf16 %v3447_v34, %v3445_v39 }
 0x255   : > { %v1814_v62 = vadd.f32 %v1686_v24, %v1550_v27  ;;  %v1815_v61 = vadd.f32 %v1687_v13, %v1551_v56  ;;  %v2354_v27 = vadd.f32 %v2226_v52, %v11486_v15  ;;  %v2743_v7 = vmax.f32 %v1951_v47, 0.0  ;;  %4560 = vmatpush1.bf16.msra.mxu0 %v9511_v9  ;;  %v9764_v9 = vld [vmem:[%s9847_s15 + $0x1f0] sm:$0xff] }
 0x256   : > { %14813 = vst [vmem:[#allocation136_spill] sm:$0xff] %v11521_v12  ;;  %3940 = vmatprep.mubr.bf16.mxu1 %v3551_v57  ;;  %v11539_v56 = vadd.f32 %v2489_v23, %v2353_v2  ;;  %4561 = vmatprep.subr.bf16.mxu0 %v9516_v0  ;;  %v1689_v57 = vmul.f32 %v10126_v36, %v11476_v16 }
 0x257   : > { %v595_v51 = vpop.permute.xlu1 %594  ;;  %v1954_v24 = vadd.f32 %v10165_v17, %v1815_v61  ;;  %v1953_v20 = vadd.f32 %v10151_v49, %v1814_v62  ;;  %9395 = vset.pattern.permute.xlu1 %v14702_v44  ;;  %3941 = vmatmul.mubr.bf16.gmra.mrb[44].mxu1 %v3550_v35  ;;  %v11541_v1 = vadd.f32 %v2490_v5, %v2354_v27  ;;  %v600_v62 = vpop.permute.xlu0 %599  ;;  %v9519_v61 = vld [vmem:[%s14424_s3 + $0x274] ss:$8 sps:$4 sm:$0xff]  }
 0x258   : > { %1173 = vperm.xlu1 %9395, %v9763_v11   ;;  %14814 = vst [vmem:[#allocation137_spill] sm:$0xff] %v11539_v56  ;;  %v1288_v15 = vmul.f32 %v10119_v33, %v595_v51  ;;  %v1289_v47 = vmul.f32 %v10107_v29, %v595_v51  ;;  %v2091_v52 = vmul.f32 %v11239_v50, %v595_v51 }
 0x259   : > { %v2746_v10 = vmax.f32 %v1954_v24, 0.0  ;;  %v2745_v8 = vmax.f32 %v1953_v20, 0.0  ;;  %14815 = vst [vmem:[#allocation138_spill] sm:$0xff] %v11541_v1  ;;  %v2092_v35 = vmul.f32 %v11249_v53, %v595_v51  ;;  %v1688_v5 = vmul.f32 %v10116_v32, %v11476_v16  ;;  %4562 = vmatpush1.bf16.msra.mxu0 %v9514_v40 }
 0x25a   : > { %v2491_v60 = vmul.f32 %v11252_v38, %v11476_v16  ;;  %v2492_v27 = vmul.f32 %v11260_v54, %v11476_v16  ;;  %v2093_v0 = vmul.f32 %v11239_v50, %v600_v62  ;;  %4563 = vmatprep.subr.bf16.mxu0 %v9519_v61 }
 0x25b   : > { %v2826_v25 = vpack.c.bf16 %v2746_v10, %v2744_v42  ;;  %v2825_v19 = vpack.c.bf16 %v2745_v8, %v2743_v7  ;;  %v1290_v42 = vmul.f32 %v10119_v33, %v600_v62  ;;  %v1291_v7 = vmul.f32 %v10107_v29, %v600_v62 }
 0x25c   : > { %v866_v11 = vpop.permute.xlu1 %865  ;;  %9396 = vset.pattern.permute.xlu1 %v14696_v48 }
 0x25d   : > { %v1424_v39 = vmul.f32 %v10104_v28, %v866_v11  ;;  %v1425_v34 = vmul.f32 %v10110_v30, %v866_v11  ;;  %v2227_v13 = vmul.f32 %v11257_v41, %v866_v11  ;;  %v2228_v23 = vmul.f32 %v11272_v26, %v866_v11  ;;  %664 = vperm.xlu1 %9396, %v9764_v9  }
 0x25e   : > { %3309 = vmatprep.mubr.bf16.mxu0 %v2826_v25  ;;  %v9517_v25 = vld [vmem:[%s14424_s3 + $0x270] ss:$8 sps:$4 sm:$0xff]   ;;  %v2094_v11 = vmul.f32 %v11249_v53, %v600_v62 }
 0x25f   : > { %v1552_v2 = vadd.f32 %v1424_v39, %v1288_v15  ;;  %v1553_v51 = vadd.f32 %v1425_v34, %v1289_v47  ;;  %3310 = vmatmul.mubr.bf16.gmra.mrb[92].mxu0 %v2825_v19  ;;  %v2355_v24 = vadd.f32 %v2227_v13, %v2091_v52  ;;  %v2356_v20 = vadd.f32 %v2228_v23, %v2092_v35  ;;  %v3201_v10 = vpop.f32.mrb[48].mxu0  ;;  %v9522_v35 = vld [vmem:[%s14424_s3 + $0x284] ss:$8 sps:$4 sm:$0xff]  }
 0x260   : > { %v870_v8 = vpop.permute.xlu1 %869  ;;  %v3202_v19 = vadd.f32 %v3201_v10, %v10916_v59  ;;  %v3203_v52 = vpop.f32.mrb[49].mxu0  ;;  %4564 = vmatpush1.bf16.msra.mxu0 %v9517_v25  ;;  %v9765_v25 = vld [vmem:[%s9847_s15 + $0x1f8] sm:$0xff] }
 0x261   : > { %v1426_v15 = vmul.f32 %v10104_v28, %v870_v8  ;;  %v1427_v47 = vmul.f32 %v10110_v30, %v870_v8  ;;  %v2229_v16 = vmul.f32 %v11257_v41, %v870_v8  ;;  %v2230_v40 = vmul.f32 %v11272_v26, %v870_v8  ;;  %9397 = vset.pattern.permute.xlu1 %v14700_v45  ;;  %v3205_v34 = vpop.f32.mrb[50].mxu0  ;;  %v9520_v8 = vld [vmem:[%s14424_s3 + $0x280] ss:$8 sps:$4 sm:$0xff]  }
 0x262   : > { %v3204_v39 = vadd.f32 %v3203_v52, %v10921_v37  ;;  %v3448_v13 = vmax.f32 %v3202_v19, 0.0  ;;  %v3206_v23 = vadd.f32 %v3205_v34, %v10916_v59  ;;  %921 = vperm.xlu1 %9397, %v9764_v9   ;;  %v3207_v10 = vpop.f32.mrb[51].mxu0  ;;  %v1817_v1 = vadd.f32 %v1689_v57, %v1553_v51  ;;  %4565 = vmatprep.subr.bf16.mxu0 %v9522_v35 }
 0x263   : > { %v1816_v61 = vadd.f32 %v1688_v5, %v1552_v2  ;;  %v1554_v56 = vadd.f32 %v1426_v15, %v1290_v42  ;;  %v1555_v12 = vadd.f32 %v1427_v47, %v1291_v7  ;;  %v3208_v62 = vadd.f32 %v3207_v10, %v10921_v37  ;;  %v9525_v7 = vld [vmem:[%s14424_s3 + $0x294] ss:$8 sps:$4 sm:$0xff]  }
 0x264   : > { %v3449_v58 = vmax.f32 %v3204_v39, 0.0  ;;  %v3450_v45 = vmax.f32 %v3206_v23, 0.0  ;;  %v11589_v19 = vadd.f32 %v2491_v60, %v2355_v24  ;;  %v11591_v9 = vadd.f32 %v2492_v27, %v2356_v20  ;;  %4566 = vmatpush1.bf16.msra.mxu0 %v9520_v8 }
 0x265   : > { %v1126_v52 = vpop.permute.xlu1 %1125  ;;  %v2357_v57 = vadd.f32 %v2229_v16, %v2093_v0  ;;  %v3451_v5 = vmax.f32 %v3208_v62, 0.0  ;;  %v1956_v60 = vadd.f32 %v10165_v17, %v1817_v1  ;;  %v1955_v24 = vadd.f32 %v10151_v49, %v1816_v61  ;;  %v9523_v16 = vld [vmem:[%s14424_s3 + $0x290] ss:$8 sps:$4 sm:$0xff]   ;;  %4567 = vmatprep.subr.bf16.mxu0 %v9525_v7  ;;  %v610_v62 = vpop.permute.xlu0 %609 }
 0x266   : > { %14816 = vst [vmem:[#allocation139_spill] sm:$0xff] %v11589_v19  ;;  %14817 = vst [vmem:[#allocation140_spill] sm:$0xff] %v11591_v9  ;;  %v1690_v2 = vmul.f32 %v10116_v32, %v1126_v52  ;;  %v1691_v51 = vmul.f32 %v10126_v36, %v1126_v52  ;;  %v2493_v42 = vmul.f32 %v11252_v38, %v1126_v52  ;;  %925 = vperm.xlu1 %9397, %v9765_v25  }
 0x267   : > { %v3552_v15 = vpack.c.bf16 %v3450_v45, %v3448_v13  ;;  %v2494_v0 = vmul.f32 %v11260_v54, %v1126_v52  ;;  %v3553_v47 = vpack.c.bf16 %v3451_v5, %v3449_v58  ;;  %v11615_v58 = vmul.f32 %v10116_v32, %v11505_v31 }
 0x268   : > { %v1818_v20 = vadd.f32 %v1690_v2, %v1554_v56  ;;  %v1819_v27 = vadd.f32 %v1691_v51, %v1555_v12  ;;  %v11606_v35 = vadd.f32 %v2493_v42, %v2357_v57  ;;  %v9528_v12 = vld [vmem:[%s14424_s3 + $0x2a4] ss:$8 sps:$4 sm:$0xff]   ;;  %v2358_v56 = vadd.f32 %v2230_v40, %v2094_v11  ;;  %4568 = vmatpush1.bf16.msra.mxu0 %v9523_v16  ;;  %v9526_v51 = vld [vmem:[%s14424_s3 + $0x2a0] ss:$8 sps:$4 sm:$0xff]  }
 0x269   : > { %3950 = vmatprep.mubr.bf16.mxu1 %v3553_v47  ;;  %v2748_v13 = vmax.f32 %v1956_v60, 0.0  ;;  %v2747_v10 = vmax.f32 %v1955_v24, 0.0  ;;  %v1693_v45 = vmul.f32 %v10126_v36, %v11505_v31  ;;  %v11624_v11 = vmul.f32 %v11252_v38, %v11505_v31  ;;  %4569 = vmatprep.subr.bf16.mxu0 %v9528_v12  ;;  %v9531_v24 = vld [vmem:[%s14424_s3 + $0x2b4] ss:$8 sps:$4 sm:$0xff]   ;;  %v11662_v47 = vpop.permute.xlu0 %619 }
 0x26a   : > { %14818 = vst [vmem:[#allocation141_spill] sm:$0xff] %v11606_v35  ;;  %v605_v39 = vpop.permute.xlu1 %604  ;;  %v1958_v34 = vadd.f32 %v10165_v17, %v1819_v27  ;;  %v1957_v1 = vadd.f32 %v10151_v49, %v1818_v20  ;;  %9399 = vset.pattern.permute.xlu1 %v14702_v44  ;;  %3951 = vmatmul.mubr.bf16.gmra.mrb[48].mxu1 %v3552_v15 }
 0x26b   : > { %1181 = vperm.xlu1 %9399, %v9765_v25   ;;  %v11618_v8 = vadd.f32 %v2494_v0, %v2358_v56  ;;  %v11628_v40 = vmul.f32 %v11260_v54, %v11505_v31  ;;  %v11632_v44 = vmul.f32 %v10116_v32, %v11530_v63  ;;  %v11636_v52 = vmul.f32 %v10126_v36, %v11530_v63  ;;  %v8908_v31 = vld [vmem:[%s14425_s4 + $0x2] sm:$0x3] }
 0x26c   : > { %v2750_v23 = vmax.f32 %v1958_v34, 0.0  ;;  %v2749_v61 = vmax.f32 %v1957_v1, 0.0  ;;  %v11640_v57 = vmul.f32 %v11252_v38, %v11530_v63  ;;  %v11650_v42 = vmul.f32 %v11260_v54, %v11530_v63  ;;  %4570 = vmatpush1.bf16.msra.mxu0 %v9526_v51 }
 0x26d   : > { %14819 = vst [vmem:[#allocation142_spill] sm:$0xff] %v11618_v8  ;;  %v1293_v7 = vmul.f32 %v10107_v29, %v605_v39  ;;  %v2095_v25 = vmul.f32 %v11239_v50, %v605_v39  ;;  %v1294_v60 = vmul.f32 %v10119_v33, %v610_v62  ;;  %v2096_v20 = vmul.f32 %v11249_v53, %v605_v39 }
 0x26e   : > { %v2828_v5 = vpack.c.bf16 %v2750_v23, %v2748_v13  ;;  %v2827_v2 = vpack.c.bf16 %v2749_v61, %v2747_v10  ;;  %v1295_v34 = vmul.f32 %v10107_v29, %v610_v62  ;;  %v11667_v1 = vmul.f32 %v11239_v50, %v610_v62  ;;  %v9529_v23 = vld [vmem:[%s14424_s3 + $0x2b0] ss:$8 sps:$4 sm:$0xff]   ;;  %4571 = vmatprep.subr.bf16.mxu0 %v9531_v24 }
 0x26f   : > { %v874_v15 = vpop.permute.xlu1 %873  ;;  %v11670_v12 = vrot.slane %v8908_v31, %v10088_v22  ;;  %v11673_v13 = vmul.f32 %v11249_v53, %v610_v62  ;;  %v11684_v8 = vrot.slane %v8908_v31, %v10086_v21  ;;  %v11688_v62 = vmul.f32 %v10119_v33, %v11662_v47 }
 0x270   : > { %v1429_v27 = vmul.f32 %v10110_v30, %v874_v15  ;;  %v2231_v0 = vmul.f32 %v11257_v41, %v874_v15  ;;  %v2232_v63 = vmul.f32 %v11272_v26, %v874_v15  ;;  %3319 = vmatprep.mubr.bf16.mxu0 %v2828_v5  ;;  %v1428_v16 = vmul.f32 %v10104_v28, %v874_v15 }
 0x271   : > { %3320 = vmatmul.mubr.bf16.gmra.mrb[96].mxu0 %v2827_v2  ;;  %v1292_v5 = vmul.f32 %v10119_v33, %v605_v39  ;;  %v11692_v51 = vmul.f32 %v10107_v29, %v11662_v47 }
 0x272   : > { %v1557_v56 = vadd.f32 %v1429_v27, %v1293_v7  ;;  %v11678_v10 = vadd.f32 %v2231_v0, %v2095_v25  ;;  %v11680_v61 = vadd.f32 %v2232_v63, %v2096_v20  ;;  %v9534_v7 = vld [vmem:[%s14424_s3 + $0x2c4] ss:$8 sps:$4 sm:$0xff]   ;;  %v11702_v0 = vmul.f32 %v11239_v50, %v11662_v47  ;;  %4572 = vmatpush1.bf16.msra.mxu0 %v9529_v23 }
 0x273   : > { %v3211_v2 = vpop.f32.mrb[52].mxu0  ;;  %v878_v15 = vpop.permute.xlu1 %877  ;;  %v1556_v63 = vadd.f32 %v1428_v16, %v1292_v5  ;;  %v9532_v16 = vld [vmem:[%s14424_s3 + $0x2c0] ss:$8 sps:$4 sm:$0xff]   ;;  %4573 = vmatprep.subr.bf16.mxu0 %v9534_v7 }
 0x274   : > { %v3212_v39 = vadd.f32 %v3211_v2, %v10916_v59  ;;  %v1430_v25 = vmul.f32 %v10104_v28, %v878_v15  ;;  %v1431_v31 = vmul.f32 %v10110_v30, %v878_v15  ;;  %v3213_v20 = vpop.f32.mrb[53].mxu0  ;;  %v3832_v27 = vpop.f32.mrb[0].mxu1  ;;  %v11705_v35 = vmul.f32 %v11257_v41, %v878_v15 }
 0x275   : > { %v3214_v24 = vadd.f32 %v3213_v20, %v10921_v37  ;;  %v3833_v9 = vadd.f32 %v3832_v27, %v11670_v12  ;;  %v3215_v19 = vpop.f32.mrb[54].mxu0  ;;  %v3834_v2 = vpop.f32.mrb[1].mxu1  ;;  %v11710_v46 = vmul.f32 %v11272_v26, %v878_v15  ;;  %v1821_v4 = vadd.f32 %v1693_v45, %v1557_v56 }
 0x276   : > { %v3452_v55 = vmax.f32 %v3212_v39, 0.0  ;;  %v3216_v43 = vadd.f32 %v3215_v19, %v10916_v59  ;;  %v3217_v6 = vpop.f32.mrb[55].mxu0  ;;  %v3836_v14 = vpop.f32.mrb[2].mxu1  ;;  %v1558_v5 = vadd.f32 %v1430_v25, %v1294_v60  ;;  %v1559_v20 = vadd.f32 %v1431_v31, %v1295_v34  ;;  %v9537_v19 = vld [vmem:[%s14424_s3 + $0x2d4] ss:$8 sps:$4 sm:$0xff]   ;;  %4574 = vmatpush1.bf16.msra.mxu0 %v9532_v16 }
 0x277   : > { %v3835_v27 = vadd.f32 %v3834_v2, %v11684_v8  ;;  %v3218_v3 = vadd.f32 %v3217_v6, %v10921_v37  ;;  %v3838_v39 = vpop.f32.mrb[3].mxu1  ;;  %v3453_v15 = vmax.f32 %v3214_v24, 0.0  ;;  %v3837_v45 = vadd.f32 %v3836_v14, %v11670_v12  ;;  %v9535_v14 = vld [vmem:[%s14424_s3 + $0x2d0] ss:$8 sps:$4 sm:$0xff]   ;;  %4575 = vmatprep.subr.bf16.mxu0 %v9537_v19 }
 0x278   : > { %v3454_v18 = vmax.f32 %v3216_v43, 0.0  ;;  %v3839_v56 = vadd.f32 %v3838_v39, %v11684_v8  ;;  %v1134_v23 = vpop.permute.xlu1 %1133  ;;  %v4151_v48 = vmax.f32 %v3833_v9, 0.0  ;;  %v1960_v2 = vadd.f32 %v10165_v17, %v1821_v4  ;;  %v9540_v4 = vld [vmem:[%s14424_s3 + $0x2e4] ss:$8 sps:$4 sm:$0xff]  }
 0x279   : > { %v3455_v60 = vmax.f32 %v3218_v3, 0.0  ;;  %v1694_v34 = vmul.f32 %v10116_v32, %v1134_v23  ;;  %v1695_v25 = vmul.f32 %v10126_v36, %v1134_v23  ;;  %v4152_v6 = vmax.f32 %v3835_v27, 0.0 }
 0x27a   : > { %v4153_v31 = vmax.f32 %v3837_v45, 0.0  ;;  %v4154_v7 = vmax.f32 %v3839_v56, 0.0  ;;  %v3554_v22 = vpack.c.bf16 %v3454_v18, %v3452_v55  ;;  %v2497_v9 = vmul.f32 %v11252_v38, %v1134_v23  ;;  %4576 = vmatpush1.bf16.msra.mxu0 %v9535_v14 }
 0x27b   : > { %v1822_v21 = vadd.f32 %v1694_v34, %v1558_v5  ;;  %v1823_v24 = vadd.f32 %v1695_v25, %v1559_v20  ;;  %v3555_v43 = vpack.c.bf16 %v3455_v60, %v3453_v15  ;;  %v3842_v39 = vpop.f32.mrb[4].mxu1  ;;  %v1820_v27 = vadd.f32 %v11615_v58, %v1556_v63  ;;  %4577 = vmatprep.subr.bf16.mxu0 %v9540_v4 }
 0x27c   : > { %v11729_v3 = vpack.c.bf16 %v4153_v31, %v4151_v48  ;;  %v11736_v16 = vpack.c.bf16 %v4154_v7, %v4152_v6  ;;  %v3843_v18 = vadd.f32 %v3842_v39, %v11670_v12  ;;  %v3844_v55 = vpop.f32.mrb[5].mxu1  ;;  %v11743_v19 = vadd.f32 %v11624_v11, %v11678_v10  ;;  %v11750_v31 = vpop.permute.xlu0 %629 }
 0x27d   : > { %3960 = vmatprep.mubr.bf16.mxu1 %v3555_v43  ;;  %v615_v5 = vpop.permute.xlu1 %614  ;;  %v1962_v20 = vadd.f32 %v10165_v17, %v1823_v24  ;;  %v1961_v48 = vadd.f32 %v10151_v49, %v1822_v21  ;;  %v2498_v58 = vmul.f32 %v11260_v54, %v1134_v23  ;;  %v3845_v63 = vadd.f32 %v3844_v55, %v11684_v8  ;;  %v3846_v45 = vpop.f32.mrb[6].mxu1  ;;  %v9543_v43 = vld [vmem:[%s14424_s3 + $0x2f4] ss:$8 sps:$4 sm:$0xff]  }
 0x27e   : > { %14820 = vst [vmem:[#allocation143_spill] sm:$0xff] %v11743_v19  ;;  %v1297_v15 = vmul.f32 %v10107_v29, %v615_v5  ;;  %3961 = vmatmul.mubr.bf16.gmra.mrb[52].mxu1 %v3554_v22  ;;  %v2752_v56 = vmax.f32 %v1960_v2, 0.0  ;;  %v4155_v60 = vmax.f32 %v3843_v18, 0.0  ;;  %v2099_v34 = vmul.f32 %v11239_v50, %v615_v5  ;;  %v3848_v6 = vpop.f32.mrb[7].mxu1  ;;  %v9538_v22 = vld [vmem:[%s14424_s3 + $0x2e0] ss:$8 sps:$4 sm:$0xff]  }
 0x27f   : > { %v3847_v25 = vadd.f32 %v3846_v45, %v11670_v12  ;;  %v2754_v21 = vmax.f32 %v1962_v20, 0.0  ;;  %v2100_v11 = vmul.f32 %v11249_v53, %v615_v5  ;;  %v3849_v10 = vadd.f32 %v3848_v6, %v11684_v8  ;;  %4578 = vmatpush1.bf16.msra.mxu0 %v9538_v22 }
 0x280   : > { %v1959_v23 = vadd.f32 %v10151_v49, %v1820_v27  ;;  %v2753_v7 = vmax.f32 %v1961_v48, 0.0  ;;  %v11763_v14 = vadd.f32 %v11628_v40, %v11680_v61  ;;  %v2361_v39 = vadd.f32 %v11705_v35, %v11667_v1  ;;  %v9541_v35 = vld [vmem:[%s14424_s3 + $0x2f0] ss:$8 sps:$4 sm:$0xff]   ;;  %4579 = vmatprep.subr.bf16.mxu0 %v9543_v43 }
 0x281   : > { %v4157_v2 = vmax.f32 %v3847_v25, 0.0  ;;  %v2830_v24 = vpack.c.bf16 %v2754_v21, %v2752_v56  ;;  %v4156_v27 = vmax.f32 %v3845_v63, 0.0  ;;  %v4158_v18 = vmax.f32 %v3849_v10, 0.0 }
 0x282   : > { %14821 = vst [vmem:[#allocation144_spill] sm:$0xff] %v11763_v14  ;;  %v882_v55 = vpop.permute.xlu1 %881  ;;  %v2751_v20 = vmax.f32 %v1959_v23, 0.0  ;;  %v2362_v4 = vadd.f32 %v11710_v46, %v11673_v13  ;;  %v11780_v46 = vadd.f32 %v2497_v9, %v2361_v39  ;;  %v1296_v13 = vmul.f32 %v10119_v33, %v615_v5  ;;  %v11784_v23 = vpop.permute.xlu0 %639 }
 0x283   : > { %v1432_v48 = vmul.f32 %v10104_v28, %v882_v55  ;;  %v1433_v45 = vmul.f32 %v10110_v30, %v882_v55  ;;  %v2235_v56 = vmul.f32 %v11257_v41, %v882_v55  ;;  %v2236_v25 = vmul.f32 %v11272_v26, %v882_v55  ;;  %3329 = vmatprep.mubr.bf16.mxu0 %v2830_v24  ;;  %v3852_v61 = vpop.f32.mrb[8].mxu1 }
 0x284   : > { %v2829_v40 = vpack.c.bf16 %v2753_v7, %v2751_v20  ;;  %v11776_v1 = vpack.c.bf16 %v4158_v18, %v4156_v27  ;;  %v11778_v63 = vpack.c.bf16 %v4157_v2, %v4155_v60  ;;  %14822 = vst [vmem:[#allocation145_spill] sm:$0xff] %v11780_v46  ;;  %v3853_v21 = vadd.f32 %v3852_v61, %v11670_v12  ;;  %v3854_v10 = vpop.f32.mrb[9].mxu1 }
 0x285   : > { %v1561_v6 = vadd.f32 %v1433_v45, %v1297_v15  ;;  %v11786_v7 = vadd.f32 %v2498_v58, %v2362_v4  ;;  %v3855_v22 = vadd.f32 %v3854_v10, %v11684_v8  ;;  %v2102_v60 = vmul.f32 %v11249_v53, %v11662_v47  ;;  %v3221_v2 = vpop.f32.mrb[56].mxu0  ;;  %v3856_v9 = vpop.f32.mrb[10].mxu1  ;;  %4580 = vmatpush1.bf16.msra.mxu0 %v9541_v35 }
 0x286   : > { %3330 = vmatmul.mubr.bf16.gmra.mrb[100].mxu0 %v2829_v40  ;;  %v2363_v24 = vadd.f32 %v2235_v56, %v2099_v34  ;;  %v2364_v39 = vadd.f32 %v2236_v25, %v2100_v11  ;;  %v1560_v5 = vadd.f32 %v1432_v48, %v1296_v13  ;;  %v4159_v15 = vmax.f32 %v3853_v21, 0.0  ;;  %v886_v55 = vpop.permute.xlu1 %885  ;;  %v3223_v43 = vpop.f32.mrb[57].mxu0 }
 0x287   : > { %14823 = vst [vmem:[#allocation146_spill] sm:$0xff] %v11786_v7  ;;  %v3222_v27 = vadd.f32 %v3221_v2, %v10916_v59  ;;  %v3857_v18 = vadd.f32 %v3856_v9, %v11670_v12  ;;  %v4160_v58 = vmax.f32 %v3855_v22, 0.0  ;;  %v1434_v20 = vmul.f32 %v10104_v28, %v886_v55  ;;  %v3858_v45 = vpop.f32.mrb[11].mxu1  ;;  %v3225_v40 = vpop.f32.mrb[58].mxu0 }
 0x288   : > { %v1435_v4 = vmul.f32 %v10110_v30, %v886_v55  ;;  %v1825_v47 = vadd.f32 %v11636_v52, %v1561_v6  ;;  %v2237_v48 = vmul.f32 %v11257_v41, %v886_v55  ;;  %v3224_v56 = vadd.f32 %v3223_v43, %v10921_v37  ;;  %v3227_v25 = vpop.f32.mrb[59].mxu0  ;;  %v11804_v35 = vpop.permute.xlu0 %649 }
 0x289   : > { %v3456_v34 = vmax.f32 %v3222_v27, 0.0  ;;  %v4161_v11 = vmax.f32 %v3857_v18, 0.0  ;;  %v1562_v61 = vadd.f32 %v1434_v20, %v11688_v62  ;;  %v2238_v13 = vmul.f32 %v11272_v26, %v886_v55 }
 0x28a   : > { %v3859_v21 = vadd.f32 %v3858_v45, %v11684_v8  ;;  %v3226_v10 = vadd.f32 %v3225_v40, %v10916_v59  ;;  %v1563_v22 = vadd.f32 %v1435_v4, %v11692_v51  ;;  %v3457_v2 = vmax.f32 %v3224_v56, 0.0 }
 0x28b   : > { %v3228_v52 = vadd.f32 %v3227_v25, %v10921_v37  ;;  %v1824_v6 = vadd.f32 %v11632_v44, %v1560_v5  ;;  %v1142_v18 = vpop.permute.xlu1 %1141  ;;  %v11807_v43 = vpack.c.bf16 %v4161_v11, %v4159_v15  ;;  %v11810_v62 = vadd.f32 %v11640_v57, %v2363_v24 }
 0x28c   : > { %v4162_v9 = vmax.f32 %v3859_v21, 0.0  ;;  %v3458_v27 = vmax.f32 %v3226_v10, 0.0  ;;  %v1698_v20 = vmul.f32 %v10116_v32, %v1142_v18  ;;  %v1699_v51 = vmul.f32 %v10126_v36, %v1142_v18 }
 0x28d   : > { %14824 = vst [vmem:[#allocation147_spill] sm:$0xff] %v11810_v62  ;;  %v3459_v55 = vmax.f32 %v3228_v52, 0.0  ;;  %v1964_v4 = vadd.f32 %v10165_v17, %v1825_v47  ;;  %v2501_v45 = vmul.f32 %v11252_v38, %v1142_v18  ;;  %v2502_v40 = vmul.f32 %v11260_v54, %v1142_v18  ;;  %v1146_v52 = vpop.permute.xlu0 %1145 }
 0x28e   : > { %v3556_v44 = vpack.c.bf16 %v3458_v27, %v3456_v34  ;;  %v1963_v5 = vadd.f32 %v10151_v49, %v1824_v6  ;;  %v1826_v56 = vadd.f32 %v1698_v20, %v1562_v61  ;;  %v1827_v15 = vadd.f32 %v1699_v51, %v1563_v22 }
 0x28f   : > { %v3557_v11 = vpack.c.bf16 %v3459_v55, %v3457_v2  ;;  %v11818_v25 = vpack.c.bf16 %v4162_v9, %v4160_v58  ;;  %v11821_v57 = vadd.f32 %v11650_v42, %v2364_v39  ;;  %v2365_v24 = vadd.f32 %v2237_v48, %v11702_v0 }
 0x290   : > { %v2366_v21 = vadd.f32 %v2238_v13, %v2102_v60  ;;  %v625_v47 = vpop.permute.xlu1 %624  ;;  %v1966_v10 = vadd.f32 %v10165_v17, %v1827_v15  ;;  %v1965_v34 = vadd.f32 %v10151_v49, %v1826_v56  ;;  %v1302_v61 = vmul.f32 %v10119_v33, %v11750_v31 }
 0x291   : > { %14825 = vst [vmem:[#allocation148_spill] sm:$0xff] %v11821_v57  ;;  %3970 = vmatprep.mubr.bf16.mxu1 %v3557_v11  ;;  %v1303_v58 = vmul.f32 %v10107_v29, %v11750_v31  ;;  %v2756_v22 = vmax.f32 %v1964_v4, 0.0  ;;  %v2755_v42 = vmax.f32 %v1963_v5, 0.0  ;;  %v11830_v60 = vadd.f32 %v2501_v45, %v2365_v24 }
 0x292   : > { %3971 = vmatmul.mubr.bf16.gmra.mrb[56].mxu1 %v3556_v44  ;;  %v3862_v39 = vpop.f32.mrb[12].mxu1  ;;  %v2758_v2 = vmax.f32 %v1966_v10, 0.0  ;;  %v2757_v0 = vmax.f32 %v1965_v34, 0.0  ;;  %v11832_v48 = vadd.f32 %v2502_v40, %v2366_v21  ;;  %v11836_v13 = vmul.f32 %v11239_v50, %v11750_v31 }
 0x293   : > { %14826 = vst [vmem:[#allocation149_spill] sm:$0xff] %v11830_v60  ;;  %v11840_v6 = vmul.f32 %v11249_v53, %v11750_v31  ;;  %v3863_v9 = vadd.f32 %v3862_v39, %v11670_v12  ;;  %v3864_v27 = vpop.f32.mrb[13].mxu1  ;;  %v1700_v18 = vmul.f32 %v10116_v32, %v1146_v52  ;;  %v1300_v55 = vmul.f32 %v10119_v33, %v625_v47 }
 0x294   : > { %14827 = vst [vmem:[#allocation150_spill] sm:$0xff] %v11832_v48  ;;  %v3866_v20 = vpop.f32.mrb[14].mxu1  ;;  %v2832_v51 = vpack.c.bf16 %v2758_v2, %v2756_v22  ;;  %v1701_v4 = vmul.f32 %v10126_v36, %v1146_v52  ;;  %v2831_v45 = vpack.c.bf16 %v2757_v0, %v2755_v42  ;;  %v1301_v40 = vmul.f32 %v10107_v29, %v625_v47 }
 0x295   : > { %v2103_v44 = vmul.f32 %v11239_v50, %v625_v47  ;;  %v2104_v5 = vmul.f32 %v11249_v53, %v625_v47  ;;  %v3867_v31 = vadd.f32 %v3866_v20, %v11670_v12  ;;  %v890_v56 = vpop.permute.xlu1 %889  ;;  %v3868_v15 = vpop.f32.mrb[15].mxu1  ;;  %v3865_v11 = vadd.f32 %v3864_v27, %v11684_v8 }
 0x296   : > { %v1436_v24 = vmul.f32 %v10104_v28, %v890_v56  ;;  %v1437_v21 = vmul.f32 %v10110_v30, %v890_v56  ;;  %v2239_v10 = vmul.f32 %v11257_v41, %v890_v56  ;;  %3339 = vmatprep.mubr.bf16.mxu0 %v2832_v51  ;;  %v4163_v34 = vmax.f32 %v3863_v9, 0.0 }
 0x297   : > { %v4165_v22 = vmax.f32 %v3867_v31, 0.0  ;;  %v2240_v42 = vmul.f32 %v11272_v26, %v890_v56  ;;  %v3869_v39 = vadd.f32 %v3868_v15, %v11684_v8  ;;  %3340 = vmatmul.mubr.bf16.gmra.mrb[104].mxu0 %v2831_v45  ;;  %v2503_v0 = vmul.f32 %v11252_v38, %v1146_v52 }
 0x298   : > { %v1564_v47 = vadd.f32 %v1436_v24, %v1300_v55  ;;  %v1565_v2 = vadd.f32 %v1437_v21, %v1301_v40  ;;  %v3231_v20 = vpop.f32.mrb[60].mxu0  ;;  %v2367_v27 = vadd.f32 %v2239_v10, %v2103_v44  ;;  %v4164_v51 = vmax.f32 %v3865_v11, 0.0 }
 0x299   : > { %v4166_v48 = vmax.f32 %v3869_v39, 0.0  ;;  %v3232_v60 = vadd.f32 %v3231_v20, %v10916_v59  ;;  %v894_v57 = vpop.permute.xlu1 %893  ;;  %v3233_v62 = vpop.f32.mrb[61].mxu0  ;;  %v11858_v7 = vpack.c.bf16 %v4165_v22, %v4163_v34  ;;  %v2368_v9 = vadd.f32 %v2240_v42, %v2104_v5 }
 0x29a   : > { %v2504_v31 = vmul.f32 %v11260_v54, %v1146_v52  ;;  %v1438_v56 = vmul.f32 %v10104_v28, %v894_v57  ;;  %v1439_v55 = vmul.f32 %v10110_v30, %v894_v57  ;;  %v3235_v45 = vpop.f32.mrb[62].mxu0  ;;  %v1828_v40 = vadd.f32 %v1700_v18, %v1564_v47 }
 0x29b   : > { %v1829_v15 = vadd.f32 %v1701_v4, %v1565_v2  ;;  %v3460_v24 = vmax.f32 %v3232_v60, 0.0  ;;  %v3234_v44 = vadd.f32 %v3233_v62, %v10921_v37  ;;  %v3237_v21 = vpop.f32.mrb[63].mxu0  ;;  %v2241_v10 = vmul.f32 %v11257_v41, %v894_v57 }
 0x29c   : > { %v2242_v34 = vmul.f32 %v11272_v26, %v894_v57  ;;  %v3236_v5 = vadd.f32 %v3235_v45, %v10916_v59  ;;  %v3238_v11 = vadd.f32 %v3237_v21, %v10921_v37  ;;  %v1566_v52 = vadd.f32 %v1438_v56, %v1302_v61 }
 0x29d   : > { %v1567_v22 = vadd.f32 %v1439_v55, %v1303_v58  ;;  %v3461_v42 = vmax.f32 %v3234_v44, 0.0  ;;  %v11868_v39 = vpack.c.bf16 %v4166_v48, %v4164_v51  ;;  %v11870_v60 = vadd.f32 %v2503_v0, %v2367_v27  ;;  %v1154_v44 = vpop.permute.xlu0 %1153 }
 0x29e   : > { %v3462_v20 = vmax.f32 %v3236_v5, 0.0  ;;  %v3463_v18 = vmax.f32 %v3238_v11, 0.0  ;;  %v1150_v4 = vpop.permute.xlu1 %1149  ;;  %v11872_v62 = vadd.f32 %v2504_v31, %v2368_v9  ;;  %v1968_v48 = vadd.f32 %v10165_v17, %v1829_v15 }
 0x29f   : > { %14828 = vst [vmem:[#allocation151_spill] sm:$0xff] %v11870_v60  ;;  %v1702_v47 = vmul.f32 %v10116_v32, %v1150_v4  ;;  %v1703_v57 = vmul.f32 %v10126_v36, %v1150_v4  ;;  %v2505_v2 = vmul.f32 %v11252_v38, %v1150_v4  ;;  %v2506_v45 = vmul.f32 %v11260_v54, %v1150_v4 }
 0x2a0   : > { %14829 = vst [vmem:[#allocation152_spill] sm:$0xff] %v11872_v62  ;;  %v3559_v61 = vpack.c.bf16 %v3463_v18, %v3461_v42  ;;  %v3558_v58 = vpack.c.bf16 %v3462_v20, %v3460_v24  ;;  %v1967_v51 = vadd.f32 %v10151_v49, %v1828_v40  ;;  %v2369_v0 = vadd.f32 %v2241_v10, %v11836_v13 }
 0x2a1   : > { %v1830_v56 = vadd.f32 %v1702_v47, %v1566_v52  ;;  %v1831_v55 = vadd.f32 %v1703_v57, %v1567_v22  ;;  %v2370_v27 = vadd.f32 %v2242_v34, %v11840_v6  ;;  %v1306_v40 = vmul.f32 %v10119_v33, %v11784_v23 }
 0x2a2   : > { %3980 = vmatprep.mubr.bf16.mxu1 %v3559_v61  ;;  %v11884_v5 = vadd.f32 %v2505_v2, %v2369_v0  ;;  %v1307_v13 = vmul.f32 %v10107_v29, %v11784_v23  ;;  %v2760_v6 = vmax.f32 %v1968_v48, 0.0  ;;  %v2759_v34 = vmax.f32 %v1967_v51, 0.0 }
 0x2a3   : > { %v635_v9 = vpop.permute.xlu1 %634  ;;  %3981 = vmatmul.mubr.bf16.gmra.mrb[60].mxu1 %v3558_v58  ;;  %v1970_v31 = vadd.f32 %v10165_v17, %v1831_v55  ;;  %v1969_v21 = vadd.f32 %v10151_v49, %v1830_v56  ;;  %v11886_v24 = vadd.f32 %v2506_v45, %v2370_v27  ;;  %v11894_v52 = vmul.f32 %v11239_v50, %v11784_v23 }
 0x2a4   : > { %14830 = vst [vmem:[#allocation153_spill] sm:$0xff] %v11884_v5  ;;  %v11898_v22 = vmul.f32 %v11249_v53, %v11784_v23  ;;  %v1704_v18 = vmul.f32 %v10116_v32, %v1154_v44  ;;  %v1304_v4 = vmul.f32 %v10119_v33, %v635_v9  ;;  %v1705_v2 = vmul.f32 %v10126_v36, %v1154_v44 }
 0x2a5   : > { %14831 = vst [vmem:[#allocation154_spill] sm:$0xff] %v11886_v24  ;;  %v3872_v15 = vpop.f32.mrb[16].mxu1  ;;  %v2762_v10 = vmax.f32 %v1970_v31, 0.0  ;;  %v2761_v11 = vmax.f32 %v1969_v21, 0.0  ;;  %v1305_v61 = vmul.f32 %v10107_v29, %v635_v9  ;;  %v2107_v58 = vmul.f32 %v11239_v50, %v635_v9 }
 0x2a6   : > { %v3873_v42 = vadd.f32 %v3872_v15, %v11670_v12  ;;  %v3874_v20 = vpop.f32.mrb[17].mxu1  ;;  %v2108_v48 = vmul.f32 %v11249_v53, %v635_v9 }
 0x2a7   : > { %v3876_v47 = vpop.f32.mrb[18].mxu1  ;;  %v2834_v57 = vpack.c.bf16 %v2762_v10, %v2760_v6  ;;  %v2833_v45 = vpack.c.bf16 %v2761_v11, %v2759_v34  ;;  %v3875_v55 = vadd.f32 %v3874_v20, %v11684_v8  ;;  %v2507_v11 = vmul.f32 %v11252_v38, %v1154_v44 }
 0x2a8   : > { %v3877_v23 = vadd.f32 %v3876_v47, %v11670_v12  ;;  %v898_v51 = vpop.permute.xlu1 %897  ;;  %v3878_v56 = vpop.f32.mrb[19].mxu1  ;;  %v4167_v21 = vmax.f32 %v3873_v42, 0.0 }
 0x2a9   : > { %v1440_v0 = vmul.f32 %v10104_v28, %v898_v51  ;;  %v1441_v27 = vmul.f32 %v10110_v30, %v898_v51  ;;  %v2243_v31 = vmul.f32 %v11257_v41, %v898_v51  ;;  %3349 = vmatprep.mubr.bf16.mxu0 %v2834_v57  ;;  %v2244_v6 = vmul.f32 %v11272_v26, %v898_v51 }
 0x2aa   : > { %v4169_v15 = vmax.f32 %v3877_v23, 0.0  ;;  %v3879_v10 = vadd.f32 %v3878_v56, %v11684_v8  ;;  %3350 = vmatmul.mubr.bf16.gmra.mrb[108].mxu0 %v2833_v45  ;;  %v4168_v57 = vmax.f32 %v3875_v55, 0.0  ;;  %v2508_v23 = vmul.f32 %v11260_v54, %v1154_v44 }
 0x2ab   : > { %v1568_v9 = vadd.f32 %v1440_v0, %v1304_v4  ;;  %v1569_v34 = vadd.f32 %v1441_v27, %v1305_v61  ;;  %v3241_v47 = vpop.f32.mrb[64].mxu0  ;;  %v2371_v20 = vadd.f32 %v2243_v31, %v2107_v58  ;;  %v2372_v42 = vadd.f32 %v2244_v6, %v2108_v48 }
 0x2ac   : > { %v4170_v24 = vmax.f32 %v3879_v10, 0.0  ;;  %v3242_v5 = vadd.f32 %v3241_v47, %v10916_v59  ;;  %v902_v62 = vpop.permute.xlu1 %901  ;;  %v3243_v60 = vpop.f32.mrb[65].mxu0  ;;  %v11916_v46 = vpack.c.bf16 %v4169_v15, %v4167_v21 }
 0x2ad   : > { %v1442_v51 = vmul.f32 %v10104_v28, %v902_v62  ;;  %v1443_v4 = vmul.f32 %v10110_v30, %v902_v62  ;;  %v3245_v45 = vpop.f32.mrb[66].mxu0  ;;  %v1832_v61 = vadd.f32 %v1704_v18, %v1568_v9  ;;  %v1833_v56 = vadd.f32 %v1705_v2, %v1569_v34 }
 0x2ae   : > { %14832 = vst [vmem:[#allocation155_spill] sm:$0xff] %v11916_v46  ;;  %v3464_v0 = vmax.f32 %v3242_v5, 0.0  ;;  %v3244_v58 = vadd.f32 %v3243_v60, %v10921_v37  ;;  %v3247_v27 = vpop.f32.mrb[67].mxu0  ;;  %v2245_v31 = vmul.f32 %v11257_v41, %v902_v62  ;;  %v2246_v21 = vmul.f32 %v11272_v26, %v902_v62 }
 0x2af   : > { %v3246_v48 = vadd.f32 %v3245_v45, %v10916_v59  ;;  %v3248_v55 = vadd.f32 %v3247_v27, %v10921_v37  ;;  %v1570_v44 = vadd.f32 %v1442_v51, %v1306_v40  ;;  %v1571_v15 = vadd.f32 %v1443_v4, %v1307_v13 }
 0x2b0   : > { %v3465_v6 = vmax.f32 %v3244_v58, 0.0  ;;  %v11926_v10 = vpack.c.bf16 %v4170_v24, %v4168_v57  ;;  %v11928_v5 = vadd.f32 %v2507_v11, %v2371_v20  ;;  %v11930_v60 = vadd.f32 %v2508_v23, %v2372_v42  ;;  %v1162_v58 = vpop.permute.xlu0 %1161 }
 0x2b1   : > { %v3466_v47 = vmax.f32 %v3246_v48, 0.0  ;;  %v3467_v18 = vmax.f32 %v3248_v55, 0.0  ;;  %v1158_v2 = vpop.permute.xlu1 %1157  ;;  %v1972_v24 = vadd.f32 %v10165_v17, %v1833_v56  ;;  %v1971_v57 = vadd.f32 %v10151_v49, %v1832_v61 }
 0x2b2   : > { %14833 = vst [vmem:[#allocation156_spill] sm:$0xff] %v11928_v5  ;;  %14834 = vst [vmem:[#allocation157_spill] sm:$0xff] %v11930_v60  ;;  %v1706_v9 = vmul.f32 %v10116_v32, %v1158_v2  ;;  %v1707_v62 = vmul.f32 %v10126_v36, %v1158_v2  ;;  %v2509_v34 = vmul.f32 %v11252_v38, %v1158_v2 }
 0x2b3   : > { %v2510_v45 = vmul.f32 %v11260_v54, %v1158_v2  ;;  %v3561_v40 = vpack.c.bf16 %v3467_v18, %v3465_v6  ;;  %v3560_v13 = vpack.c.bf16 %v3466_v47, %v3464_v0  ;;  %v2373_v11 = vadd.f32 %v2245_v31, %v11894_v52 }
 0x2b4   : > { %v1834_v51 = vadd.f32 %v1706_v9, %v1570_v44  ;;  %v1835_v4 = vadd.f32 %v1707_v62, %v1571_v15  ;;  %v2374_v20 = vadd.f32 %v2246_v21, %v11898_v22  ;;  %v1310_v61 = vmul.f32 %v10119_v33, %v11804_v35 }
 0x2b5   : > { %3990 = vmatprep.mubr.bf16.mxu1 %v3561_v40  ;;  %v11942_v48 = vadd.f32 %v2509_v34, %v2373_v11  ;;  %v1311_v52 = vmul.f32 %v10107_v29, %v11804_v35  ;;  %v2764_v22 = vmax.f32 %v1972_v24, 0.0  ;;  %v2763_v21 = vmax.f32 %v1971_v57, 0.0 }
 0x2b6   : > { %v645_v42 = vpop.permute.xlu1 %644  ;;  %3991 = vmatmul.mubr.bf16.gmra.mrb[64].mxu1 %v3560_v13  ;;  %v1974_v23 = vadd.f32 %v10165_v17, %v1835_v4  ;;  %v1973_v27 = vadd.f32 %v10151_v49, %v1834_v51  ;;  %v11944_v0 = vadd.f32 %v2510_v45, %v2374_v20  ;;  %v11952_v44 = vmul.f32 %v11239_v50, %v11804_v35 }
 0x2b7   : > { %14835 = vst [vmem:[#allocation158_spill] sm:$0xff] %v11942_v48  ;;  %v11956_v15 = vmul.f32 %v11249_v53, %v11804_v35  ;;  %v1708_v18 = vmul.f32 %v10116_v32, %v1162_v58  ;;  %v1308_v2 = vmul.f32 %v10119_v33, %v645_v42  ;;  %v1709_v34 = vmul.f32 %v10126_v36, %v1162_v58 }
 0x2b8   : > { %14836 = vst [vmem:[#allocation159_spill] sm:$0xff] %v11944_v0  ;;  %v3882_v56 = vpop.f32.mrb[20].mxu1  ;;  %v2766_v31 = vmax.f32 %v1974_v23, 0.0  ;;  %v2765_v55 = vmax.f32 %v1973_v27, 0.0  ;;  %v1309_v40 = vmul.f32 %v10107_v29, %v645_v42  ;;  %v2111_v13 = vmul.f32 %v11239_v50, %v645_v42 }
 0x2b9   : > { %v3883_v6 = vadd.f32 %v3882_v56, %v11670_v12  ;;  %v3884_v47 = vpop.f32.mrb[21].mxu1  ;;  %v2112_v24 = vmul.f32 %v11249_v53, %v645_v42 }
 0x2ba   : > { %v3886_v9 = vpop.f32.mrb[22].mxu1  ;;  %v2836_v62 = vpack.c.bf16 %v2766_v31, %v2764_v22  ;;  %v2835_v45 = vpack.c.bf16 %v2765_v55, %v2763_v21  ;;  %v3885_v4 = vadd.f32 %v3884_v47, %v11684_v8  ;;  %v2511_v55 = vmul.f32 %v11252_v38, %v1162_v58 }
 0x2bb   : > { %v3887_v35 = vadd.f32 %v3886_v9, %v11670_v12  ;;  %v906_v57 = vpop.permute.xlu1 %905  ;;  %v3888_v51 = vpop.f32.mrb[23].mxu1  ;;  %v4171_v27 = vmax.f32 %v3883_v6, 0.0 }
 0x2bc   : > { %v1444_v11 = vmul.f32 %v10104_v28, %v906_v57  ;;  %v1445_v20 = vmul.f32 %v10110_v30, %v906_v57  ;;  %v2247_v23 = vmul.f32 %v11257_v41, %v906_v57  ;;  %3359 = vmatprep.mubr.bf16.mxu0 %v2836_v62  ;;  %v2248_v22 = vmul.f32 %v11272_v26, %v906_v57 }
 0x2bd   : > { %v4173_v56 = vmax.f32 %v3887_v35, 0.0  ;;  %v3889_v31 = vadd.f32 %v3888_v51, %v11684_v8  ;;  %3360 = vmatmul.mubr.bf16.gmra.mrb[112].mxu0 %v2835_v45  ;;  %v4172_v62 = vmax.f32 %v3885_v4, 0.0  ;;  %v2512_v35 = vmul.f32 %v11260_v54, %v1162_v58 }
 0x2be   : > { %v1572_v42 = vadd.f32 %v1444_v11, %v1308_v2  ;;  %v1573_v21 = vadd.f32 %v1445_v20, %v1309_v40  ;;  %v3251_v9 = vpop.f32.mrb[68].mxu0  ;;  %v2375_v47 = vadd.f32 %v2247_v23, %v2111_v13  ;;  %v2376_v6 = vadd.f32 %v2248_v22, %v2112_v24 }
 0x2bf   : > { %v4174_v0 = vmax.f32 %v3889_v31, 0.0  ;;  %v3252_v48 = vadd.f32 %v3251_v9, %v10916_v59  ;;  %v910_v60 = vpop.permute.xlu1 %909  ;;  %v3253_v5 = vpop.f32.mrb[69].mxu0  ;;  %v11974_v14 = vpack.c.bf16 %v4173_v56, %v4171_v27 }
 0x2c0   : > { %v1446_v57 = vmul.f32 %v10104_v28, %v910_v60  ;;  %v1447_v2 = vmul.f32 %v10110_v30, %v910_v60  ;;  %v3255_v45 = vpop.f32.mrb[70].mxu0  ;;  %v1836_v40 = vadd.f32 %v1708_v18, %v1572_v42  ;;  %v1837_v51 = vadd.f32 %v1709_v34, %v1573_v21 }
 0x2c1   : > { %14837 = vst [vmem:[#allocation160_spill] sm:$0xff] %v11974_v14  ;;  %v3468_v11 = vmax.f32 %v3252_v48, 0.0  ;;  %v3254_v13 = vadd.f32 %v3253_v5, %v10921_v37  ;;  %v3257_v20 = vpop.f32.mrb[71].mxu0  ;;  %v2249_v23 = vmul.f32 %v11257_v41, %v910_v60  ;;  %v2250_v27 = vmul.f32 %v11272_v26, %v910_v60 }
 0x2c2   : > { %v3256_v24 = vadd.f32 %v3255_v45, %v10916_v59  ;;  %v3258_v4 = vadd.f32 %v3257_v20, %v10921_v37  ;;  %v1574_v58 = vadd.f32 %v1446_v57, %v1310_v61  ;;  %v1575_v56 = vadd.f32 %v1447_v2, %v1311_v52  ;;  %v1170_v61 = vpop.permute.xlu0 %1169 }
 0x2c3   : > { %v3469_v22 = vmax.f32 %v3254_v13, 0.0  ;;  %v11984_v31 = vpack.c.bf16 %v4174_v0, %v4172_v62  ;;  %v11986_v48 = vadd.f32 %v2511_v55, %v2375_v47  ;;  %v11988_v5 = vadd.f32 %v2512_v35, %v2376_v6 }
 0x2c4   : > { %v3470_v9 = vmax.f32 %v3256_v24, 0.0  ;;  %v3471_v18 = vmax.f32 %v3258_v4, 0.0  ;;  %v1166_v34 = vpop.permute.xlu1 %1165  ;;  %v1976_v0 = vadd.f32 %v10165_v17, %v1837_v51  ;;  %v1975_v62 = vadd.f32 %v10151_v49, %v1836_v40 }
 0x2c5   : > { %14838 = vst [vmem:[#allocation161_spill] sm:$0xff] %v11984_v31  ;;  %14839 = vst [vmem:[#allocation162_spill] sm:$0xff] %v11986_v48  ;;  %v1710_v42 = vmul.f32 %v10116_v32, %v1166_v34  ;;  %v1711_v60 = vmul.f32 %v10126_v36, %v1166_v34  ;;  %v2513_v21 = vmul.f32 %v11252_v38, %v1166_v34 }
 0x2c6   : > { %14840 = vst [vmem:[#allocation163_spill] sm:$0xff] %v11988_v5  ;;  %v2514_v45 = vmul.f32 %v11260_v54, %v1166_v34  ;;  %v3563_v52 = vpack.c.bf16 %v3471_v18, %v3469_v22  ;;  %v3562_v57 = vpack.c.bf16 %v3470_v9, %v3468_v11  ;;  %v2377_v47 = vadd.f32 %v2249_v23, %v11952_v44  ;;  %v660_v24 = vpop.permute.xlu0 %659 }
 0x2c7   : > { %v1838_v2 = vadd.f32 %v1710_v42, %v1574_v58  ;;  %v1839_v55 = vadd.f32 %v1711_v60, %v1575_v56  ;;  %v2378_v6 = vadd.f32 %v2250_v27, %v11956_v15  ;;  %v1712_v40 = vmul.f32 %v10116_v32, %v1170_v61 }
 0x2c8   : > { %4000 = vmatprep.mubr.bf16.mxu1 %v3563_v52  ;;  %v12000_v4 = vadd.f32 %v2513_v21, %v2377_v47  ;;  %v1713_v51 = vmul.f32 %v10126_v36, %v1170_v61  ;;  %v2768_v44 = vmax.f32 %v1976_v0, 0.0  ;;  %v2767_v15 = vmax.f32 %v1975_v62, 0.0 }
 0x2c9   : > { %v655_v35 = vpop.permute.xlu1 %654  ;;  %4001 = vmatmul.mubr.bf16.gmra.mrb[68].mxu1 %v3562_v57  ;;  %v1978_v13 = vadd.f32 %v10165_v17, %v1839_v55  ;;  %v1977_v20 = vadd.f32 %v10151_v49, %v1838_v2  ;;  %v12002_v11 = vadd.f32 %v2514_v45, %v2378_v6  ;;  %v2515_v56 = vmul.f32 %v11252_v38, %v1170_v61 }
 0x2ca   : > { %14841 = vst [vmem:[#allocation164_spill] sm:$0xff] %v12000_v4  ;;  %v2516_v22 = vmul.f32 %v11260_v54, %v1170_v61  ;;  %v1314_v34 = vmul.f32 %v10119_v33, %v660_v24  ;;  %v1312_v42 = vmul.f32 %v10119_v33, %v655_v35  ;;  %v1315_v52 = vmul.f32 %v10107_v29, %v660_v24 }
 0x2cb   : > { %14842 = vst [vmem:[#allocation165_spill] sm:$0xff] %v12002_v11  ;;  %v3892_v58 = vpop.f32.mrb[24].mxu1  ;;  %v2770_v23 = vmax.f32 %v1978_v13, 0.0  ;;  %v2769_v27 = vmax.f32 %v1977_v20, 0.0  ;;  %v1313_v57 = vmul.f32 %v10107_v29, %v655_v35  ;;  %v2115_v0 = vmul.f32 %v11239_v50, %v655_v35 }
 0x2cc   : > { %v3893_v9 = vadd.f32 %v3892_v58, %v11670_v12  ;;  %v3894_v18 = vpop.f32.mrb[25].mxu1  ;;  %v2116_v62 = vmul.f32 %v11249_v53, %v655_v35 }
 0x2cd   : > { %v3896_v60 = vpop.f32.mrb[26].mxu1  ;;  %v2838_v21 = vpack.c.bf16 %v2770_v23, %v2768_v44  ;;  %v2837_v45 = vpack.c.bf16 %v2769_v27, %v2767_v15  ;;  %v3895_v47 = vadd.f32 %v3894_v18, %v11684_v8 }
 0x2ce   : > { %v3897_v61 = vadd.f32 %v3896_v60, %v11670_v12  ;;  %v914_v2 = vpop.permute.xlu1 %913  ;;  %v3898_v55 = vpop.f32.mrb[27].mxu1  ;;  %v4175_v58 = vmax.f32 %v3893_v9, 0.0  ;;  %v2117_v60 = vmul.f32 %v11239_v50, %v660_v24 }
 0x2cf   : > { %v1448_v6 = vmul.f32 %v10104_v28, %v914_v2  ;;  %v1449_v13 = vmul.f32 %v10110_v30, %v914_v2  ;;  %v2251_v20 = vmul.f32 %v11257_v41, %v914_v2  ;;  %3369 = vmatprep.mubr.bf16.mxu0 %v2838_v21  ;;  %v2252_v23 = vmul.f32 %v11272_v26, %v914_v2 }
 0x2d0   : > { %v4177_v44 = vmax.f32 %v3897_v61, 0.0  ;;  %v3899_v15 = vadd.f32 %v3898_v55, %v11684_v8  ;;  %3370 = vmatmul.mubr.bf16.gmra.mrb[116].mxu0 %v2837_v45  ;;  %v4176_v21 = vmax.f32 %v3895_v47, 0.0  ;;  %v2118_v61 = vmul.f32 %v11249_v53, %v660_v24 }
 0x2d1   : > { %v1576_v35 = vadd.f32 %v1448_v6, %v1312_v42  ;;  %v1577_v27 = vadd.f32 %v1449_v13, %v1313_v57  ;;  %v3261_v11 = vpop.f32.mrb[72].mxu0  ;;  %v2379_v18 = vadd.f32 %v2251_v20, %v2115_v0  ;;  %v2380_v9 = vadd.f32 %v2252_v23, %v2116_v62  ;;  %v670_v23 = vpop.permute.xlu0 %669 }
 0x2d2   : > { %v4178_v4 = vmax.f32 %v3899_v15, 0.0  ;;  %v3262_v5 = vadd.f32 %v3261_v11, %v10916_v59  ;;  %v918_v48 = vpop.permute.xlu1 %917  ;;  %v3263_v19 = vpop.f32.mrb[73].mxu0  ;;  %v12024_v14 = vpack.c.bf16 %v4177_v44, %v4175_v58 }
 0x2d3   : > { %v1450_v2 = vmul.f32 %v10104_v28, %v918_v48  ;;  %v1451_v42 = vmul.f32 %v10110_v30, %v918_v48  ;;  %v3265_v45 = vpop.f32.mrb[74].mxu0  ;;  %v2253_v57 = vmul.f32 %v11257_v41, %v918_v48  ;;  %v2254_v0 = vmul.f32 %v11272_v26, %v918_v48 }
 0x2d4   : > { %14843 = vst [vmem:[#allocation166_spill] sm:$0xff] %v12024_v14  ;;  %v3264_v55 = vadd.f32 %v3263_v19, %v10921_v37  ;;  %v3266_v11 = vadd.f32 %v3265_v45, %v10916_v59  ;;  %v3267_v6 = vpop.f32.mrb[75].mxu0  ;;  %v3472_v13 = vmax.f32 %v3262_v5, 0.0  ;;  %v1841_v47 = vadd.f32 %v1713_v51, %v1577_v27 }
 0x2d5   : > { %v3268_v62 = vadd.f32 %v3267_v6, %v10921_v37  ;;  %v1840_v20 = vadd.f32 %v1712_v40, %v1576_v35  ;;  %v1578_v24 = vadd.f32 %v1450_v2, %v1314_v34  ;;  %v1579_v58 = vadd.f32 %v1451_v42, %v1315_v52  ;;  %v1178_v2 = vpop.permute.xlu0 %1177 }
 0x2d6   : > { %v3474_v44 = vmax.f32 %v3266_v11, 0.0  ;;  %v12034_v15 = vpack.c.bf16 %v4178_v4, %v4176_v21  ;;  %v3473_v14 = vmax.f32 %v3264_v55, 0.0  ;;  %v12036_v48 = vadd.f32 %v2515_v56, %v2379_v18 }
 0x2d7   : > { %v3475_v31 = vmax.f32 %v3268_v62, 0.0  ;;  %v1174_v46 = vpop.permute.xlu1 %1173  ;;  %v12038_v19 = vadd.f32 %v2516_v22, %v2380_v9  ;;  %v1980_v4 = vadd.f32 %v10165_v17, %v1841_v47  ;;  %v1979_v35 = vadd.f32 %v10151_v49, %v1840_v20 }
 0x2d8   : > { %14844 = vst [vmem:[#allocation167_spill] sm:$0xff] %v12036_v48  ;;  %v1714_v45 = vmul.f32 %v10116_v32, %v1174_v46  ;;  %v1715_v5 = vmul.f32 %v10126_v36, %v1174_v46  ;;  %v2517_v51 = vmul.f32 %v11252_v38, %v1174_v46  ;;  %v2518_v40 = vmul.f32 %v11260_v54, %v1174_v46 }
 0x2d9   : > { %14845 = vst [vmem:[#allocation168_spill] sm:$0xff] %v12038_v19  ;;  %v3565_v34 = vpack.c.bf16 %v3475_v31, %v3473_v14  ;;  %v3564_v52 = vpack.c.bf16 %v3474_v44, %v3472_v13  ;;  %v2381_v56 = vadd.f32 %v2253_v57, %v2117_v60  ;;  %v2382_v18 = vadd.f32 %v2254_v0, %v2118_v61  ;;  %v14899_v19 = vld [vmem:[#allocation37_spill] sm:$0xff] }
 0x2da   : > { %v1842_v27 = vadd.f32 %v1714_v45, %v1578_v24  ;;  %v1843_v21 = vadd.f32 %v1715_v5, %v1579_v58  ;;  %v1318_v46 = vmul.f32 %v10119_v33, %v670_v23  ;;  %v2772_v11 = vmax.f32 %v1980_v4, 0.0 }
 0x2db   : > { %4010 = vmatprep.mubr.bf16.mxu1 %v3565_v34  ;;  %v12048_v55 = vadd.f32 %v2517_v51, %v2381_v56  ;;  %v12050_v14 = vadd.f32 %v2518_v40, %v2382_v18  ;;  %v2771_v13 = vmax.f32 %v1979_v35, 0.0  ;;  %v1319_v61 = vmul.f32 %v10107_v29, %v670_v23 }
 0x2dc   : > { %v665_v22 = vpop.permute.xlu1 %664  ;;  %4011 = vmatmul.mubr.bf16.gmra.mrb[72].mxu1 %v3564_v52  ;;  %v1982_v9 = vadd.f32 %v10165_v17, %v1843_v21  ;;  %v1981_v42 = vadd.f32 %v10151_v49, %v1842_v27  ;;  %v12055_v57 = vmul.f32 %v11239_v50, %v670_v23  ;;  %v1716_v47 = vmul.f32 %v10116_v32, %v1178_v2 }
 0x2dd   : > { %14846 = vst [vmem:[#allocation169_spill] sm:$0xff] %v12048_v55  ;;  %14847 = vst [vmem:[#allocation170_spill] sm:$0xff] %v12050_v14  ;;  %v1316_v20 = vmul.f32 %v10119_v33, %v665_v22  ;;  %v1717_v44 = vmul.f32 %v10126_v36, %v1178_v2  ;;  %v1317_v5 = vmul.f32 %v10107_v29, %v665_v22 }
 0x2de   : > { %v3902_v31 = vpop.f32.mrb[28].mxu1  ;;  %v2774_v6 = vmax.f32 %v1982_v9, 0.0  ;;  %v2773_v60 = vmax.f32 %v1981_v42, 0.0  ;;  %v2119_v51 = vmul.f32 %v11239_v50, %v665_v22  ;;  %v2120_v40 = vmul.f32 %v11249_v53, %v665_v22 }
 0x2df   : > { %v3903_v0 = vadd.f32 %v3902_v31, %v11670_v12  ;;  %v3904_v62 = vpop.f32.mrb[29].mxu1  ;;  %v2122_v22 = vmul.f32 %v11249_v53, %v670_v23  ;;  %v13024_v48 = vmul.f32 %v11239_v50, %v14899_v19 }
 0x2e0   : > { %v3906_v24 = vpop.f32.mrb[30].mxu1  ;;  %v2840_v58 = vpack.c.bf16 %v2774_v6, %v2772_v11  ;;  %v2839_v45 = vpack.c.bf16 %v2773_v60, %v2771_v13  ;;  %v3905_v35 = vadd.f32 %v3904_v62, %v11684_v8  ;;  %v2519_v6 = vmul.f32 %v11252_v38, %v1178_v2 }
 0x2e1   : > { %v3907_v34 = vadd.f32 %v3906_v24, %v11670_v12  ;;  %v922_v52 = vpop.permute.xlu1 %921  ;;  %v3908_v4 = vpop.f32.mrb[31].mxu1  ;;  %v4179_v56 = vmax.f32 %v3903_v0, 0.0  ;;  %v2520_v13 = vmul.f32 %v11260_v54, %v1178_v2 }
 0x2e2   : > { %v1452_v27 = vmul.f32 %v10104_v28, %v922_v52  ;;  %v1453_v33 = vmul.f32 %v10110_v30, %v922_v52  ;;  %v2255_v21 = vmul.f32 %v11257_v41, %v922_v52  ;;  %3379 = vmatprep.mubr.bf16.mxu0 %v2840_v58  ;;  %v2256_v29 = vmul.f32 %v11272_v26, %v922_v52 }
 0x2e3   : > { %v4181_v18 = vmax.f32 %v3907_v34, 0.0  ;;  %v3909_v9 = vadd.f32 %v3908_v4, %v11684_v8  ;;  %3380 = vmatmul.mubr.bf16.gmra.mrb[120].mxu0 %v2839_v45  ;;  %v4180_v23 = vmax.f32 %v3905_v35, 0.0 }
 0x2e4   : > { %v1580_v42 = vadd.f32 %v1452_v27, %v1316_v20  ;;  %v1581_v31 = vadd.f32 %v1453_v33, %v1317_v5  ;;  %v2383_v11 = vadd.f32 %v2255_v21, %v2119_v51  ;;  %v2384_v0 = vadd.f32 %v2256_v29, %v2120_v40 }
 0x2e5   : > { %v3271_v60 = vpop.f32.mrb[76].mxu0  ;;  %v926_v62 = vpop.permute.xlu1 %925  ;;  %v12074_v24 = vpack.c.bf16 %v4181_v18, %v4179_v56  ;;  %v4182_v58 = vmax.f32 %v3909_v9, 0.0 }
 0x2e6   : > { %v1845_v34 = vadd.f32 %v1717_v44, %v1581_v31  ;;  %v3272_v52 = vadd.f32 %v3271_v60, %v10916_v59  ;;  %v1454_v45 = vmul.f32 %v10104_v28, %v926_v62  ;;  %v3273_v4 = vpop.f32.mrb[77].mxu0  ;;  %v1844_v20 = vadd.f32 %v1716_v47, %v1580_v42 }
 0x2e7   : > { %v1455_v5 = vmul.f32 %v10110_v30, %v926_v62  ;;  %v3274_v51 = vadd.f32 %v3273_v4, %v10921_v37  ;;  %v3275_v27 = vpop.f32.mrb[78].mxu0  ;;  %v2257_v33 = vmul.f32 %v11257_v41, %v926_v62  ;;  %v2258_v21 = vmul.f32 %v11272_v26, %v926_v62 }
 0x2e8   : > { %v3476_v2 = vmax.f32 %v3272_v52, 0.0  ;;  %v3276_v40 = vadd.f32 %v3275_v27, %v10916_v59  ;;  %v3277_v44 = vpop.f32.mrb[79].mxu0  ;;  %v1582_v28 = vadd.f32 %v1454_v45, %v1318_v46  ;;  %v1984_v35 = vadd.f32 %v10165_v17, %v1845_v34 }
 0x2e9   : > { %v3477_v56 = vmax.f32 %v3274_v51, 0.0  ;;  %v3278_v18 = vadd.f32 %v3277_v44, %v10921_v37  ;;  %v1583_v29 = vadd.f32 %v1455_v5, %v1319_v61  ;;  %v12085_v9 = vpack.c.bf16 %v4182_v58, %v4180_v23 }
 0x2ea   : > { %v3478_v47 = vmax.f32 %v3276_v40, 0.0  ;;  %v1182_v30 = vpop.permute.xlu1 %1181  ;;  %v12087_v42 = vadd.f32 %v2519_v6, %v2383_v11  ;;  %v1983_v46 = vadd.f32 %v10151_v49, %v1844_v20  ;;  %v12094_v34 = vadd.f32 %v2520_v13, %v2384_v0 }
 0x2eb   : > { %v3479_v31 = vmax.f32 %v3278_v18, 0.0  ;;  %v1718_v60 = vmul.f32 %v10116_v32, %v1182_v30  ;;  %v1719_v62 = vmul.f32 %v10126_v36, %v1182_v30  ;;  %v2521_v52 = vmul.f32 %v11252_v38, %v1182_v30 }
 0x2ec   : > { %14848 = vst [vmem:[#allocation171_spill] sm:$0xff] %v12087_v42  ;;  %v2522_v4 = vmul.f32 %v11260_v54, %v1182_v30  ;;  %v3566_v51 = vpack.c.bf16 %v3478_v47, %v3476_v2  ;;  %14849 = vst [vmem:[#allocation172_spill] sm:$0xff] %v12094_v34  ;;  %v2385_v11 = vadd.f32 %v2257_v33, %v12055_v57  ;;  %v2776_v27 = vmax.f32 %v1984_v35, 0.0  ;;  %v14894_v34 = vld [vmem:[#allocation32_spill] sm:$0xff] }
 0x2ed   : > { %v1846_v61 = vadd.f32 %v1718_v60, %v1582_v28  ;;  %v1847_v45 = vadd.f32 %v1719_v62, %v1583_v29  ;;  %v3567_v58 = vpack.c.bf16 %v3479_v31, %v3477_v56  ;;  %v2386_v6 = vadd.f32 %v2258_v21, %v2122_v22 }
 0x2ee   : > { %v12099_v23 = vadd.f32 %v2521_v52, %v2385_v11  ;;  %v2775_v13 = vmax.f32 %v1983_v46, 0.0  ;;  %v2147_v42 = vmul.f32 %v11257_v41, %v14894_v34 }
 0x2ef   : > { %4020 = vmatprep.mubr.bf16.mxu1 %v3567_v58  ;;  %v1986_v32 = vadd.f32 %v10165_v17, %v1847_v45  ;;  %v1985_v36 = vadd.f32 %v10151_v49, %v1846_v61  ;;  %v12101_v5 = vadd.f32 %v2522_v4, %v2386_v6 }
 0x2f0   : > { %14850 = vst [vmem:[#allocation173_spill] sm:$0xff] %v12099_v23  ;;  %4021 = vmatmul.mubr.bf16.gmra.mrb[76].mxu1 %v3566_v51  ;;  %v14879_v23 = vld [vmem:[#allocation27_spill] sm:$0xff] }
 0x2f1   : > { %14851 = vst [vmem:[#allocation174_spill] sm:$0xff] %v12101_v5  ;;  %v2778_v20 = vmax.f32 %v1986_v32, 0.0  ;;  %v2777_v0 = vmax.f32 %v1985_v36, 0.0  ;;  %v3912_v2 = vpop.f32.mrb[32].mxu1  ;;  %v14878_v5 = vld [vmem:[#allocation23_spill] sm:$0xff] }
 0x2f2   : > { %v3913_v40 = vadd.f32 %v3912_v2, %v11670_v12  ;;  %v3914_v44 = vpop.f32.mrb[33].mxu1 }
 0x2f3   : > { %v2842_v57 = vpack.c.bf16 %v2778_v20, %v2776_v27  ;;  %v2841_v22 = vpack.c.bf16 %v2777_v0, %v2775_v13  ;;  %v3915_v33 = vadd.f32 %v3914_v44, %v11684_v8  ;;  %v3916_v17 = vpop.f32.mrb[34].mxu1 }
 0x2f4   : > { %v3917_v49 = vadd.f32 %v3916_v17, %v11670_v12  ;;  %v3918_v21 = vpop.f32.mrb[35].mxu1  ;;  %v4183_v18 = vmax.f32 %v3913_v40, 0.0 }
 0x2f5   : > { %3389 = vmatprep.mubr.bf16.mxu0 %v2842_v57  ;;  %v3919_v56 = vadd.f32 %v3918_v21, %v11684_v8  ;;  %v4184_v35 = vmax.f32 %v3915_v33, 0.0 }
 0x2f6   : > { %3390 = vmatmul.mubr.bf16.gmra.mrb[124].mxu0 %v2841_v22  ;;  %v4185_v28 = vmax.f32 %v3917_v49, 0.0 }
 0x2f7   : > { %4581 = vmatprep.mubr.bf16.mxu0 %v11736_v16  ;;  %v4186_v47 = vmax.f32 %v3919_v56, 0.0 }
 0x2f8   : > { %v3281_v29 = vpop.f32.mrb[80].mxu0  ;;  %v12109_v60 = vpack.c.bf16 %v4185_v28, %v4183_v18 }
 0x2f9   : > { %v3282_v30 = vadd.f32 %v3281_v29, %v10916_v59  ;;  %v3283_v31 = vpop.f32.mrb[81].mxu0  ;;  %v12112_v4 = vpack.c.bf16 %v4186_v47, %v4184_v35 }
 0x2fa   : > { %v3284_v62 = vadd.f32 %v3283_v31, %v10921_v37  ;;  %v3285_v52 = vpop.f32.mrb[82].mxu0 }
 0x2fb   : > { %v3286_v51 = vadd.f32 %v3285_v52, %v10916_v59  ;;  %v3287_v46 = vpop.f32.mrb[83].mxu0  ;;  %v3480_v45 = vmax.f32 %v3282_v30, 0.0 }
 0x2fc   : > { %v3288_v61 = vadd.f32 %v3287_v46, %v10921_v37  ;;  %v3481_v58 = vmax.f32 %v3284_v62, 0.0 }
 0x2fd   : > { %v3482_v16 = vmax.f32 %v3286_v51, 0.0  ;;  %v9544_v51 = vld [vmem:[%s14424_s3 + $0x300] ss:$8 sps:$4 sm:$0xff]  }
 0x2fe   : > { %v3483_v11 = vmax.f32 %v3288_v61, 0.0  ;;  %4582 = vmatmul.mubr.bf16.vlgmr.msra.gmra.mrb[128].mxu0 %v11729_v3 }
 0x2ff   : > { %4591 = vmatprep.mubr.bf16.mxu0 %v11776_v1  ;;  %v3568_v6 = vpack.c.bf16 %v3482_v16, %v3480_v45 }
 0x300   : > { %v3569_v32 = vpack.c.bf16 %v3483_v11, %v3481_v58 }
 0x302   : > { %4030 = vmatprep.mubr.bf16.mxu1 %v3569_v32 }
 0x303   : > { %4031 = vmatmul.mubr.bf16.gmra.mrb[80].mxu1 %v3568_v6 }
 0x304   : > { %v3922_v36 = vpop.f32.mrb[36].mxu1 }
 0x305   : > { %v3923_v27 = vadd.f32 %v3922_v36, %v11670_v12  ;;  %v3924_v20 = vpop.f32.mrb[37].mxu1 }
 0x306   : > { %4592 = vmatmul.mubr.bf16.gmra.mrb[132].mxu0 %v11778_v63  ;;  %v3925_v13 = vadd.f32 %v3924_v20, %v11684_v8  ;;  %v3926_v0 = vpop.f32.mrb[38].mxu1 }
 0x307   : > { %4601 = vmatprep.mubr.bf16.mxu0 %v11818_v25  ;;  %v3927_v2 = vadd.f32 %v3926_v0, %v11670_v12  ;;  %v3928_v3 = vpop.f32.mrb[39].mxu1  ;;  %v4187_v40 = vmax.f32 %v3923_v27, 0.0 }
 0x308   : > { %v3929_v1 = vadd.f32 %v3928_v3, %v11684_v8  ;;  %v4188_v57 = vmax.f32 %v3925_v13, 0.0 }
 0x309   : > { %v4189_v44 = vmax.f32 %v3927_v2, 0.0  ;;  %v14853_v2 = vld [vmem:[#allocation161_spill] sm:$0xff] }
 0x30a   : > { %v4190_v22 = vmax.f32 %v3929_v1, 0.0 }
 0x30b   : > { %v12125_v21 = vpack.c.bf16 %v4189_v44, %v4187_v40 }
 0x30c   : > { %v3291_v33 = vpop.f32.mrb[84].mxu0  ;;  %v12128_v18 = vpack.c.bf16 %v4190_v22, %v4188_v57 }
 0x30d   : > { %v3292_v17 = vadd.f32 %v3291_v33, %v10916_v59  ;;  %v3293_v49 = vpop.f32.mrb[85].mxu0 }
 0x30e   : > { %v3294_v63 = vadd.f32 %v3293_v49, %v10921_v37  ;;  %v3295_v56 = vpop.f32.mrb[86].mxu0  ;;  %4602 = vmatmul.mubr.bf16.gmra.mrb[136].mxu0 %v11807_v43  ;;  %v9546_v43 = vld [vmem:[%s14424_s3 + $0x304] ss:$8 sps:$4 sm:$0xff]   ;;  %v9549_v49 = vld [vmem:[%s14424_s3 + $0x314] ss:$8 sps:$4 sm:$0xff]  }
 0x30f   : > { %v3296_v25 = vadd.f32 %v3295_v56, %v10916_v59  ;;  %v3297_v28 = vpop.f32.mrb[87].mxu0  ;;  %4611 = vmatprep.mubr.bf16.mxu0 %v11868_v39  ;;  %v3484_v47 = vmax.f32 %v3292_v17, 0.0  ;;  %5300 = vmatprep.subr.bf16.mxu1 %v9546_v43  ;;  %v9547_v17 = vld [vmem:[%s14424_s3 + $0x310] ss:$8 sps:$4 sm:$0xff]  }
 0x310   : > { %v3298_v35 = vadd.f32 %v3297_v28, %v10921_v37  ;;  %v3485_v30 = vmax.f32 %v3294_v63, 0.0  ;;  %5301 = vmatpush1.bf16.msra.mxu1 %v9544_v51  ;;  %v9558_v51 = vld [vmem:[%s14424_s3 + $0x344] ss:$8 sps:$4 sm:$0xff]  }
 0x311   : > { %v3486_v29 = vmax.f32 %v3296_v25, 0.0  ;;  %5302 = vmatprep.subr.bf16.mxu1 %v9549_v49  ;;  %v9564_v49 = vld [vmem:[%s14424_s3 + $0x364] ss:$8 sps:$4 sm:$0xff]  }
 0x312   : > { %v3487_v31 = vmax.f32 %v3298_v35, 0.0 }
 0x313   : > { %v3570_v62 = vpack.c.bf16 %v3486_v29, %v3484_v47  ;;  %v14854_v47 = vld [vmem:[#allocation160_spill] sm:$0xff] }
 0x314   : > { %v3571_v52 = vpack.c.bf16 %v3487_v31, %v3485_v30  ;;  %5303 = vmatpush1.bf16.msra.mxu1 %v9547_v17  ;;  %v9550_v30 = vld [vmem:[%s14424_s3 + $0x320] ss:$8 sps:$4 sm:$0xff]   ;;  %v9552_v31 = vld [vmem:[%s14424_s3 + $0x324] ss:$8 sps:$4 sm:$0xff]  }
 0x315   : > { %5304 = vmatprep.subr.bf16.mxu1 %v9552_v31  ;;  %v9570_v31 = vld [vmem:[%s14424_s3 + $0x384] ss:$8 sps:$4 sm:$0xff]  }
 0x316   : > { %4040 = vmatprep.mubr.bf16.mxu1 %v3571_v52  ;;  %4612 = vmatmul.mubr.bf16.gmra.mrb[140].mxu0 %v11858_v7 }
 0x317   : > { %4041 = vmatmul.mubr.bf16.gmra.mrb[84].mxu1 %v3570_v62  ;;  %4621 = vmatprep.mubr.bf16.mxu0 %v11926_v10  ;;  %v3932_v39 = vpop.f32.mrb[40].mxu1  ;;  %v14852_v10 = vld [vmem:[#allocation155_spill] sm:$0xff]  ;;  %v9555_v62 = vld [vmem:[%s14424_s3 + $0x334] ss:$8 sps:$4 sm:$0xff]  }
 0x318   : > { %v3933_v46 = vadd.f32 %v3932_v39, %v11670_v12  ;;  %v3934_v61 = vpop.f32.mrb[41].mxu1  ;;  %5305 = vmatpush1.bf16.msra.mxu1 %v9550_v30  ;;  %v9565_v30 = vld [vmem:[%s14424_s3 + $0x370] ss:$8 sps:$4 sm:$0xff]  }
 0x319   : > { %v3935_v45 = vadd.f32 %v3934_v61, %v11684_v8  ;;  %v3936_v16 = vpop.f32.mrb[42].mxu1  ;;  %5306 = vmatprep.subr.bf16.mxu1 %v9555_v62  ;;  %v9568_v62 = vld [vmem:[%s14424_s3 + $0x380] ss:$8 sps:$4 sm:$0xff]  }
 0x31a   : > { %v3937_v7 = vadd.f32 %v3936_v16, %v11670_v12  ;;  %v3938_v58 = vpop.f32.mrb[43].mxu1  ;;  %v4191_v6 = vmax.f32 %v3933_v46, 0.0 }
 0x31b   : > { %v3939_v11 = vadd.f32 %v3938_v58, %v11684_v8  ;;  %v4192_v36 = vmax.f32 %v3935_v45, 0.0  ;;  %v9556_v58 = vld [vmem:[%s14424_s3 + $0x340] ss:$8 sps:$4 sm:$0xff]  }
 0x31c   : > { %v4193_v32 = vmax.f32 %v3937_v7, 0.0  ;;  %v14855_v7 = vld [vmem:[#allocation166_spill] sm:$0xff] }
 0x31d   : > { %v4194_v27 = vmax.f32 %v3939_v11, 0.0 }
 0x31e   : > { %v3301_v20 = vpop.f32.mrb[88].mxu0  ;;  %4622 = vmatmul.mubr.bf16.gmra.mrb[144].mxu0 %v14852_v10  ;;  %v12149_v3 = vpack.c.bf16 %v4193_v32, %v4191_v6 }
 0x31f   : > { %v3302_v13 = vadd.f32 %v3301_v20, %v10916_v59  ;;  %v3303_v0 = vpop.f32.mrb[89].mxu0  ;;  %4631 = vmatprep.mubr.bf16.mxu0 %v14853_v2  ;;  %v12152_v44 = vpack.c.bf16 %v4194_v27, %v4192_v36  ;;  %v9559_v2 = vld [vmem:[%s14424_s3 + $0x350] ss:$8 sps:$4 sm:$0xff]  }
 0x320   : > { %v3304_v1 = vadd.f32 %v3303_v0, %v10921_v37  ;;  %v3305_v40 = vpop.f32.mrb[90].mxu0 }
 0x321   : > { %v3306_v57 = vadd.f32 %v3305_v40, %v10916_v59  ;;  %v3307_v22 = vpop.f32.mrb[91].mxu0  ;;  %v3488_v63 = vmax.f32 %v3302_v13, 0.0 }
 0x322   : > { %v3308_v33 = vadd.f32 %v3307_v22, %v10921_v37  ;;  %v3489_v25 = vmax.f32 %v3304_v1, 0.0 }
 0x323   : > { %v3490_v56 = vmax.f32 %v3306_v57, 0.0 }
 0x324   : > { %v3491_v28 = vmax.f32 %v3308_v33, 0.0 }
 0x325   : > { %v3572_v35 = vpack.c.bf16 %v3490_v56, %v3488_v63 }
 0x326   : > { %4632 = vmatmul.mubr.bf16.gmra.mrb[148].mxu0 %v14854_v47  ;;  %v3573_v29 = vpack.c.bf16 %v3491_v28, %v3489_v25  ;;  %v9562_v25 = vld [vmem:[%s14424_s3 + $0x360] ss:$8 sps:$4 sm:$0xff]  }
 0x327   : > { %4641 = vmatprep.mubr.bf16.mxu0 %v12034_v15  ;;  %v9553_v15 = vld [vmem:[%s14424_s3 + $0x330] ss:$8 sps:$4 sm:$0xff]  }
 0x328   : > { %4050 = vmatprep.mubr.bf16.mxu1 %v3573_v29  ;;  %5307 = vmatpush1.bf16.msra.mxu1 %v9553_v15 }
 0x329   : > { %4051 = vmatmul.mubr.bf16.gmra.mrb[88].mxu1 %v3572_v35  ;;  %5308 = vmatprep.subr.bf16.mxu1 %v9558_v51 }
 0x32a   : > { %v3942_v52 = vpop.f32.mrb[44].mxu1 }
 0x32b   : > { %v3943_v43 = vadd.f32 %v3942_v52, %v11670_v12  ;;  %v3944_v39 = vpop.f32.mrb[45].mxu1 }
 0x32c   : > { %v3945_v46 = vadd.f32 %v3944_v39, %v11684_v8  ;;  %v3946_v61 = vpop.f32.mrb[46].mxu1  ;;  %5309 = vmatpush1.bf16.msra.mxu1 %v9556_v58  ;;  %v9573_v39 = vld [vmem:[%s14424_s3 + $0x394] ss:$8 sps:$4 sm:$0xff]  }
 0x32d   : > { %v3947_v45 = vadd.f32 %v3946_v61, %v11670_v12  ;;  %v3948_v16 = vpop.f32.mrb[47].mxu1  ;;  %v4195_v6 = vmax.f32 %v3943_v43, 0.0 }
 0x32e   : > { %4642 = vmatmul.mubr.bf16.gmra.mrb[152].mxu0 %v14855_v7  ;;  %v3949_v11 = vadd.f32 %v3948_v16, %v11684_v8  ;;  %v4196_v36 = vmax.f32 %v3945_v46, 0.0 }
 0x32f   : > { %4651 = vmatprep.mubr.bf16.mxu0 %v12085_v9  ;;  %v4197_v32 = vmax.f32 %v3947_v45, 0.0  ;;  %v9561_v9 = vld [vmem:[%s14424_s3 + $0x354] ss:$8 sps:$4 sm:$0xff]   ;;  %v9571_v45 = vld [vmem:[%s14424_s3 + $0x390] ss:$8 sps:$4 sm:$0xff]  }
 0x330   : > { %v4198_v27 = vmax.f32 %v3949_v11, 0.0  ;;  %5310 = vmatprep.subr.bf16.mxu1 %v9561_v9 }
 0x331   : > { %v12189_v0 = vpack.c.bf16 %v4197_v32, %v4195_v6  ;;  %5311 = vmatpush1.bf16.msra.mxu1 %v9559_v2 }
 0x332   : > { %v3311_v20 = vpop.f32.mrb[92].mxu0  ;;  %v12198_v57 = vpack.c.bf16 %v4198_v27, %v4196_v36  ;;  %5312 = vmatprep.subr.bf16.mxu1 %v9564_v49 }
 0x333   : > { %v3312_v10 = vadd.f32 %v3311_v20, %v10916_v59  ;;  %v3313_v13 = vpop.f32.mrb[93].mxu0 }
 0x334   : > { %v3314_v1 = vadd.f32 %v3313_v13, %v10921_v37  ;;  %v3315_v40 = vpop.f32.mrb[94].mxu0 }
 0x335   : > { %v3316_v22 = vadd.f32 %v3315_v40, %v10916_v59  ;;  %v3317_v33 = vpop.f32.mrb[95].mxu0  ;;  %v3492_v63 = vmax.f32 %v3312_v10, 0.0  ;;  %5313 = vmatpush1.bf16.msra.mxu1 %v9562_v25  ;;  %v9576_v40 = vld [vmem:[%s14424_s3 + $0x3a4] ss:$8 sps:$4 sm:$0xff]   ;;  %v9580_v25 = vld [vmem:[%s14424_s3 + $0x3c0] ss:$8 sps:$4 sm:$0xff]  }
 0x336   : > { %v3318_v17 = vadd.f32 %v3317_v33, %v10921_v37  ;;  %4652 = vmatmul.mubr.bf16.gmra.mrb[156].mxu0 %v12074_v24  ;;  %v3493_v28 = vmax.f32 %v3314_v1, 0.0  ;;  %v9567_v24 = vld [vmem:[%s14424_s3 + $0x374] ss:$8 sps:$4 sm:$0xff]   ;;  %v9574_v1 = vld [vmem:[%s14424_s3 + $0x3a0] ss:$8 sps:$4 sm:$0xff]  }
 0x337   : > { %v3494_v56 = vmax.f32 %v3316_v22, 0.0  ;;  %4661 = vmatprep.mubr.bf16.mxu0 %v12112_v4  ;;  %5314 = vmatprep.subr.bf16.mxu1 %v9567_v24 }
 0x338   : > { %v3495_v35 = vmax.f32 %v3318_v17, 0.0 }
 0x339   : > { %v3574_v47 = vpack.c.bf16 %v3494_v56, %v3492_v63  ;;  %5315 = vmatpush1.bf16.msra.mxu1 %v9565_v30  ;;  %v9577_v56 = vld [vmem:[%s14424_s3 + $0x3b0] ss:$8 sps:$4 sm:$0xff]  }
 0x33a   : > { %v3575_v29 = vpack.c.bf16 %v3495_v35, %v3493_v28  ;;  %5316 = vmatprep.subr.bf16.mxu1 %v9570_v31  ;;  %v9582_v28 = vld [vmem:[%s14424_s3 + $0x3c4] ss:$8 sps:$4 sm:$0xff]  }
 0x33c   : > { %4060 = vmatprep.mubr.bf16.mxu1 %v3575_v29 }
 0x33d   : > { %4061 = vmatmul.mubr.bf16.gmra.mrb[92].mxu1 %v3574_v47  ;;  %v3952_v4 = vpop.f32.mrb[48].mxu1  ;;  %v9585_v47 = vld [vmem:[%s14424_s3 + $0x3d4] ss:$8 sps:$4 sm:$0xff]  }
 0x33e   : > { %4662 = vmatmul.mubr.bf16.gmra.mrb[160].mxu0 %v12109_v60  ;;  %v3953_v15 = vadd.f32 %v3952_v4, %v11670_v12  ;;  %v3954_v52 = vpop.f32.mrb[49].mxu1  ;;  %5317 = vmatpush1.bf16.msra.mxu1 %v9568_v62  ;;  %v9583_v4 = vld [vmem:[%s14424_s3 + $0x3d0] ss:$8 sps:$4 sm:$0xff]  }
 0x33f   : > { %4671 = vmatprep.mubr.bf16.mxu0 %v12128_v18  ;;  %v3955_v51 = vadd.f32 %v3954_v52, %v11684_v8  ;;  %v3956_v43 = vpop.f32.mrb[50].mxu1  ;;  %5318 = vmatprep.subr.bf16.mxu1 %v9573_v39 }
 0x340   : > { %v3957_v60 = vadd.f32 %v3956_v43, %v11670_v12  ;;  %v3958_v46 = vpop.f32.mrb[51].mxu1  ;;  %v4199_v16 = vmax.f32 %v3953_v15, 0.0 }
 0x341   : > { %v3959_v61 = vadd.f32 %v3958_v46, %v11684_v8  ;;  %v4200_v58 = vmax.f32 %v3955_v51, 0.0 }
 0x342   : > { %v4201_v18 = vmax.f32 %v3957_v60, 0.0  ;;  %5319 = vmatpush1.bf16.msra.mxu1 %v9571_v45  ;;  %v9588_v45 = vld [vmem:[%s14424_s3 + $0x3e4] ss:$8 sps:$4 sm:$0xff]  }
 0x343   : > { %v4202_v11 = vmax.f32 %v3959_v61, 0.0  ;;  %5320 = vmatprep.subr.bf16.mxu1 %v9576_v40  ;;  %v9586_v61 = vld [vmem:[%s14424_s3 + $0x3e0] ss:$8 sps:$4 sm:$0xff]  }
 0x344   : > { %v3321_v7 = vpop.f32.mrb[96].mxu0  ;;  %v12236_v20 = vpack.c.bf16 %v4201_v18, %v4199_v16 }
 0x345   : > { %v3322_v6 = vadd.f32 %v3321_v7, %v10916_v59  ;;  %v3323_v32 = vpop.f32.mrb[97].mxu0  ;;  %v4304_v2 = vpack.c.bf16 %v4202_v11, %v4200_v58 }
 0x346   : > { %v3324_v36 = vadd.f32 %v3323_v32, %v10921_v37  ;;  %v3325_v27 = vpop.f32.mrb[98].mxu0  ;;  %4672 = vmatmul.mubr.bf16.gmra.mrb[164].mxu0 %v12125_v21  ;;  %v9579_v21 = vld [vmem:[%s14424_s3 + $0x3b4] ss:$8 sps:$4 sm:$0xff]   ;;  %5321 = vmatpush1.bf16.msra.mxu1 %v9574_v1 }
 0x347   : > { %v3326_v10 = vadd.f32 %v3325_v27, %v10916_v59  ;;  %v3327_v13 = vpop.f32.mrb[99].mxu0  ;;  %4681 = vmatprep.mubr.bf16.mxu0 %v12152_v44  ;;  %v3496_v22 = vmax.f32 %v3322_v6, 0.0  ;;  %5322 = vmatprep.subr.bf16.mxu1 %v9579_v21  ;;  %v9589_v6 = vld [vmem:[%s14424_s3 + $0x3f0] ss:$8 sps:$4 sm:$0xff]   ;;  %v9591_v32 = vld [vmem:[%s14424_s3 + $0x3f4] ss:$8 sps:$4 sm:$0xff]  }
 0x348   : > { %v3328_v9 = vadd.f32 %v3327_v13, %v10921_v37  ;;  %v3497_v17 = vmax.f32 %v3324_v36, 0.0 }
 0x349   : > { %v3498_v33 = vmax.f32 %v3326_v10, 0.0 }
 0x34a   : > { %v3499_v49 = vmax.f32 %v3328_v9, 0.0  ;;  %5323 = vmatpush1.bf16.msra.mxu1 %v9577_v56 }
 0x34b   : > { %v3576_v63 = vpack.c.bf16 %v3498_v33, %v3496_v22  ;;  %5324 = vmatprep.subr.bf16.mxu1 %v9582_v28 }
 0x34c   : > { %v3577_v44 = vpack.c.bf16 %v3499_v49, %v3497_v17 }
 0x34e   : > { %4070 = vmatprep.mubr.bf16.mxu1 %v3577_v44  ;;  %4682 = vmatmul.mubr.bf16.gmra.mrb[168].mxu0 %v12149_v3 }
 0x34f   : > { %4071 = vmatmul.mubr.bf16.gmra.mrb[96].mxu1 %v3576_v63  ;;  %4691 = vmatprep.mubr.bf16.mxu0 %v12198_v57 }
 0x350   : > { %5325 = vmatpush1.bf16.msra.mxu1 %v9580_v25 }
 0x351   : > { %v3962_v35 = vpop.f32.mrb[52].mxu1  ;;  %5326 = vmatprep.subr.bf16.mxu1 %v9585_v47 }
 0x352   : > { %v3963_v29 = vadd.f32 %v3962_v35, %v11670_v12  ;;  %v3964_v3 = vpop.f32.mrb[53].mxu1 }
 0x353   : > { %v3965_v57 = vadd.f32 %v3964_v3, %v11684_v8  ;;  %v3966_v30 = vpop.f32.mrb[54].mxu1 }
 0x354   : > { %v3967_v24 = vadd.f32 %v3966_v30, %v11670_v12  ;;  %v3968_v31 = vpop.f32.mrb[55].mxu1  ;;  %v4203_v15 = vmax.f32 %v3963_v29, 0.0  ;;  %5327 = vmatpush1.bf16.msra.mxu1 %v9583_v4 }
 0x355   : > { %v3969_v62 = vadd.f32 %v3968_v31, %v11684_v8  ;;  %v4204_v51 = vmax.f32 %v3965_v57, 0.0  ;;  %5328 = vmatprep.subr.bf16.mxu1 %v9588_v45 }
 0x356   : > { %v4205_v52 = vmax.f32 %v3967_v24, 0.0  ;;  %4692 = vmatmul.mubr.bf16.gmra.mrb[172].mxu0 %v12189_v0 }
 0x357   : > { %v4206_v43 = vmax.f32 %v3969_v62, 0.0  ;;  %4701 = vmatprep.mubr.bf16.mxu0 %v4304_v2 }
 0x358   : > { %v4305_v39 = vpack.c.bf16 %v4205_v52, %v4203_v15  ;;  %5329 = vmatpush1.bf16.msra.mxu1 %v9586_v61 }
 0x359   : > { %v3331_v60 = vpop.f32.mrb[100].mxu0  ;;  %v4306_v46 = vpack.c.bf16 %v4206_v43, %v4204_v51  ;;  %5330 = vmatprep.subr.bf16.mxu1 %v9591_v32 }
 0x35a   : > { %v3332_v16 = vadd.f32 %v3331_v60, %v10916_v59  ;;  %v3333_v18 = vpop.f32.mrb[101].mxu0 }
 0x35b   : > { %v3334_v7 = vadd.f32 %v3333_v18, %v10921_v37  ;;  %v3335_v58 = vpop.f32.mrb[102].mxu0 }
 0x35c   : > { %v3336_v0 = vadd.f32 %v3335_v58, %v10916_v59  ;;  %v3337_v11 = vpop.f32.mrb[103].mxu0  ;;  %v3500_v27 = vmax.f32 %v3332_v16, 0.0  ;;  %5331 = vmatpush1.bf16.msra.mxu1 %v9589_v6 }
 0x35d   : > { %v3338_v36 = vadd.f32 %v3337_v11, %v10921_v37  ;;  %v3501_v13 = vmax.f32 %v3334_v7, 0.0 }
 0x35e   : > { %v3502_v10 = vmax.f32 %v3336_v0, 0.0  ;;  %4702 = vmatmul.mubr.bf16.gmra.mrb[176].mxu0 %v12236_v20 }
 0x35f   : > { %v3503_v2 = vmax.f32 %v3338_v36, 0.0  ;;  %4711 = vmatprep.mubr.bf16.mxu0 %v4306_v46 }
 0x360   : > { %v3578_v9 = vpack.c.bf16 %v3502_v10, %v3500_v27 }
 0x361   : > { %v3579_v1 = vpack.c.bf16 %v3503_v2, %v3501_v13 }
 0x363   : > { %4080 = vmatprep.mubr.bf16.mxu1 %v3579_v1 }
 0x364   : > { %4081 = vmatmul.mubr.bf16.gmra.mrb[100].mxu1 %v3578_v9 }
 0x365   : > { %v3972_v40 = vpop.f32.mrb[56].mxu1 }
 0x366   : > { %v3973_v22 = vadd.f32 %v3972_v40, %v11670_v12  ;;  %v3974_v33 = vpop.f32.mrb[57].mxu1  ;;  %4712 = vmatmul.mubr.bf16.gmra.mrb[180].mxu0 %v4305_v39 }
 0x367   : > { %v3975_v17 = vadd.f32 %v3974_v33, %v11684_v8  ;;  %v3976_v49 = vpop.f32.mrb[58].mxu1 }
 0x368   : > { %v3977_v21 = vadd.f32 %v3976_v49, %v11670_v12  ;;  %v3978_v63 = vpop.f32.mrb[59].mxu1  ;;  %v4207_v20 = vmax.f32 %v3973_v22, 0.0 }
 0x369   : > { %v3979_v44 = vadd.f32 %v3978_v63, %v11684_v8  ;;  %v4208_v25 = vmax.f32 %v3975_v17, 0.0 }
 0x36a   : > { %v4209_v56 = vmax.f32 %v3977_v21, 0.0  ;;  %v3341_v35 = vpop.f32.mrb[104].mxu0 }
 0x36b   : > { %v4210_v28 = vmax.f32 %v3979_v44, 0.0  ;;  %v3342_v47 = vadd.f32 %v3341_v35, %v10916_v59  ;;  %v3343_v29 = vpop.f32.mrb[105].mxu0 }
 0x36c   : > { %v4307_v3 = vpack.c.bf16 %v4209_v56, %v4207_v20  ;;  %v3344_v57 = vadd.f32 %v3343_v29, %v10921_v37  ;;  %v3345_v30 = vpop.f32.mrb[106].mxu0 }
 0x36d   : > { %v4308_v24 = vpack.c.bf16 %v4210_v28, %v4208_v25  ;;  %v3346_v31 = vadd.f32 %v3345_v30, %v10916_v59  ;;  %v3347_v4 = vpop.f32.mrb[107].mxu0  ;;  %v3504_v15 = vmax.f32 %v3342_v47, 0.0 }
 0x36e   : > { %v3348_v62 = vadd.f32 %v3347_v4, %v10921_v37  ;;  %v3505_v51 = vmax.f32 %v3344_v57, 0.0 }
 0x36f   : > { %4721 = vmatprep.mubr.bf16.mxu0 %v4308_v24  ;;  %v3506_v52 = vmax.f32 %v3346_v31, 0.0 }
 0x370   : > { %4722 = vmatmul.mubr.bf16.gmra.mrb[184].mxu0 %v4307_v3  ;;  %v3507_v43 = vmax.f32 %v3348_v62, 0.0 }
 0x371   : > { %v3580_v39 = vpack.c.bf16 %v3506_v52, %v3504_v15 }
 0x372   : > { %v3581_v60 = vpack.c.bf16 %v3507_v43, %v3505_v51 }
 0x374   : > { %4090 = vmatprep.mubr.bf16.mxu1 %v3581_v60 }
 0x375   : > { %4091 = vmatmul.mubr.bf16.gmra.mrb[104].mxu1 %v3580_v39 }
 0x376   : > { %v3982_v46 = vpop.f32.mrb[60].mxu1 }
 0x377   : > { %v3983_v61 = vadd.f32 %v3982_v46, %v11670_v12  ;;  %v3984_v45 = vpop.f32.mrb[61].mxu1 }
 0x378   : > { %v3985_v16 = vadd.f32 %v3984_v45, %v11684_v8  ;;  %v3986_v18 = vpop.f32.mrb[62].mxu1 }
 0x379   : > { %v3987_v7 = vadd.f32 %v3986_v18, %v11670_v12  ;;  %v3988_v58 = vpop.f32.mrb[63].mxu1  ;;  %v4211_v11 = vmax.f32 %v3983_v61, 0.0 }
 0x37a   : > { %v3989_v0 = vadd.f32 %v3988_v58, %v11684_v8  ;;  %v4212_v32 = vmax.f32 %v3985_v16, 0.0 }
 0x37b   : > { %v4213_v6 = vmax.f32 %v3987_v7, 0.0 }
 0x37c   : > { %v4214_v36 = vmax.f32 %v3989_v0, 0.0 }
 0x37d   : > { %v3351_v27 = vpop.f32.mrb[108].mxu0  ;;  %v4309_v10 = vpack.c.bf16 %v4213_v6, %v4211_v11 }
 0x37e   : > { %v3352_v13 = vadd.f32 %v3351_v27, %v10916_v59  ;;  %v3353_v2 = vpop.f32.mrb[109].mxu0  ;;  %v4310_v9 = vpack.c.bf16 %v4214_v36, %v4212_v32 }
 0x37f   : > { %v3354_v1 = vadd.f32 %v3353_v2, %v10921_v37  ;;  %v3355_v40 = vpop.f32.mrb[110].mxu0 }
 0x380   : > { %v3356_v22 = vadd.f32 %v3355_v40, %v10916_v59  ;;  %v3357_v33 = vpop.f32.mrb[111].mxu0  ;;  %4731 = vmatprep.mubr.bf16.mxu0 %v4310_v9  ;;  %v3508_v49 = vmax.f32 %v3352_v13, 0.0 }
 0x381   : > { %v3358_v17 = vadd.f32 %v3357_v33, %v10921_v37  ;;  %4732 = vmatmul.mubr.bf16.gmra.mrb[188].mxu0 %v4309_v10  ;;  %v3509_v63 = vmax.f32 %v3354_v1, 0.0 }
 0x382   : > { %v3510_v21 = vmax.f32 %v3356_v22, 0.0 }
 0x383   : > { %v3511_v44 = vmax.f32 %v3358_v17, 0.0 }
 0x384   : > { %v3582_v20 = vpack.c.bf16 %v3510_v21, %v3508_v49 }
 0x385   : > { %v3583_v56 = vpack.c.bf16 %v3511_v44, %v3509_v63 }
 0x387   : > { %4100 = vmatprep.mubr.bf16.mxu1 %v3583_v56 }
 0x388   : > { %4101 = vmatmul.mubr.bf16.gmra.mrb[108].mxu1 %v3582_v20 }
 0x389   : > { %v3992_v25 = vpop.f32.mrb[64].mxu1 }
 0x38a   : > { %v3993_v28 = vadd.f32 %v3992_v25, %v11670_v12  ;;  %v3994_v35 = vpop.f32.mrb[65].mxu1 }
 0x38b   : > { %v3995_v47 = vadd.f32 %v3994_v35, %v11684_v8  ;;  %v3996_v29 = vpop.f32.mrb[66].mxu1 }
 0x38c   : > { %v3997_v3 = vadd.f32 %v3996_v29, %v11670_v12  ;;  %v3998_v57 = vpop.f32.mrb[67].mxu1  ;;  %v4215_v24 = vmax.f32 %v3993_v28, 0.0 }
 0x38d   : > { %v3999_v30 = vadd.f32 %v3998_v57, %v11684_v8  ;;  %v4216_v4 = vmax.f32 %v3995_v47, 0.0 }
 0x38e   : > { %v4217_v31 = vmax.f32 %v3997_v3, 0.0 }
 0x38f   : > { %v4218_v62 = vmax.f32 %v3999_v30, 0.0 }
 0x390   : > { %v3361_v15 = vpop.f32.mrb[112].mxu0  ;;  %v4311_v52 = vpack.c.bf16 %v4217_v31, %v4215_v24 }
 0x391   : > { %v3362_v51 = vadd.f32 %v3361_v15, %v10916_v59  ;;  %v3363_v43 = vpop.f32.mrb[113].mxu0  ;;  %v4312_v39 = vpack.c.bf16 %v4218_v62, %v4216_v4 }
 0x392   : > { %v3364_v60 = vadd.f32 %v3363_v43, %v10921_v37  ;;  %v3365_v46 = vpop.f32.mrb[114].mxu0 }
 0x393   : > { %v3366_v61 = vadd.f32 %v3365_v46, %v10916_v59  ;;  %v3367_v45 = vpop.f32.mrb[115].mxu0  ;;  %4741 = vmatprep.mubr.bf16.mxu0 %v4312_v39  ;;  %v3512_v18 = vmax.f32 %v3362_v51, 0.0 }
 0x394   : > { %v3368_v16 = vadd.f32 %v3367_v45, %v10921_v37  ;;  %4742 = vmatmul.mubr.bf16.gmra.mrb[192].mxu0 %v4311_v52  ;;  %v3513_v58 = vmax.f32 %v3364_v60, 0.0 }
 0x395   : > { %v3514_v7 = vmax.f32 %v3366_v61, 0.0 }
 0x396   : > { %v3515_v0 = vmax.f32 %v3368_v16, 0.0 }
 0x397   : > { %v3584_v11 = vpack.c.bf16 %v3514_v7, %v3512_v18 }
 0x398   : > { %v3585_v6 = vpack.c.bf16 %v3515_v0, %v3513_v58 }
 0x39a   : > { %4110 = vmatprep.mubr.bf16.mxu1 %v3585_v6 }
 0x39b   : > { %4111 = vmatmul.mubr.bf16.gmra.mrb[112].mxu1 %v3584_v11 }
 0x39c   : > { %v4002_v32 = vpop.f32.mrb[68].mxu1 }
 0x39d   : > { %v4003_v36 = vadd.f32 %v4002_v32, %v11670_v12  ;;  %v4004_v27 = vpop.f32.mrb[69].mxu1 }
 0x39e   : > { %v4005_v10 = vadd.f32 %v4004_v27, %v11684_v8  ;;  %v4006_v13 = vpop.f32.mrb[70].mxu1 }
 0x39f   : > { %v4007_v2 = vadd.f32 %v4006_v13, %v11670_v12  ;;  %v4008_v9 = vpop.f32.mrb[71].mxu1  ;;  %v4219_v40 = vmax.f32 %v4003_v36, 0.0 }
 0x3a0   : > { %v4009_v1 = vadd.f32 %v4008_v9, %v11684_v8  ;;  %v4220_v33 = vmax.f32 %v4005_v10, 0.0 }
 0x3a1   : > { %v4221_v22 = vmax.f32 %v4007_v2, 0.0 }
 0x3a2   : > { %v4222_v17 = vmax.f32 %v4009_v1, 0.0 }
 0x3a3   : > { %v3371_v49 = vpop.f32.mrb[116].mxu0  ;;  %v4313_v21 = vpack.c.bf16 %v4221_v22, %v4219_v40 }
 0x3a4   : > { %v3372_v63 = vadd.f32 %v3371_v49, %v10916_v59  ;;  %v3373_v44 = vpop.f32.mrb[117].mxu0  ;;  %v4314_v20 = vpack.c.bf16 %v4222_v17, %v4220_v33 }
 0x3a5   : > { %v3374_v56 = vadd.f32 %v3373_v44, %v10921_v37  ;;  %v3375_v25 = vpop.f32.mrb[118].mxu0 }
 0x3a6   : > { %v3376_v28 = vadd.f32 %v3375_v25, %v10916_v59  ;;  %v3377_v35 = vpop.f32.mrb[119].mxu0  ;;  %4751 = vmatprep.mubr.bf16.mxu0 %v4314_v20  ;;  %v3516_v29 = vmax.f32 %v3372_v63, 0.0 }
 0x3a7   : > { %v3378_v47 = vadd.f32 %v3377_v35, %v10921_v37  ;;  %4752 = vmatmul.mubr.bf16.gmra.mrb[196].mxu0 %v4313_v21  ;;  %v3517_v57 = vmax.f32 %v3374_v56, 0.0 }
 0x3a8   : > { %v3518_v3 = vmax.f32 %v3376_v28, 0.0 }
 0x3a9   : > { %v3519_v30 = vmax.f32 %v3378_v47, 0.0 }
 0x3aa   : > { %v3586_v24 = vpack.c.bf16 %v3518_v3, %v3516_v29 }
 0x3ab   : > { %v3587_v31 = vpack.c.bf16 %v3519_v30, %v3517_v57 }
 0x3ad   : > { %4120 = vmatprep.mubr.bf16.mxu1 %v3587_v31 }
 0x3ae   : > { %4121 = vmatmul.mubr.bf16.gmra.mrb[116].mxu1 %v3586_v24 }
 0x3af   : > { %v4012_v4 = vpop.f32.mrb[72].mxu1 }
 0x3b0   : > { %v4013_v62 = vadd.f32 %v4012_v4, %v11670_v12  ;;  %v4014_v15 = vpop.f32.mrb[73].mxu1 }
 0x3b1   : > { %v4015_v52 = vadd.f32 %v4014_v15, %v11684_v8  ;;  %v4016_v51 = vpop.f32.mrb[74].mxu1 }
 0x3b2   : > { %v4017_v43 = vadd.f32 %v4016_v51, %v11670_v12  ;;  %v4018_v39 = vpop.f32.mrb[75].mxu1  ;;  %v4223_v46 = vmax.f32 %v4013_v62, 0.0  ;;  %v8973_v62 = vld [vmem:[%s14425_s4 + $0x4] sm:$0x3] }
 0x3b3   : > { %v4019_v60 = vadd.f32 %v4018_v39, %v11684_v8  ;;  %v4224_v45 = vmax.f32 %v4015_v52, 0.0 }
 0x3b4   : > { %v4225_v61 = vmax.f32 %v4017_v43, 0.0 }
 0x3b5   : > { %v4226_v16 = vmax.f32 %v4019_v60, 0.0  ;;  %v14856_v60 = vld [vmem:[#allocation14_spill] sm:$0xff] }
 0x3b6   : > { %v3381_v18 = vpop.f32.mrb[120].mxu0  ;;  %v4315_v7 = vpack.c.bf16 %v4225_v61, %v4223_v46  ;;  %v12342_v46 = vrot.slane %v8973_v62, %v14856_v60 }
 0x3b7   : > { %v3382_v58 = vadd.f32 %v3381_v18, %v10916_v59  ;;  %v3383_v0 = vpop.f32.mrb[121].mxu0  ;;  %v4316_v11 = vpack.c.bf16 %v4226_v16, %v4224_v45  ;;  %v14857_v16 = vld [vmem:[#allocation13_spill] sm:$0xff] }
 0x3b8   : > { %v3384_v6 = vadd.f32 %v3383_v0, %v10921_v37  ;;  %v3385_v32 = vpop.f32.mrb[122].mxu0  ;;  %v12345_v18 = vrot.slane %v8973_v62, %v14857_v16 }
 0x3b9   : > { %v3386_v36 = vadd.f32 %v3385_v32, %v10916_v59  ;;  %v3387_v27 = vpop.f32.mrb[123].mxu0  ;;  %4761 = vmatprep.mubr.bf16.mxu0 %v4316_v11  ;;  %v3520_v13 = vmax.f32 %v3382_v58, 0.0 }
 0x3ba   : > { %v3388_v10 = vadd.f32 %v3387_v27, %v10921_v37  ;;  %4762 = vmatmul.mubr.bf16.gmra.mrb[200].mxu0 %v4315_v7  ;;  %v3521_v9 = vmax.f32 %v3384_v6, 0.0 }
 0x3bb   : > { %v3522_v2 = vmax.f32 %v3386_v36, 0.0 }
 0x3bc   : > { %v3523_v1 = vmax.f32 %v3388_v10, 0.0 }
 0x3bd   : > { %v3588_v40 = vpack.c.bf16 %v3522_v2, %v3520_v13 }
 0x3be   : > { %v3589_v22 = vpack.c.bf16 %v3523_v1, %v3521_v9 }
 0x3c0   : > { %4130 = vmatprep.mubr.bf16.mxu1 %v3589_v22 }
 0x3c1   : > { %4131 = vmatmul.mubr.bf16.gmra.mrb[120].mxu1 %v3588_v40 }
 0x3c3   : > { %v4022_v33 = vpop.f32.mrb[76].mxu1 }
 0x3c4   : > { %v4023_v17 = vadd.f32 %v4022_v33, %v11670_v12  ;;  %v4024_v49 = vpop.f32.mrb[77].mxu1 }
 0x3c5   : > { %v4025_v21 = vadd.f32 %v4024_v49, %v11684_v8  ;;  %v4026_v63 = vpop.f32.mrb[78].mxu1 }
 0x3c6   : > { %v4027_v44 = vadd.f32 %v4026_v63, %v11670_v12  ;;  %v4028_v20 = vpop.f32.mrb[79].mxu1  ;;  %v4227_v25 = vmax.f32 %v4023_v17, 0.0 }
 0x3c7   : > { %v4029_v56 = vadd.f32 %v4028_v20, %v11684_v8  ;;  %v4228_v35 = vmax.f32 %v4025_v21, 0.0 }
 0x3c8   : > { %v4229_v28 = vmax.f32 %v4027_v44, 0.0 }
 0x3c9   : > { %v4230_v47 = vmax.f32 %v4029_v56, 0.0  ;;  %v3391_v29 = vpop.f32.mrb[124].mxu0 }
 0x3ca   : > { %v3392_v3 = vadd.f32 %v3391_v29, %v10916_v59  ;;  %v3393_v57 = vpop.f32.mrb[125].mxu0  ;;  %v4317_v30 = vpack.c.bf16 %v4229_v28, %v4227_v25 }
 0x3cb   : > { %v3394_v24 = vadd.f32 %v3393_v57, %v10921_v37  ;;  %v3395_v31 = vpop.f32.mrb[126].mxu0  ;;  %v4318_v4 = vpack.c.bf16 %v4230_v47, %v4228_v35 }
 0x3cc   : > { %v3396_v15 = vadd.f32 %v3395_v31, %v10916_v59  ;;  %v3397_v52 = vpop.f32.mrb[127].mxu0  ;;  %v3524_v43 = vmax.f32 %v3392_v3, 0.0 }
 0x3cd   : > { %v3398_v51 = vadd.f32 %v3397_v52, %v10921_v37  ;;  %4771 = vmatprep.mubr.bf16.mxu0 %v4318_v4  ;;  %v3525_v61 = vmax.f32 %v3394_v24, 0.0 }
 0x3ce   : > { %v3526_v39 = vmax.f32 %v3396_v15, 0.0  ;;  %4772 = vmatmul.mubr.bf16.gmra.mrb[204].mxu0 %v4317_v30 }
 0x3cf   : > { %v3527_v45 = vmax.f32 %v3398_v51, 0.0 }
 0x3d0   : > { %v3590_v7 = vpack.c.bf16 %v3526_v39, %v3524_v43 }
 0x3d1   : > { %v4583_v58 = vpop.f32.mrb[128].mxu0  ;;  %v3591_v0 = vpack.c.bf16 %v3527_v45, %v3525_v61 }
 0x3d2   : > { %v4584_v59 = vadd.f32 %v4583_v58, %v12342_v46  ;;  %v4585_v11 = vpop.f32.mrb[129].mxu0 }
 0x3d3   : > { %v4586_v37 = vadd.f32 %v4585_v11, %v12345_v18  ;;  %4140 = vmatprep.mubr.bf16.mxu1 %v3591_v0  ;;  %v4587_v6 = vpop.f32.mrb[130].mxu0 }
 0x3d4   : > { %v4588_v32 = vadd.f32 %v4587_v6, %v12342_v46  ;;  %4141 = vmatmul.mubr.bf16.gmra.mrb[124].mxu1 %v3590_v7  ;;  %v4589_v36 = vpop.f32.mrb[131].mxu0  ;;  %v4902_v10 = vmax.f32 %v4584_v59, 0.0 }
 0x3d5   : > { %v4590_v27 = vadd.f32 %v4589_v36, %v12345_v18  ;;  %v4903_v9 = vmax.f32 %v4586_v37, 0.0 }
 0x3d6   : > { %v4904_v13 = vmax.f32 %v4588_v32, 0.0  ;;  %v4032_v2 = vpop.f32.mrb[80].mxu1 }
 0x3d7   : > { %v4905_v1 = vmax.f32 %v4590_v27, 0.0  ;;  %v4033_v40 = vadd.f32 %v4032_v2, %v11670_v12  ;;  %v4034_v22 = vpop.f32.mrb[81].mxu1 }
 0x3d8   : > { %v5030_v33 = vpack.c.bf16 %v4904_v13, %v4902_v10  ;;  %v4035_v17 = vadd.f32 %v4034_v22, %v11684_v8  ;;  %v4036_v49 = vpop.f32.mrb[82].mxu1 }
 0x3d9   : > { %v4037_v21 = vadd.f32 %v4036_v49, %v11670_v12  ;;  %v4038_v63 = vpop.f32.mrb[83].mxu1  ;;  %v4593_v44 = vpop.f32.mrb[132].mxu0  ;;  %v5031_v20 = vpack.c.bf16 %v4905_v1, %v4903_v9  ;;  %v4231_v35 = vmax.f32 %v4033_v40, 0.0 }
 0x3da   : > { %v4039_v56 = vadd.f32 %v4038_v63, %v11684_v8  ;;  %v4594_v25 = vadd.f32 %v4593_v44, %v12342_v46  ;;  %v4595_v28 = vpop.f32.mrb[133].mxu0  ;;  %v4232_v57 = vmax.f32 %v4035_v17, 0.0 }
 0x3db   : > { %v4233_v47 = vmax.f32 %v4037_v21, 0.0  ;;  %v4596_v29 = vadd.f32 %v4595_v28, %v12345_v18  ;;  %v4597_v3 = vpop.f32.mrb[134].mxu0  ;;  %5332 = vmatprep.mubr.bf16.mxu1 %v5031_v20 }
 0x3dc   : > { %v4234_v30 = vmax.f32 %v4039_v56, 0.0  ;;  %v4598_v24 = vadd.f32 %v4597_v3, %v12342_v46  ;;  %v4599_v31 = vpop.f32.mrb[135].mxu0  ;;  %5333 = vmatmul.mubr.bf16.vlgmr.msra.gmra.mrb[128].mxu1 %v5030_v33  ;;  %v4906_v15 = vmax.f32 %v4594_v25, 0.0 }
 0x3dd   : > { %v4600_v4 = vadd.f32 %v4599_v31, %v12345_v18  ;;  %v4319_v62 = vpack.c.bf16 %v4233_v47, %v4231_v35  ;;  %v4907_v43 = vmax.f32 %v4596_v29, 0.0 }
 0x3de   : > { %v4908_v52 = vmax.f32 %v4598_v24, 0.0  ;;  %v4320_v51 = vpack.c.bf16 %v4234_v30, %v4232_v57 }
 0x3df   : > { %v4909_v39 = vmax.f32 %v4600_v4, 0.0 }
 0x3e0   : > { %4781 = vmatprep.mubr.bf16.mxu0 %v4320_v51  ;;  %v5032_v61 = vpack.c.bf16 %v4908_v52, %v4906_v15 }
 0x3e1   : > { %v4603_v45 = vpop.f32.mrb[136].mxu0  ;;  %4782 = vmatmul.mubr.bf16.gmra.mrb[208].mxu0 %v4319_v62  ;;  %v5033_v7 = vpack.c.bf16 %v4909_v39, %v4907_v43 }
 0x3e2   : > { %v4604_v58 = vadd.f32 %v4603_v45, %v12342_v46  ;;  %v4605_v0 = vpop.f32.mrb[137].mxu0 }
 0x3e3   : > { %v4606_v59 = vadd.f32 %v4605_v0, %v12345_v18  ;;  %v4607_v11 = vpop.f32.mrb[138].mxu0  ;;  %5342 = vmatprep.mubr.bf16.mxu1 %v5033_v7 }
 0x3e4   : > { %v4608_v37 = vadd.f32 %v4607_v11, %v12342_v46  ;;  %v4609_v6 = vpop.f32.mrb[139].mxu0  ;;  %5343 = vmatmul.mubr.bf16.gmra.mrb[132].mxu1 %v5032_v61  ;;  %v4910_v36 = vmax.f32 %v4604_v58, 0.0 }
 0x3e5   : > { %v4610_v32 = vadd.f32 %v4609_v6, %v12345_v18  ;;  %v4911_v10 = vmax.f32 %v4606_v59, 0.0  ;;  %v9594_v6 = vld [vmem:[%s14424_s3 + $0x404] ss:$8 sps:$4 sm:$0xff]  }
 0x3e6   : > { %v4912_v27 = vmax.f32 %v4608_v37, 0.0  ;;  %v9592_v37 = vld [vmem:[%s14424_s3 + $0x400] ss:$8 sps:$4 sm:$0xff]   ;;  %6051 = vmatprep.subr.bf16.mxu0 %v9594_v6 }
 0x3e7   : > { %v4913_v13 = vmax.f32 %v4610_v32, 0.0  ;;  %6052 = vmatpush1.bf16.msra.mxu0 %v9592_v37 }
 0x3e8   : > { %v5034_v2 = vpack.c.bf16 %v4912_v27, %v4910_v36 }
 0x3e9   : > { %v4613_v1 = vpop.f32.mrb[140].mxu0  ;;  %v5035_v40 = vpack.c.bf16 %v4913_v13, %v4911_v10 }
 0x3ea   : > { %v4042_v9 = vpop.f32.mrb[84].mxu1  ;;  %v4614_v33 = vadd.f32 %v4613_v1, %v12342_v46  ;;  %v4615_v49 = vpop.f32.mrb[141].mxu0 }
 0x3eb   : > { %v4043_v22 = vadd.f32 %v4042_v9, %v11670_v12  ;;  %v4044_v17 = vpop.f32.mrb[85].mxu1  ;;  %v4616_v63 = vadd.f32 %v4615_v49, %v12345_v18  ;;  %v4617_v20 = vpop.f32.mrb[142].mxu0  ;;  %5352 = vmatprep.mubr.bf16.mxu1 %v5035_v40 }
 0x3ec   : > { %v4045_v21 = vadd.f32 %v4044_v17, %v11684_v8  ;;  %v4046_v44 = vpop.f32.mrb[86].mxu1  ;;  %v4618_v25 = vadd.f32 %v4617_v20, %v12342_v46  ;;  %v4619_v35 = vpop.f32.mrb[143].mxu0  ;;  %5353 = vmatmul.mubr.bf16.gmra.mrb[136].mxu1 %v5034_v2  ;;  %v4914_v57 = vmax.f32 %v4614_v33, 0.0 }
 0x3ed   : > { %v4047_v56 = vadd.f32 %v4046_v44, %v11670_v12  ;;  %v4048_v28 = vpop.f32.mrb[87].mxu1  ;;  %v4620_v29 = vadd.f32 %v4619_v35, %v12345_v18  ;;  %v4235_v3 = vmax.f32 %v4043_v22, 0.0  ;;  %v4915_v4 = vmax.f32 %v4616_v63, 0.0 }
 0x3ee   : > { %v4049_v47 = vadd.f32 %v4048_v28, %v11684_v8  ;;  %v4916_v24 = vmax.f32 %v4618_v25, 0.0  ;;  %v4236_v31 = vmax.f32 %v4045_v21, 0.0 }
 0x3ef   : > { %v4237_v30 = vmax.f32 %v4047_v56, 0.0  ;;  %v4917_v15 = vmax.f32 %v4620_v29, 0.0 }
 0x3f0   : > { %v4238_v62 = vmax.f32 %v4049_v47, 0.0  ;;  %v5036_v51 = vpack.c.bf16 %v4916_v24, %v4914_v57 }
 0x3f1   : > { %v4321_v52 = vpack.c.bf16 %v4237_v30, %v4235_v3  ;;  %v4623_v43 = vpop.f32.mrb[144].mxu0  ;;  %v5037_v61 = vpack.c.bf16 %v4917_v15, %v4915_v4  ;;  %v9595_v4 = vld [vmem:[%s14424_s3 + $0x410] ss:$8 sps:$4 sm:$0xff]  }
 0x3f2   : > { %v4322_v39 = vpack.c.bf16 %v4238_v62, %v4236_v31  ;;  %v4624_v45 = vadd.f32 %v4623_v43, %v12342_v46  ;;  %v4625_v7 = vpop.f32.mrb[145].mxu0  ;;  %v9597_v62 = vld [vmem:[%s14424_s3 + $0x414] ss:$8 sps:$4 sm:$0xff]  }
 0x3f3   : > { %v4626_v58 = vadd.f32 %v4625_v7, %v12345_v18  ;;  %v4627_v0 = vpop.f32.mrb[146].mxu0  ;;  %5362 = vmatprep.mubr.bf16.mxu1 %v5037_v61  ;;  %6053 = vmatprep.subr.bf16.mxu0 %v9597_v62  ;;  %v9607_v62 = vld [vmem:[%s14424_s3 + $0x450] ss:$8 sps:$4 sm:$0xff]  }
 0x3f4   : > { %4791 = vmatprep.mubr.bf16.mxu0 %v4322_v39  ;;  %v4628_v59 = vadd.f32 %v4627_v0, %v12342_v46  ;;  %v4629_v11 = vpop.f32.mrb[147].mxu0  ;;  %5363 = vmatmul.mubr.bf16.gmra.mrb[140].mxu1 %v5036_v51  ;;  %v4918_v36 = vmax.f32 %v4624_v45, 0.0 }
 0x3f5   : > { %4792 = vmatmul.mubr.bf16.gmra.mrb[212].mxu0 %v4321_v52  ;;  %v4630_v32 = vadd.f32 %v4629_v11, %v12345_v18  ;;  %v4919_v10 = vmax.f32 %v4626_v58, 0.0 }
 0x3f6   : > { %v4920_v27 = vmax.f32 %v4628_v59, 0.0  ;;  %6054 = vmatpush1.bf16.msra.mxu0 %v9595_v4 }
 0x3f7   : > { %v4921_v13 = vmax.f32 %v4630_v32, 0.0 }
 0x3f8   : > { %v5038_v2 = vpack.c.bf16 %v4920_v27, %v4918_v36  ;;  %v9598_v36 = vld [vmem:[%s14424_s3 + $0x420] ss:$8 sps:$4 sm:$0xff]   ;;  %v9600_v27 = vld [vmem:[%s14424_s3 + $0x424] ss:$8 sps:$4 sm:$0xff]  }
 0x3f9   : > { %v4633_v9 = vpop.f32.mrb[148].mxu0  ;;  %v5039_v1 = vpack.c.bf16 %v4921_v13, %v4919_v10  ;;  %6055 = vmatprep.subr.bf16.mxu0 %v9600_v27 }
 0x3fa   : > { %v4634_v40 = vadd.f32 %v4633_v9, %v12342_v46  ;;  %v4635_v22 = vpop.f32.mrb[149].mxu0  ;;  %6056 = vmatpush1.bf16.msra.mxu0 %v9598_v36 }
 0x3fb   : > { %v4636_v33 = vadd.f32 %v4635_v22, %v12345_v18  ;;  %v4637_v17 = vpop.f32.mrb[150].mxu0  ;;  %5372 = vmatprep.mubr.bf16.mxu1 %v5039_v1  ;;  %v9603_v1 = vld [vmem:[%s14424_s3 + $0x434] ss:$8 sps:$4 sm:$0xff]   ;;  %v9601_v22 = vld [vmem:[%s14424_s3 + $0x430] ss:$8 sps:$4 sm:$0xff]  }
 0x3fc   : > { %v4638_v49 = vadd.f32 %v4637_v17, %v12342_v46  ;;  %v4052_v21 = vpop.f32.mrb[88].mxu1  ;;  %v4639_v63 = vpop.f32.mrb[151].mxu0  ;;  %5373 = vmatmul.mubr.bf16.gmra.mrb[144].mxu1 %v5038_v2  ;;  %v4922_v25 = vmax.f32 %v4634_v40, 0.0  ;;  %6057 = vmatprep.subr.bf16.mxu0 %v9603_v1 }
 0x3fd   : > { %v4053_v44 = vadd.f32 %v4052_v21, %v11670_v12  ;;  %v4640_v20 = vadd.f32 %v4639_v63, %v12345_v18  ;;  %v4054_v56 = vpop.f32.mrb[89].mxu1  ;;  %v4923_v29 = vmax.f32 %v4636_v33, 0.0 }
 0x3fe   : > { %v4924_v28 = vmax.f32 %v4638_v49, 0.0  ;;  %v4055_v35 = vadd.f32 %v4054_v56, %v11684_v8  ;;  %v4056_v47 = vpop.f32.mrb[90].mxu1  ;;  %v9606_v49 = vld [vmem:[%s14424_s3 + $0x444] ss:$8 sps:$4 sm:$0xff]   ;;  %6058 = vmatpush1.bf16.msra.mxu0 %v9601_v22 }
 0x3ff   : > { %v4925_v3 = vmax.f32 %v4640_v20, 0.0  ;;  %v4057_v57 = vadd.f32 %v4056_v47, %v11670_v12  ;;  %v4058_v30 = vpop.f32.mrb[91].mxu1  ;;  %v4239_v15 = vmax.f32 %v4053_v44, 0.0  ;;  %6059 = vmatprep.subr.bf16.mxu0 %v9606_v49 }
 0x400   : > { %v4059_v24 = vadd.f32 %v4058_v30, %v11684_v8  ;;  %v5040_v31 = vpack.c.bf16 %v4924_v28, %v4922_v25  ;;  %v4240_v39 = vmax.f32 %v4055_v35, 0.0  ;;  %v9604_v28 = vld [vmem:[%s14424_s3 + $0x440] ss:$8 sps:$4 sm:$0xff]  }
 0x401   : > { %v4241_v52 = vmax.f32 %v4057_v57, 0.0  ;;  %v4643_v51 = vpop.f32.mrb[152].mxu0  ;;  %v5041_v43 = vpack.c.bf16 %v4925_v3, %v4923_v29 }
 0x402   : > { %v4242_v61 = vmax.f32 %v4059_v24, 0.0  ;;  %v4644_v45 = vadd.f32 %v4643_v51, %v12342_v46  ;;  %v4645_v7 = vpop.f32.mrb[153].mxu0  ;;  %6060 = vmatpush1.bf16.msra.mxu0 %v9604_v28 }
 0x403   : > { %v4646_v58 = vadd.f32 %v4645_v7, %v12345_v18  ;;  %v4647_v0 = vpop.f32.mrb[154].mxu0  ;;  %5382 = vmatprep.mubr.bf16.mxu1 %v5041_v43  ;;  %v4323_v59 = vpack.c.bf16 %v4241_v52, %v4239_v15  ;;  %v9609_v15 = vld [vmem:[%s14424_s3 + $0x454] ss:$8 sps:$4 sm:$0xff]  }
 0x404   : > { %v4648_v11 = vadd.f32 %v4647_v0, %v12342_v46  ;;  %v4649_v37 = vpop.f32.mrb[155].mxu0  ;;  %5383 = vmatmul.mubr.bf16.gmra.mrb[148].mxu1 %v5040_v31  ;;  %v4324_v6 = vpack.c.bf16 %v4242_v61, %v4240_v39  ;;  %v4926_v10 = vmax.f32 %v4644_v45, 0.0  ;;  %6061 = vmatprep.subr.bf16.mxu0 %v9609_v15 }
 0x405   : > { %v4650_v32 = vadd.f32 %v4649_v37, %v12345_v18  ;;  %v4927_v2 = vmax.f32 %v4646_v58, 0.0  ;;  %v9612_v37 = vld [vmem:[%s14424_s3 + $0x464] ss:$8 sps:$4 sm:$0xff]  }
 0x406   : > { %v4928_v13 = vmax.f32 %v4648_v11, 0.0  ;;  %4801 = vmatprep.mubr.bf16.mxu0 %v4324_v6  ;;  %6062 = vmatpush1.bf16.msra.mxu0 %v9607_v62  ;;  %v9621_v62 = vld [vmem:[%s14424_s3 + $0x494] ss:$8 sps:$4 sm:$0xff]  }
 0x407   : > { %v4929_v9 = vmax.f32 %v4650_v32, 0.0  ;;  %4802 = vmatmul.mubr.bf16.gmra.mrb[216].mxu0 %v4323_v59  ;;  %6063 = vmatprep.subr.bf16.mxu0 %v9612_v37 }
 0x408   : > { %v5042_v40 = vpack.c.bf16 %v4928_v13, %v4926_v10  ;;  %v9610_v10 = vld [vmem:[%s14424_s3 + $0x460] ss:$8 sps:$4 sm:$0xff]  }
 0x409   : > { %v4653_v33 = vpop.f32.mrb[156].mxu0  ;;  %v5043_v17 = vpack.c.bf16 %v4929_v9, %v4927_v2 }
 0x40a   : > { %v4654_v21 = vadd.f32 %v4653_v33, %v12342_v46  ;;  %v4655_v63 = vpop.f32.mrb[157].mxu0  ;;  %6064 = vmatpush1.bf16.msra.mxu0 %v9610_v10 }
 0x40b   : > { %v4656_v44 = vadd.f32 %v4655_v63, %v12345_v18  ;;  %v4657_v20 = vpop.f32.mrb[158].mxu0  ;;  %5392 = vmatprep.mubr.bf16.mxu1 %v5043_v17 }
 0x40c   : > { %v4658_v56 = vadd.f32 %v4657_v20, %v12342_v46  ;;  %v4659_v25 = vpop.f32.mrb[159].mxu0  ;;  %5393 = vmatmul.mubr.bf16.gmra.mrb[152].mxu1 %v5042_v40  ;;  %v4930_v47 = vmax.f32 %v4654_v21, 0.0  ;;  %v9613_v20 = vld [vmem:[%s14424_s3 + $0x470] ss:$8 sps:$4 sm:$0xff]  }
 0x40d   : > { %v4660_v35 = vadd.f32 %v4659_v25, %v12345_v18  ;;  %v4931_v3 = vmax.f32 %v4656_v44, 0.0 }
 0x40e   : > { %v4932_v29 = vmax.f32 %v4658_v56, 0.0  ;;  %v9615_v56 = vld [vmem:[%s14424_s3 + $0x474] ss:$8 sps:$4 sm:$0xff]  }
 0x40f   : > { %v4933_v57 = vmax.f32 %v4660_v35, 0.0  ;;  %v9618_v35 = vld [vmem:[%s14424_s3 + $0x484] ss:$8 sps:$4 sm:$0xff]   ;;  %6065 = vmatprep.subr.bf16.mxu0 %v9615_v56  ;;  %v9627_v56 = vld [vmem:[%s14424_s3 + $0x4b4] ss:$8 sps:$4 sm:$0xff]  }
 0x410   : > { %v4062_v30 = vpop.f32.mrb[92].mxu1  ;;  %v5044_v4 = vpack.c.bf16 %v4932_v29, %v4930_v47  ;;  %6066 = vmatpush1.bf16.msra.mxu0 %v9613_v20 }
 0x411   : > { %v4063_v24 = vadd.f32 %v4062_v30, %v11670_v12  ;;  %v4064_v31 = vpop.f32.mrb[93].mxu1  ;;  %v4663_v43 = vpop.f32.mrb[160].mxu0  ;;  %v5045_v39 = vpack.c.bf16 %v4933_v57, %v4931_v3  ;;  %v9616_v30 = vld [vmem:[%s14424_s3 + $0x480] ss:$8 sps:$4 sm:$0xff]   ;;  %6067 = vmatprep.subr.bf16.mxu0 %v9618_v35 }
 0x412   : > { %v4065_v52 = vadd.f32 %v4064_v31, %v11684_v8  ;;  %v4066_v51 = vpop.f32.mrb[94].mxu1  ;;  %v4664_v45 = vadd.f32 %v4663_v43, %v12342_v46  ;;  %v4665_v58 = vpop.f32.mrb[161].mxu0  ;;  %v9619_v43 = vld [vmem:[%s14424_s3 + $0x490] ss:$8 sps:$4 sm:$0xff]  }
 0x413   : > { %v4067_v61 = vadd.f32 %v4066_v51, %v11670_v12  ;;  %v4068_v7 = vpop.f32.mrb[95].mxu1  ;;  %v4666_v59 = vadd.f32 %v4665_v58, %v12345_v18  ;;  %v4667_v11 = vpop.f32.mrb[162].mxu0  ;;  %5402 = vmatprep.mubr.bf16.mxu1 %v5045_v39  ;;  %v4243_v6 = vmax.f32 %v4063_v24, 0.0 }
 0x414   : > { %v4069_v0 = vadd.f32 %v4068_v7, %v11684_v8  ;;  %v4668_v36 = vadd.f32 %v4667_v11, %v12342_v46  ;;  %v4669_v27 = vpop.f32.mrb[163].mxu0  ;;  %5403 = vmatmul.mubr.bf16.gmra.mrb[156].mxu1 %v5044_v4  ;;  %v4244_v13 = vmax.f32 %v4065_v52, 0.0  ;;  %v4934_v1 = vmax.f32 %v4664_v45, 0.0  ;;  %6068 = vmatpush1.bf16.msra.mxu0 %v9616_v30 }
 0x415   : > { %v4245_v32 = vmax.f32 %v4067_v61, 0.0  ;;  %v4670_v9 = vadd.f32 %v4669_v27, %v12345_v18  ;;  %v4935_v33 = vmax.f32 %v4666_v59, 0.0  ;;  %6069 = vmatprep.subr.bf16.mxu0 %v9621_v62 }
 0x416   : > { %v4246_v2 = vmax.f32 %v4069_v0, 0.0  ;;  %v4936_v40 = vmax.f32 %v4668_v36, 0.0 }
 0x417   : > { %v4325_v22 = vpack.c.bf16 %v4245_v32, %v4243_v6  ;;  %v4937_v17 = vmax.f32 %v4670_v9, 0.0 }
 0x418   : > { %v4326_v49 = vpack.c.bf16 %v4246_v2, %v4244_v13  ;;  %v5046_v21 = vpack.c.bf16 %v4936_v40, %v4934_v1  ;;  %6070 = vmatpush1.bf16.msra.mxu0 %v9619_v43  ;;  %v9622_v1 = vld [vmem:[%s14424_s3 + $0x4a0] ss:$8 sps:$4 sm:$0xff]   ;;  %v9624_v40 = vld [vmem:[%s14424_s3 + $0x4a4] ss:$8 sps:$4 sm:$0xff]  }
 0x419   : > { %v4673_v63 = vpop.f32.mrb[164].mxu0  ;;  %v5047_v44 = vpack.c.bf16 %v4937_v17, %v4935_v33  ;;  %6071 = vmatprep.subr.bf16.mxu0 %v9624_v40  ;;  %v9634_v40 = vld [vmem:[%s14424_s3 + $0x4e0] ss:$8 sps:$4 sm:$0xff]  }
 0x41a   : > { %4811 = vmatprep.mubr.bf16.mxu0 %v4326_v49  ;;  %v4674_v25 = vadd.f32 %v4673_v63, %v12342_v46  ;;  %v4675_v28 = vpop.f32.mrb[165].mxu0 }
 0x41b   : > { %4812 = vmatmul.mubr.bf16.gmra.mrb[220].mxu0 %v4325_v22  ;;  %v4676_v47 = vadd.f32 %v4675_v28, %v12345_v18  ;;  %v4677_v29 = vpop.f32.mrb[166].mxu0  ;;  %5412 = vmatprep.mubr.bf16.mxu1 %v5047_v44 }
 0x41c   : > { %v4678_v3 = vadd.f32 %v4677_v29, %v12342_v46  ;;  %v4679_v57 = vpop.f32.mrb[167].mxu0  ;;  %5413 = vmatmul.mubr.bf16.gmra.mrb[160].mxu1 %v5046_v21  ;;  %v4938_v31 = vmax.f32 %v4674_v25, 0.0  ;;  %6072 = vmatpush1.bf16.msra.mxu0 %v9622_v1 }
 0x41d   : > { %v4680_v24 = vadd.f32 %v4679_v57, %v12345_v18  ;;  %v4939_v15 = vmax.f32 %v4676_v47, 0.0  ;;  %6073 = vmatprep.subr.bf16.mxu0 %v9627_v56 }
 0x41e   : > { %v4940_v4 = vmax.f32 %v4678_v3, 0.0  ;;  %v9625_v3 = vld [vmem:[%s14424_s3 + $0x4b0] ss:$8 sps:$4 sm:$0xff]  }
 0x41f   : > { %v4941_v52 = vmax.f32 %v4680_v24, 0.0 }
 0x420   : > { %v5048_v51 = vpack.c.bf16 %v4940_v4, %v4938_v31  ;;  %6074 = vmatpush1.bf16.msra.mxu0 %v9625_v3 }
 0x421   : > { %v4683_v39 = vpop.f32.mrb[168].mxu0  ;;  %v5049_v45 = vpack.c.bf16 %v4941_v52, %v4939_v15  ;;  %v9628_v52 = vld [vmem:[%s14424_s3 + $0x4c0] ss:$8 sps:$4 sm:$0xff]  }
 0x422   : > { %v4072_v61 = vpop.f32.mrb[96].mxu1  ;;  %v4684_v7 = vadd.f32 %v4683_v39, %v12342_v46  ;;  %v4685_v0 = vpop.f32.mrb[169].mxu0 }
 0x423   : > { %v4073_v58 = vadd.f32 %v4072_v61, %v11670_v12  ;;  %v4074_v59 = vpop.f32.mrb[97].mxu1  ;;  %v4686_v11 = vadd.f32 %v4685_v0, %v12345_v18  ;;  %v4687_v6 = vpop.f32.mrb[170].mxu0  ;;  %5422 = vmatprep.mubr.bf16.mxu1 %v5049_v45  ;;  %v9633_v61 = vld [vmem:[%s14424_s3 + $0x4d4] ss:$8 sps:$4 sm:$0xff]  }
 0x424   : > { %v4075_v37 = vadd.f32 %v4074_v59, %v11684_v8  ;;  %v4076_v32 = vpop.f32.mrb[98].mxu1  ;;  %v4688_v36 = vadd.f32 %v4687_v6, %v12342_v46  ;;  %v4689_v10 = vpop.f32.mrb[171].mxu0  ;;  %5423 = vmatmul.mubr.bf16.gmra.mrb[164].mxu1 %v5048_v51  ;;  %v4942_v22 = vmax.f32 %v4684_v7, 0.0  ;;  %v9630_v51 = vld [vmem:[%s14424_s3 + $0x4c4] ss:$8 sps:$4 sm:$0xff]  }
 0x425   : > { %v4077_v27 = vadd.f32 %v4076_v32, %v11670_v12  ;;  %v4078_v13 = vpop.f32.mrb[99].mxu1  ;;  %v4690_v2 = vadd.f32 %v4689_v10, %v12345_v18  ;;  %v4247_v33 = vmax.f32 %v4073_v58, 0.0  ;;  %v4943_v21 = vmax.f32 %v4686_v11, 0.0  ;;  %6075 = vmatprep.subr.bf16.mxu0 %v9630_v51  ;;  %v9631_v11 = vld [vmem:[%s14424_s3 + $0x4d0] ss:$8 sps:$4 sm:$0xff]  }
 0x426   : > { %v4079_v9 = vadd.f32 %v4078_v13, %v11684_v8  ;;  %v4944_v17 = vmax.f32 %v4688_v36, 0.0  ;;  %v4248_v63 = vmax.f32 %v4075_v37, 0.0  ;;  %6076 = vmatpush1.bf16.msra.mxu0 %v9628_v52 }
 0x427   : > { %v4249_v49 = vmax.f32 %v4077_v27, 0.0  ;;  %v4945_v44 = vmax.f32 %v4690_v2, 0.0  ;;  %6077 = vmatprep.subr.bf16.mxu0 %v9633_v61 }
 0x428   : > { %v4250_v20 = vmax.f32 %v4079_v9, 0.0  ;;  %v5050_v25 = vpack.c.bf16 %v4944_v17, %v4942_v22  ;;  %v9636_v22 = vld [vmem:[%s14424_s3 + $0x4e4] ss:$8 sps:$4 sm:$0xff]  }
 0x429   : > { %v4327_v28 = vpack.c.bf16 %v4249_v49, %v4247_v33  ;;  %v4693_v35 = vpop.f32.mrb[172].mxu0  ;;  %v5051_v47 = vpack.c.bf16 %v4945_v44, %v4943_v21 }
 0x42a   : > { %v4328_v29 = vpack.c.bf16 %v4250_v20, %v4248_v63  ;;  %v4694_v57 = vadd.f32 %v4693_v35, %v12342_v46  ;;  %v4695_v30 = vpop.f32.mrb[173].mxu0  ;;  %6078 = vmatpush1.bf16.msra.mxu0 %v9631_v11 }
 0x42b   : > { %v4696_v24 = vadd.f32 %v4695_v30, %v12345_v18  ;;  %v4697_v31 = vpop.f32.mrb[174].mxu0  ;;  %5432 = vmatprep.mubr.bf16.mxu1 %v5051_v47  ;;  %6079 = vmatprep.subr.bf16.mxu0 %v9636_v22  ;;  %v9637_v47 = vld [vmem:[%s14424_s3 + $0x4f0] ss:$8 sps:$4 sm:$0xff]   ;;  %v9639_v30 = vld [vmem:[%s14424_s3 + $0x4f4] ss:$8 sps:$4 sm:$0xff]  }
 0x42c   : > { %4821 = vmatprep.mubr.bf16.mxu0 %v4328_v29  ;;  %v4698_v4 = vadd.f32 %v4697_v31, %v12342_v46  ;;  %v4699_v62 = vpop.f32.mrb[175].mxu0  ;;  %5433 = vmatmul.mubr.bf16.gmra.mrb[168].mxu1 %v5050_v25  ;;  %v4946_v43 = vmax.f32 %v4694_v57, 0.0 }
 0x42d   : > { %4822 = vmatmul.mubr.bf16.gmra.mrb[224].mxu0 %v4327_v28  ;;  %v4700_v15 = vadd.f32 %v4699_v62, %v12345_v18  ;;  %v4947_v45 = vmax.f32 %v4696_v24, 0.0 }
 0x42e   : > { %v4948_v39 = vmax.f32 %v4698_v4, 0.0  ;;  %6080 = vmatpush1.bf16.msra.mxu0 %v9634_v40 }
 0x42f   : > { %v4949_v7 = vmax.f32 %v4700_v15, 0.0  ;;  %6081 = vmatprep.subr.bf16.mxu0 %v9639_v30 }
 0x430   : > { %v5052_v58 = vpack.c.bf16 %v4948_v39, %v4946_v43 }
 0x431   : > { %v4703_v0 = vpop.f32.mrb[176].mxu0  ;;  %v5053_v59 = vpack.c.bf16 %v4949_v7, %v4947_v45 }
 0x432   : > { %v4704_v37 = vadd.f32 %v4703_v0, %v12342_v46  ;;  %v4705_v6 = vpop.f32.mrb[177].mxu0  ;;  %6082 = vmatpush1.bf16.msra.mxu0 %v9637_v47 }
 0x433   : > { %v4706_v32 = vadd.f32 %v4705_v6, %v12345_v18  ;;  %v4707_v36 = vpop.f32.mrb[178].mxu0  ;;  %5442 = vmatprep.mubr.bf16.mxu1 %v5053_v59 }
 0x434   : > { %v4708_v27 = vadd.f32 %v4707_v36, %v12342_v46  ;;  %v4709_v10 = vpop.f32.mrb[179].mxu0  ;;  %5443 = vmatmul.mubr.bf16.gmra.mrb[172].mxu1 %v5052_v58  ;;  %v4950_v13 = vmax.f32 %v4704_v37, 0.0 }
 0x435   : > { %v4710_v2 = vadd.f32 %v4709_v10, %v12345_v18  ;;  %v4951_v33 = vmax.f32 %v4706_v32, 0.0 }
 0x436   : > { %v4952_v9 = vmax.f32 %v4708_v27, 0.0 }
 0x437   : > { %v4082_v1 = vpop.f32.mrb[100].mxu1  ;;  %v4953_v17 = vmax.f32 %v4710_v2, 0.0 }
 0x438   : > { %v4083_v49 = vadd.f32 %v4082_v1, %v11670_v12  ;;  %v4084_v21 = vpop.f32.mrb[101].mxu1  ;;  %v5054_v20 = vpack.c.bf16 %v4952_v9, %v4950_v13 }
 0x439   : > { %v4085_v63 = vadd.f32 %v4084_v21, %v11684_v8  ;;  %v4086_v44 = vpop.f32.mrb[102].mxu1  ;;  %v4713_v28 = vpop.f32.mrb[180].mxu0  ;;  %v5055_v35 = vpack.c.bf16 %v4953_v17, %v4951_v33 }
 0x43a   : > { %v4087_v56 = vadd.f32 %v4086_v44, %v11670_v12  ;;  %v4088_v25 = vpop.f32.mrb[103].mxu1  ;;  %v4714_v3 = vadd.f32 %v4713_v28, %v12342_v46  ;;  %v4715_v57 = vpop.f32.mrb[181].mxu0  ;;  %v4251_v24 = vmax.f32 %v4083_v49, 0.0 }
 0x43b   : > { %v4089_v29 = vadd.f32 %v4088_v25, %v11684_v8  ;;  %v4716_v4 = vadd.f32 %v4715_v57, %v12345_v18  ;;  %v4717_v62 = vpop.f32.mrb[182].mxu0  ;;  %5452 = vmatprep.mubr.bf16.mxu1 %v5055_v35  ;;  %v4252_v15 = vmax.f32 %v4085_v63, 0.0 }
 0x43c   : > { %v4253_v31 = vmax.f32 %v4087_v56, 0.0  ;;  %v4718_v51 = vadd.f32 %v4717_v62, %v12342_v46  ;;  %v4719_v43 = vpop.f32.mrb[183].mxu0  ;;  %5453 = vmatmul.mubr.bf16.gmra.mrb[176].mxu1 %v5054_v20  ;;  %v4954_v45 = vmax.f32 %v4714_v3, 0.0 }
 0x43d   : > { %v4254_v52 = vmax.f32 %v4089_v29, 0.0  ;;  %v4720_v39 = vadd.f32 %v4719_v43, %v12345_v18  ;;  %v4955_v0 = vmax.f32 %v4716_v4, 0.0 }
 0x43e   : > { %v4329_v61 = vpack.c.bf16 %v4253_v31, %v4251_v24  ;;  %v4956_v7 = vmax.f32 %v4718_v51, 0.0 }
 0x43f   : > { %v4330_v58 = vpack.c.bf16 %v4254_v52, %v4252_v15  ;;  %v4957_v59 = vmax.f32 %v4720_v39, 0.0 }
 0x440   : > { %v5056_v11 = vpack.c.bf16 %v4956_v7, %v4954_v45 }
 0x441   : > { %4831 = vmatprep.mubr.bf16.mxu0 %v4330_v58  ;;  %v5057_v37 = vpack.c.bf16 %v4957_v59, %v4955_v0 }
 0x442   : > { %4832 = vmatmul.mubr.bf16.gmra.mrb[228].mxu0 %v4329_v61 }
 0x443   : > { %v4723_v6 = vpop.f32.mrb[184].mxu0  ;;  %5462 = vmatprep.mubr.bf16.mxu1 %v5057_v37 }
 0x444   : > { %v4724_v32 = vadd.f32 %v4723_v6, %v12342_v46  ;;  %v4725_v36 = vpop.f32.mrb[185].mxu0  ;;  %5463 = vmatmul.mubr.bf16.gmra.mrb[180].mxu1 %v5056_v11 }
 0x445   : > { %v4726_v27 = vadd.f32 %v4725_v36, %v12345_v18  ;;  %v4727_v10 = vpop.f32.mrb[186].mxu0 }
 0x446   : > { %v4728_v13 = vadd.f32 %v4727_v10, %v12342_v46  ;;  %v4729_v2 = vpop.f32.mrb[187].mxu0  ;;  %v4958_v1 = vmax.f32 %v4724_v32, 0.0 }
 0x447   : > { %v4730_v9 = vadd.f32 %v4729_v2, %v12345_v18  ;;  %v4959_v22 = vmax.f32 %v4726_v27, 0.0 }
 0x448   : > { %v4960_v40 = vmax.f32 %v4728_v13, 0.0  ;;  %v4092_v17 = vpop.f32.mrb[104].mxu1 }
 0x449   : > { %v4961_v33 = vmax.f32 %v4730_v9, 0.0  ;;  %v4093_v49 = vadd.f32 %v4092_v17, %v11670_v12  ;;  %v4094_v21 = vpop.f32.mrb[105].mxu1 }
 0x44a   : > { %v5058_v63 = vpack.c.bf16 %v4960_v40, %v4958_v1  ;;  %v4095_v44 = vadd.f32 %v4094_v21, %v11684_v8  ;;  %v4096_v20 = vpop.f32.mrb[106].mxu1 }
 0x44b   : > { %v5059_v56 = vpack.c.bf16 %v4961_v33, %v4959_v22  ;;  %v4097_v25 = vadd.f32 %v4096_v20, %v11670_v12  ;;  %v4098_v28 = vpop.f32.mrb[107].mxu1  ;;  %v4255_v47 = vmax.f32 %v4093_v49, 0.0 }
 0x44c   : > { %v4099_v35 = vadd.f32 %v4098_v28, %v11684_v8  ;;  %v4256_v3 = vmax.f32 %v4095_v44, 0.0 }
 0x44d   : > { %5472 = vmatprep.mubr.bf16.mxu1 %v5059_v56  ;;  %v4257_v29 = vmax.f32 %v4097_v25, 0.0 }
 0x44e   : > { %5473 = vmatmul.mubr.bf16.gmra.mrb[184].mxu1 %v5058_v63  ;;  %v4258_v57 = vmax.f32 %v4099_v35, 0.0 }
 0x44f   : > { %v4331_v30 = vpack.c.bf16 %v4257_v29, %v4255_v47 }
 0x450   : > { %v4332_v24 = vpack.c.bf16 %v4258_v57, %v4256_v3 }
 0x452   : > { %4841 = vmatprep.mubr.bf16.mxu0 %v4332_v24 }
 0x453   : > { %4842 = vmatmul.mubr.bf16.gmra.mrb[232].mxu0 %v4331_v30 }
 0x454   : > { %v4733_v31 = vpop.f32.mrb[188].mxu0 }
 0x455   : > { %v4734_v4 = vadd.f32 %v4733_v31, %v12342_v46  ;;  %v4735_v62 = vpop.f32.mrb[189].mxu0 }
 0x456   : > { %v4736_v15 = vadd.f32 %v4735_v62, %v12345_v18  ;;  %v4737_v52 = vpop.f32.mrb[190].mxu0 }
 0x457   : > { %v4738_v51 = vadd.f32 %v4737_v52, %v12342_v46  ;;  %v4739_v43 = vpop.f32.mrb[191].mxu0  ;;  %v4962_v61 = vmax.f32 %v4734_v4, 0.0 }
 0x458   : > { %v4740_v39 = vadd.f32 %v4739_v43, %v12345_v18  ;;  %v4963_v7 = vmax.f32 %v4736_v15, 0.0 }
 0x459   : > { %v4964_v45 = vmax.f32 %v4738_v51, 0.0 }
 0x45a   : > { %v4965_v58 = vmax.f32 %v4740_v39, 0.0 }
 0x45b   : > { %v4102_v0 = vpop.f32.mrb[108].mxu1  ;;  %v5060_v59 = vpack.c.bf16 %v4964_v45, %v4962_v61 }
 0x45c   : > { %v4103_v11 = vadd.f32 %v4102_v0, %v11670_v12  ;;  %v4104_v37 = vpop.f32.mrb[109].mxu1  ;;  %v5061_v6 = vpack.c.bf16 %v4965_v58, %v4963_v7 }
 0x45d   : > { %v4105_v32 = vadd.f32 %v4104_v37, %v11684_v8  ;;  %v4106_v36 = vpop.f32.mrb[110].mxu1 }
 0x45e   : > { %v4107_v27 = vadd.f32 %v4106_v36, %v11670_v12  ;;  %v4108_v10 = vpop.f32.mrb[111].mxu1  ;;  %5482 = vmatprep.mubr.bf16.mxu1 %v5061_v6  ;;  %v4259_v2 = vmax.f32 %v4103_v11, 0.0 }
 0x45f   : > { %v4109_v13 = vadd.f32 %v4108_v10, %v11684_v8  ;;  %5483 = vmatmul.mubr.bf16.gmra.mrb[188].mxu1 %v5060_v59  ;;  %v4260_v1 = vmax.f32 %v4105_v32, 0.0 }
 0x460   : > { %v4261_v9 = vmax.f32 %v4107_v27, 0.0 }
 0x461   : > { %v4262_v40 = vmax.f32 %v4109_v13, 0.0 }
 0x462   : > { %v4333_v22 = vpack.c.bf16 %v4261_v9, %v4259_v2 }
 0x463   : > { %v4334_v33 = vpack.c.bf16 %v4262_v40, %v4260_v1 }
 0x465   : > { %4851 = vmatprep.mubr.bf16.mxu0 %v4334_v33 }
 0x466   : > { %4852 = vmatmul.mubr.bf16.gmra.mrb[236].mxu0 %v4333_v22 }
 0x467   : > { %v4743_v17 = vpop.f32.mrb[192].mxu0 }
 0x468   : > { %v4744_v49 = vadd.f32 %v4743_v17, %v12342_v46  ;;  %v4745_v21 = vpop.f32.mrb[193].mxu0 }
 0x469   : > { %v4746_v63 = vadd.f32 %v4745_v21, %v12345_v18  ;;  %v4747_v44 = vpop.f32.mrb[194].mxu0 }
 0x46a   : > { %v4748_v20 = vadd.f32 %v4747_v44, %v12342_v46  ;;  %v4749_v56 = vpop.f32.mrb[195].mxu0  ;;  %v4966_v28 = vmax.f32 %v4744_v49, 0.0 }
 0x46b   : > { %v4750_v25 = vadd.f32 %v4749_v56, %v12345_v18  ;;  %v4967_v47 = vmax.f32 %v4746_v63, 0.0 }
 0x46c   : > { %v4968_v35 = vmax.f32 %v4748_v20, 0.0 }
 0x46d   : > { %v4969_v29 = vmax.f32 %v4750_v25, 0.0 }
 0x46e   : > { %v4112_v3 = vpop.f32.mrb[112].mxu1  ;;  %v5062_v57 = vpack.c.bf16 %v4968_v35, %v4966_v28 }
 0x46f   : > { %v4113_v30 = vadd.f32 %v4112_v3, %v11670_v12  ;;  %v4114_v24 = vpop.f32.mrb[113].mxu1  ;;  %v5063_v31 = vpack.c.bf16 %v4969_v29, %v4967_v47 }
 0x470   : > { %v4115_v4 = vadd.f32 %v4114_v24, %v11684_v8  ;;  %v4116_v62 = vpop.f32.mrb[114].mxu1 }
 0x471   : > { %v4117_v15 = vadd.f32 %v4116_v62, %v11670_v12  ;;  %v4118_v52 = vpop.f32.mrb[115].mxu1  ;;  %5492 = vmatprep.mubr.bf16.mxu1 %v5063_v31  ;;  %v4263_v43 = vmax.f32 %v4113_v30, 0.0 }
 0x472   : > { %v4119_v51 = vadd.f32 %v4118_v52, %v11684_v8  ;;  %5493 = vmatmul.mubr.bf16.gmra.mrb[192].mxu1 %v5062_v57  ;;  %v4264_v61 = vmax.f32 %v4115_v4, 0.0 }
 0x473   : > { %v4265_v39 = vmax.f32 %v4117_v15, 0.0 }
 0x474   : > { %v4266_v45 = vmax.f32 %v4119_v51, 0.0 }
 0x475   : > { %v4335_v7 = vpack.c.bf16 %v4265_v39, %v4263_v43 }
 0x476   : > { %v4336_v58 = vpack.c.bf16 %v4266_v45, %v4264_v61 }
 0x478   : > { %4861 = vmatprep.mubr.bf16.mxu0 %v4336_v58 }
 0x479   : > { %4862 = vmatmul.mubr.bf16.gmra.mrb[240].mxu0 %v4335_v7 }
 0x47a   : > { %v4753_v0 = vpop.f32.mrb[196].mxu0 }
 0x47b   : > { %v4754_v59 = vadd.f32 %v4753_v0, %v12342_v46  ;;  %v4755_v11 = vpop.f32.mrb[197].mxu0 }
 0x47c   : > { %v4756_v37 = vadd.f32 %v4755_v11, %v12345_v18  ;;  %v4757_v6 = vpop.f32.mrb[198].mxu0 }
 0x47d   : > { %v4758_v32 = vadd.f32 %v4757_v6, %v12342_v46  ;;  %v4759_v36 = vpop.f32.mrb[199].mxu0  ;;  %v4970_v10 = vmax.f32 %v4754_v59, 0.0 }
 0x47e   : > { %v4760_v27 = vadd.f32 %v4759_v36, %v12345_v18  ;;  %v4971_v2 = vmax.f32 %v4756_v37, 0.0 }
 0x47f   : > { %v4972_v13 = vmax.f32 %v4758_v32, 0.0 }
 0x480   : > { %v4973_v9 = vmax.f32 %v4760_v27, 0.0 }
 0x481   : > { %v4122_v1 = vpop.f32.mrb[116].mxu1  ;;  %v5064_v40 = vpack.c.bf16 %v4972_v13, %v4970_v10 }
 0x482   : > { %v4123_v22 = vadd.f32 %v4122_v1, %v11670_v12  ;;  %v4124_v33 = vpop.f32.mrb[117].mxu1  ;;  %v5065_v17 = vpack.c.bf16 %v4973_v9, %v4971_v2 }
 0x483   : > { %v4125_v49 = vadd.f32 %v4124_v33, %v11684_v8  ;;  %v4126_v21 = vpop.f32.mrb[118].mxu1 }
 0x484   : > { %v4127_v63 = vadd.f32 %v4126_v21, %v11670_v12  ;;  %v4128_v44 = vpop.f32.mrb[119].mxu1  ;;  %5502 = vmatprep.mubr.bf16.mxu1 %v5065_v17  ;;  %v4267_v56 = vmax.f32 %v4123_v22, 0.0 }
 0x485   : > { %v4129_v20 = vadd.f32 %v4128_v44, %v11684_v8  ;;  %5503 = vmatmul.mubr.bf16.gmra.mrb[196].mxu1 %v5064_v40  ;;  %v4268_v28 = vmax.f32 %v4125_v49, 0.0 }
 0x486   : > { %v4269_v25 = vmax.f32 %v4127_v63, 0.0 }
 0x487   : > { %v4270_v35 = vmax.f32 %v4129_v20, 0.0 }
 0x488   : > { %v4337_v47 = vpack.c.bf16 %v4269_v25, %v4267_v56 }
 0x489   : > { %v4338_v29 = vpack.c.bf16 %v4270_v35, %v4268_v28 }
 0x48b   : > { %4871 = vmatprep.mubr.bf16.mxu0 %v4338_v29 }
 0x48c   : > { %4872 = vmatmul.mubr.bf16.gmra.mrb[244].mxu0 %v4337_v47 }
 0x48d   : > { %v4763_v3 = vpop.f32.mrb[200].mxu0 }
 0x48e   : > { %v4764_v57 = vadd.f32 %v4763_v3, %v12342_v46  ;;  %v4765_v30 = vpop.f32.mrb[201].mxu0 }
 0x48f   : > { %v4766_v24 = vadd.f32 %v4765_v30, %v12345_v18  ;;  %v4767_v31 = vpop.f32.mrb[202].mxu0 }
 0x490   : > { %v4768_v4 = vadd.f32 %v4767_v31, %v12342_v46  ;;  %v4769_v62 = vpop.f32.mrb[203].mxu0  ;;  %v4974_v52 = vmax.f32 %v4764_v57, 0.0 }
 0x491   : > { %v4770_v15 = vadd.f32 %v4769_v62, %v12345_v18  ;;  %v4975_v43 = vmax.f32 %v4766_v24, 0.0  ;;  %v9038_v24 = vld [vmem:[%s14425_s4 + $0x6] sm:$0x3] }
 0x492   : > { %v4976_v51 = vmax.f32 %v4768_v4, 0.0 }
 0x493   : > { %v4977_v39 = vmax.f32 %v4770_v15, 0.0 }
 0x494   : > { %v4132_v61 = vpop.f32.mrb[120].mxu1  ;;  %v5066_v45 = vpack.c.bf16 %v4976_v51, %v4974_v52  ;;  %v12575_v51 = vrot.slane %v9038_v24, %v14856_v60 }
 0x495   : > { %v4133_v7 = vadd.f32 %v4132_v61, %v11670_v12  ;;  %v4134_v58 = vpop.f32.mrb[121].mxu1  ;;  %v5067_v0 = vpack.c.bf16 %v4977_v39, %v4975_v43  ;;  %v12578_v61 = vrot.slane %v9038_v24, %v14857_v16 }
 0x496   : > { %v4135_v59 = vadd.f32 %v4134_v58, %v11684_v8  ;;  %v4136_v11 = vpop.f32.mrb[122].mxu1 }
 0x497   : > { %v4137_v37 = vadd.f32 %v4136_v11, %v11670_v12  ;;  %v4138_v6 = vpop.f32.mrb[123].mxu1  ;;  %5512 = vmatprep.mubr.bf16.mxu1 %v5067_v0  ;;  %v4271_v36 = vmax.f32 %v4133_v7, 0.0 }
 0x498   : > { %v4139_v32 = vadd.f32 %v4138_v6, %v11684_v8  ;;  %5513 = vmatmul.mubr.bf16.gmra.mrb[200].mxu1 %v5066_v45  ;;  %v4272_v10 = vmax.f32 %v4135_v59, 0.0 }
 0x499   : > { %v4273_v27 = vmax.f32 %v4137_v37, 0.0 }
 0x49a   : > { %v4274_v13 = vmax.f32 %v4139_v32, 0.0 }
 0x49b   : > { %v4339_v2 = vpack.c.bf16 %v4273_v27, %v4271_v36 }
 0x49c   : > { %v4340_v9 = vpack.c.bf16 %v4274_v13, %v4272_v10 }
 0x49e   : > { %4881 = vmatprep.mubr.bf16.mxu0 %v4340_v9 }
 0x49f   : > { %4882 = vmatmul.mubr.bf16.gmra.mrb[248].mxu0 %v4339_v2 }
 0x4a1   : > { %v4773_v1 = vpop.f32.mrb[204].mxu0 }
 0x4a2   : > { %v4774_v40 = vadd.f32 %v4773_v1, %v12342_v46  ;;  %v4775_v22 = vpop.f32.mrb[205].mxu0 }
 0x4a3   : > { %v4776_v33 = vadd.f32 %v4775_v22, %v12345_v18  ;;  %v4777_v17 = vpop.f32.mrb[206].mxu0 }
 0x4a4   : > { %v4778_v49 = vadd.f32 %v4777_v17, %v12342_v46  ;;  %v4779_v21 = vpop.f32.mrb[207].mxu0  ;;  %v4978_v44 = vmax.f32 %v4774_v40, 0.0 }
 0x4a5   : > { %v4780_v63 = vadd.f32 %v4779_v21, %v12345_v18  ;;  %v4979_v56 = vmax.f32 %v4776_v33, 0.0 }
 0x4a6   : > { %v4980_v20 = vmax.f32 %v4778_v49, 0.0 }
 0x4a7   : > { %v4981_v25 = vmax.f32 %v4780_v63, 0.0  ;;  %v4142_v28 = vpop.f32.mrb[124].mxu1 }
 0x4a8   : > { %v4143_v35 = vadd.f32 %v4142_v28, %v11670_v12  ;;  %v4144_v47 = vpop.f32.mrb[125].mxu1  ;;  %v5068_v29 = vpack.c.bf16 %v4980_v20, %v4978_v44 }
 0x4a9   : > { %v4145_v3 = vadd.f32 %v4144_v47, %v11684_v8  ;;  %v4146_v57 = vpop.f32.mrb[126].mxu1  ;;  %v5069_v30 = vpack.c.bf16 %v4981_v25, %v4979_v56 }
 0x4aa   : > { %v4147_v31 = vadd.f32 %v4146_v57, %v11670_v12  ;;  %v4148_v4 = vpop.f32.mrb[127].mxu1  ;;  %v4275_v15 = vmax.f32 %v4143_v35, 0.0 }
 0x4ab   : > { %v4149_v62 = vadd.f32 %v4148_v4, %v11684_v8  ;;  %5522 = vmatprep.mubr.bf16.mxu1 %v5069_v30  ;;  %v4276_v43 = vmax.f32 %v4145_v3, 0.0 }
 0x4ac   : > { %v4277_v52 = vmax.f32 %v4147_v31, 0.0  ;;  %5523 = vmatmul.mubr.bf16.gmra.mrb[204].mxu1 %v5068_v29 }
 0x4ad   : > { %v4278_v39 = vmax.f32 %v4149_v62, 0.0 }
 0x4ae   : > { %v4341_v45 = vpack.c.bf16 %v4277_v52, %v4275_v15 }
 0x4af   : > { %v5334_v7 = vpop.f32.mrb[128].mxu1  ;;  %v4342_v58 = vpack.c.bf16 %v4278_v39, %v4276_v43 }
 0x4b0   : > { %v5335_v12 = vadd.f32 %v5334_v7, %v12575_v51  ;;  %v5336_v0 = vpop.f32.mrb[129].mxu1 }
 0x4b1   : > { %v5337_v8 = vadd.f32 %v5336_v0, %v12578_v61  ;;  %4891 = vmatprep.mubr.bf16.mxu0 %v4342_v58  ;;  %v5338_v59 = vpop.f32.mrb[130].mxu1 }
 0x4b2   : > { %v5339_v11 = vadd.f32 %v5338_v59, %v12575_v51  ;;  %4892 = vmatmul.mubr.bf16.gmra.mrb[252].mxu0 %v4341_v45  ;;  %v5340_v37 = vpop.f32.mrb[131].mxu1  ;;  %v5653_v32 = vmax.f32 %v5335_v12, 0.0 }
 0x4b3   : > { %v5341_v6 = vadd.f32 %v5340_v37, %v12578_v61  ;;  %v5654_v10 = vmax.f32 %v5337_v8, 0.0 }
 0x4b4   : > { %v5655_v36 = vmax.f32 %v5339_v11, 0.0  ;;  %v4783_v27 = vpop.f32.mrb[208].mxu0 }
 0x4b5   : > { %v5656_v13 = vmax.f32 %v5341_v6, 0.0  ;;  %v4784_v2 = vadd.f32 %v4783_v27, %v12342_v46  ;;  %v4785_v9 = vpop.f32.mrb[209].mxu0 }
 0x4b6   : > { %v5781_v1 = vpack.c.bf16 %v5655_v36, %v5653_v32  ;;  %v4786_v40 = vadd.f32 %v4785_v9, %v12345_v18  ;;  %v4787_v22 = vpop.f32.mrb[210].mxu0 }
 0x4b7   : > { %v4788_v33 = vadd.f32 %v4787_v22, %v12342_v46  ;;  %v4789_v17 = vpop.f32.mrb[211].mxu0  ;;  %v5344_v49 = vpop.f32.mrb[132].mxu1  ;;  %v5782_v21 = vpack.c.bf16 %v5656_v13, %v5654_v10  ;;  %v4982_v56 = vmax.f32 %v4784_v2, 0.0 }
 0x4b8   : > { %v4790_v63 = vadd.f32 %v4789_v17, %v12345_v18  ;;  %v5345_v44 = vadd.f32 %v5344_v49, %v12575_v51  ;;  %v5346_v20 = vpop.f32.mrb[133].mxu1  ;;  %v4983_v47 = vmax.f32 %v4786_v40, 0.0 }
 0x4b9   : > { %v4984_v25 = vmax.f32 %v4788_v33, 0.0  ;;  %v5347_v28 = vadd.f32 %v5346_v20, %v12578_v61  ;;  %v5348_v35 = vpop.f32.mrb[134].mxu1  ;;  %6083 = vmatprep.mubr.bf16.mxu0 %v5782_v21 }
 0x4ba   : > { %v4985_v29 = vmax.f32 %v4790_v63, 0.0  ;;  %v5349_v3 = vadd.f32 %v5348_v35, %v12575_v51  ;;  %v5350_v57 = vpop.f32.mrb[135].mxu1  ;;  %6084 = vmatmul.mubr.bf16.vlgmr.msra.gmra.mrb[0].mxu0 %v5781_v1  ;;  %v5657_v31 = vmax.f32 %v5345_v44, 0.0 }
 0x4bb   : > { %v5351_v30 = vadd.f32 %v5350_v57, %v12578_v61  ;;  %v5070_v24 = vpack.c.bf16 %v4984_v25, %v4982_v56  ;;  %v5658_v15 = vmax.f32 %v5347_v28, 0.0 }
 0x4bc   : > { %v5659_v4 = vmax.f32 %v5349_v3, 0.0  ;;  %v5071_v62 = vpack.c.bf16 %v4985_v29, %v4983_v47 }
 0x4bd   : > { %v5660_v52 = vmax.f32 %v5351_v30, 0.0 }
 0x4be   : > { %v5783_v43 = vpack.c.bf16 %v5659_v4, %v5657_v31  ;;  %5532 = vmatprep.mubr.bf16.mxu1 %v5071_v62 }
 0x4bf   : > { %v5354_v39 = vpop.f32.mrb[136].mxu1  ;;  %5533 = vmatmul.mubr.bf16.gmra.mrb[208].mxu1 %v5070_v24  ;;  %v5784_v45 = vpack.c.bf16 %v5660_v52, %v5658_v15 }
 0x4c0   : > { %v5355_v7 = vadd.f32 %v5354_v39, %v12575_v51  ;;  %v5356_v58 = vpop.f32.mrb[137].mxu1 }
 0x4c1   : > { %v5357_v12 = vadd.f32 %v5356_v58, %v12578_v61  ;;  %v5358_v0 = vpop.f32.mrb[138].mxu1  ;;  %6093 = vmatprep.mubr.bf16.mxu0 %v5784_v45 }
 0x4c2   : > { %v5359_v8 = vadd.f32 %v5358_v0, %v12575_v51  ;;  %v5360_v59 = vpop.f32.mrb[139].mxu1  ;;  %6094 = vmatmul.mubr.bf16.gmra.mrb[4].mxu0 %v5783_v43  ;;  %v5661_v37 = vmax.f32 %v5355_v7, 0.0 }
 0x4c3   : > { %v5361_v11 = vadd.f32 %v5360_v59, %v12578_v61  ;;  %v5662_v32 = vmax.f32 %v5357_v12, 0.0  ;;  %v9642_v59 = vld [vmem:[%s14424_s3 + $0x504] ss:$8 sps:$4 sm:$0xff]  }
 0x4c4   : > { %v5663_v6 = vmax.f32 %v5359_v8, 0.0  ;;  %v9640_v8 = vld [vmem:[%s14424_s3 + $0x500] ss:$8 sps:$4 sm:$0xff]   ;;  %6930 = vmatprep.subr.bf16.mxu1 %v9642_v59 }
 0x4c5   : > { %v5664_v36 = vmax.f32 %v5361_v11, 0.0  ;;  %6931 = vmatpush1.bf16.msra.mxu1 %v9640_v8 }
 0x4c6   : > { %v5785_v27 = vpack.c.bf16 %v5663_v6, %v5661_v37 }
 0x4c7   : > { %v5364_v13 = vpop.f32.mrb[140].mxu1  ;;  %v5786_v2 = vpack.c.bf16 %v5664_v36, %v5662_v32 }
 0x4c8   : > { %v4793_v10 = vpop.f32.mrb[212].mxu0  ;;  %v5365_v1 = vadd.f32 %v5364_v13, %v12575_v51  ;;  %v5366_v22 = vpop.f32.mrb[141].mxu1 }
 0x4c9   : > { %v4794_v9 = vadd.f32 %v4793_v10, %v12342_v46  ;;  %v4795_v40 = vpop.f32.mrb[213].mxu0  ;;  %v5367_v17 = vadd.f32 %v5366_v22, %v12578_v61  ;;  %v5368_v21 = vpop.f32.mrb[142].mxu1  ;;  %6103 = vmatprep.mubr.bf16.mxu0 %v5786_v2 }
 0x4ca   : > { %v4796_v33 = vadd.f32 %v4795_v40, %v12345_v18  ;;  %v4797_v49 = vpop.f32.mrb[214].mxu0  ;;  %v5369_v44 = vadd.f32 %v5368_v21, %v12575_v51  ;;  %v5370_v56 = vpop.f32.mrb[143].mxu1  ;;  %6104 = vmatmul.mubr.bf16.gmra.mrb[8].mxu0 %v5785_v27  ;;  %v5665_v47 = vmax.f32 %v5365_v1, 0.0 }
 0x4cb   : > { %v4798_v63 = vadd.f32 %v4797_v49, %v12342_v46  ;;  %v4799_v20 = vpop.f32.mrb[215].mxu0  ;;  %v5371_v28 = vadd.f32 %v5370_v56, %v12578_v61  ;;  %v4986_v35 = vmax.f32 %v4794_v9, 0.0  ;;  %v5666_v30 = vmax.f32 %v5367_v17, 0.0 }
 0x4cc   : > { %v4800_v25 = vadd.f32 %v4799_v20, %v12345_v18  ;;  %v5667_v3 = vmax.f32 %v5369_v44, 0.0  ;;  %v4987_v57 = vmax.f32 %v4796_v33, 0.0 }
 0x4cd   : > { %v4988_v29 = vmax.f32 %v4798_v63, 0.0  ;;  %v5668_v31 = vmax.f32 %v5371_v28, 0.0 }
 0x4ce   : > { %v4989_v24 = vmax.f32 %v4800_v25, 0.0  ;;  %v5787_v4 = vpack.c.bf16 %v5667_v3, %v5665_v47 }
 0x4cf   : > { %v5072_v62 = vpack.c.bf16 %v4988_v29, %v4986_v35  ;;  %v5374_v15 = vpop.f32.mrb[144].mxu1  ;;  %v5788_v43 = vpack.c.bf16 %v5668_v31, %v5666_v30 }
 0x4d0   : > { %v5073_v52 = vpack.c.bf16 %v4989_v24, %v4987_v57  ;;  %v5375_v39 = vadd.f32 %v5374_v15, %v12575_v51  ;;  %v5376_v45 = vpop.f32.mrb[145].mxu1  ;;  %v9645_v15 = vld [vmem:[%s14424_s3 + $0x514] ss:$8 sps:$4 sm:$0xff]  }
 0x4d1   : > { %v5377_v7 = vadd.f32 %v5376_v45, %v12578_v61  ;;  %v5378_v58 = vpop.f32.mrb[146].mxu1  ;;  %6113 = vmatprep.mubr.bf16.mxu0 %v5788_v43  ;;  %6932 = vmatprep.subr.bf16.mxu1 %v9645_v15 }
 0x4d2   : > { %5542 = vmatprep.mubr.bf16.mxu1 %v5073_v52  ;;  %v5379_v12 = vadd.f32 %v5378_v58, %v12575_v51  ;;  %v5380_v0 = vpop.f32.mrb[147].mxu1  ;;  %6114 = vmatmul.mubr.bf16.gmra.mrb[12].mxu0 %v5787_v4  ;;  %v5669_v37 = vmax.f32 %v5375_v39, 0.0 }
 0x4d3   : > { %5543 = vmatmul.mubr.bf16.gmra.mrb[212].mxu1 %v5072_v62  ;;  %v5381_v11 = vadd.f32 %v5380_v0, %v12578_v61  ;;  %v5670_v32 = vmax.f32 %v5377_v7, 0.0  ;;  %v9643_v62 = vld [vmem:[%s14424_s3 + $0x510] ss:$8 sps:$4 sm:$0xff]  }
 0x4d4   : > { %v5671_v6 = vmax.f32 %v5379_v12, 0.0  ;;  %6933 = vmatpush1.bf16.msra.mxu1 %v9643_v62 }
 0x4d5   : > { %v5672_v36 = vmax.f32 %v5381_v11, 0.0 }
 0x4d6   : > { %v5789_v27 = vpack.c.bf16 %v5671_v6, %v5669_v37 }
 0x4d7   : > { %v5384_v10 = vpop.f32.mrb[148].mxu1  ;;  %v5790_v13 = vpack.c.bf16 %v5672_v36, %v5670_v32 }
 0x4d8   : > { %v5385_v2 = vadd.f32 %v5384_v10, %v12575_v51  ;;  %v5386_v9 = vpop.f32.mrb[149].mxu1  ;;  %v9648_v10 = vld [vmem:[%s14424_s3 + $0x524] ss:$8 sps:$4 sm:$0xff]  }
 0x4d9   : > { %v5387_v1 = vadd.f32 %v5386_v9, %v12578_v61  ;;  %v5388_v40 = vpop.f32.mrb[150].mxu1  ;;  %6123 = vmatprep.mubr.bf16.mxu0 %v5790_v13  ;;  %6934 = vmatprep.subr.bf16.mxu1 %v9648_v10 }
 0x4da   : > { %v5389_v22 = vadd.f32 %v5388_v40, %v12575_v51  ;;  %v4803_v33 = vpop.f32.mrb[216].mxu0  ;;  %v5390_v17 = vpop.f32.mrb[151].mxu1  ;;  %6124 = vmatmul.mubr.bf16.gmra.mrb[16].mxu0 %v5789_v27  ;;  %v5673_v44 = vmax.f32 %v5385_v2, 0.0  ;;  %v9646_v27 = vld [vmem:[%s14424_s3 + $0x520] ss:$8 sps:$4 sm:$0xff]  }
 0x4db   : > { %v4804_v49 = vadd.f32 %v4803_v33, %v12342_v46  ;;  %v5391_v21 = vadd.f32 %v5390_v17, %v12578_v61  ;;  %v4805_v63 = vpop.f32.mrb[217].mxu0  ;;  %v5674_v28 = vmax.f32 %v5387_v1, 0.0  ;;  %v9651_v2 = vld [vmem:[%s14424_s3 + $0x534] ss:$8 sps:$4 sm:$0xff]   ;;  %6935 = vmatpush1.bf16.msra.mxu1 %v9646_v27  ;;  %v9649_v33 = vld [vmem:[%s14424_s3 + $0x530] ss:$8 sps:$4 sm:$0xff]  }
 0x4dc   : > { %v5675_v20 = vmax.f32 %v5389_v22, 0.0  ;;  %v4806_v56 = vadd.f32 %v4805_v63, %v12345_v18  ;;  %v4807_v25 = vpop.f32.mrb[218].mxu0  ;;  %6936 = vmatprep.subr.bf16.mxu1 %v9651_v2 }
 0x4dd   : > { %v5676_v35 = vmax.f32 %v5391_v21, 0.0  ;;  %v4808_v47 = vadd.f32 %v4807_v25, %v12342_v46  ;;  %v4809_v29 = vpop.f32.mrb[219].mxu0  ;;  %v4990_v57 = vmax.f32 %v4804_v49, 0.0 }
 0x4de   : > { %v5791_v3 = vpack.c.bf16 %v5675_v20, %v5673_v44  ;;  %v4810_v30 = vadd.f32 %v4809_v29, %v12345_v18  ;;  %v4991_v52 = vmax.f32 %v4806_v56, 0.0  ;;  %v9654_v44 = vld [vmem:[%s14424_s3 + $0x544] ss:$8 sps:$4 sm:$0xff]  }
 0x4df   : > { %v4992_v24 = vmax.f32 %v4808_v47, 0.0  ;;  %v5394_v31 = vpop.f32.mrb[152].mxu1  ;;  %v5792_v4 = vpack.c.bf16 %v5676_v35, %v5674_v28  ;;  %6937 = vmatpush1.bf16.msra.mxu1 %v9649_v33  ;;  %v9652_v28 = vld [vmem:[%s14424_s3 + $0x540] ss:$8 sps:$4 sm:$0xff]  }
 0x4e0   : > { %v4993_v43 = vmax.f32 %v4810_v30, 0.0  ;;  %v5395_v39 = vadd.f32 %v5394_v31, %v12575_v51  ;;  %v5396_v45 = vpop.f32.mrb[153].mxu1  ;;  %6938 = vmatprep.subr.bf16.mxu1 %v9654_v44  ;;  %v9658_v33 = vld [vmem:[%s14424_s3 + $0x560] ss:$8 sps:$4 sm:$0xff]   ;;  %v9663_v44 = vld [vmem:[%s14424_s3 + $0x574] ss:$8 sps:$4 sm:$0xff]  }
 0x4e1   : > { %v5397_v7 = vadd.f32 %v5396_v45, %v12578_v61  ;;  %v5398_v58 = vpop.f32.mrb[154].mxu1  ;;  %6133 = vmatprep.mubr.bf16.mxu0 %v5792_v4  ;;  %v5074_v12 = vpack.c.bf16 %v4992_v24, %v4990_v57 }
 0x4e2   : > { %v5399_v0 = vadd.f32 %v5398_v58, %v12575_v51  ;;  %v5400_v8 = vpop.f32.mrb[155].mxu1  ;;  %6134 = vmatmul.mubr.bf16.gmra.mrb[20].mxu0 %v5791_v3  ;;  %v5075_v59 = vpack.c.bf16 %v4993_v43, %v4991_v52  ;;  %v5677_v37 = vmax.f32 %v5395_v39, 0.0 }
 0x4e3   : > { %v5401_v11 = vadd.f32 %v5400_v8, %v12578_v61  ;;  %v5678_v32 = vmax.f32 %v5397_v7, 0.0  ;;  %6939 = vmatpush1.bf16.msra.mxu1 %v9652_v28 }
 0x4e4   : > { %v5679_v6 = vmax.f32 %v5399_v0, 0.0  ;;  %5552 = vmatprep.mubr.bf16.mxu1 %v5075_v59 }
 0x4e5   : > { %v5680_v36 = vmax.f32 %v5401_v11, 0.0  ;;  %5553 = vmatmul.mubr.bf16.gmra.mrb[216].mxu1 %v5074_v12  ;;  %v9655_v11 = vld [vmem:[%s14424_s3 + $0x550] ss:$8 sps:$4 sm:$0xff]  }
 0x4e6   : > { %v5793_v13 = vpack.c.bf16 %v5679_v6, %v5677_v37 }
 0x4e7   : > { %v5404_v9 = vpop.f32.mrb[156].mxu1  ;;  %v5794_v1 = vpack.c.bf16 %v5680_v36, %v5678_v32  ;;  %v9657_v36 = vld [vmem:[%s14424_s3 + $0x554] ss:$8 sps:$4 sm:$0xff]  }
 0x4e8   : > { %v5405_v40 = vadd.f32 %v5404_v9, %v12575_v51  ;;  %v5406_v22 = vpop.f32.mrb[157].mxu1  ;;  %6940 = vmatprep.subr.bf16.mxu1 %v9657_v36  ;;  %v9667_v36 = vld [vmem:[%s14424_s3 + $0x590] ss:$8 sps:$4 sm:$0xff]  }
 0x4e9   : > { %v5407_v17 = vadd.f32 %v5406_v22, %v12578_v61  ;;  %v5408_v49 = vpop.f32.mrb[158].mxu1  ;;  %6143 = vmatprep.mubr.bf16.mxu0 %v5794_v1  ;;  %6941 = vmatpush1.bf16.msra.mxu1 %v9655_v11 }
 0x4ea   : > { %v5409_v21 = vadd.f32 %v5408_v49, %v12575_v51  ;;  %v5410_v63 = vpop.f32.mrb[159].mxu1  ;;  %6144 = vmatmul.mubr.bf16.gmra.mrb[24].mxu0 %v5793_v13  ;;  %v5681_v56 = vmax.f32 %v5405_v40, 0.0  ;;  %v9660_v40 = vld [vmem:[%s14424_s3 + $0x564] ss:$8 sps:$4 sm:$0xff]  }
 0x4eb   : > { %v5411_v20 = vadd.f32 %v5410_v63, %v12578_v61  ;;  %v5682_v35 = vmax.f32 %v5407_v17, 0.0  ;;  %6942 = vmatprep.subr.bf16.mxu1 %v9660_v40 }
 0x4ec   : > { %v5683_v25 = vmax.f32 %v5409_v21, 0.0 }
 0x4ed   : > { %v5684_v47 = vmax.f32 %v5411_v20, 0.0  ;;  %6943 = vmatpush1.bf16.msra.mxu1 %v9658_v33 }
 0x4ee   : > { %v4813_v29 = vpop.f32.mrb[220].mxu0  ;;  %v5795_v3 = vpack.c.bf16 %v5683_v25, %v5681_v56  ;;  %6944 = vmatprep.subr.bf16.mxu1 %v9663_v44 }
 0x4ef   : > { %v4814_v57 = vadd.f32 %v4813_v29, %v12342_v46  ;;  %v4815_v30 = vpop.f32.mrb[221].mxu0  ;;  %v5414_v4 = vpop.f32.mrb[160].mxu1  ;;  %v5796_v62 = vpack.c.bf16 %v5684_v47, %v5682_v35  ;;  %v9661_v35 = vld [vmem:[%s14424_s3 + $0x570] ss:$8 sps:$4 sm:$0xff]   ;;  %v9666_v29 = vld [vmem:[%s14424_s3 + $0x584] ss:$8 sps:$4 sm:$0xff]  }
 0x4f0   : > { %v4816_v24 = vadd.f32 %v4815_v30, %v12345_v18  ;;  %v4817_v31 = vpop.f32.mrb[222].mxu0  ;;  %v5415_v52 = vadd.f32 %v5414_v4, %v12575_v51  ;;  %v5416_v39 = vpop.f32.mrb[161].mxu1  ;;  %v9664_v4 = vld [vmem:[%s14424_s3 + $0x580] ss:$8 sps:$4 sm:$0xff]  }
 0x4f1   : > { %v4818_v15 = vadd.f32 %v4817_v31, %v12342_v46  ;;  %v4819_v43 = vpop.f32.mrb[223].mxu0  ;;  %v5417_v7 = vadd.f32 %v5416_v39, %v12578_v61  ;;  %v5418_v58 = vpop.f32.mrb[162].mxu1  ;;  %6153 = vmatprep.mubr.bf16.mxu0 %v5796_v62  ;;  %v4994_v12 = vmax.f32 %v4814_v57, 0.0  ;;  %6945 = vmatpush1.bf16.msra.mxu1 %v9661_v35 }
 0x4f2   : > { %v4820_v45 = vadd.f32 %v4819_v43, %v12345_v18  ;;  %v5419_v8 = vadd.f32 %v5418_v58, %v12575_v51  ;;  %v5420_v59 = vpop.f32.mrb[163].mxu1  ;;  %6154 = vmatmul.mubr.bf16.gmra.mrb[28].mxu0 %v5795_v3  ;;  %v4995_v37 = vmax.f32 %v4816_v24, 0.0  ;;  %v5685_v27 = vmax.f32 %v5415_v52, 0.0  ;;  %6946 = vmatprep.subr.bf16.mxu1 %v9666_v29  ;;  %v9669_v43 = vld [vmem:[%s14424_s3 + $0x594] ss:$8 sps:$4 sm:$0xff]  }
 0x4f3   : > { %v4996_v0 = vmax.f32 %v4818_v15, 0.0  ;;  %v5421_v32 = vadd.f32 %v5420_v59, %v12578_v61  ;;  %v5686_v2 = vmax.f32 %v5417_v7, 0.0 }
 0x4f4   : > { %v4997_v6 = vmax.f32 %v4820_v45, 0.0  ;;  %v5687_v10 = vmax.f32 %v5419_v8, 0.0 }
 0x4f5   : > { %v5076_v13 = vpack.c.bf16 %v4996_v0, %v4994_v12  ;;  %v5688_v9 = vmax.f32 %v5421_v32, 0.0  ;;  %6947 = vmatpush1.bf16.msra.mxu1 %v9664_v4 }
 0x4f6   : > { %v5077_v1 = vpack.c.bf16 %v4997_v6, %v4995_v37  ;;  %v5797_v22 = vpack.c.bf16 %v5687_v10, %v5685_v27  ;;  %6948 = vmatprep.subr.bf16.mxu1 %v9669_v43 }
 0x4f7   : > { %v5424_v17 = vpop.f32.mrb[164].mxu1  ;;  %v5798_v49 = vpack.c.bf16 %v5688_v9, %v5686_v2 }
 0x4f8   : > { %5562 = vmatprep.mubr.bf16.mxu1 %v5077_v1  ;;  %v5425_v21 = vadd.f32 %v5424_v17, %v12575_v51  ;;  %v5426_v63 = vpop.f32.mrb[165].mxu1 }
 0x4f9   : > { %5563 = vmatmul.mubr.bf16.gmra.mrb[220].mxu1 %v5076_v13  ;;  %v5427_v20 = vadd.f32 %v5426_v63, %v12578_v61  ;;  %v5428_v56 = vpop.f32.mrb[166].mxu1  ;;  %6163 = vmatprep.mubr.bf16.mxu0 %v5798_v49  ;;  %v9672_v63 = vld [vmem:[%s14424_s3 + $0x5a4] ss:$8 sps:$4 sm:$0xff]  }
 0x4fa   : > { %v5429_v25 = vadd.f32 %v5428_v56, %v12575_v51  ;;  %v5430_v28 = vpop.f32.mrb[167].mxu1  ;;  %6164 = vmatmul.mubr.bf16.gmra.mrb[32].mxu0 %v5797_v22  ;;  %v5689_v3 = vmax.f32 %v5425_v21, 0.0  ;;  %6949 = vmatpush1.bf16.msra.mxu1 %v9667_v36  ;;  %v9681_v36 = vld [vmem:[%s14424_s3 + $0x5d4] ss:$8 sps:$4 sm:$0xff]  }
 0x4fb   : > { %v5431_v47 = vadd.f32 %v5430_v28, %v12578_v61  ;;  %v5690_v30 = vmax.f32 %v5427_v20, 0.0  ;;  %6950 = vmatprep.subr.bf16.mxu1 %v9672_v63 }
 0x4fc   : > { %v5691_v57 = vmax.f32 %v5429_v25, 0.0  ;;  %v9670_v25 = vld [vmem:[%s14424_s3 + $0x5a0] ss:$8 sps:$4 sm:$0xff]  }
 0x4fd   : > { %v5692_v24 = vmax.f32 %v5431_v47, 0.0 }
 0x4fe   : > { %v5799_v31 = vpack.c.bf16 %v5691_v57, %v5689_v3  ;;  %v9675_v3 = vld [vmem:[%s14424_s3 + $0x5b4] ss:$8 sps:$4 sm:$0xff]   ;;  %6951 = vmatpush1.bf16.msra.mxu1 %v9670_v25 }
 0x4ff   : > { %v5434_v62 = vpop.f32.mrb[168].mxu1  ;;  %v5800_v52 = vpack.c.bf16 %v5692_v24, %v5690_v30  ;;  %6952 = vmatprep.subr.bf16.mxu1 %v9675_v3 }
 0x500   : > { %v4823_v15 = vpop.f32.mrb[224].mxu0  ;;  %v5435_v39 = vadd.f32 %v5434_v62, %v12575_v51  ;;  %v5436_v7 = vpop.f32.mrb[169].mxu1 }
 0x501   : > { %v4824_v45 = vadd.f32 %v4823_v15, %v12342_v46  ;;  %v4825_v58 = vpop.f32.mrb[225].mxu0  ;;  %v5437_v12 = vadd.f32 %v5436_v7, %v12578_v61  ;;  %v5438_v8 = vpop.f32.mrb[170].mxu1  ;;  %6173 = vmatprep.mubr.bf16.mxu0 %v5800_v52  ;;  %v9678_v15 = vld [vmem:[%s14424_s3 + $0x5c4] ss:$8 sps:$4 sm:$0xff]  }
 0x502   : > { %v4826_v0 = vadd.f32 %v4825_v58, %v12345_v18  ;;  %v4827_v59 = vpop.f32.mrb[226].mxu0  ;;  %v5439_v11 = vadd.f32 %v5438_v8, %v12575_v51  ;;  %v5440_v6 = vpop.f32.mrb[171].mxu1  ;;  %6174 = vmatmul.mubr.bf16.gmra.mrb[36].mxu0 %v5799_v31  ;;  %v5693_v13 = vmax.f32 %v5435_v39, 0.0  ;;  %v9673_v31 = vld [vmem:[%s14424_s3 + $0x5b0] ss:$8 sps:$4 sm:$0xff]  }
 0x503   : > { %v4828_v37 = vadd.f32 %v4827_v59, %v12342_v46  ;;  %v4829_v32 = vpop.f32.mrb[227].mxu0  ;;  %v5441_v27 = vadd.f32 %v5440_v6, %v12578_v61  ;;  %v4998_v2 = vmax.f32 %v4824_v45, 0.0  ;;  %v5694_v40 = vmax.f32 %v5437_v12, 0.0  ;;  %6953 = vmatpush1.bf16.msra.mxu1 %v9673_v31  ;;  %v9676_v58 = vld [vmem:[%s14424_s3 + $0x5c0] ss:$8 sps:$4 sm:$0xff]  }
 0x504   : > { %v4830_v10 = vadd.f32 %v4829_v32, %v12345_v18  ;;  %v5695_v9 = vmax.f32 %v5439_v11, 0.0  ;;  %v4999_v22 = vmax.f32 %v4826_v0, 0.0  ;;  %6954 = vmatprep.subr.bf16.mxu1 %v9678_v15  ;;  %v9679_v32 = vld [vmem:[%s14424_s3 + $0x5d0] ss:$8 sps:$4 sm:$0xff]  }
 0x505   : > { %v5000_v1 = vmax.f32 %v4828_v37, 0.0  ;;  %v5696_v33 = vmax.f32 %v5441_v27, 0.0 }
 0x506   : > { %v5001_v17 = vmax.f32 %v4830_v10, 0.0  ;;  %v5801_v49 = vpack.c.bf16 %v5695_v9, %v5693_v13 }
 0x507   : > { %v5078_v21 = vpack.c.bf16 %v5000_v1, %v4998_v2  ;;  %v5444_v44 = vpop.f32.mrb[172].mxu1  ;;  %v5802_v20 = vpack.c.bf16 %v5696_v33, %v5694_v40  ;;  %6955 = vmatpush1.bf16.msra.mxu1 %v9676_v58 }
 0x508   : > { %v5079_v56 = vpack.c.bf16 %v5001_v17, %v4999_v22  ;;  %v5445_v28 = vadd.f32 %v5444_v44, %v12575_v51  ;;  %v5446_v35 = vpop.f32.mrb[173].mxu1  ;;  %6956 = vmatprep.subr.bf16.mxu1 %v9681_v36 }
 0x509   : > { %v5447_v47 = vadd.f32 %v5446_v35, %v12578_v61  ;;  %v5448_v29 = vpop.f32.mrb[174].mxu1  ;;  %6183 = vmatprep.mubr.bf16.mxu0 %v5802_v20 }
 0x50a   : > { %5572 = vmatprep.mubr.bf16.mxu1 %v5079_v56  ;;  %v5449_v57 = vadd.f32 %v5448_v29, %v12575_v51  ;;  %v5450_v30 = vpop.f32.mrb[175].mxu1  ;;  %6184 = vmatmul.mubr.bf16.gmra.mrb[40].mxu0 %v5801_v49  ;;  %v5697_v4 = vmax.f32 %v5445_v28, 0.0  ;;  %v9684_v49 = vld [vmem:[%s14424_s3 + $0x5e4] ss:$8 sps:$4 sm:$0xff]   ;;  %v9682_v56 = vld [vmem:[%s14424_s3 + $0x5e0] ss:$8 sps:$4 sm:$0xff]  }
 0x50b   : > { %5573 = vmatmul.mubr.bf16.gmra.mrb[224].mxu1 %v5078_v21  ;;  %v5451_v24 = vadd.f32 %v5450_v30, %v12578_v61  ;;  %v5698_v52 = vmax.f32 %v5447_v47, 0.0 }
 0x50c   : > { %v5699_v62 = vmax.f32 %v5449_v57, 0.0  ;;  %6957 = vmatpush1.bf16.msra.mxu1 %v9679_v32 }
 0x50d   : > { %v5700_v43 = vmax.f32 %v5451_v24, 0.0  ;;  %6958 = vmatprep.subr.bf16.mxu1 %v9684_v49 }
 0x50e   : > { %v5803_v39 = vpack.c.bf16 %v5699_v62, %v5697_v4 }
 0x50f   : > { %v5454_v45 = vpop.f32.mrb[176].mxu1  ;;  %v5804_v7 = vpack.c.bf16 %v5700_v43, %v5698_v52  ;;  %v9687_v52 = vld [vmem:[%s14424_s3 + $0x5f4] ss:$8 sps:$4 sm:$0xff]  }
 0x510   : > { %v5455_v12 = vadd.f32 %v5454_v45, %v12575_v51  ;;  %v5456_v0 = vpop.f32.mrb[177].mxu1  ;;  %6959 = vmatpush1.bf16.msra.mxu1 %v9682_v56 }
 0x511   : > { %v5457_v8 = vadd.f32 %v5456_v0, %v12578_v61  ;;  %v5458_v59 = vpop.f32.mrb[178].mxu1  ;;  %6193 = vmatprep.mubr.bf16.mxu0 %v5804_v7  ;;  %v9685_v7 = vld [vmem:[%s14424_s3 + $0x5f0] ss:$8 sps:$4 sm:$0xff]   ;;  %6960 = vmatprep.subr.bf16.mxu1 %v9687_v52 }
 0x512   : > { %v5459_v11 = vadd.f32 %v5458_v59, %v12575_v51  ;;  %v5460_v37 = vpop.f32.mrb[179].mxu1  ;;  %6194 = vmatmul.mubr.bf16.gmra.mrb[44].mxu0 %v5803_v39  ;;  %v5701_v27 = vmax.f32 %v5455_v12, 0.0 }
 0x513   : > { %v5461_v6 = vadd.f32 %v5460_v37, %v12578_v61  ;;  %v5702_v2 = vmax.f32 %v5457_v8, 0.0 }
 0x514   : > { %v5703_v10 = vmax.f32 %v5459_v11, 0.0  ;;  %6961 = vmatpush1.bf16.msra.mxu1 %v9685_v7 }
 0x515   : > { %v4833_v13 = vpop.f32.mrb[228].mxu0  ;;  %v5704_v9 = vmax.f32 %v5461_v6, 0.0  ;;  %v14858_v6 = vmov 0  }
 0x516   : > { %v4834_v1 = vadd.f32 %v4833_v13, %v12342_v46  ;;  %v4835_v40 = vpop.f32.mrb[229].mxu0  ;;  %v5805_v22 = vpack.c.bf16 %v5703_v10, %v5701_v27  ;;  %8354 = vmatprep.subr.bf16.mxu1 %v14858_v6 }
 0x517   : > { %v4836_v33 = vadd.f32 %v4835_v40, %v12345_v18  ;;  %v4837_v17 = vpop.f32.mrb[230].mxu0  ;;  %v5464_v44 = vpop.f32.mrb[180].mxu1  ;;  %v5806_v20 = vpack.c.bf16 %v5704_v9, %v5702_v2 }
 0x518   : > { %v4838_v21 = vadd.f32 %v4837_v17, %v12342_v46  ;;  %v4839_v63 = vpop.f32.mrb[231].mxu0  ;;  %v5465_v28 = vadd.f32 %v5464_v44, %v12575_v51  ;;  %v5466_v35 = vpop.f32.mrb[181].mxu1  ;;  %v5002_v47 = vmax.f32 %v4834_v1, 0.0 }
 0x519   : > { %v4840_v25 = vadd.f32 %v4839_v63, %v12345_v18  ;;  %v5467_v3 = vadd.f32 %v5466_v35, %v12578_v61  ;;  %v5468_v57 = vpop.f32.mrb[182].mxu1  ;;  %6203 = vmatprep.mubr.bf16.mxu0 %v5806_v20  ;;  %v5003_v30 = vmax.f32 %v4836_v33, 0.0 }
 0x51a   : > { %v5004_v29 = vmax.f32 %v4838_v21, 0.0  ;;  %v5469_v31 = vadd.f32 %v5468_v57, %v12575_v51  ;;  %v5470_v4 = vpop.f32.mrb[183].mxu1  ;;  %6204 = vmatmul.mubr.bf16.gmra.mrb[48].mxu0 %v5805_v22  ;;  %v5705_v43 = vmax.f32 %v5465_v28, 0.0 }
 0x51b   : > { %v5005_v24 = vmax.f32 %v4840_v25, 0.0  ;;  %v5471_v62 = vadd.f32 %v5470_v4, %v12578_v61  ;;  %v5706_v58 = vmax.f32 %v5467_v3, 0.0 }
 0x51c   : > { %v5080_v15 = vpack.c.bf16 %v5004_v29, %v5002_v47  ;;  %v5707_v39 = vmax.f32 %v5469_v31, 0.0 }
 0x51d   : > { %v5081_v45 = vpack.c.bf16 %v5005_v24, %v5003_v30  ;;  %v5708_v12 = vmax.f32 %v5471_v62, 0.0 }
 0x51e   : > { %v5807_v0 = vpack.c.bf16 %v5707_v39, %v5705_v43 }
 0x51f   : > { %5582 = vmatprep.mubr.bf16.mxu1 %v5081_v45  ;;  %v5808_v8 = vpack.c.bf16 %v5708_v12, %v5706_v58 }
 0x520   : > { %5583 = vmatmul.mubr.bf16.gmra.mrb[228].mxu1 %v5080_v15 }
 0x521   : > { %v5474_v59 = vpop.f32.mrb[184].mxu1  ;;  %6213 = vmatprep.mubr.bf16.mxu0 %v5808_v8 }
 0x522   : > { %v5475_v11 = vadd.f32 %v5474_v59, %v12575_v51  ;;  %v5476_v37 = vpop.f32.mrb[185].mxu1  ;;  %6214 = vmatmul.mubr.bf16.gmra.mrb[52].mxu0 %v5807_v0 }
 0x523   : > { %v5477_v32 = vadd.f32 %v5476_v37, %v12578_v61  ;;  %v5478_v36 = vpop.f32.mrb[186].mxu1 }
 0x524   : > { %v5479_v27 = vadd.f32 %v5478_v36, %v12575_v51  ;;  %v5480_v10 = vpop.f32.mrb[187].mxu1  ;;  %v5709_v2 = vmax.f32 %v5475_v11, 0.0 }
 0x525   : > { %v5481_v13 = vadd.f32 %v5480_v10, %v12578_v61  ;;  %v5710_v1 = vmax.f32 %v5477_v32, 0.0 }
 0x526   : > { %v5711_v9 = vmax.f32 %v5479_v27, 0.0  ;;  %v4843_v22 = vpop.f32.mrb[232].mxu0 }
 0x527   : > { %v5712_v40 = vmax.f32 %v5481_v13, 0.0  ;;  %v4844_v17 = vadd.f32 %v4843_v22, %v12342_v46  ;;  %v4845_v49 = vpop.f32.mrb[233].mxu0 }
 0x528   : > { %v5809_v33 = vpack.c.bf16 %v5711_v9, %v5709_v2  ;;  %v4846_v21 = vadd.f32 %v4845_v49, %v12345_v18  ;;  %v4847_v63 = vpop.f32.mrb[234].mxu0 }
 0x529   : > { %v5810_v44 = vpack.c.bf16 %v5712_v40, %v5710_v1  ;;  %v4848_v20 = vadd.f32 %v4847_v63, %v12342_v46  ;;  %v4849_v56 = vpop.f32.mrb[235].mxu0  ;;  %v5006_v28 = vmax.f32 %v4844_v17, 0.0 }
 0x52a   : > { %v4850_v25 = vadd.f32 %v4849_v56, %v12345_v18  ;;  %v5007_v47 = vmax.f32 %v4846_v21, 0.0 }
 0x52b   : > { %6223 = vmatprep.mubr.bf16.mxu0 %v5810_v44  ;;  %v5008_v35 = vmax.f32 %v4848_v20, 0.0 }
 0x52c   : > { %6224 = vmatmul.mubr.bf16.gmra.mrb[56].mxu0 %v5809_v33  ;;  %v5009_v29 = vmax.f32 %v4850_v25, 0.0 }
 0x52d   : > { %v5082_v3 = vpack.c.bf16 %v5008_v35, %v5006_v28 }
 0x52e   : > { %v5083_v57 = vpack.c.bf16 %v5009_v29, %v5007_v47 }
 0x530   : > { %5592 = vmatprep.mubr.bf16.mxu1 %v5083_v57 }
 0x531   : > { %5593 = vmatmul.mubr.bf16.gmra.mrb[232].mxu1 %v5082_v3 }
 0x532   : > { %v5484_v30 = vpop.f32.mrb[188].mxu1 }
 0x533   : > { %v5485_v24 = vadd.f32 %v5484_v30, %v12575_v51  ;;  %v5486_v31 = vpop.f32.mrb[189].mxu1 }
 0x534   : > { %v5487_v4 = vadd.f32 %v5486_v31, %v12578_v61  ;;  %v5488_v62 = vpop.f32.mrb[190].mxu1 }
 0x535   : > { %v5489_v15 = vadd.f32 %v5488_v62, %v12575_v51  ;;  %v5490_v52 = vpop.f32.mrb[191].mxu1  ;;  %v5713_v39 = vmax.f32 %v5485_v24, 0.0 }
 0x536   : > { %v5491_v43 = vadd.f32 %v5490_v52, %v12578_v61  ;;  %v5714_v7 = vmax.f32 %v5487_v4, 0.0 }
 0x537   : > { %v5715_v45 = vmax.f32 %v5489_v15, 0.0 }
 0x538   : > { %v5716_v58 = vmax.f32 %v5491_v43, 0.0 }
 0x539   : > { %v5811_v12 = vpack.c.bf16 %v5715_v45, %v5713_v39  ;;  %v4853_v0 = vpop.f32.mrb[236].mxu0 }
 0x53a   : > { %v4854_v8 = vadd.f32 %v4853_v0, %v12342_v46  ;;  %v4855_v59 = vpop.f32.mrb[237].mxu0  ;;  %v5812_v11 = vpack.c.bf16 %v5716_v58, %v5714_v7 }
 0x53b   : > { %v4856_v37 = vadd.f32 %v4855_v59, %v12345_v18  ;;  %v4857_v32 = vpop.f32.mrb[238].mxu0 }
 0x53c   : > { %v4858_v36 = vadd.f32 %v4857_v32, %v12342_v46  ;;  %v4859_v27 = vpop.f32.mrb[239].mxu0  ;;  %6233 = vmatprep.mubr.bf16.mxu0 %v5812_v11  ;;  %v5010_v13 = vmax.f32 %v4854_v8, 0.0 }
 0x53d   : > { %v4860_v10 = vadd.f32 %v4859_v27, %v12345_v18  ;;  %6234 = vmatmul.mubr.bf16.gmra.mrb[60].mxu0 %v5811_v12  ;;  %v5011_v9 = vmax.f32 %v4856_v37, 0.0 }
 0x53e   : > { %v5012_v2 = vmax.f32 %v4858_v36, 0.0 }
 0x53f   : > { %v5013_v1 = vmax.f32 %v4860_v10, 0.0 }
 0x540   : > { %v5084_v40 = vpack.c.bf16 %v5012_v2, %v5010_v13 }
 0x541   : > { %v5085_v22 = vpack.c.bf16 %v5013_v1, %v5011_v9 }
 0x543   : > { %5602 = vmatprep.mubr.bf16.mxu1 %v5085_v22 }
 0x544   : > { %5603 = vmatmul.mubr.bf16.gmra.mrb[236].mxu1 %v5084_v40 }
 0x545   : > { %v5494_v33 = vpop.f32.mrb[192].mxu1 }
 0x546   : > { %v5495_v17 = vadd.f32 %v5494_v33, %v12575_v51  ;;  %v5496_v49 = vpop.f32.mrb[193].mxu1 }
 0x547   : > { %v5497_v21 = vadd.f32 %v5496_v49, %v12578_v61  ;;  %v5498_v63 = vpop.f32.mrb[194].mxu1 }
 0x548   : > { %v5499_v44 = vadd.f32 %v5498_v63, %v12575_v51  ;;  %v5500_v20 = vpop.f32.mrb[195].mxu1  ;;  %v5717_v25 = vmax.f32 %v5495_v17, 0.0 }
 0x549   : > { %v5501_v56 = vadd.f32 %v5500_v20, %v12578_v61  ;;  %v5718_v35 = vmax.f32 %v5497_v21, 0.0 }
 0x54a   : > { %v5719_v28 = vmax.f32 %v5499_v44, 0.0 }
 0x54b   : > { %v5720_v47 = vmax.f32 %v5501_v56, 0.0 }
 0x54c   : > { %v5813_v29 = vpack.c.bf16 %v5719_v28, %v5717_v25  ;;  %v4863_v3 = vpop.f32.mrb[240].mxu0 }
 0x54d   : > { %v4864_v57 = vadd.f32 %v4863_v3, %v12342_v46  ;;  %v4865_v30 = vpop.f32.mrb[241].mxu0  ;;  %v5814_v24 = vpack.c.bf16 %v5720_v47, %v5718_v35 }
 0x54e   : > { %v4866_v31 = vadd.f32 %v4865_v30, %v12345_v18  ;;  %v4867_v4 = vpop.f32.mrb[242].mxu0  ;;  %v14860_v30 = vld [vmem:[#allocation2_spill] sm:$0xff] }
 0x54f   : > { %v4868_v62 = vadd.f32 %v4867_v4, %v12342_v46  ;;  %v4869_v15 = vpop.f32.mrb[243].mxu0  ;;  %6243 = vmatprep.mubr.bf16.mxu0 %v5814_v24  ;;  %v5014_v43 = vmax.f32 %v4864_v57, 0.0  ;;  %v2131_v24 = vmul.f32 %v11257_v41, %v14860_v30  ;;  %v14861_v4 = vld [vmem:[#allocation3_spill] sm:$0xff] }
 0x550   : > { %v4870_v52 = vadd.f32 %v4869_v15, %v12345_v18  ;;  %6244 = vmatmul.mubr.bf16.gmra.mrb[64].mxu0 %v5813_v29  ;;  %v5015_v45 = vmax.f32 %v4866_v31, 0.0  ;;  %v14859_v29 = vld [vmem:[#allocation11_spill] sm:$0xff]  ;;  %v2132_v15 = vmul.f32 %v11272_v26, %v14860_v30 }
 0x551   : > { %v5016_v39 = vmax.f32 %v4868_v62, 0.0  ;;  %v2135_v3 = vmul.f32 %v11257_v41, %v14859_v29  ;;  %v2136_v31 = vmul.f32 %v11272_v26, %v14859_v29  ;;  %v2395_v62 = vmul.f32 %v11252_v38, %v14861_v4 }
 0x552   : > { %v5017_v7 = vmax.f32 %v4870_v52, 0.0  ;;  %v2396_v52 = vmul.f32 %v11260_v54, %v14861_v4 }
 0x553   : > { %v5086_v58 = vpack.c.bf16 %v5016_v39, %v5014_v43  ;;  %v14862_v43 = vld [vmem:[#allocation9_spill] sm:$0xff] }
 0x554   : > { %v5087_v12 = vpack.c.bf16 %v5017_v7, %v5015_v45  ;;  %v1999_v39 = vmul.f32 %v11239_v50, %v14862_v43  ;;  %v14863_v45 = vld [vmem:[#allocation4_spill] sm:$0xff] }
 0x555   : > { %v2133_v7 = vmul.f32 %v11257_v41, %v14863_v45 }
 0x556   : > { %5612 = vmatprep.mubr.bf16.mxu1 %v5087_v12  ;;  %v14864_v12 = vld [vmem:[#allocation5_spill] sm:$0xff] }
 0x557   : > { %5613 = vmatmul.mubr.bf16.gmra.mrb[240].mxu1 %v5086_v58  ;;  %v2134_v58 = vmul.f32 %v11272_v26, %v14863_v45  ;;  %v14872_v45 = vld [vmem:[#allocation15_spill] sm:$0xff] }
 0x558   : > { %v5504_v0 = vpop.f32.mrb[196].mxu1 }
 0x559   : > { %v5505_v8 = vadd.f32 %v5504_v0, %v12575_v51  ;;  %v5506_v59 = vpop.f32.mrb[197].mxu1  ;;  %v2399_v0 = vmul.f32 %v11252_v38, %v14864_v12 }
 0x55a   : > { %v5507_v11 = vadd.f32 %v5506_v59, %v12578_v61  ;;  %v5508_v37 = vpop.f32.mrb[198].mxu1  ;;  %v2263_v59 = vadd.f32 %v2135_v3, %v1999_v39 }
 0x55b   : > { %v5509_v32 = vadd.f32 %v5508_v37, %v12575_v51  ;;  %v5510_v36 = vpop.f32.mrb[199].mxu1  ;;  %v5721_v10 = vmax.f32 %v5505_v8, 0.0  ;;  %v2000_v8 = vmul.f32 %v11249_v53, %v14862_v43  ;;  %v14865_v37 = vld [vmem:[#allocation6_spill] sm:$0xff] }
 0x55c   : > { %v5511_v27 = vadd.f32 %v5510_v36, %v12578_v61  ;;  %v5722_v2 = vmax.f32 %v5507_v11, 0.0  ;;  %v2400_v11 = vmul.f32 %v11260_v54, %v14864_v12  ;;  %v12819_v36 = vmul.f32 %v11260_v54, %v14865_v37 }
 0x55d   : > { %v5723_v13 = vmax.f32 %v5509_v32, 0.0  ;;  %v12815_v32 = vmul.f32 %v11252_v38, %v14865_v37  ;;  %v2137_v12 = vmul.f32 %v11257_v41, %v14872_v45 }
 0x55e   : > { %v5724_v9 = vmax.f32 %v5511_v27, 0.0 }
 0x55f   : > { %v5815_v1 = vpack.c.bf16 %v5723_v13, %v5721_v10  ;;  %v4873_v40 = vpop.f32.mrb[244].mxu0  ;;  %v14866_v10 = vld [vmem:[#allocation7_spill] sm:$0xff] }
 0x560   : > { %v4874_v22 = vadd.f32 %v4873_v40, %v12342_v46  ;;  %v4875_v33 = vpop.f32.mrb[245].mxu0  ;;  %v5816_v17 = vpack.c.bf16 %v5724_v9, %v5722_v2  ;;  %v2397_v13 = vmul.f32 %v11252_v38, %v14866_v10  ;;  %v12825_v2 = vmul.f32 %v11260_v54, %v14866_v10 }
 0x561   : > { %v4876_v49 = vadd.f32 %v4875_v33, %v12345_v18  ;;  %v4877_v21 = vpop.f32.mrb[246].mxu0  ;;  %v2264_v9 = vadd.f32 %v2136_v31, %v2000_v8  ;;  %v12856_v31 = vadd.f32 %v2399_v0, %v2263_v59  ;;  %v2138_v8 = vmul.f32 %v11272_v26, %v14872_v45 }
 0x562   : > { %v4878_v63 = vadd.f32 %v4877_v21, %v12342_v46  ;;  %v4879_v44 = vpop.f32.mrb[247].mxu0  ;;  %6253 = vmatprep.mubr.bf16.mxu0 %v5816_v17  ;;  %v5018_v56 = vmax.f32 %v4874_v22, 0.0  ;;  %v14868_v17 = vld [vmem:[#allocation18_spill] sm:$0xff] }
 0x563   : > { %v4880_v20 = vadd.f32 %v4879_v44, %v12345_v18  ;;  %6254 = vmatmul.mubr.bf16.gmra.mrb[68].mxu0 %v5815_v1  ;;  %v5019_v28 = vmax.f32 %v4876_v49, 0.0  ;;  %v14867_v1 = vld [vmem:[#allocation8_spill] sm:$0xff]  ;;  %v1995_v49 = vmul.f32 %v11239_v50, %v14868_v17  ;;  %v1996_v21 = vmul.f32 %v11249_v53, %v14868_v17 }
 0x564   : > { %v5020_v25 = vmax.f32 %v4878_v63, 0.0  ;;  %v12829_v40 = vmul.f32 %v11252_v38, %v14867_v1  ;;  %v12838_v63 = vmul.f32 %v11260_v54, %v14867_v1  ;;  %v12863_v39 = vadd.f32 %v2400_v11, %v2264_v9  ;;  %v14873_v17 = vld [vmem:[#allocation16_spill] sm:$0xff] }
 0x565   : > { %v5021_v35 = vmax.f32 %v4880_v20, 0.0  ;;  %v2259_v10 = vadd.f32 %v2131_v24, %v1995_v49  ;;  %v2260_v1 = vadd.f32 %v2132_v15, %v1996_v21  ;;  %v14875_v21 = vld [vmem:[#allocation17_spill] sm:$0xff] }
 0x566   : > { %v5088_v47 = vpack.c.bf16 %v5020_v25, %v5018_v56  ;;  %v14869_v56 = vld [vmem:[#allocation10_spill] sm:$0xff]  ;;  %v2402_v45 = vmul.f32 %v11260_v54, %v14875_v21 }
 0x567   : > { %v5089_v57 = vpack.c.bf16 %v5021_v35, %v5019_v28  ;;  %v12843_v25 = vmul.f32 %v11252_v38, %v14869_v56  ;;  %v12847_v28 = vmul.f32 %v11260_v54, %v14869_v56  ;;  %v14870_v35 = vld [vmem:[#allocation12_spill] sm:$0xff] }
 0x568   : > { %v12860_v4 = vmul.f32 %v11260_v54, %v14870_v35 }
 0x569   : > { %5622 = vmatprep.mubr.bf16.mxu1 %v5089_v57  ;;  %v14871_v57 = vld [vmem:[#allocation19_spill] sm:$0xff] }
 0x56a   : > { %5623 = vmatmul.mubr.bf16.gmra.mrb[244].mxu1 %v5088_v47  ;;  %v12851_v47 = vmul.f32 %v11252_v38, %v14870_v35  ;;  %v1997_v30 = vmul.f32 %v11239_v50, %v14871_v57  ;;  %v14874_v35 = vld [vmem:[#allocation21_spill] sm:$0xff] }
 0x56b   : > { %v5514_v27 = vpop.f32.mrb[200].mxu1 }
 0x56c   : > { %v5515_v22 = vadd.f32 %v5514_v27, %v12575_v51  ;;  %v5516_v33 = vpop.f32.mrb[201].mxu1  ;;  %v2261_v56 = vadd.f32 %v2133_v7, %v1997_v30  ;;  %v12887_v30 = vadd.f32 %v2395_v62, %v2259_v10  ;;  %v14877_v10 = vld [vmem:[#allocation22_spill] sm:$0xff] }
 0x56d   : > { %v5517_v44 = vadd.f32 %v5516_v33, %v12578_v61  ;;  %v5518_v20 = vpop.f32.mrb[202].mxu1  ;;  %v1998_v33 = vmul.f32 %v11249_v53, %v14871_v57 }
 0x56e   : > { %v5519_v29 = vadd.f32 %v5518_v20, %v12575_v51  ;;  %v5520_v3 = vpop.f32.mrb[203].mxu1  ;;  %v5725_v37 = vmax.f32 %v5515_v22, 0.0  ;;  %v12873_v20 = vmul.f32 %v11252_v38, %v14873_v17  ;;  %v12879_v22 = vmul.f32 %v11260_v54, %v14873_v17 }
 0x56f   : > { %v5521_v43 = vadd.f32 %v5520_v3, %v12578_v61  ;;  %v5726_v0 = vmax.f32 %v5517_v44, 0.0  ;;  %v2001_v3 = vmul.f32 %v11239_v50, %v14874_v35  ;;  %v2401_v44 = vmul.f32 %v11252_v38, %v14875_v21 }
 0x570   : > { %v5727_v27 = vmax.f32 %v5519_v29, 0.0  ;;  %v2002_v29 = vmul.f32 %v11249_v53, %v14874_v35  ;;  %v12899_v62 = vadd.f32 %v2397_v13, %v2261_v56  ;;  %v14880_v56 = vld [vmem:[#allocation24_spill] sm:$0xff] }
 0x571   : > { %v5728_v59 = vmax.f32 %v5521_v43, 0.0  ;;  %v12889_v43 = vadd.f32 %v2396_v52, %v2260_v1  ;;  %v2265_v52 = vadd.f32 %v2137_v12, %v2001_v3  ;;  %v2139_v1 = vmul.f32 %v11257_v41, %v14877_v10 }
 0x572   : > { %v5817_v11 = vpack.c.bf16 %v5727_v27, %v5725_v37  ;;  %v4883_v9 = vpop.f32.mrb[248].mxu0  ;;  %v2141_v12 = vmul.f32 %v11257_v41, %v14880_v56  ;;  %v2006_v3 = vmul.f32 %v11249_v53, %v14878_v5 }
 0x573   : > { %v4884_v24 = vadd.f32 %v4883_v9, %v12342_v46  ;;  %v4885_v15 = vpop.f32.mrb[249].mxu0  ;;  %v5818_v49 = vpack.c.bf16 %v5728_v59, %v5726_v0  ;;  %v2262_v0 = vadd.f32 %v2134_v58, %v1998_v33  ;;  %v14876_v59 = vld [vmem:[#allocation20_spill] sm:$0xff]  ;;  %v2140_v58 = vmul.f32 %v11272_v26, %v14877_v10 }
 0x574   : > { %v4886_v57 = vadd.f32 %v4885_v15, %v12345_v18  ;;  %v4887_v7 = vpop.f32.mrb[250].mxu0  ;;  %v2003_v17 = vmul.f32 %v11239_v50, %v14876_v59  ;;  %v2004_v9 = vmul.f32 %v11249_v53, %v14876_v59  ;;  %v2005_v59 = vmul.f32 %v11239_v50, %v14878_v5 }
 0x575   : > { %v4888_v37 = vadd.f32 %v4887_v7, %v12342_v46  ;;  %v4889_v27 = vpop.f32.mrb[251].mxu0  ;;  %6263 = vmatprep.mubr.bf16.mxu0 %v5818_v49  ;;  %v5022_v15 = vmax.f32 %v4884_v24, 0.0  ;;  %v2266_v7 = vadd.f32 %v2138_v8, %v2002_v29  ;;  %v2142_v8 = vmul.f32 %v11272_v26, %v14880_v56 }
 0x576   : > { %v4890_v35 = vadd.f32 %v4889_v27, %v12345_v18  ;;  %6264 = vmatmul.mubr.bf16.gmra.mrb[72].mxu0 %v5817_v11  ;;  %v5023_v33 = vmax.f32 %v4886_v57, 0.0  ;;  %v2143_v11 = vmul.f32 %v11257_v41, %v14879_v23  ;;  %v2267_v29 = vadd.f32 %v2139_v1, %v2003_v17  ;;  %v14881_v57 = vld [vmem:[#allocation26_spill] sm:$0xff] }
 0x577   : > { %v5024_v21 = vmax.f32 %v4888_v37, 0.0  ;;  %v2007_v37 = vmul.f32 %v11239_v50, %v14881_v57  ;;  %v2144_v27 = vmul.f32 %v11272_v26, %v14879_v23  ;;  %v2268_v10 = vadd.f32 %v2140_v58, %v2004_v9  ;;  %v14884_v58 = vld [vmem:[#allocation29_spill] sm:$0xff] }
 0x578   : > { %v5025_v49 = vmax.f32 %v4890_v35, 0.0  ;;  %v12920_v35 = vadd.f32 %v12825_v2, %v2262_v0  ;;  %v12926_v56 = vadd.f32 %v2401_v44, %v2265_v52  ;;  %v12928_v17 = vadd.f32 %v2402_v45, %v2266_v7  ;;  %v14883_v0 = vld [vmem:[#allocation28_spill] sm:$0xff] }
 0x579   : > { %v5090_v13 = vpack.c.bf16 %v5024_v21, %v5022_v15  ;;  %v14882_v15 = vld [vmem:[#allocation25_spill] sm:$0xff]  ;;  %v2271_v1 = vadd.f32 %v2143_v11, %v2007_v37  ;;  %v2269_v23 = vadd.f32 %v2141_v12, %v2005_v59  ;;  %v2270_v2 = vadd.f32 %v2142_v8, %v2006_v3  ;;  %v14885_v12 = vld [vmem:[#allocation30_spill] sm:$0xff] }
 0x57a   : > { %v5091_v24 = vpack.c.bf16 %v5025_v49, %v5023_v33  ;;  %v2405_v21 = vmul.f32 %v11252_v38, %v14882_v15  ;;  %v2406_v5 = vmul.f32 %v11260_v54, %v14882_v15  ;;  %v2008_v33 = vmul.f32 %v11249_v53, %v14881_v57  ;;  %v14886_v57 = vld [vmem:[#allocation33_spill] sm:$0xff] }
 0x57b   : > { %v2009_v9 = vmul.f32 %v11239_v50, %v14883_v0  ;;  %v2145_v49 = vmul.f32 %v11257_v41, %v14884_v58  ;;  %v12937_v15 = vadd.f32 %v12815_v32, %v2267_v29  ;;  %v2010_v45 = vmul.f32 %v11249_v53, %v14883_v0  ;;  %v14887_v37 = vld [vmem:[#allocation41_spill] sm:$0xff] }
 0x57c   : > { %5632 = vmatprep.mubr.bf16.mxu1 %v5091_v24  ;;  %v2272_v44 = vadd.f32 %v2144_v27, %v2008_v33  ;;  %v2146_v52 = vmul.f32 %v11272_v26, %v14884_v58  ;;  %v12944_v59 = vadd.f32 %v12819_v36, %v2268_v10  ;;  %v12946_v11 = vadd.f32 %v2405_v21, %v2269_v23  ;;  %v14890_v58 = vld [vmem:[#allocation44_spill] sm:$0xff] }
 0x57d   : > { %5633 = vmatmul.mubr.bf16.gmra.mrb[248].mxu1 %v5090_v13  ;;  %v12948_v13 = vadd.f32 %v2406_v5, %v2270_v2  ;;  %v2409_v3 = vmul.f32 %v11252_v38, %v14885_v12  ;;  %v12954_v24 = vadd.f32 %v12829_v40, %v2271_v1  ;;  %v2410_v29 = vmul.f32 %v11260_v54, %v14885_v12 }
 0x57e   : > { %v12960_v36 = vmul.f32 %v11239_v50, %v14886_v57  ;;  %v12964_v27 = vmul.f32 %v11239_v50, %v14887_v37  ;;  %v12968_v10 = vmul.f32 %v11249_v53, %v14887_v37  ;;  %v2273_v40 = vadd.f32 %v2145_v49, %v2009_v9 }
 0x57f   : > { %v5524_v7 = vpop.f32.mrb[204].mxu1  ;;  %v12973_v23 = vadd.f32 %v12838_v63, %v2272_v44  ;;  %v2274_v2 = vadd.f32 %v2146_v52, %v2010_v45  ;;  %v12977_v0 = vmul.f32 %v11249_v53, %v14886_v57  ;;  %v12985_v12 = vmul.f32 %v11249_v53, %v14890_v58  ;;  %v14893_v45 = vld [vmem:[#allocation31_spill] sm:$0xff] }
 0x580   : > { %v5525_v32 = vadd.f32 %v5524_v7, %v12575_v51  ;;  %v5526_v8 = vpop.f32.mrb[205].mxu1  ;;  %14888 = vst [vmem:[#allocation155_spill] sm:$0xff] %v12964_v27  ;;  %14889 = vst [vmem:[#allocation161_spill] sm:$0xff] %v12968_v10  ;;  %v12981_v7 = vmul.f32 %v11239_v50, %v14890_v58  ;;  %v12988_v49 = vadd.f32 %v2409_v3, %v2273_v40 }
 0x581   : > { %v5527_v21 = vadd.f32 %v5526_v8, %v12578_v61  ;;  %v5528_v5 = vpop.f32.mrb[206].mxu1  ;;  %14892 = vst [vmem:[#allocation166_spill] sm:$0xff] %v12985_v12  ;;  %v12990_v44 = vadd.f32 %v2410_v29, %v2274_v2  ;;  %v2011_v52 = vmul.f32 %v11239_v50, %v14893_v45  ;;  %v2012_v58 = vmul.f32 %v11249_v53, %v14893_v45 }
 0x582   : > { %v5529_v1 = vadd.f32 %v5528_v5, %v12575_v51  ;;  %v5530_v33 = vpop.f32.mrb[207].mxu1  ;;  %14891 = vst [vmem:[#allocation160_spill] sm:$0xff] %v12981_v7  ;;  %v5729_v8 = vmax.f32 %v5525_v32, 0.0  ;;  %v14895_v32 = vld [vmem:[#allocation35_spill] sm:$0xff] }
 0x583   : > { %v5531_v9 = vadd.f32 %v5530_v33, %v12578_v61  ;;  %v5730_v57 = vmax.f32 %v5527_v21, 0.0  ;;  %v13001_v29 = vmul.f32 %v11239_v50, %v14895_v32  ;;  %v14896_v21 = vld [vmem:[#allocation46_spill] sm:$0xff] }
 0x584   : > { %v5731_v63 = vmax.f32 %v5529_v1, 0.0  ;;  %v13005_v1 = vmul.f32 %v11249_v53, %v14895_v32  ;;  %v13009_v33 = vmul.f32 %v11239_v50, %v14896_v21 }
 0x585   : > { %v5732_v37 = vmax.f32 %v5531_v9, 0.0  ;;  %v4893_v5 = vpop.f32.mrb[252].mxu0 }
 0x586   : > { %v5819_v14 = vpack.c.bf16 %v5731_v63, %v5729_v8  ;;  %v4894_v3 = vadd.f32 %v4893_v5, %v12342_v46  ;;  %v4895_v40 = vpop.f32.mrb[253].mxu0  ;;  %14897 = vst [vmem:[#allocation11_spill] sm:$0xff] %v13009_v33  ;;  %v9103_v8 = vld [vmem:[%s14425_s4 + $0x8] sm:$0x3]  ;;  %v2148_v63 = vmul.f32 %v11272_v26, %v14894_v34  ;;  %v13019_v5 = vmul.f32 %v11249_v53, %v14896_v21 }
 0x587   : > { %v4896_v2 = vadd.f32 %v4895_v40, %v12345_v18  ;;  %v4897_v9 = vpop.f32.mrb[254].mxu0  ;;  %v5820_v45 = vpack.c.bf16 %v5732_v37, %v5730_v57  ;;  %v13028_v57 = vmul.f32 %v11249_v53, %v14899_v19  ;;  %v2275_v40 = vadd.f32 %v2147_v42, %v2011_v52  ;;  %v14900_v34 = vld [vmem:[#allocation39_spill] sm:$0xff]  ;;  %v14902_v19 = vld [vmem:[#allocation34_spill] sm:$0xff] }
 0x588   : > { %14898 = vst [vmem:[#allocation2_spill] sm:$0xff] %v13019_v5  ;;  %v4898_v32 = vadd.f32 %v4897_v9, %v12342_v46  ;;  %v4899_v55 = vpop.f32.mrb[255].mxu0  ;;  %v13033_v6 = vmul.f32 %v11239_v50, %v14900_v34  ;;  %v13037_v46 = vmul.f32 %v11249_v53, %v14900_v34  ;;  %v5026_v21 = vmax.f32 %v4894_v3, 0.0  ;;  %v14905_v3 = vld [vmem:[#allocation36_spill] sm:$0xff] }
 0x589   : > { %v4900_v37 = vadd.f32 %v4899_v55, %v12345_v18  ;;  %6273 = vmatprep.mubr.bf16.mxu0 %v5820_v45  ;;  %v13040_v5 = vrot.slane %v9103_v8, %v14856_v60  ;;  %v2149_v33 = vmul.f32 %v11257_v41, %v14902_v19  ;;  %v5027_v55 = vmax.f32 %v4896_v2, 0.0  ;;  %v14903_v45 = vld [vmem:[#allocation48_spill] sm:$0xff]  ;;  %v14907_v2 = vld [vmem:[#allocation50_spill] sm:$0xff] }
 0x58a   : > { %14901 = vst [vmem:[#allocation3_spill] sm:$0xff] %v13037_v46  ;;  %v5028_v9 = vmax.f32 %v4898_v32, 0.0  ;;  %6274 = vmatmul.mubr.bf16.gmra.mrb[76].mxu0 %v5819_v14  ;;  %v13045_v42 = vrot.slane %v9103_v8, %v14857_v16  ;;  %v2276_v52 = vadd.f32 %v2148_v63, %v2012_v58  ;;  %v13049_v12 = vmul.f32 %v11239_v50, %v14903_v45 }
 0x58b   : > { %v5029_v18 = vmax.f32 %v4900_v37, 0.0  ;;  %v2413_v14 = vmul.f32 %v11252_v38, %v14905_v3  ;;  %v2150_v32 = vmul.f32 %v11272_v26, %v14902_v19  ;;  %v13057_v60 = vmul.f32 %v11249_v53, %v14903_v45 }
 0x58c   : > { %14904 = vst [vmem:[#allocation9_spill] sm:$0xff] %v13049_v12  ;;  %v5092_v34 = vpack.c.bf16 %v5028_v9, %v5026_v21  ;;  %v13061_v8 = vmul.f32 %v11239_v50, %v14907_v2  ;;  %v13065_v58 = vmul.f32 %v11249_v53, %v14907_v2  ;;  %v13069_v16 = vadd.f32 %v12843_v25, %v2275_v40 }
 0x58d   : > { %14906 = vst [vmem:[#allocation4_spill] sm:$0xff] %v13057_v60  ;;  %v6085_v63 = vpop.f32.mrb[0].mxu0  ;;  %v5093_v37 = vpack.c.bf16 %v5029_v18, %v5027_v55  ;;  %v2277_v19 = vadd.f32 %v2149_v33, %v12960_v36  ;;  %v2414_v45 = vmul.f32 %v11260_v54, %v14905_v3  ;;  %v14910_v60 = vld [vmem:[#allocation53_spill] sm:$0xff]  ;;  %v13084_v25 = vadd.f32 %v12847_v28, %v2276_v52 }
 0x58e   : > { %14908 = vst [vmem:[#allocation5_spill] sm:$0xff] %v13061_v8  ;;  %14909 = vst [vmem:[#allocation6_spill] sm:$0xff] %v13065_v58  ;;  %v6086_v21 = vadd.f32 %v6085_v63, %v13040_v5  ;;  %v6087_v9 = vpop.f32.mrb[1].mxu0  ;;  %v13076_v8 = vmul.f32 %v11239_v50, %v14910_v60  ;;  %v13080_v2 = vmul.f32 %v11249_v53, %v14910_v60 }
 0x58f   : > { %v6088_v55 = vadd.f32 %v6087_v9, %v13045_v42  ;;  %5642 = vmatprep.mubr.bf16.mxu1 %v5093_v37  ;;  %v6089_v18 = vpop.f32.mrb[2].mxu0  ;;  %v13088_v3 = vadd.f32 %v2413_v14, %v2277_v19  ;;  %v2278_v63 = vadd.f32 %v2150_v32, %v12977_v0  ;;  %v14915_v14 = vld [vmem:[#allocation38_spill] sm:$0xff]  ;;  %v14916_v32 = vld [vmem:[#allocation40_spill] sm:$0xff] }
 0x590   : > { %14911 = vst [vmem:[#allocation7_spill] sm:$0xff] %v13076_v8  ;;  %14912 = vst [vmem:[#allocation8_spill] sm:$0xff] %v13080_v2  ;;  %v6404_v36 = vadd.f32 %v6086_v21, %v12887_v30  ;;  %v6090_v33 = vadd.f32 %v6089_v18, %v13040_v5  ;;  %5643 = vmatmul.mubr.bf16.gmra.mrb[252].mxu1 %v5092_v34  ;;  %v6091_v40 = vpop.f32.mrb[3].mxu0  ;;  %v14913_v8 = vld [vmem:[#allocation55_spill] sm:$0xff]  ;;  %v2015_v0 = vmul.f32 %v11239_v50, %v14915_v14  ;;  %v14917_v19 = vld [vmem:[#allocation60_spill] sm:$0xff] }
 0x591   : > { %v13093_v60 = vmul.f32 %v11252_v38, %v14913_v8  ;;  %v13097_v37 = vmul.f32 %v11260_v54, %v14913_v8  ;;  %v6405_v28 = vadd.f32 %v6088_v55, %v12889_v43  ;;  %v6092_v30 = vadd.f32 %v6091_v40, %v13045_v42 }
 0x592   : > { %v6406_v52 = vadd.f32 %v6090_v33, %v12899_v62  ;;  %v5534_v34 = vpop.f32.mrb[208].mxu1  ;;  %v13102_v21 = vadd.f32 %v2414_v45, %v2278_v63  ;;  %v2151_v9 = vmul.f32 %v11257_v41, %v14916_v32  ;;  %v13110_v18 = vmul.f32 %v11252_v38, %v14917_v19 }
 0x593   : > { %14914 = vst [vmem:[#allocation18_spill] sm:$0xff] %v13097_v37  ;;  %v6407_v8 = vadd.f32 %v6092_v30, %v12920_v35  ;;  %v5535_v43 = vadd.f32 %v5534_v34, %v12575_v51  ;;  %v5536_v55 = vpop.f32.mrb[209].mxu1  ;;  %v2016_v62 = vmul.f32 %v11249_v53, %v14915_v14  ;;  %v13118_v45 = vmul.f32 %v11260_v54, %v14917_v19 }
 0x594   : > { %14918 = vst [vmem:[#allocation10_spill] sm:$0xff] %v13110_v18  ;;  %v6532_v33 = vmax.f32 %v6404_v36, 0.0  ;;  %v6534_v40 = vmax.f32 %v6406_v52, 0.0  ;;  %v5537_v63 = vadd.f32 %v5536_v55, %v12578_v61  ;;  %v5538_v2 = vpop.f32.mrb[210].mxu1  ;;  %v6533_v58 = vmax.f32 %v6405_v28, 0.0 }
 0x595   : > { %14919 = vst [vmem:[#allocation12_spill] sm:$0xff] %v13118_v45  ;;  %v6535_v12 = vmax.f32 %v6407_v8, 0.0  ;;  %v5539_v7 = vadd.f32 %v5538_v2, %v12575_v51  ;;  %v5540_v35 = vpop.f32.mrb[211].mxu1  ;;  %v6095_v30 = vpop.f32.mrb[4].mxu0  ;;  %v2152_v34 = vmul.f32 %v11272_v26, %v14916_v32  ;;  %v2279_v36 = vadd.f32 %v2151_v9, %v2015_v0  ;;  %v14920_v9 = vld [vmem:[#allocation65_spill] sm:$0xff] }
 0x596   : > { %v6660_v10 = vpack.c.bf16 %v6534_v40, %v6532_v33  ;;  %v5541_v14 = vadd.f32 %v5540_v35, %v12578_v61  ;;  %v6096_v19 = vadd.f32 %v6095_v30, %v13040_v5  ;;  %v6097_v27 = vpop.f32.mrb[5].mxu0  ;;  %v5733_v52 = vmax.f32 %v5535_v43, 0.0 }
 0x597   : > { %v5735_v45 = vmax.f32 %v5539_v7, 0.0  ;;  %v6098_v55 = vadd.f32 %v6097_v27, %v13045_v42  ;;  %v6099_v28 = vpop.f32.mrb[6].mxu0  ;;  %v6661_v8 = vpack.c.bf16 %v6535_v12, %v6533_v58  ;;  %v5734_v18 = vmax.f32 %v5537_v63, 0.0  ;;  %v14921_v58 = vld [vmem:[#allocation70_spill] sm:$0xff] }
 0x598   : > { %v5736_v2 = vmax.f32 %v5541_v14, 0.0  ;;  %v6408_v37 = vadd.f32 %v6096_v19, %v12856_v31  ;;  %v6100_v46 = vadd.f32 %v6099_v28, %v13040_v5  ;;  %v6101_v32 = vpop.f32.mrb[7].mxu0  ;;  %v2280_v0 = vadd.f32 %v2152_v34, %v2016_v62 }
 0x599   : > { %v5821_v33 = vpack.c.bf16 %v5735_v45, %v5733_v52  ;;  %v6409_v40 = vadd.f32 %v6098_v55, %v12863_v39  ;;  %v6102_v35 = vadd.f32 %v6101_v32, %v13045_v42  ;;  %6962 = vmatprep.mubr.bf16.mxu1 %v6661_v8  ;;  %v13133_v7 = vmul.f32 %v11252_v38, %v14920_v9  ;;  %v14922_v45 = vld [vmem:[#allocation42_spill] sm:$0xff] }
 0x59a   : > { %v13137_v27 = vmul.f32 %v11260_v54, %v14920_v9  ;;  %v6410_v31 = vadd.f32 %v6100_v46, %v12926_v56  ;;  %6963 = vmatmul.mubr.bf16.vlgmr.msra.gmra.mrb[0].mxu1 %v6660_v10  ;;  %v5822_v12 = vpack.c.bf16 %v5736_v2, %v5734_v18  ;;  %v13142_v43 = vmul.f32 %v11252_v38, %v14921_v58 }
 0x59b   : > { %v6411_v39 = vadd.f32 %v6102_v35, %v12928_v17  ;;  %v13146_v62 = vadd.f32 %v12851_v47, %v2279_v36  ;;  %v2153_v63 = vmul.f32 %v11257_v41, %v14922_v45  ;;  %v13152_v30 = vmul.f32 %v11260_v54, %v14921_v58  ;;  %v14923_v17 = vld [vmem:[#allocation47_spill] sm:$0xff] }
 0x59c   : > { %v6536_v34 = vmax.f32 %v6408_v37, 0.0  ;;  %v6538_v56 = vmax.f32 %v6410_v31, 0.0  ;;  %6283 = vmatprep.mubr.bf16.mxu0 %v5822_v12  ;;  %v2154_v10 = vmul.f32 %v11272_v26, %v14922_v45  ;;  %v6537_v46 = vmax.f32 %v6409_v40, 0.0  ;;  %v14924_v37 = vld [vmem:[#allocation43_spill] sm:$0xff]  ;;  %v14925_v40 = vld [vmem:[#allocation45_spill] sm:$0xff] }
 0x59d   : > { %v6539_v18 = vmax.f32 %v6411_v39, 0.0  ;;  %v6105_v14 = vpop.f32.mrb[8].mxu0  ;;  %6284 = vmatmul.mubr.bf16.gmra.mrb[80].mxu0 %v5821_v33  ;;  %v13157_v47 = vadd.f32 %v12860_v4, %v2280_v0  ;;  %v2155_v19 = vmul.f32 %v11257_v41, %v14923_v17  ;;  %v2417_v28 = vmul.f32 %v11252_v38, %v14924_v37  ;;  %v14926_v0 = vld [vmem:[#allocation75_spill] sm:$0xff] }
 0x59e   : > { %v6662_v36 = vpack.c.bf16 %v6538_v56, %v6536_v34  ;;  %v6106_v52 = vadd.f32 %v6105_v14, %v13040_v5  ;;  %v6107_v55 = vpop.f32.mrb[9].mxu0  ;;  %v2418_v8 = vmul.f32 %v11260_v54, %v14924_v37  ;;  %v2281_v4 = vadd.f32 %v2153_v63, %v13001_v29 }
 0x59f   : > { %v6108_v2 = vadd.f32 %v6107_v55, %v13045_v42  ;;  %v6109_v32 = vpop.f32.mrb[10].mxu0  ;;  %v6663_v33 = vpack.c.bf16 %v6539_v18, %v6537_v46  ;;  %v2019_v35 = vmul.f32 %v11239_v50, %v14925_v40  ;;  %v13172_v9 = vmul.f32 %v11252_v38, %v14926_v0 }
 0x5a0   : > { %v6412_v31 = vadd.f32 %v6106_v52, %v12937_v15  ;;  %v6110_v12 = vadd.f32 %v6109_v32, %v13040_v5  ;;  %v6111_v58 = vpop.f32.mrb[11].mxu0  ;;  %v2282_v39 = vadd.f32 %v2154_v10, %v13005_v1  ;;  %v2156_v63 = vmul.f32 %v11272_v26, %v14923_v17  ;;  %v14927_v1 = vld [vmem:[#allocation79_spill] sm:$0xff] }
 0x5a1   : > { %v6413_v45 = vadd.f32 %v6108_v2, %v12944_v59  ;;  %v6112_v34 = vadd.f32 %v6111_v58, %v13045_v42  ;;  %6972 = vmatprep.mubr.bf16.mxu1 %v6663_v33  ;;  %v2283_v29 = vadd.f32 %v2155_v19, %v2019_v35  ;;  %v13183_v56 = vmul.f32 %v11260_v54, %v14926_v0  ;;  %v14928_v19 = vld [vmem:[#allocation81_spill] sm:$0xff] }
 0x5a2   : > { %v6414_v15 = vadd.f32 %v6110_v12, %v12946_v11  ;;  %6973 = vmatmul.mubr.bf16.gmra.mrb[4].mxu1 %v6662_v36  ;;  %v13186_v46 = vadd.f32 %v2417_v28, %v2281_v4  ;;  %v13188_v18 = vadd.f32 %v2418_v8, %v2282_v39  ;;  %v13192_v59 = vmul.f32 %v11252_v38, %v14927_v1  ;;  %v14929_v12 = vld [vmem:[#allocation49_spill] sm:$0xff] }
 0x5a3   : > { %v13196_v10 = vmul.f32 %v11260_v54, %v14927_v1  ;;  %v6415_v14 = vadd.f32 %v6112_v34, %v12948_v13  ;;  %v2020_v17 = vmul.f32 %v11249_v53, %v14925_v40  ;;  %v13203_v11 = vmul.f32 %v11252_v38, %v14928_v19 }
 0x5a4   : > { %v13207_v36 = vmul.f32 %v11260_v54, %v14928_v19  ;;  %v6540_v52 = vmax.f32 %v6412_v31, 0.0  ;;  %v6542_v55 = vmax.f32 %v6414_v15, 0.0  ;;  %v6541_v37 = vmax.f32 %v6413_v45, 0.0 }
 0x5a5   : > { %v6543_v28 = vmax.f32 %v6415_v14, 0.0  ;;  %v6115_v2 = vpop.f32.mrb[12].mxu0  ;;  %v13210_v32 = vadd.f32 %v12873_v20, %v2283_v29  ;;  %v2284_v13 = vadd.f32 %v2156_v63, %v2020_v17  ;;  %v2157_v58 = vmul.f32 %v11257_v41, %v14929_v12  ;;  %v14930_v29 = vld [vmem:[#allocation83_spill] sm:$0xff] }
 0x5a6   : > { %v5544_v8 = vpop.f32.mrb[212].mxu1  ;;  %v6664_v33 = vpack.c.bf16 %v6542_v55, %v6540_v52  ;;  %v6116_v40 = vadd.f32 %v6115_v2, %v13040_v5  ;;  %v6117_v0 = vpop.f32.mrb[13].mxu0  ;;  %v2158_v20 = vmul.f32 %v11272_v26, %v14929_v12  ;;  %v13222_v63 = vmul.f32 %v11252_v38, %v14930_v29 }
 0x5a7   : > { %v5545_v4 = vadd.f32 %v5544_v8, %v12575_v51  ;;  %v5546_v35 = vpop.f32.mrb[213].mxu1  ;;  %v6118_v39 = vadd.f32 %v6117_v0, %v13045_v42  ;;  %v6119_v34 = vpop.f32.mrb[14].mxu0  ;;  %v6665_v15 = vpack.c.bf16 %v6543_v28, %v6541_v37  ;;  %v13229_v55 = vmul.f32 %v11260_v54, %v14930_v29 }
 0x5a8   : > { %v5547_v31 = vadd.f32 %v5546_v35, %v12578_v61  ;;  %v5548_v45 = vpop.f32.mrb[214].mxu1  ;;  %v6416_v1 = vadd.f32 %v6116_v40, %v12954_v24  ;;  %v6120_v17 = vadd.f32 %v6119_v34, %v13040_v5  ;;  %v6121_v52 = vpop.f32.mrb[15].mxu0  ;;  %v13236_v40 = vadd.f32 %v12879_v22, %v2284_v13  ;;  %v14931_v34 = vld [vmem:[#allocation51_spill] sm:$0xff] }
 0x5a9   : > { %v5549_v14 = vadd.f32 %v5548_v45, %v12575_v51  ;;  %v5550_v19 = vpop.f32.mrb[215].mxu1  ;;  %v6417_v37 = vadd.f32 %v6118_v39, %v12973_v23  ;;  %v6122_v8 = vadd.f32 %v6121_v52, %v13045_v42  ;;  %6982 = vmatprep.mubr.bf16.mxu1 %v6665_v15  ;;  %v5737_v2 = vmax.f32 %v5545_v4, 0.0  ;;  %v14932_v52 = vld [vmem:[#allocation54_spill] sm:$0xff] }
 0x5aa   : > { %v5551_v28 = vadd.f32 %v5550_v19, %v12578_v61  ;;  %v6418_v24 = vadd.f32 %v6120_v17, %v12988_v49  ;;  %6983 = vmatmul.mubr.bf16.gmra.mrb[8].mxu1 %v6664_v33  ;;  %v5738_v0 = vmax.f32 %v5547_v31, 0.0  ;;  %v2421_v23 = vmul.f32 %v11252_v38, %v14931_v34 }
 0x5ab   : > { %v5739_v35 = vmax.f32 %v5549_v14, 0.0  ;;  %v6419_v45 = vadd.f32 %v6122_v8, %v12990_v44  ;;  %v6544_v39 = vmax.f32 %v6416_v1, 0.0  ;;  %v2422_v4 = vmul.f32 %v11260_v54, %v14931_v34 }
 0x5ac   : > { %v5740_v12 = vmax.f32 %v5551_v28, 0.0  ;;  %v6546_v19 = vmax.f32 %v6418_v24, 0.0  ;;  %v6545_v15 = vmax.f32 %v6417_v37, 0.0  ;;  %v2285_v22 = vadd.f32 %v2157_v58, %v13024_v48 }
 0x5ad   : > { %v5823_v29 = vpack.c.bf16 %v5739_v35, %v5737_v2  ;;  %v6547_v14 = vmax.f32 %v6419_v45, 0.0  ;;  %v6125_v49 = vpop.f32.mrb[16].mxu0  ;;  %v2286_v44 = vadd.f32 %v2158_v20, %v13028_v57  ;;  %v2159_v1 = vmul.f32 %v11257_v41, %v14932_v52  ;;  %v14933_v20 = vld [vmem:[#allocation52_spill] sm:$0xff] }
 0x5ae   : > { %v5824_v33 = vpack.c.bf16 %v5740_v12, %v5738_v0  ;;  %v6666_v13 = vpack.c.bf16 %v6546_v19, %v6544_v39  ;;  %v6126_v31 = vadd.f32 %v6125_v49, %v13040_v5  ;;  %v6127_v17 = vpop.f32.mrb[17].mxu0  ;;  %v13249_v37 = vadd.f32 %v2421_v23, %v2285_v22  ;;  %v14934_v23 = vld [vmem:[#allocation56_spill] sm:$0xff]  ;;  %v9688_v39 = vld [vmem:[%s14424_s3 + $0x600] ss:$8 sps:$4 sm:$0xff]   ;;  %v14936_v22 = vld [vmem:[#allocation57_spill] sm:$0xff] }
 0x5af   : > { %v6128_v28 = vadd.f32 %v6127_v17, %v13045_v42  ;;  %v6129_v8 = vpop.f32.mrb[18].mxu0  ;;  %v6667_v2 = vpack.c.bf16 %v6547_v14, %v6545_v15  ;;  %v2160_v35 = vmul.f32 %v11272_v26, %v14932_v52  ;;  %v13255_v57 = vadd.f32 %v2422_v4, %v2286_v44  ;;  %v14935_v4 = vld [vmem:[#allocation59_spill] sm:$0xff] }
 0x5b0   : > { %6293 = vmatprep.mubr.bf16.mxu0 %v5824_v33  ;;  %v6420_v48 = vadd.f32 %v6126_v31, %v13069_v16  ;;  %v6130_v58 = vadd.f32 %v6129_v8, %v13040_v5  ;;  %v6131_v24 = vpop.f32.mrb[19].mxu0  ;;  %v2023_v0 = vmul.f32 %v11239_v50, %v14933_v20  ;;  %v2024_v34 = vmul.f32 %v11249_v53, %v14933_v20 }
 0x5b1   : > { %6294 = vmatmul.mubr.bf16.gmra.mrb[84].mxu0 %v5823_v29  ;;  %v6421_v12 = vadd.f32 %v6128_v28, %v13084_v25  ;;  %v6132_v45 = vadd.f32 %v6131_v24, %v13045_v42  ;;  %6992 = vmatprep.mubr.bf16.mxu1 %v6667_v2  ;;  %v2161_v16 = vmul.f32 %v11257_v41, %v14934_v23  ;;  %v9690_v29 = vld [vmem:[%s14424_s3 + $0x604] ss:$8 sps:$4 sm:$0xff]  }
 0x5b2   : > { %v6422_v19 = vadd.f32 %v6130_v58, %v13088_v3  ;;  %6993 = vmatmul.mubr.bf16.gmra.mrb[12].mxu1 %v6666_v13  ;;  %v2287_v25 = vadd.f32 %v2159_v1, %v2023_v0  ;;  %v2163_v15 = vmul.f32 %v11257_v41, %v14935_v4  ;;  %v2164_v14 = vmul.f32 %v11272_v26, %v14935_v4  ;;  %v14937_v13 = vld [vmem:[#allocation58_spill] sm:$0xff] }
 0x5b3   : > { %v6423_v49 = vadd.f32 %v6132_v45, %v13102_v21  ;;  %v2288_v33 = vadd.f32 %v2160_v35, %v2024_v34  ;;  %v2425_v31 = vmul.f32 %v11252_v38, %v14936_v22  ;;  %v2162_v17 = vmul.f32 %v11272_v26, %v14934_v23  ;;  %7681 = vmatprep.subr.bf16.mxu0 %v9690_v29 }
 0x5b4   : > { %v6548_v44 = vmax.f32 %v6420_v48, 0.0  ;;  %v6550_v3 = vmax.f32 %v6422_v19, 0.0  ;;  %v2027_v52 = vmul.f32 %v11239_v50, %v14937_v13  ;;  %v2028_v1 = vmul.f32 %v11249_v53, %v14937_v13  ;;  %7682 = vmatpush1.bf16.msra.mxu0 %v9688_v39 }
 0x5b5   : > { %v6549_v28 = vmax.f32 %v6421_v12, 0.0  ;;  %v6551_v8 = vmax.f32 %v6423_v49, 0.0  ;;  %v6135_v21 = vpop.f32.mrb[20].mxu0  ;;  %v2289_v2 = vadd.f32 %v2161_v16, %v13033_v6  ;;  %v2426_v35 = vmul.f32 %v11260_v54, %v14936_v22  ;;  %v14938_v12 = vld [vmem:[#allocation3_spill] sm:$0xff]  ;;  %v14939_v49 = vld [vmem:[#allocation18_spill] sm:$0xff] }
 0x5b6   : > { %v6668_v58 = vpack.c.bf16 %v6550_v3, %v6548_v44  ;;  %v6136_v24 = vadd.f32 %v6135_v21, %v13040_v5  ;;  %v6137_v48 = vpop.f32.mrb[21].mxu0  ;;  %v2291_v20 = vadd.f32 %v2163_v15, %v2027_v52  ;;  %v2292_v0 = vadd.f32 %v2164_v14, %v2028_v1  ;;  %v14942_v21 = vld [vmem:[#allocation61_spill] sm:$0xff] }
 0x5b7   : > { %v6138_v45 = vadd.f32 %v6137_v48, %v13045_v42  ;;  %v6139_v34 = vpop.f32.mrb[22].mxu0  ;;  %v6669_v23 = vpack.c.bf16 %v6551_v8, %v6549_v28  ;;  %v13291_v39 = vadd.f32 %v13093_v60, %v2287_v25  ;;  %v2290_v29 = vadd.f32 %v2162_v17, %v14938_v12  ;;  %v14943_v48 = vld [vmem:[#allocation62_spill] sm:$0xff] }
 0x5b8   : > { %v6424_v6 = vadd.f32 %v6136_v24, %v13146_v62  ;;  %v6140_v16 = vadd.f32 %v6139_v34, %v13040_v5  ;;  %v5554_v19 = vpop.f32.mrb[216].mxu1  ;;  %v6141_v4 = vpop.f32.mrb[23].mxu0  ;;  %v13297_v22 = vadd.f32 %v14939_v49, %v2288_v33  ;;  %v13299_v15 = vadd.f32 %v2425_v31, %v2289_v2  ;;  %v14940_v33 = vld [vmem:[#allocation10_spill] sm:$0xff]  ;;  %v14941_v31 = vld [vmem:[#allocation12_spill] sm:$0xff] }
 0x5b9   : > { %v6425_v14 = vadd.f32 %v6138_v45, %v13157_v47  ;;  %v5555_v44 = vadd.f32 %v5554_v19, %v12575_v51  ;;  %v6142_v60 = vadd.f32 %v6141_v4, %v13045_v42  ;;  %v5556_v25 = vpop.f32.mrb[217].mxu1  ;;  %7002 = vmatprep.mubr.bf16.mxu1 %v6669_v23  ;;  %v13304_v17 = vadd.f32 %v2426_v35, %v2290_v29 }
 0x5ba   : > { %v6426_v62 = vadd.f32 %v6140_v16, %v13186_v46  ;;  %v5557_v3 = vadd.f32 %v5556_v25, %v12578_v61  ;;  %v5558_v13 = vpop.f32.mrb[218].mxu1  ;;  %7003 = vmatmul.mubr.bf16.gmra.mrb[16].mxu1 %v6668_v58  ;;  %v13309_v52 = vadd.f32 %v14940_v33, %v2291_v20  ;;  %v13312_v1 = vadd.f32 %v14941_v31, %v2292_v0  ;;  %v14944_v31 = vld [vmem:[#allocation64_spill] sm:$0xff] }
 0x5bb   : > { %v6427_v47 = vadd.f32 %v6142_v60, %v13188_v18  ;;  %v5559_v28 = vadd.f32 %v5558_v13, %v12575_v51  ;;  %v5560_v8 = vpop.f32.mrb[219].mxu1  ;;  %v2165_v2 = vmul.f32 %v11257_v41, %v14942_v21  ;;  %v2166_v46 = vmul.f32 %v11272_v26, %v14942_v21 }
 0x5bc   : > { %v6552_v35 = vmax.f32 %v6424_v6, 0.0  ;;  %v6554_v24 = vmax.f32 %v6426_v62, 0.0  ;;  %v5561_v58 = vadd.f32 %v5560_v8, %v12578_v61  ;;  %v2429_v20 = vmul.f32 %v11252_v38, %v14943_v48 }
 0x5bd   : > { %v6553_v0 = vmax.f32 %v6425_v14, 0.0  ;;  %v5741_v45 = vmax.f32 %v5555_v44, 0.0  ;;  %v6555_v34 = vmax.f32 %v6427_v47, 0.0  ;;  %v5743_v18 = vmax.f32 %v5559_v28, 0.0  ;;  %v6145_v23 = vpop.f32.mrb[24].mxu0 }
 0x5be   : > { %v6670_v12 = vpack.c.bf16 %v6554_v24, %v6552_v35  ;;  %v5742_v29 = vmax.f32 %v5557_v3, 0.0  ;;  %v5744_v16 = vmax.f32 %v5561_v58, 0.0  ;;  %v6146_v19 = vadd.f32 %v6145_v23, %v13040_v5  ;;  %v6147_v4 = vpop.f32.mrb[25].mxu0  ;;  %v9693_v14 = vld [vmem:[%s14424_s3 + $0x614] ss:$8 sps:$4 sm:$0xff]   ;;  %v14945_v24 = vld [vmem:[#allocation155_spill] sm:$0xff] }
 0x5bf   : > { %v5825_v49 = vpack.c.bf16 %v5743_v18, %v5741_v45  ;;  %v6148_v6 = vadd.f32 %v6147_v4, %v13045_v42  ;;  %v6149_v60 = vpop.f32.mrb[26].mxu0  ;;  %v6671_v25 = vpack.c.bf16 %v6555_v34, %v6553_v0  ;;  %v2430_v62 = vmul.f32 %v11260_v54, %v14943_v48  ;;  %v9691_v28 = vld [vmem:[%s14424_s3 + $0x610] ss:$8 sps:$4 sm:$0xff]   ;;  %7683 = vmatprep.subr.bf16.mxu0 %v9693_v14  ;;  %v14947_v34 = vld [vmem:[#allocation63_spill] sm:$0xff]  ;;  %v14948_v23 = vld [vmem:[#allocation66_spill] sm:$0xff] }
 0x5c0   : > { %v6428_v44 = vadd.f32 %v6146_v19, %v13210_v32  ;;  %v6150_v3 = vadd.f32 %v6149_v60, %v13040_v5  ;;  %v6151_v13 = vpop.f32.mrb[27].mxu0  ;;  %v5826_v33 = vpack.c.bf16 %v5744_v16, %v5742_v29  ;;  %v2167_v47 = vmul.f32 %v11257_v41, %v14944_v31  ;;  %v14946_v48 = vld [vmem:[#allocation161_spill] sm:$0xff]  ;;  %7684 = vmatpush1.bf16.msra.mxu0 %v9691_v28  ;;  %v14950_v28 = vld [vmem:[#allocation160_spill] sm:$0xff] }
 0x5c1   : > { %v6429_v8 = vadd.f32 %v6148_v6, %v13236_v40  ;;  %v6152_v21 = vadd.f32 %v6151_v13, %v13045_v42  ;;  %7012 = vmatprep.mubr.bf16.mxu1 %v6671_v25  ;;  %v2168_v35 = vmul.f32 %v11272_v26, %v14944_v31  ;;  %v2293_v58 = vadd.f32 %v2165_v2, %v14945_v24  ;;  %v9696_v2 = vld [vmem:[%s14424_s3 + $0x624] ss:$8 sps:$4 sm:$0xff]  }
 0x5c2   : > { %v6430_v32 = vadd.f32 %v6150_v3, %v13249_v37  ;;  %6303 = vmatprep.mubr.bf16.mxu0 %v5826_v33  ;;  %7013 = vmatmul.mubr.bf16.gmra.mrb[20].mxu1 %v6670_v12  ;;  %v2294_v0 = vadd.f32 %v2166_v46, %v14946_v48  ;;  %v2031_v40 = vmul.f32 %v11239_v50, %v14947_v34  ;;  %v6556_v16 = vmax.f32 %v6428_v44, 0.0  ;;  %v14949_v3 = vld [vmem:[#allocation69_spill] sm:$0xff] }
 0x5c3   : > { %v6431_v45 = vadd.f32 %v6152_v21, %v13255_v57  ;;  %6304 = vmatmul.mubr.bf16.gmra.mrb[88].mxu0 %v5825_v49  ;;  %v2032_v18 = vmul.f32 %v11249_v53, %v14947_v34  ;;  %v2169_v29 = vmul.f32 %v11257_v41, %v14948_v23  ;;  %v13351_v19 = vadd.f32 %v2429_v20, %v2293_v58  ;;  %v9694_v57 = vld [vmem:[%s14424_s3 + $0x620] ss:$8 sps:$4 sm:$0xff]   ;;  %v9699_v20 = vld [vmem:[%s14424_s3 + $0x634] ss:$8 sps:$4 sm:$0xff]   ;;  %v9697_v34 = vld [vmem:[%s14424_s3 + $0x630] ss:$8 sps:$4 sm:$0xff]  }
 0x5c4   : > { %v6558_v37 = vmax.f32 %v6430_v32, 0.0  ;;  %v13353_v12 = vadd.f32 %v2430_v62, %v2294_v0  ;;  %v6557_v46 = vmax.f32 %v6429_v8, 0.0  ;;  %v2295_v6 = vadd.f32 %v2167_v47, %v2031_v40  ;;  %7685 = vmatprep.subr.bf16.mxu0 %v9696_v2  ;;  %v14951_v21 = vld [vmem:[#allocation67_spill] sm:$0xff]  ;;  %v14952_v0 = vld [vmem:[#allocation68_spill] sm:$0xff] }
 0x5c5   : > { %v6559_v4 = vmax.f32 %v6431_v45, 0.0  ;;  %v6155_v49 = vpop.f32.mrb[28].mxu0  ;;  %v2296_v60 = vadd.f32 %v2168_v35, %v2032_v18  ;;  %v2170_v44 = vmul.f32 %v11272_v26, %v14948_v23  ;;  %v2171_v13 = vmul.f32 %v11257_v41, %v14949_v3  ;;  %7686 = vmatpush1.bf16.msra.mxu0 %v9694_v57  ;;  %v9702_v23 = vld [vmem:[%s14424_s3 + $0x644] ss:$8 sps:$4 sm:$0xff]  }
 0x5c6   : > { %v6672_v25 = vpack.c.bf16 %v6558_v37, %v6556_v16  ;;  %v6156_v62 = vadd.f32 %v6155_v49, %v13040_v5  ;;  %v6157_v14 = vpop.f32.mrb[29].mxu0  ;;  %v2297_v8 = vadd.f32 %v2169_v29, %v14950_v28  ;;  %v2433_v35 = vmul.f32 %v11252_v38, %v14951_v21  ;;  %7687 = vmatprep.subr.bf16.mxu0 %v9699_v20  ;;  %v14953_v37 = vld [vmem:[#allocation166_spill] sm:$0xff] }
 0x5c7   : > { %v6158_v33 = vadd.f32 %v6157_v14, %v13045_v42  ;;  %v6159_v31 = vpop.f32.mrb[30].mxu0  ;;  %v6673_v47 = vpack.c.bf16 %v6559_v4, %v6557_v46  ;;  %v2434_v48 = vmul.f32 %v11260_v54, %v14951_v21  ;;  %v2035_v45 = vmul.f32 %v11239_v50, %v14952_v0 }
 0x5c8   : > { %v6432_v32 = vadd.f32 %v6156_v62, %v13291_v39  ;;  %v6160_v24 = vadd.f32 %v6159_v31, %v13040_v5  ;;  %v6161_v58 = vpop.f32.mrb[31].mxu0  ;;  %v2172_v39 = vmul.f32 %v11272_v26, %v14949_v3  ;;  %v13391_v16 = vadd.f32 %v13133_v7, %v2295_v6 }
 0x5c9   : > { %v6433_v40 = vadd.f32 %v6158_v33, %v13297_v22  ;;  %v6162_v18 = vadd.f32 %v6161_v58, %v13045_v42  ;;  %7022 = vmatprep.mubr.bf16.mxu1 %v6673_v47  ;;  %v2298_v57 = vadd.f32 %v2170_v44, %v14953_v37  ;;  %v2299_v22 = vadd.f32 %v2171_v13, %v2035_v45 }
 0x5ca   : > { %v6434_v29 = vadd.f32 %v6160_v24, %v13299_v15  ;;  %7023 = vmatmul.mubr.bf16.gmra.mrb[24].mxu1 %v6672_v25  ;;  %v13396_v4 = vadd.f32 %v13137_v27, %v2296_v60  ;;  %v13398_v49 = vadd.f32 %v2433_v35, %v2297_v8  ;;  %v2036_v20 = vmul.f32 %v11249_v53, %v14952_v0 }
 0x5cb   : > { %v6435_v2 = vadd.f32 %v6162_v18, %v13304_v17  ;;  %v6560_v62 = vmax.f32 %v6432_v32, 0.0  ;;  %v13403_v6 = vadd.f32 %v2434_v48, %v2298_v57  ;;  %7688 = vmatpush1.bf16.msra.mxu0 %v9697_v34  ;;  %v9700_v17 = vld [vmem:[%s14424_s3 + $0x640] ss:$8 sps:$4 sm:$0xff]   ;;  %v6561_v14 = vmax.f32 %v6433_v40, 0.0 }
 0x5cc   : > { %v5564_v46 = vpop.f32.mrb[220].mxu1  ;;  %v6562_v15 = vmax.f32 %v6434_v29, 0.0  ;;  %v13409_v13 = vadd.f32 %v2172_v39, %v2036_v20  ;;  %7689 = vmatprep.subr.bf16.mxu0 %v9702_v23  ;;  %v13414_v21 = vadd.f32 %v13142_v43, %v2299_v22  ;;  %v14954_v48 = vld [vmem:[#allocation71_spill] sm:$0xff]  ;;  %v9703_v20 = vld [vmem:[%s14424_s3 + $0x650] ss:$8 sps:$4 sm:$0xff]  }
 0x5cd   : > { %v5565_v25 = vadd.f32 %v5564_v46, %v12575_v51  ;;  %v5566_v7 = vpop.f32.mrb[221].mxu1  ;;  %v6563_v27 = vmax.f32 %v6435_v2, 0.0  ;;  %v6165_v3 = vpop.f32.mrb[32].mxu0  ;;  %v2173_v0 = vmul.f32 %v11257_v41, %v14954_v48  ;;  %v2174_v2 = vmul.f32 %v11272_v26, %v14954_v48  ;;  %v14955_v46 = vld [vmem:[#allocation74_spill] sm:$0xff] }
 0x5ce   : > { %v5567_v60 = vadd.f32 %v5566_v7, %v12578_v61  ;;  %v5568_v44 = vpop.f32.mrb[222].mxu1  ;;  %v6674_v33 = vpack.c.bf16 %v6562_v15, %v6560_v62  ;;  %v6166_v47 = vadd.f32 %v6165_v3, %v13040_v5  ;;  %v6167_v8 = vpop.f32.mrb[33].mxu0  ;;  %v2176_v7 = vmul.f32 %v11272_v26, %v14955_v46  ;;  %v14958_v3 = vld [vmem:[#allocation73_spill] sm:$0xff] }
 0x5cf   : > { %v5569_v31 = vadd.f32 %v5568_v44, %v12575_v51  ;;  %v5570_v28 = vpop.f32.mrb[223].mxu1  ;;  %v6168_v32 = vadd.f32 %v6167_v8, %v13045_v42  ;;  %v6169_v24 = vpop.f32.mrb[34].mxu0  ;;  %v6675_v58 = vpack.c.bf16 %v6563_v27, %v6561_v14  ;;  %v5745_v45 = vmax.f32 %v5565_v25, 0.0  ;;  %7690 = vmatpush1.bf16.msra.mxu0 %v9700_v17  ;;  %v14956_v25 = vld [vmem:[#allocation11_spill] sm:$0xff] }
 0x5d0   : > { %v5571_v35 = vadd.f32 %v5570_v28, %v12578_v61  ;;  %v6436_v40 = vadd.f32 %v6166_v47, %v13309_v52  ;;  %v6170_v18 = vadd.f32 %v6169_v24, %v13040_v5  ;;  %v6171_v39 = vpop.f32.mrb[35].mxu0  ;;  %v5746_v23 = vmax.f32 %v5567_v60, 0.0  ;;  %v9708_v17 = vld [vmem:[%s14424_s3 + $0x664] ss:$8 sps:$4 sm:$0xff]   ;;  %v14957_v60 = vld [vmem:[#allocation72_spill] sm:$0xff] }
 0x5d1   : > { %v5747_v34 = vmax.f32 %v5569_v31, 0.0  ;;  %v6437_v29 = vadd.f32 %v6168_v32, %v13312_v1  ;;  %v6172_v37 = vadd.f32 %v6171_v39, %v13045_v42  ;;  %7032 = vmatprep.mubr.bf16.mxu1 %v6675_v58  ;;  %v2175_v52 = vmul.f32 %v11257_v41, %v14955_v46  ;;  %v9705_v1 = vld [vmem:[%s14424_s3 + $0x654] ss:$8 sps:$4 sm:$0xff]  }
 0x5d2   : > { %v5748_v43 = vmax.f32 %v5571_v35, 0.0  ;;  %v6438_v22 = vadd.f32 %v6170_v18, %v13351_v19  ;;  %7033 = vmatmul.mubr.bf16.gmra.mrb[28].mxu1 %v6674_v33  ;;  %v2301_v19 = vadd.f32 %v2173_v0, %v14956_v25  ;;  %v6564_v14 = vmax.f32 %v6436_v40, 0.0  ;;  %7691 = vmatprep.subr.bf16.mxu0 %v9705_v1  ;;  %v9706_v35 = vld [vmem:[%s14424_s3 + $0x660] ss:$8 sps:$4 sm:$0xff]   ;;  %v14959_v18 = vld [vmem:[#allocation76_spill] sm:$0xff] }
 0x5d3   : > { %v5827_v57 = vpack.c.bf16 %v5747_v34, %v5745_v45  ;;  %v6439_v62 = vadd.f32 %v6172_v37, %v13353_v12  ;;  %v2437_v44 = vmul.f32 %v11252_v38, %v14957_v60  ;;  %v2039_v33 = vmul.f32 %v11239_v50, %v14958_v3  ;;  %7692 = vmatpush1.bf16.msra.mxu0 %v9703_v20 }
 0x5d4   : > { %v5828_v15 = vpack.c.bf16 %v5748_v43, %v5746_v23  ;;  %v6566_v27 = vmax.f32 %v6438_v22, 0.0  ;;  %v6565_v12 = vmax.f32 %v6437_v29, 0.0  ;;  %v2438_v28 = vmul.f32 %v11260_v54, %v14957_v60  ;;  %7693 = vmatprep.subr.bf16.mxu0 %v9708_v17  ;;  %v9711_v23 = vld [vmem:[%s14424_s3 + $0x674] ss:$8 sps:$4 sm:$0xff]  }
 0x5d5   : > { %v6567_v31 = vmax.f32 %v6439_v62, 0.0  ;;  %v6175_v47 = vpop.f32.mrb[36].mxu0  ;;  %v2040_v8 = vmul.f32 %v11249_v53, %v14958_v3  ;;  %v2303_v48 = vadd.f32 %v2175_v52, %v2039_v33  ;;  %v2177_v39 = vmul.f32 %v11257_v41, %v14959_v18  ;;  %v14963_v60 = vld [vmem:[#allocation4_spill] sm:$0xff] }
 0x5d6   : > { %6313 = vmatprep.mubr.bf16.mxu0 %v5828_v15  ;;  %v6676_v32 = vpack.c.bf16 %v6566_v27, %v6564_v14  ;;  %v6176_v24 = vadd.f32 %v6175_v47, %v13040_v5  ;;  %v6177_v58 = vpop.f32.mrb[37].mxu0  ;;  %v2178_v46 = vmul.f32 %v11272_v26, %v14959_v18  ;;  %v2564_v1 = vadd.f32 %v13152_v30, %v13409_v13  ;;  %v14961_v13 = vld [vmem:[#allocation9_spill] sm:$0xff]  ;;  %v9712_v47 = vld [vmem:[%s14424_s3 + $0x680] ss:$8 sps:$4 sm:$0xff]  }
 0x5d7   : > { %6314 = vmatmul.mubr.bf16.gmra.mrb[92].mxu0 %v5827_v57  ;;  %v6178_v0 = vadd.f32 %v6177_v58, %v13045_v42  ;;  %v6179_v45 = vpop.f32.mrb[38].mxu0  ;;  %v6677_v34 = vpack.c.bf16 %v6567_v31, %v6565_v12  ;;  %v2304_v40 = vadd.f32 %v2176_v7, %v2040_v8  ;;  %v14960_v57 = vld [vmem:[#allocation2_spill] sm:$0xff]  ;;  %v13478_v7 = vadd.f32 %v13172_v9, %v2303_v48  ;;  %v14962_v27 = vld [vmem:[#allocation77_spill] sm:$0xff]  ;;  %v14965_v58 = vld [vmem:[#allocation80_spill] sm:$0xff] }
 0x5d8   : > { %v6440_v43 = vadd.f32 %v6176_v24, %v13391_v16  ;;  %v6180_v29 = vadd.f32 %v6179_v45, %v13040_v5  ;;  %v6181_v37 = vpop.f32.mrb[39].mxu0  ;;  %v2302_v22 = vadd.f32 %v2174_v2, %v14960_v57  ;;  %7694 = vmatpush1.bf16.msra.mxu0 %v9706_v35  ;;  %v9709_v16 = vld [vmem:[%s14424_s3 + $0x670] ss:$8 sps:$4 sm:$0xff]   ;;  %v2565_v2 = vadd.f32 %v2437_v44, %v2301_v19 }
 0x5d9   : > { %v6441_v52 = vadd.f32 %v6178_v0, %v13396_v4  ;;  %v6182_v20 = vadd.f32 %v6181_v37, %v13045_v42  ;;  %7042 = vmatprep.mubr.bf16.mxu1 %v6677_v34  ;;  %7695 = vmatprep.subr.bf16.mxu0 %v9711_v23  ;;  %v9714_v4 = vld [vmem:[%s14424_s3 + $0x684] ss:$8 sps:$4 sm:$0xff]   ;;  %v13481_v30 = vadd.f32 %v13183_v56, %v2304_v40  ;;  %v9717_v0 = vld [vmem:[%s14424_s3 + $0x694] ss:$8 sps:$4 sm:$0xff]  }
 0x5da   : > { %v6442_v62 = vadd.f32 %v6180_v29, %v13398_v49  ;;  %7043 = vmatmul.mubr.bf16.gmra.mrb[32].mxu1 %v6676_v32  ;;  %v2566_v15 = vadd.f32 %v2438_v28, %v2302_v22  ;;  %v2305_v17 = vadd.f32 %v2177_v39, %v14961_v13  ;;  %v6568_v14 = vmax.f32 %v6440_v43, 0.0 }
 0x5db   : > { %v6443_v25 = vadd.f32 %v6182_v20, %v13403_v6  ;;  %v2441_v19 = vmul.f32 %v11252_v38, %v14962_v27  ;;  %v2306_v44 = vadd.f32 %v2178_v46, %v14963_v60  ;;  %v6569_v3 = vmax.f32 %v6441_v52, 0.0  ;;  %v14964_v6 = vld [vmem:[#allocation78_spill] sm:$0xff] }
 0x5dc   : > { %v6570_v49 = vmax.f32 %v6442_v62, 0.0  ;;  %v2442_v9 = vmul.f32 %v11260_v54, %v14962_v27  ;;  %v2043_v56 = vmul.f32 %v11239_v50, %v14964_v6  ;;  %7696 = vmatpush1.bf16.msra.mxu0 %v9709_v16  ;;  %v2179_v48 = vmul.f32 %v11257_v41, %v14965_v58 }
 0x5dd   : > { %v6571_v33 = vmax.f32 %v6443_v25, 0.0  ;;  %v6185_v12 = vpop.f32.mrb[40].mxu0  ;;  %7697 = vmatprep.subr.bf16.mxu0 %v9714_v4  ;;  %v2180_v23 = vmul.f32 %v11272_v26, %v14965_v58  ;;  %v2044_v46 = vmul.f32 %v11249_v53, %v14964_v6  ;;  %v9718_v58 = vld [vmem:[%s14424_s3 + $0x6a0] ss:$8 sps:$4 sm:$0xff]  }
 0x5de   : > { %v5574_v31 = vpop.f32.mrb[224].mxu1  ;;  %v6678_v28 = vpack.c.bf16 %v6570_v49, %v6568_v14  ;;  %v6186_v8 = vadd.f32 %v6185_v12, %v13040_v5  ;;  %v6187_v32 = vpop.f32.mrb[41].mxu0  ;;  %v2307_v13 = vadd.f32 %v2179_v48, %v2043_v56  ;;  %v14966_v12 = vld [vmem:[#allocation82_spill] sm:$0xff] }
 0x5df   : > { %v5575_v35 = vadd.f32 %v5574_v31, %v12575_v51  ;;  %v5576_v24 = vpop.f32.mrb[225].mxu1  ;;  %v6188_v45 = vadd.f32 %v6187_v32, %v13045_v42  ;;  %v6189_v40 = vpop.f32.mrb[42].mxu0  ;;  %v6679_v39 = vpack.c.bf16 %v6571_v33, %v6569_v3  ;;  %v2181_v31 = vmul.f32 %v11257_v41, %v14966_v12  ;;  %v9720_v48 = vld [vmem:[%s14424_s3 + $0x6a4] ss:$8 sps:$4 sm:$0xff]  }
 0x5e0   : > { %v5577_v34 = vadd.f32 %v5576_v24, %v12578_v61  ;;  %v5578_v18 = vpop.f32.mrb[226].mxu1  ;;  %v6444_v43 = vadd.f32 %v6186_v8, %v13414_v21  ;;  %v6190_v29 = vadd.f32 %v6189_v40, %v13040_v5  ;;  %v6191_v57 = vpop.f32.mrb[43].mxu0  ;;  %7698 = vmatpush1.bf16.msra.mxu0 %v9712_v47  ;;  %v9715_v21 = vld [vmem:[%s14424_s3 + $0x690] ss:$8 sps:$4 sm:$0xff]   ;;  %v2569_v32 = vadd.f32 %v2441_v19, %v2305_v17 }
 0x5e1   : > { %v5579_v37 = vadd.f32 %v5578_v18, %v12575_v51  ;;  %v5580_v22 = vpop.f32.mrb[227].mxu1  ;;  %v6445_v52 = vadd.f32 %v6188_v45, %v2564_v1  ;;  %v6192_v20 = vadd.f32 %v6191_v57, %v13045_v42  ;;  %7052 = vmatprep.mubr.bf16.mxu1 %v6679_v39  ;;  %v5749_v62 = vmax.f32 %v5575_v35, 0.0  ;;  %7699 = vmatprep.subr.bf16.mxu0 %v9717_v0  ;;  %v14967_v18 = vld [vmem:[#allocation5_spill] sm:$0xff]  ;;  %v14969_v57 = vld [vmem:[#allocation87_spill] sm:$0xff] }
 0x5e2   : > { %v5581_v16 = vadd.f32 %v5580_v22, %v12578_v61  ;;  %v6446_v4 = vadd.f32 %v6190_v29, %v2565_v2  ;;  %7053 = vmatmul.mubr.bf16.gmra.mrb[36].mxu1 %v6678_v28  ;;  %v5750_v14 = vmax.f32 %v5577_v34, 0.0  ;;  %v2308_v1 = vadd.f32 %v2180_v23, %v2044_v46 }
 0x5e3   : > { %v5751_v25 = vmax.f32 %v5579_v37, 0.0  ;;  %v6447_v49 = vadd.f32 %v6192_v20, %v2566_v15  ;;  %v6572_v60 = vmax.f32 %v6444_v43, 0.0  ;;  %v6573_v6 = vmax.f32 %v6445_v52, 0.0  ;;  %v14968_v43 = vld [vmem:[#allocation84_spill] sm:$0xff]  ;;  %v14970_v20 = vld [vmem:[#allocation6_spill] sm:$0xff] }
 0x5e4   : > { %v5752_v27 = vmax.f32 %v5581_v16, 0.0  ;;  %v6574_v3 = vmax.f32 %v6446_v4, 0.0  ;;  %7700 = vmatpush1.bf16.msra.mxu0 %v9715_v21  ;;  %v2570_v24 = vadd.f32 %v2442_v9, %v2306_v44  ;;  %v2571_v15 = vadd.f32 %v13192_v59, %v2307_v13  ;;  %v9723_v59 = vld [vmem:[%s14424_s3 + $0x6b4] ss:$8 sps:$4 sm:$0xff]  }
 0x5e5   : > { %v5829_v33 = vpack.c.bf16 %v5751_v25, %v5749_v62  ;;  %v6575_v47 = vmax.f32 %v6447_v49, 0.0  ;;  %v6195_v8 = vpop.f32.mrb[44].mxu0  ;;  %v2572_v45 = vadd.f32 %v13196_v10, %v2308_v1  ;;  %v2182_v44 = vmul.f32 %v11272_v26, %v14966_v12  ;;  %7701 = vmatprep.subr.bf16.mxu0 %v9720_v48  ;;  %v14971_v62 = vld [vmem:[#allocation85_spill] sm:$0xff] }
 0x5e6   : > { %v5830_v35 = vpack.c.bf16 %v5752_v27, %v5750_v14  ;;  %v6680_v2 = vpack.c.bf16 %v6574_v3, %v6572_v60  ;;  %v6196_v56 = vadd.f32 %v6195_v8, %v13040_v5  ;;  %v6197_v28 = vpop.f32.mrb[45].mxu0  ;;  %v2309_v39 = vadd.f32 %v2181_v31, %v14967_v18  ;;  %v14972_v49 = vld [vmem:[#allocation89_spill] sm:$0xff]  ;;  %v9724_v31 = vld [vmem:[%s14424_s3 + $0x6c0] ss:$8 sps:$4 sm:$0xff]  }
 0x5e7   : > { %v6198_v0 = vadd.f32 %v6197_v28, %v13045_v42  ;;  %v6199_v17 = vpop.f32.mrb[46].mxu0  ;;  %v6681_v19 = vpack.c.bf16 %v6575_v47, %v6573_v6  ;;  %v2445_v29 = vmul.f32 %v11252_v38, %v14968_v43  ;;  %v2183_v22 = vmul.f32 %v11257_v41, %v14969_v57 }
 0x5e8   : > { %6323 = vmatprep.mubr.bf16.mxu0 %v5830_v35  ;;  %v6448_v9 = vadd.f32 %v6196_v56, %v13478_v7  ;;  %v6200_v34 = vadd.f32 %v6199_v17, %v13040_v5  ;;  %v6201_v40 = vpop.f32.mrb[47].mxu0  ;;  %7702 = vmatpush1.bf16.msra.mxu0 %v9718_v58  ;;  %v9721_v7 = vld [vmem:[%s14424_s3 + $0x6b0] ss:$8 sps:$4 sm:$0xff]   ;;  %v2184_v46 = vmul.f32 %v11272_v26, %v14969_v57  ;;  %v14973_v58 = vld [vmem:[#allocation91_spill] sm:$0xff] }
 0x5e9   : > { %6324 = vmatmul.mubr.bf16.gmra.mrb[96].mxu0 %v5829_v33  ;;  %v6449_v23 = vadd.f32 %v6198_v0, %v13481_v30  ;;  %v6202_v10 = vadd.f32 %v6201_v40, %v13045_v42  ;;  %7062 = vmatprep.mubr.bf16.mxu1 %v6681_v19  ;;  %v9726_v30 = vld [vmem:[%s14424_s3 + $0x6c4] ss:$8 sps:$4 sm:$0xff]   ;;  %v2310_v16 = vadd.f32 %v2182_v44, %v14970_v20 }
 0x5ea   : > { %v6450_v37 = vadd.f32 %v6200_v34, %v2569_v32  ;;  %7063 = vmatmul.mubr.bf16.gmra.mrb[40].mxu1 %v6680_v2  ;;  %7703 = vmatprep.subr.bf16.mxu0 %v9723_v59  ;;  %v2446_v21 = vmul.f32 %v11260_v54, %v14968_v43  ;;  %v2047_v4 = vmul.f32 %v11239_v50, %v14971_v62  ;;  %v6576_v25 = vmax.f32 %v6448_v9, 0.0  ;;  %v9729_v2 = vld [vmem:[%s14424_s3 + $0x6d4] ss:$8 sps:$4 sm:$0xff]   ;;  %v14974_v9 = vld [vmem:[#allocation7_spill] sm:$0xff] }
 0x5eb   : > { %v6451_v52 = vadd.f32 %v6202_v10, %v2570_v24  ;;  %v2048_v14 = vmul.f32 %v11249_v53, %v14971_v62  ;;  %v2185_v27 = vmul.f32 %v11257_v41, %v14972_v49  ;;  %v6577_v1 = vmax.f32 %v6449_v23, 0.0  ;;  %v9727_v10 = vld [vmem:[%s14424_s3 + $0x6d0] ss:$8 sps:$4 sm:$0xff]  }
 0x5ec   : > { %v6578_v13 = vmax.f32 %v6450_v37, 0.0  ;;  %v2573_v33 = vadd.f32 %v2445_v29, %v2309_v39  ;;  %v2186_v12 = vmul.f32 %v11272_v26, %v14972_v49  ;;  %7704 = vmatpush1.bf16.msra.mxu0 %v9721_v7  ;;  %v2311_v32 = vadd.f32 %v2183_v22, %v2047_v4  ;;  %v14975_v39 = vld [vmem:[#allocation8_spill] sm:$0xff] }
 0x5ed   : > { %v6579_v60 = vmax.f32 %v6451_v52, 0.0  ;;  %v6205_v3 = vpop.f32.mrb[48].mxu0  ;;  %v2312_v35 = vadd.f32 %v2184_v46, %v2048_v14  ;;  %7705 = vmatprep.subr.bf16.mxu0 %v9726_v30  ;;  %v2449_v48 = vmul.f32 %v11252_v38, %v14973_v58  ;;  %v2450_v0 = vmul.f32 %v11260_v54, %v14973_v58  ;;  %v14977_v14 = vld [vmem:[#allocation94_spill] sm:$0xff] }
 0x5ee   : > { %v6682_v6 = vpack.c.bf16 %v6578_v13, %v6576_v25  ;;  %v6206_v47 = vadd.f32 %v6205_v3, %v13040_v5  ;;  %v6207_v8 = vpop.f32.mrb[49].mxu0  ;;  %v2574_v44 = vadd.f32 %v2446_v21, %v2310_v16  ;;  %v2313_v34 = vadd.f32 %v2185_v27, %v14974_v9  ;;  %v14976_v21 = vld [vmem:[#allocation93_spill] sm:$0xff]  ;;  %v9730_v27 = vld [vmem:[%s14424_s3 + $0x6e0] ss:$8 sps:$4 sm:$0xff]  }
 0x5ef   : > { %v6208_v56 = vadd.f32 %v6207_v8, %v13045_v42  ;;  %v6209_v28 = vpop.f32.mrb[50].mxu0  ;;  %v6683_v24 = vpack.c.bf16 %v6579_v60, %v6577_v1  ;;  %v2314_v23 = vadd.f32 %v2186_v12, %v14975_v39  ;;  %v2576_v7 = vadd.f32 %v13207_v36, %v2312_v35 }
 0x5f0   : > { %v6452_v17 = vadd.f32 %v6206_v47, %v2571_v15  ;;  %v6210_v19 = vadd.f32 %v6209_v28, %v13040_v5  ;;  %v6211_v59 = vpop.f32.mrb[51].mxu0  ;;  %7706 = vmatpush1.bf16.msra.mxu0 %v9724_v31  ;;  %v2575_v15 = vadd.f32 %v13203_v11, %v2311_v32  ;;  %v2577_v22 = vadd.f32 %v2449_v48, %v2313_v34  ;;  %v9732_v31 = vld [vmem:[%s14424_s3 + $0x6e4] ss:$8 sps:$4 sm:$0xff]  }
 0x5f1   : > { %v6453_v40 = vadd.f32 %v6208_v56, %v2572_v45  ;;  %v6212_v18 = vadd.f32 %v6211_v59, %v13045_v42  ;;  %7072 = vmatprep.mubr.bf16.mxu1 %v6683_v24  ;;  %7707 = vmatprep.subr.bf16.mxu0 %v9729_v2  ;;  %v2578_v46 = vadd.f32 %v2450_v0, %v2314_v23 }
 0x5f2   : > { %v6454_v43 = vadd.f32 %v6210_v19, %v2573_v33  ;;  %7073 = vmatmul.mubr.bf16.gmra.mrb[44].mxu1 %v6682_v6  ;;  %v6580_v30 = vmax.f32 %v6452_v17, 0.0  ;;  %v2051_v62 = vmul.f32 %v11239_v50, %v14976_v21  ;;  %v2187_v49 = vmul.f32 %v11257_v41, %v14977_v14  ;;  %v9735_v19 = vld [vmem:[%s14424_s3 + $0x6f4] ss:$8 sps:$4 sm:$0xff]  }
 0x5f3   : > { %v5584_v29 = vpop.f32.mrb[228].mxu1  ;;  %v6455_v37 = vadd.f32 %v6212_v18, %v2574_v44  ;;  %v6581_v4 = vmax.f32 %v6453_v40, 0.0  ;;  %v2188_v12 = vmul.f32 %v11272_v26, %v14977_v14  ;;  %v14978_v44 = vld [vmem:[#allocation95_spill] sm:$0xff]  ;;  %v2052_v40 = vmul.f32 %v11249_v53, %v14976_v21  ;;  %v9733_v18 = vld [vmem:[%s14424_s3 + $0x6f0] ss:$8 sps:$4 sm:$0xff]  }
 0x5f4   : > { %v5585_v45 = vadd.f32 %v5584_v29, %v12575_v51  ;;  %v5586_v57 = vpop.f32.mrb[229].mxu1  ;;  %v6582_v52 = vmax.f32 %v6454_v43, 0.0  ;;  %7708 = vmatpush1.bf16.msra.mxu0 %v9727_v10  ;;  %v2053_v59 = vmul.f32 %v11239_v50, %v14978_v44  ;;  %v2054_v39 = vmul.f32 %v11249_v53, %v14978_v44  ;;  %v14979_v43 = vld [vmem:[#allocation96_spill] sm:$0xff] }
 0x5f5   : > { %v5587_v20 = vadd.f32 %v5586_v57, %v12578_v61  ;;  %v5588_v16 = vpop.f32.mrb[230].mxu1  ;;  %v6583_v25 = vmax.f32 %v6455_v37, 0.0  ;;  %v6215_v13 = vpop.f32.mrb[52].mxu0  ;;  %7709 = vmatprep.subr.bf16.mxu0 %v9732_v31  ;;  %v2315_v10 = vadd.f32 %v2187_v49, %v2051_v62  ;;  %v2189_v29 = vmul.f32 %v11257_v41, %v14979_v43 }
 0x5f6   : > { %v5589_v11 = vadd.f32 %v5588_v16, %v12575_v51  ;;  %v5590_v36 = vpop.f32.mrb[231].mxu1  ;;  %v6684_v1 = vpack.c.bf16 %v6582_v52, %v6580_v30  ;;  %v6216_v3 = vadd.f32 %v6215_v13, %v13040_v5  ;;  %v6217_v33 = vpop.f32.mrb[53].mxu0  ;;  %v5753_v6 = vmax.f32 %v5585_v45, 0.0  ;;  %v14980_v30 = vld [vmem:[#allocation97_spill] sm:$0xff] }
 0x5f7   : > { %v5591_v60 = vadd.f32 %v5590_v36, %v12578_v61  ;;  %v6218_v8 = vadd.f32 %v6217_v33, %v13045_v42  ;;  %v6219_v32 = vpop.f32.mrb[54].mxu0  ;;  %v6685_v35 = vpack.c.bf16 %v6583_v25, %v6581_v4  ;;  %v5754_v2 = vmax.f32 %v5587_v20, 0.0 }
 0x5f8   : > { %v5755_v47 = vmax.f32 %v5589_v11, 0.0  ;;  %v6456_v28 = vadd.f32 %v6216_v3, %v2575_v15  ;;  %v6220_v24 = vadd.f32 %v6219_v32, %v13040_v5  ;;  %v6221_v58 = vpop.f32.mrb[55].mxu0  ;;  %7710 = vmatpush1.bf16.msra.mxu0 %v9730_v27  ;;  %v2316_v37 = vadd.f32 %v2188_v12, %v2052_v40 }
 0x5f9   : > { %v5756_v56 = vmax.f32 %v5591_v60, 0.0  ;;  %v6457_v0 = vadd.f32 %v6218_v8, %v2576_v7  ;;  %v6222_v17 = vadd.f32 %v6221_v58, %v13045_v42  ;;  %7082 = vmatprep.mubr.bf16.mxu1 %v6685_v35  ;;  %7711 = vmatprep.subr.bf16.mxu0 %v9735_v19  ;;  %v2190_v45 = vmul.f32 %v11272_v26, %v14979_v43 }
 0x5fa   : > { %v5831_v48 = vpack.c.bf16 %v5755_v47, %v5753_v6  ;;  %v6458_v9 = vadd.f32 %v6220_v24, %v2577_v22  ;;  %7083 = vmatmul.mubr.bf16.gmra.mrb[48].mxu1 %v6684_v1  ;;  %v6584_v15 = vmax.f32 %v6456_v28, 0.0  ;;  %v2453_v52 = vmul.f32 %v11252_v38, %v14980_v30 }
 0x5fb   : > { %v5832_v34 = vpack.c.bf16 %v5756_v56, %v5754_v2  ;;  %v6459_v23 = vadd.f32 %v6222_v17, %v2578_v46  ;;  %v6585_v57 = vmax.f32 %v6457_v0, 0.0  ;;  %v2454_v16 = vmul.f32 %v11260_v54, %v14980_v30  ;;  %v14985_v30 = vld [vmem:[#allocation101_spill] sm:$0xff] }
 0x5fc   : > { %v6586_v7 = vmax.f32 %v6458_v9, 0.0  ;;  %7712 = vmatpush1.bf16.msra.mxu0 %v9733_v18  ;;  %v2579_v21 = vadd.f32 %v13222_v63, %v2315_v10  ;;  %v2317_v25 = vadd.f32 %v2189_v29, %v2053_v59  ;;  %v2580_v36 = vadd.f32 %v13229_v55, %v2316_v37  ;;  %v14981_v9 = vld [vmem:[#allocation99_spill] sm:$0xff]  ;;  %v14982_v10 = vld [vmem:[#allocation98_spill] sm:$0xff] }
 0x5fd   : > { %6333 = vmatprep.mubr.bf16.mxu0 %v5832_v34  ;;  %v6587_v22 = vmax.f32 %v6459_v23, 0.0  ;;  %v2318_v49 = vadd.f32 %v2190_v45, %v2054_v39  ;;  %v2191_v34 = vmul.f32 %v11257_v41, %v14981_v9  ;;  %v2192_v39 = vmul.f32 %v11272_v26, %v14981_v9  ;;  %v14984_v45 = vld [vmem:[#allocation100_spill] sm:$0xff] }
 0x5fe   : > { %6334 = vmatmul.mubr.bf16.gmra.mrb[100].mxu0 %v5831_v48  ;;  %v6686_v20 = vpack.c.bf16 %v6586_v7, %v6584_v15  ;;  %v2581_v1 = vadd.f32 %v2453_v52, %v2317_v25  ;;  %v2055_v43 = vmul.f32 %v11239_v50, %v14982_v10  ;;  %v2056_v15 = vmul.f32 %v11249_v53, %v14982_v10  ;;  %v14983_v7 = vld [vmem:[#allocation86_spill] sm:$0xff] }
 0x5ff   : > { %v6225_v46 = vpop.f32.mrb[56].mxu0  ;;  %v6687_v11 = vpack.c.bf16 %v6587_v22, %v6585_v57  ;;  %v2582_v12 = vadd.f32 %v2454_v16, %v2318_v49  ;;  %v2455_v37 = vmul.f32 %v11252_v38, %v14983_v7  ;;  %v2057_v57 = vmul.f32 %v11239_v50, %v14984_v45 }
 0x600   : > { %v6226_v62 = vadd.f32 %v6225_v46, %v13040_v5  ;;  %v6227_v4 = vpop.f32.mrb[57].mxu0  ;;  %v2319_v22 = vadd.f32 %v2191_v34, %v2055_v43  ;;  %v2193_v52 = vmul.f32 %v11257_v41, %v14985_v30  ;;  %v2058_v46 = vmul.f32 %v11249_v53, %v14984_v45 }
 0x601   : > { %v6228_v13 = vadd.f32 %v6227_v4, %v13045_v42  ;;  %v6229_v14 = vpop.f32.mrb[58].mxu0  ;;  %7092 = vmatprep.mubr.bf16.mxu1 %v6687_v11  ;;  %v2320_v16 = vadd.f32 %v2192_v39, %v2056_v15  ;;  %v14987_v39 = vld [vmem:[#allocation104_spill] sm:$0xff] }
 0x602   : > { %v6460_v27 = vadd.f32 %v6226_v62, %v2579_v21  ;;  %v6230_v60 = vadd.f32 %v6229_v14, %v13040_v5  ;;  %v6231_v3 = vpop.f32.mrb[59].mxu0  ;;  %7093 = vmatmul.mubr.bf16.gmra.mrb[52].mxu1 %v6686_v20  ;;  %v2456_v20 = vmul.f32 %v11260_v54, %v14983_v7  ;;  %v2194_v21 = vmul.f32 %v11272_v26, %v14985_v30  ;;  %v14986_v62 = vld [vmem:[#allocation102_spill] sm:$0xff]  ;;  %v14988_v7 = vld [vmem:[#allocation103_spill] sm:$0xff] }
 0x603   : > { %v6461_v33 = vadd.f32 %v6228_v13, %v2580_v36  ;;  %v6232_v63 = vadd.f32 %v6231_v3, %v13045_v42  ;;  %v2457_v4 = vmul.f32 %v11252_v38, %v14986_v62  ;;  %v2458_v11 = vmul.f32 %v11260_v54, %v14986_v62 }
 0x604   : > { %v6462_v31 = vadd.f32 %v6230_v60, %v2581_v1  ;;  %v5594_v47 = vpop.f32.mrb[232].mxu1  ;;  %v6588_v8 = vmax.f32 %v6460_v27, 0.0  ;;  %v2583_v36 = vadd.f32 %v2455_v37, %v2319_v22  ;;  %v2321_v49 = vadd.f32 %v2193_v52, %v2057_v57  ;;  %v14989_v22 = vld [vmem:[#allocation88_spill] sm:$0xff]  ;;  %v14990_v52 = vld [vmem:[#allocation105_spill] sm:$0xff] }
 0x605   : > { %v6463_v6 = vadd.f32 %v6232_v63, %v2582_v12  ;;  %v5595_v32 = vadd.f32 %v5594_v47, %v12575_v51  ;;  %v5596_v35 = vpop.f32.mrb[233].mxu1  ;;  %v6589_v2 = vmax.f32 %v6461_v33, 0.0  ;;  %v2584_v27 = vadd.f32 %v2456_v20, %v2320_v16  ;;  %v14991_v16 = vld [vmem:[#allocation106_spill] sm:$0xff] }
 0x606   : > { %v6590_v55 = vmax.f32 %v6462_v31, 0.0  ;;  %v5597_v28 = vadd.f32 %v5596_v35, %v12578_v61  ;;  %v5598_v24 = vpop.f32.mrb[234].mxu1  ;;  %v2322_v3 = vadd.f32 %v2194_v21, %v2058_v46  ;;  %v2585_v12 = vadd.f32 %v2457_v4, %v2321_v49 }
 0x607   : > { %v6591_v56 = vmax.f32 %v6463_v6, 0.0  ;;  %v5599_v48 = vadd.f32 %v5598_v24, %v12575_v51  ;;  %v5600_v0 = vpop.f32.mrb[235].mxu1  ;;  %v5757_v44 = vmax.f32 %v5595_v32, 0.0  ;;  %v2059_v37 = vmul.f32 %v11239_v50, %v14988_v7 }
 0x608   : > { %v6688_v58 = vpack.c.bf16 %v6590_v55, %v6588_v8  ;;  %v5601_v17 = vadd.f32 %v5600_v0, %v12578_v61  ;;  %v5758_v40 = vmax.f32 %v5597_v28, 0.0  ;;  %v2586_v47 = vadd.f32 %v2458_v11, %v2322_v3 }
 0x609   : > { %v6689_v19 = vpack.c.bf16 %v6591_v56, %v6589_v2  ;;  %v5759_v59 = vmax.f32 %v5599_v48, 0.0  ;;  %v2060_v57 = vmul.f32 %v11249_v53, %v14988_v7  ;;  %v2459_v30 = vmul.f32 %v11252_v38, %v14989_v22 }
 0x60a   : > { %v5760_v18 = vmax.f32 %v5601_v17, 0.0  ;;  %v2061_v20 = vmul.f32 %v11239_v50, %v14990_v52  ;;  %v2197_v21 = vmul.f32 %v11257_v41, %v14991_v16  ;;  %v2460_v62 = vmul.f32 %v11260_v54, %v14989_v22  ;;  %v14994_v22 = vld [vmem:[#allocation108_spill] sm:$0xff] }
 0x60b   : > { %7102 = vmatprep.mubr.bf16.mxu1 %v6689_v19  ;;  %v5833_v23 = vpack.c.bf16 %v5759_v59, %v5757_v44  ;;  %v2062_v4 = vmul.f32 %v11249_v53, %v14990_v52  ;;  %v2198_v11 = vmul.f32 %v11272_v26, %v14991_v16 }
 0x60c   : > { %7103 = vmatmul.mubr.bf16.gmra.mrb[56].mxu1 %v6688_v58  ;;  %v5834_v29 = vpack.c.bf16 %v5760_v18, %v5758_v40  ;;  %v2325_v3 = vadd.f32 %v2197_v21, %v2061_v20  ;;  %v2064_v20 = vmul.f32 %v11249_v53, %v14994_v22  ;;  %v14996_v21 = vld [vmem:[#allocation109_spill] sm:$0xff] }
 0x60e   : > { %6343 = vmatprep.mubr.bf16.mxu0 %v5834_v29  ;;  %v2196_v29 = vmul.f32 %v11272_v26, %v14987_v39 }
 0x60f   : > { %6344 = vmatmul.mubr.bf16.gmra.mrb[104].mxu0 %v5833_v23  ;;  %v2195_v23 = vmul.f32 %v11257_v41, %v14987_v39 }
 0x610   : > { %v6235_v25 = vpop.f32.mrb[60].mxu0 }
 0x611   : > { %v6236_v13 = vadd.f32 %v6235_v25, %v13040_v5  ;;  %v6237_v14 = vpop.f32.mrb[61].mxu0  ;;  %v2323_v46 = vadd.f32 %v2195_v23, %v2059_v37  ;;  %v2324_v25 = vadd.f32 %v2196_v29, %v2060_v57  ;;  %v14993_v29 = vld [vmem:[#allocation110_spill] sm:$0xff] }
 0x612   : > { %v6238_v1 = vadd.f32 %v6237_v14, %v13045_v42  ;;  %v6239_v60 = vpop.f32.mrb[62].mxu0 }
 0x613   : > { %v6464_v33 = vadd.f32 %v6236_v13, %v2583_v36  ;;  %v6240_v63 = vadd.f32 %v6239_v60, %v13040_v5  ;;  %v6241_v31 = vpop.f32.mrb[63].mxu0  ;;  %v14992_v36 = vld [vmem:[#allocation107_spill] sm:$0xff] }
 0x614   : > { %v6465_v6 = vadd.f32 %v6238_v1, %v2584_v27  ;;  %v6242_v8 = vadd.f32 %v6241_v31, %v13045_v42  ;;  %v2461_v13 = vmul.f32 %v11252_v38, %v14992_v36  ;;  %v2462_v49 = vmul.f32 %v11260_v54, %v14992_v36 }
 0x615   : > { %v6466_v55 = vadd.f32 %v6240_v63, %v2585_v12  ;;  %v6592_v35 = vmax.f32 %v6464_v33, 0.0  ;;  %v2587_v27 = vadd.f32 %v2459_v30, %v2323_v46  ;;  %v2588_v33 = vadd.f32 %v2460_v62, %v2324_v25  ;;  %v14995_v46 = vld [vmem:[#allocation90_spill] sm:$0xff]  ;;  %v14997_v25 = vld [vmem:[#allocation112_spill] sm:$0xff] }
 0x616   : > { %v6467_v32 = vadd.f32 %v6242_v8, %v2586_v47  ;;  %v6593_v28 = vmax.f32 %v6465_v6, 0.0  ;;  %v2326_v31 = vadd.f32 %v2198_v11, %v2062_v4  ;;  %v2589_v47 = vadd.f32 %v2461_v13, %v2325_v3 }
 0x617   : > { %v6594_v2 = vmax.f32 %v6466_v55, 0.0  ;;  %v5604_v56 = vpop.f32.mrb[236].mxu1  ;;  %v2063_v30 = vmul.f32 %v11239_v50, %v14994_v22  ;;  %v2463_v16 = vmul.f32 %v11252_v38, %v14995_v46  ;;  %v2065_v62 = vmul.f32 %v11239_v50, %v14996_v21 }
 0x618   : > { %v6595_v24 = vmax.f32 %v6467_v32, 0.0  ;;  %v5605_v58 = vadd.f32 %v5604_v56, %v12575_v51  ;;  %v5606_v48 = vpop.f32.mrb[237].mxu1  ;;  %v2201_v11 = vmul.f32 %v11257_v41, %v14997_v25  ;;  %v2464_v36 = vmul.f32 %v11260_v54, %v14995_v46  ;;  %v15000_v46 = vld [vmem:[#allocation114_spill] sm:$0xff] }
 0x619   : > { %v6690_v0 = vpack.c.bf16 %v6594_v2, %v6592_v35  ;;  %v5607_v17 = vadd.f32 %v5606_v48, %v12578_v61  ;;  %v5608_v19 = vpop.f32.mrb[238].mxu1  ;;  %v2590_v35 = vadd.f32 %v2462_v49, %v2326_v31  ;;  %v2066_v13 = vmul.f32 %v11249_v53, %v14996_v21 }
 0x61a   : > { %v5609_v44 = vadd.f32 %v5608_v19, %v12575_v51  ;;  %v5610_v59 = vpop.f32.mrb[239].mxu1  ;;  %v6691_v9 = vpack.c.bf16 %v6595_v24, %v6593_v28  ;;  %v5761_v40 = vmax.f32 %v5605_v58, 0.0  ;;  %v2202_v49 = vmul.f32 %v11272_v26, %v14997_v25 }
 0x61b   : > { %v5611_v34 = vadd.f32 %v5610_v59, %v12578_v61  ;;  %v5762_v10 = vmax.f32 %v5607_v17, 0.0  ;;  %v2329_v31 = vadd.f32 %v2201_v11, %v2065_v62  ;;  %v2068_v62 = vmul.f32 %v11249_v53, %v15000_v46  ;;  %v15002_v11 = vld [vmem:[#allocation111_spill] sm:$0xff] }
 0x61c   : > { %v5763_v18 = vmax.f32 %v5609_v44, 0.0  ;;  %7112 = vmatprep.mubr.bf16.mxu1 %v6691_v9 }
 0x61d   : > { %v5764_v43 = vmax.f32 %v5611_v34, 0.0  ;;  %7113 = vmatmul.mubr.bf16.gmra.mrb[60].mxu1 %v6690_v0 }
 0x61e   : > { %v5835_v15 = vpack.c.bf16 %v5763_v18, %v5761_v40 }
 0x61f   : > { %v5836_v45 = vpack.c.bf16 %v5764_v43, %v5762_v10 }
 0x621   : > { %6353 = vmatprep.mubr.bf16.mxu0 %v5836_v45  ;;  %v2200_v45 = vmul.f32 %v11272_v26, %v14993_v29 }
 0x622   : > { %6354 = vmatmul.mubr.bf16.gmra.mrb[108].mxu0 %v5835_v15  ;;  %v2199_v15 = vmul.f32 %v11257_v41, %v14993_v29 }
 0x623   : > { %v6245_v14 = vpop.f32.mrb[64].mxu0 }
 0x624   : > { %v6246_v1 = vadd.f32 %v6245_v14, %v13040_v5  ;;  %v6247_v60 = vpop.f32.mrb[65].mxu0  ;;  %v2327_v4 = vadd.f32 %v2199_v15, %v2063_v30  ;;  %v2328_v14 = vadd.f32 %v2200_v45, %v2064_v20  ;;  %v14999_v45 = vld [vmem:[#allocation115_spill] sm:$0xff] }
 0x625   : > { %v6248_v12 = vadd.f32 %v6247_v60, %v13045_v42  ;;  %v6249_v63 = vpop.f32.mrb[66].mxu0 }
 0x626   : > { %v6468_v6 = vadd.f32 %v6246_v1, %v2587_v27  ;;  %v6250_v8 = vadd.f32 %v6249_v63, %v13040_v5  ;;  %v6251_v55 = vpop.f32.mrb[67].mxu0  ;;  %v14998_v27 = vld [vmem:[#allocation113_spill] sm:$0xff] }
 0x627   : > { %v6469_v32 = vadd.f32 %v6248_v12, %v2588_v33  ;;  %v6252_v2 = vadd.f32 %v6251_v55, %v13045_v42  ;;  %v2465_v1 = vmul.f32 %v11252_v38, %v14998_v27  ;;  %v2466_v3 = vmul.f32 %v11260_v54, %v14998_v27 }
 0x628   : > { %v6470_v56 = vadd.f32 %v6250_v8, %v2589_v47  ;;  %v6596_v24 = vmax.f32 %v6468_v6, 0.0  ;;  %v2591_v33 = vadd.f32 %v2463_v16, %v2327_v4  ;;  %v2592_v6 = vadd.f32 %v2464_v36, %v2328_v14  ;;  %v15001_v4 = vld [vmem:[#allocation92_spill] sm:$0xff] }
 0x629   : > { %v6471_v28 = vadd.f32 %v6252_v2, %v2590_v35  ;;  %v6597_v0 = vmax.f32 %v6469_v32, 0.0  ;;  %v2330_v55 = vadd.f32 %v2202_v49, %v2066_v13  ;;  %v2593_v35 = vadd.f32 %v2465_v1, %v2329_v31  ;;  %v15003_v14 = vld [vmem:[#allocation116_spill] sm:$0xff] }
 0x62a   : > { %v6598_v58 = vmax.f32 %v6470_v56, 0.0  ;;  %v5614_v48 = vpop.f32.mrb[240].mxu1  ;;  %v2067_v16 = vmul.f32 %v11239_v50, %v15000_v46  ;;  %v2467_v25 = vmul.f32 %v11252_v38, %v15001_v4  ;;  %v2069_v36 = vmul.f32 %v11239_v50, %v15002_v11  ;;  %v15005_v46 = vld [vmem:[#allocation119_spill] sm:$0xff] }
 0x62b   : > { %v6599_v17 = vmax.f32 %v6471_v28, 0.0  ;;  %v5615_v19 = vadd.f32 %v5614_v48, %v12575_v51  ;;  %v5616_v44 = vpop.f32.mrb[241].mxu1  ;;  %v2205_v49 = vmul.f32 %v11257_v41, %v15003_v14  ;;  %v2468_v27 = vmul.f32 %v11260_v54, %v15001_v4 }
 0x62c   : > { %v6692_v59 = vpack.c.bf16 %v6598_v58, %v6596_v24  ;;  %v5617_v9 = vadd.f32 %v5616_v44, %v12578_v61  ;;  %v5618_v34 = vpop.f32.mrb[242].mxu1  ;;  %v2594_v24 = vadd.f32 %v2466_v3, %v2330_v55  ;;  %v2070_v1 = vmul.f32 %v11249_v53, %v15002_v11 }
 0x62d   : > { %v5619_v40 = vadd.f32 %v5618_v34, %v12575_v51  ;;  %v5620_v18 = vpop.f32.mrb[243].mxu1  ;;  %v6693_v39 = vpack.c.bf16 %v6599_v17, %v6597_v0  ;;  %v5765_v10 = vmax.f32 %v5615_v19, 0.0  ;;  %v2206_v3 = vmul.f32 %v11272_v26, %v15003_v14 }
 0x62e   : > { %v5621_v23 = vadd.f32 %v5620_v18, %v12578_v61  ;;  %v5766_v7 = vmax.f32 %v5617_v9, 0.0  ;;  %v2333_v55 = vadd.f32 %v2205_v49, %v2069_v36 }
 0x62f   : > { %v5767_v43 = vmax.f32 %v5619_v40, 0.0  ;;  %7122 = vmatprep.mubr.bf16.mxu1 %v6693_v39 }
 0x630   : > { %v5768_v37 = vmax.f32 %v5621_v23, 0.0  ;;  %7123 = vmatmul.mubr.bf16.gmra.mrb[64].mxu1 %v6692_v59 }
 0x631   : > { %v5837_v57 = vpack.c.bf16 %v5767_v43, %v5765_v10 }
 0x632   : > { %v5838_v52 = vpack.c.bf16 %v5768_v37, %v5766_v7 }
 0x634   : > { %6363 = vmatprep.mubr.bf16.mxu0 %v5838_v52  ;;  %v2204_v52 = vmul.f32 %v11272_v26, %v14999_v45 }
 0x635   : > { %6364 = vmatmul.mubr.bf16.gmra.mrb[112].mxu0 %v5837_v57  ;;  %v2203_v57 = vmul.f32 %v11257_v41, %v14999_v45 }
 0x636   : > { %v6255_v60 = vpop.f32.mrb[68].mxu0 }
 0x637   : > { %v6256_v12 = vadd.f32 %v6255_v60, %v13040_v5  ;;  %v6257_v63 = vpop.f32.mrb[69].mxu0  ;;  %v2331_v13 = vadd.f32 %v2203_v57, %v2067_v16  ;;  %v2332_v60 = vadd.f32 %v2204_v52, %v2068_v62  ;;  %v2207_v16 = vmul.f32 %v11257_v41, %v15005_v46 }
 0x638   : > { %v6258_v47 = vadd.f32 %v6257_v63, %v13045_v42  ;;  %v6259_v8 = vpop.f32.mrb[70].mxu0  ;;  %v2208_v62 = vmul.f32 %v11272_v26, %v15005_v46 }
 0x639   : > { %v6472_v32 = vadd.f32 %v6256_v12, %v2591_v33  ;;  %v6260_v2 = vadd.f32 %v6259_v8, %v13040_v5  ;;  %v6261_v56 = vpop.f32.mrb[71].mxu0  ;;  %v15004_v33 = vld [vmem:[#allocation117_spill] sm:$0xff] }
 0x63a   : > { %v6473_v28 = vadd.f32 %v6258_v47, %v2592_v6  ;;  %v6262_v58 = vadd.f32 %v6261_v56, %v13045_v42  ;;  %v2469_v12 = vmul.f32 %v11252_v38, %v15004_v33  ;;  %v2470_v31 = vmul.f32 %v11260_v54, %v15004_v33 }
 0x63b   : > { %v6474_v48 = vadd.f32 %v6260_v2, %v2593_v35  ;;  %v6600_v17 = vmax.f32 %v6472_v32, 0.0  ;;  %v2595_v6 = vadd.f32 %v2467_v25, %v2331_v13  ;;  %v2596_v32 = vadd.f32 %v2468_v27, %v2332_v60  ;;  %v15006_v25 = vld [vmem:[#allocation118_spill] sm:$0xff]  ;;  %v15007_v13 = vld [vmem:[#allocation120_spill] sm:$0xff] }
 0x63c   : > { %v6475_v0 = vadd.f32 %v6262_v58, %v2594_v24  ;;  %v6601_v59 = vmax.f32 %v6473_v28, 0.0  ;;  %v2334_v56 = vadd.f32 %v2206_v3, %v2070_v1  ;;  %v2597_v24 = vadd.f32 %v2469_v12, %v2333_v55 }
 0x63d   : > { %v6602_v19 = vmax.f32 %v6474_v48, 0.0  ;;  %v5624_v44 = vpop.f32.mrb[244].mxu1  ;;  %v2071_v11 = vmul.f32 %v11239_v50, %v15006_v25  ;;  %v2072_v36 = vmul.f32 %v11249_v53, %v15006_v25  ;;  %v2471_v14 = vmul.f32 %v11252_v38, %v15007_v13 }
 0x63e   : > { %v6603_v9 = vmax.f32 %v6475_v0, 0.0  ;;  %v5625_v34 = vadd.f32 %v5624_v44, %v12575_v51  ;;  %v5626_v40 = vpop.f32.mrb[245].mxu1  ;;  %v2472_v27 = vmul.f32 %v11260_v54, %v15007_v13  ;;  %v15012_v13 = vld [vmem:[#allocation123_spill] sm:$0xff] }
 0x63f   : > { %v6694_v18 = vpack.c.bf16 %v6602_v19, %v6600_v17  ;;  %v5627_v39 = vadd.f32 %v5626_v40, %v12578_v61  ;;  %v5628_v23 = vpop.f32.mrb[246].mxu1  ;;  %v2598_v17 = vadd.f32 %v2470_v31, %v2334_v56  ;;  %v2335_v49 = vadd.f32 %v2207_v16, %v2071_v11 }
 0x640   : > { %v5629_v10 = vadd.f32 %v5628_v23, %v12575_v51  ;;  %v5630_v43 = vpop.f32.mrb[247].mxu1  ;;  %v6695_v29 = vpack.c.bf16 %v6603_v9, %v6601_v59  ;;  %v5769_v7 = vmax.f32 %v5625_v34, 0.0  ;;  %v2336_v41 = vadd.f32 %v2208_v62, %v2072_v36 }
 0x641   : > { %v5631_v15 = vadd.f32 %v5630_v43, %v12578_v61  ;;  %v5770_v22 = vmax.f32 %v5627_v39, 0.0  ;;  %v2599_v60 = vadd.f32 %v2471_v14, %v2335_v49 }
 0x642   : > { %v5771_v37 = vmax.f32 %v5629_v10, 0.0  ;;  %7132 = vmatprep.mubr.bf16.mxu1 %v6695_v29  ;;  %v2600_v33 = vadd.f32 %v2472_v27, %v2336_v41 }
 0x643   : > { %v5772_v30 = vmax.f32 %v5631_v15, 0.0  ;;  %7133 = vmatmul.mubr.bf16.gmra.mrb[68].mxu1 %v6694_v18 }
 0x644   : > { %v5839_v20 = vpack.c.bf16 %v5771_v37, %v5769_v7 }
 0x645   : > { %v5840_v21 = vpack.c.bf16 %v5772_v30, %v5770_v22 }
 0x647   : > { %6373 = vmatprep.mubr.bf16.mxu0 %v5840_v21 }
 0x648   : > { %6374 = vmatmul.mubr.bf16.gmra.mrb[116].mxu0 %v5839_v20 }
 0x649   : > { %v6265_v63 = vpop.f32.mrb[72].mxu0 }
 0x64a   : > { %v6266_v47 = vadd.f32 %v6265_v63, %v13040_v5  ;;  %v6267_v8 = vpop.f32.mrb[73].mxu0 }
 0x64b   : > { %v6268_v35 = vadd.f32 %v6267_v8, %v13045_v42  ;;  %v6269_v2 = vpop.f32.mrb[74].mxu0  ;;  %v15009_v8 = vld [vmem:[#allocation122_spill] sm:$0xff] }
 0x64c   : > { %v6476_v28 = vadd.f32 %v6266_v47, %v2595_v6  ;;  %v6270_v58 = vadd.f32 %v6269_v2, %v13040_v5  ;;  %v6271_v48 = vpop.f32.mrb[75].mxu0  ;;  %v15008_v47 = vld [vmem:[#allocation121_spill] sm:$0xff] }
 0x64d   : > { %v6477_v0 = vadd.f32 %v6268_v35, %v2596_v32  ;;  %v6272_v19 = vadd.f32 %v6271_v48, %v13045_v42 }
 0x64e   : > { %v6478_v44 = vadd.f32 %v6270_v58, %v2597_v24  ;;  %v6604_v9 = vmax.f32 %v6476_v28, 0.0 }
 0x64f   : > { %v6479_v59 = vadd.f32 %v6272_v19, %v2598_v17  ;;  %v6605_v18 = vmax.f32 %v6477_v0, 0.0 }
 0x650   : > { %v6606_v34 = vmax.f32 %v6478_v44, 0.0  ;;  %v5634_v40 = vpop.f32.mrb[248].mxu1 }
 0x651   : > { %v6607_v39 = vmax.f32 %v6479_v59, 0.0  ;;  %v5635_v23 = vadd.f32 %v5634_v40, %v12575_v51  ;;  %v5636_v10 = vpop.f32.mrb[249].mxu1 }
 0x652   : > { %v6696_v43 = vpack.c.bf16 %v6606_v34, %v6604_v9  ;;  %v5637_v29 = vadd.f32 %v5636_v10, %v12578_v61  ;;  %v5638_v15 = vpop.f32.mrb[250].mxu1  ;;  %v9168_v34 = vld [vmem:[%s14425_s4 + $0xa] sm:$0x3] }
 0x653   : > { %v5639_v7 = vadd.f32 %v5638_v15, %v12575_v51  ;;  %v5640_v37 = vpop.f32.mrb[251].mxu1  ;;  %v6697_v45 = vpack.c.bf16 %v6607_v39, %v6605_v18  ;;  %v5773_v22 = vmax.f32 %v5635_v23, 0.0 }
 0x654   : > { %v5641_v57 = vadd.f32 %v5640_v37, %v12578_v61  ;;  %v5774_v52 = vmax.f32 %v5637_v29, 0.0 }
 0x655   : > { %v5775_v30 = vmax.f32 %v5639_v7, 0.0  ;;  %7142 = vmatprep.mubr.bf16.mxu1 %v6697_v45 }
 0x656   : > { %v5776_v20 = vmax.f32 %v5641_v57, 0.0  ;;  %7143 = vmatmul.mubr.bf16.gmra.mrb[72].mxu1 %v6696_v43  ;;  %v15010_v43 = vld [vmem:[#allocation14_spill] sm:$0xff] }
 0x657   : > { %v5841_v21 = vpack.c.bf16 %v5775_v30, %v5773_v22  ;;  %v13785_v29 = vrot.slane %v9168_v34, %v15010_v43 }
 0x658   : > { %v5842_v4 = vpack.c.bf16 %v5776_v20, %v5774_v52 }
 0x65a   : > { %6383 = vmatprep.mubr.bf16.mxu0 %v5842_v4 }
 0x65b   : > { %6384 = vmatmul.mubr.bf16.gmra.mrb[120].mxu0 %v5841_v21 }
 0x65d   : > { %v6275_v1 = vpop.f32.mrb[76].mxu0 }
 0x65e   : > { %v6276_v26 = vadd.f32 %v6275_v1, %v13040_v5  ;;  %v6277_v3 = vpop.f32.mrb[77].mxu0 }
 0x65f   : > { %v6278_v50 = vadd.f32 %v6277_v3, %v13045_v42  ;;  %v6279_v12 = vpop.f32.mrb[78].mxu0 }
 0x660   : > { %v6480_v53 = vadd.f32 %v6276_v26, %v2599_v60  ;;  %v6280_v63 = vadd.f32 %v6279_v12, %v13040_v5  ;;  %v6281_v38 = vpop.f32.mrb[79].mxu0  ;;  %v15013_v60 = vld [vmem:[#allocation124_spill] sm:$0xff] }
 0x661   : > { %v6481_v31 = vadd.f32 %v6278_v50, %v2600_v33  ;;  %v6282_v6 = vadd.f32 %v6281_v38, %v13045_v42  ;;  %v15014_v50 = vld [vmem:[#allocation125_spill] sm:$0xff] }
 0x662   : > { %v6482_v54 = vadd.f32 %v6280_v63, %v15008_v47  ;;  %v6608_v35 = vmax.f32 %v6480_v53, 0.0  ;;  %v15015_v63 = vld [vmem:[#allocation126_spill] sm:$0xff] }
 0x663   : > { %v6483_v55 = vadd.f32 %v6282_v6, %v15009_v8  ;;  %v5644_v32 = vpop.f32.mrb[252].mxu1  ;;  %v6609_v24 = vmax.f32 %v6481_v31, 0.0 }
 0x664   : > { %v6610_v2 = vmax.f32 %v6482_v54, 0.0  ;;  %v5645_v56 = vadd.f32 %v5644_v32, %v12575_v51  ;;  %v5646_v28 = vpop.f32.mrb[253].mxu1 }
 0x665   : > { %v6611_v58 = vmax.f32 %v6483_v55, 0.0  ;;  %v5647_v48 = vadd.f32 %v5646_v28, %v12578_v61  ;;  %v5648_v0 = vpop.f32.mrb[254].mxu1 }
 0x666   : > { %v6698_v17 = vpack.c.bf16 %v6610_v2, %v6608_v35  ;;  %v5649_v19 = vadd.f32 %v5648_v0, %v12575_v51  ;;  %v5650_v44 = vpop.f32.mrb[255].mxu1  ;;  %v5777_v40 = vmax.f32 %v5645_v56, 0.0  ;;  %v15011_v51 = vld [vmem:[#allocation13_spill] sm:$0xff] }
 0x667   : > { %v5651_v59 = vadd.f32 %v5650_v44, %v12578_v61  ;;  %v6699_v9 = vpack.c.bf16 %v6611_v58, %v6609_v24  ;;  %v5778_v39 = vmax.f32 %v5647_v48, 0.0  ;;  %v13788_v7 = vrot.slane %v9168_v34, %v15011_v51 }
 0x668   : > { %v5779_v18 = vmax.f32 %v5649_v19, 0.0 }
 0x669   : > { %v5780_v23 = vmax.f32 %v5651_v59, 0.0  ;;  %7152 = vmatprep.mubr.bf16.mxu1 %v6699_v9 }
 0x66a   : > { %v5843_v10 = vpack.c.bf16 %v5779_v18, %v5777_v40  ;;  %7153 = vmatmul.mubr.bf16.gmra.mrb[76].mxu1 %v6698_v17 }
 0x66b   : > { %v5844_v15 = vpack.c.bf16 %v5780_v23, %v5778_v39 }
 0x66d   : > { %6393 = vmatprep.mubr.bf16.mxu0 %v5844_v15  ;;  %v6964_v61 = vpop.f32.mrb[0].mxu1 }
 0x66e   : > { %v6965_v37 = vadd.f32 %v6964_v61, %v13785_v29  ;;  %6394 = vmatmul.mubr.bf16.gmra.mrb[124].mxu0 %v5843_v10  ;;  %v6966_v45 = vpop.f32.mrb[1].mxu1 }
 0x66f   : > { %v6967_v57 = vadd.f32 %v6966_v45, %v13788_v7  ;;  %v6968_v22 = vpop.f32.mrb[2].mxu1 }
 0x670   : > { %v6969_v30 = vadd.f32 %v6968_v22, %v13785_v29  ;;  %v6285_v52 = vpop.f32.mrb[80].mxu0  ;;  %v6970_v20 = vpop.f32.mrb[3].mxu1  ;;  %v7283_v62 = vmax.f32 %v6965_v37, 0.0 }
 0x671   : > { %v6286_v46 = vadd.f32 %v6285_v52, %v13040_v5  ;;  %v6971_v16 = vadd.f32 %v6970_v20, %v13788_v7  ;;  %v6287_v21 = vpop.f32.mrb[81].mxu0  ;;  %v7284_v36 = vmax.f32 %v6967_v57, 0.0 }
 0x672   : > { %v7285_v4 = vmax.f32 %v6969_v30, 0.0  ;;  %v6288_v25 = vadd.f32 %v6287_v21, %v13045_v42  ;;  %v6289_v11 = vpop.f32.mrb[82].mxu0 }
 0x673   : > { %v6484_v14 = vadd.f32 %v6286_v46, %v15012_v13  ;;  %v7286_v49 = vmax.f32 %v6971_v16, 0.0  ;;  %v6290_v27 = vadd.f32 %v6289_v11, %v13040_v5  ;;  %v6291_v41 = vpop.f32.mrb[83].mxu0 }
 0x674   : > { %v7411_v1 = vpack.c.bf16 %v7285_v4, %v7283_v62  ;;  %v6485_v26 = vadd.f32 %v6288_v25, %v15013_v60  ;;  %v6292_v3 = vadd.f32 %v6291_v41, %v13045_v42  ;;  %v15016_v4 = vld [vmem:[#allocation127_spill] sm:$0xff] }
 0x675   : > { %v7412_v33 = vpack.c.bf16 %v7286_v49, %v7284_v36  ;;  %v6486_v12 = vadd.f32 %v6290_v27, %v15014_v50  ;;  %v6974_v53 = vpop.f32.mrb[4].mxu1  ;;  %v6612_v47 = vmax.f32 %v6484_v14, 0.0  ;;  %v15017_v49 = vld [vmem:[#allocation128_spill] sm:$0xff] }
 0x676   : > { %v6487_v38 = vadd.f32 %v6292_v3, %v15015_v63  ;;  %v6975_v31 = vadd.f32 %v6974_v53, %v13785_v29  ;;  %v6976_v6 = vpop.f32.mrb[5].mxu1  ;;  %v6613_v32 = vmax.f32 %v6485_v26, 0.0  ;;  %v15018_v26 = vld [vmem:[#allocation129_spill] sm:$0xff] }
 0x677   : > { %v6614_v54 = vmax.f32 %v6486_v12, 0.0  ;;  %v6977_v8 = vadd.f32 %v6976_v6, %v13788_v7  ;;  %v6978_v55 = vpop.f32.mrb[6].mxu1  ;;  %7713 = vmatprep.mubr.bf16.mxu0 %v7412_v33  ;;  %v15019_v12 = vld [vmem:[#allocation130_spill] sm:$0xff] }
 0x678   : > { %v6615_v35 = vmax.f32 %v6487_v38, 0.0  ;;  %v6979_v2 = vadd.f32 %v6978_v55, %v13785_v29  ;;  %v6980_v56 = vpop.f32.mrb[7].mxu1  ;;  %7714 = vmatmul.mubr.bf16.vlgmr.msra.gmra.mrb[128].mxu0 %v7411_v1  ;;  %v7287_v58 = vmax.f32 %v6975_v31, 0.0 }
 0x679   : > { %v6700_v28 = vpack.c.bf16 %v6614_v54, %v6612_v47  ;;  %v6981_v24 = vadd.f32 %v6980_v56, %v13788_v7  ;;  %v7288_v17 = vmax.f32 %v6977_v8, 0.0 }
 0x67a   : > { %v7289_v48 = vmax.f32 %v6979_v2, 0.0  ;;  %v6701_v0 = vpack.c.bf16 %v6615_v35, %v6613_v32 }
 0x67b   : > { %v7290_v19 = vmax.f32 %v6981_v24, 0.0 }
 0x67c   : > { %v7413_v44 = vpack.c.bf16 %v7289_v48, %v7287_v58  ;;  %7162 = vmatprep.mubr.bf16.mxu1 %v6701_v0 }
 0x67d   : > { %v7414_v59 = vpack.c.bf16 %v7290_v19, %v7288_v17  ;;  %v6984_v9 = vpop.f32.mrb[8].mxu1  ;;  %7163 = vmatmul.mubr.bf16.gmra.mrb[80].mxu1 %v6700_v28 }
 0x67e   : > { %v6985_v34 = vadd.f32 %v6984_v9, %v13785_v29  ;;  %v6986_v40 = vpop.f32.mrb[9].mxu1  ;;  %v9736_v9 = vld [vmem:[%s14426_s5] sm:$0xff]  }
 0x67f   : > { %v6987_v18 = vadd.f32 %v6986_v40, %v13788_v7  ;;  %v6988_v39 = vpop.f32.mrb[10].mxu1  ;;  %7723 = vmatprep.mubr.bf16.mxu0 %v7414_v59  ;;  %8355 = vmatpush1.bf16.msra.mxu1 %v9736_v9  ;;  %v9738_v9 = vld [vmem:[%s14426_s5 + $0x10] sm:$0xff]  }
 0x680   : > { %v6989_v23 = vadd.f32 %v6988_v39, %v13785_v29  ;;  %v6990_v10 = vpop.f32.mrb[11].mxu1  ;;  %7724 = vmatmul.mubr.bf16.gmra.mrb[132].mxu0 %v7413_v44  ;;  %v7291_v61 = vmax.f32 %v6985_v34, 0.0 }
 0x681   : > { %v6991_v15 = vadd.f32 %v6990_v10, %v13788_v7  ;;  %v7292_v45 = vmax.f32 %v6987_v18, 0.0  ;;  %v15020_v10 = vmov 0  }
 0x682   : > { %v7293_v37 = vmax.f32 %v6989_v23, 0.0  ;;  %8356 = vmatprep.subr.bf16.mxu1 %v15020_v10 }
 0x683   : > { %v7294_v57 = vmax.f32 %v6991_v15, 0.0 }
 0x684   : > { %v6295_v22 = vpop.f32.mrb[84].mxu0  ;;  %v7415_v30 = vpack.c.bf16 %v7293_v37, %v7291_v61 }
 0x685   : > { %v6296_v52 = vadd.f32 %v6295_v22, %v13040_v5  ;;  %v6297_v20 = vpop.f32.mrb[85].mxu0  ;;  %v7416_v46 = vpack.c.bf16 %v7294_v57, %v7292_v45  ;;  %v6994_v62 = vpop.f32.mrb[12].mxu1 }
 0x686   : > { %v6298_v16 = vadd.f32 %v6297_v20, %v13045_v42  ;;  %v6299_v21 = vpop.f32.mrb[86].mxu0  ;;  %v6995_v36 = vadd.f32 %v6994_v62, %v13785_v29  ;;  %v6996_v14 = vpop.f32.mrb[13].mxu1 }
 0x687   : > { %v6488_v25 = vadd.f32 %v6296_v52, %v15016_v4  ;;  %v6300_v11 = vadd.f32 %v6299_v21, %v13040_v5  ;;  %v6301_v13 = vpop.f32.mrb[87].mxu0  ;;  %v6997_v1 = vadd.f32 %v6996_v14, %v13788_v7  ;;  %v6998_v60 = vpop.f32.mrb[14].mxu1  ;;  %7733 = vmatprep.mubr.bf16.mxu0 %v7416_v46  ;;  %v15021_v4 = vld [vmem:[#allocation131_spill] sm:$0xff] }
 0x688   : > { %v6489_v27 = vadd.f32 %v6298_v16, %v15017_v49  ;;  %v6302_v41 = vadd.f32 %v6301_v13, %v13045_v42  ;;  %v6999_v33 = vadd.f32 %v6998_v60, %v13785_v29  ;;  %v7000_v50 = vpop.f32.mrb[15].mxu1  ;;  %7734 = vmatmul.mubr.bf16.gmra.mrb[136].mxu0 %v7415_v30  ;;  %v7295_v6 = vmax.f32 %v6995_v36, 0.0  ;;  %v15022_v49 = vld [vmem:[#allocation132_spill] sm:$0xff] }
 0x689   : > { %v6490_v3 = vadd.f32 %v6300_v11, %v15018_v26  ;;  %v7001_v63 = vadd.f32 %v7000_v50, %v13788_v7  ;;  %v6616_v38 = vmax.f32 %v6488_v25, 0.0  ;;  %v7296_v55 = vmax.f32 %v6997_v1, 0.0  ;;  %v15023_v26 = vld [vmem:[#allocation133_spill] sm:$0xff] }
 0x68a   : > { %v6491_v53 = vadd.f32 %v6302_v41, %v15019_v12  ;;  %v7297_v47 = vmax.f32 %v6999_v33, 0.0  ;;  %v6617_v54 = vmax.f32 %v6489_v27, 0.0  ;;  %v15024_v12 = vld [vmem:[#allocation134_spill] sm:$0xff] }
 0x68b   : > { %v6618_v31 = vmax.f32 %v6490_v3, 0.0  ;;  %v7298_v32 = vmax.f32 %v7001_v63, 0.0 }
 0x68c   : > { %v6619_v8 = vmax.f32 %v6491_v53, 0.0  ;;  %v7417_v2 = vpack.c.bf16 %v7297_v47, %v7295_v6 }
 0x68d   : > { %v6702_v35 = vpack.c.bf16 %v6618_v31, %v6616_v38  ;;  %v7418_v56 = vpack.c.bf16 %v7298_v32, %v7296_v55  ;;  %v7004_v28 = vpop.f32.mrb[16].mxu1 }
 0x68e   : > { %v6703_v24 = vpack.c.bf16 %v6619_v8, %v6617_v54  ;;  %v7005_v58 = vadd.f32 %v7004_v28, %v13785_v29  ;;  %v7006_v48 = vpop.f32.mrb[17].mxu1 }
 0x68f   : > { %v7007_v0 = vadd.f32 %v7006_v48, %v13788_v7  ;;  %v7008_v17 = vpop.f32.mrb[18].mxu1  ;;  %7743 = vmatprep.mubr.bf16.mxu0 %v7418_v56 }
 0x690   : > { %7172 = vmatprep.mubr.bf16.mxu1 %v6703_v24  ;;  %v7009_v19 = vadd.f32 %v7008_v17, %v13785_v29  ;;  %v7010_v44 = vpop.f32.mrb[19].mxu1  ;;  %7744 = vmatmul.mubr.bf16.gmra.mrb[140].mxu0 %v7417_v2  ;;  %v7299_v34 = vmax.f32 %v7005_v58, 0.0  ;;  %v9737_v58 = vld [vmem:[%s14426_s5 + $0x8] sm:$0xff]  }
 0x691   : > { %7173 = vmatmul.mubr.bf16.gmra.mrb[84].mxu1 %v6702_v35  ;;  %v7011_v59 = vadd.f32 %v7010_v44, %v13788_v7  ;;  %v7300_v18 = vmax.f32 %v7007_v0, 0.0 }
 0x692   : > { %v7301_v40 = vmax.f32 %v7009_v19, 0.0  ;;  %8357 = vmatpush1.bf16.msra.mxu1 %v9737_v58 }
 0x693   : > { %v7302_v39 = vmax.f32 %v7011_v59, 0.0  ;;  %8358 = vmatprep.subr.bf16.mxu1 %v15020_v10 }
 0x694   : > { %v7419_v23 = vpack.c.bf16 %v7301_v40, %v7299_v34 }
 0x695   : > { %v7420_v15 = vpack.c.bf16 %v7302_v39, %v7300_v18  ;;  %v7014_v61 = vpop.f32.mrb[20].mxu1 }
 0x696   : > { %v7015_v37 = vadd.f32 %v7014_v61, %v13785_v29  ;;  %v6305_v45 = vpop.f32.mrb[88].mxu0  ;;  %v7016_v57 = vpop.f32.mrb[21].mxu1  ;;  %8359 = vmatpush1.bf16.msra.mxu1 %v9738_v9 }
 0x697   : > { %v6306_v22 = vadd.f32 %v6305_v45, %v13040_v5  ;;  %v7017_v30 = vadd.f32 %v7016_v57, %v13788_v7  ;;  %v6307_v52 = vpop.f32.mrb[89].mxu0  ;;  %v7018_v20 = vpop.f32.mrb[22].mxu1  ;;  %7753 = vmatprep.mubr.bf16.mxu0 %v7420_v15  ;;  %8360 = vmatprep.subr.bf16.mxu1 %v15020_v10 }
 0x698   : > { %v6308_v46 = vadd.f32 %v6307_v52, %v13045_v42  ;;  %v7019_v16 = vadd.f32 %v7018_v20, %v13785_v29  ;;  %v6309_v21 = vpop.f32.mrb[90].mxu0  ;;  %v7020_v62 = vpop.f32.mrb[23].mxu1  ;;  %7754 = vmatmul.mubr.bf16.gmra.mrb[144].mxu0 %v7419_v23  ;;  %v7303_v14 = vmax.f32 %v7015_v37, 0.0  ;;  %v9739_v23 = vld [vmem:[%s14426_s5 + $0x18] sm:$0xff]  }
 0x699   : > { %v6492_v25 = vadd.f32 %v6306_v22, %v15021_v4  ;;  %v6310_v11 = vadd.f32 %v6309_v21, %v13040_v5  ;;  %v7021_v36 = vadd.f32 %v7020_v62, %v13788_v7  ;;  %v6311_v13 = vpop.f32.mrb[91].mxu0  ;;  %v7304_v60 = vmax.f32 %v7017_v30, 0.0 }
 0x69a   : > { %v6493_v27 = vadd.f32 %v6308_v46, %v15022_v49  ;;  %v7305_v41 = vmax.f32 %v7019_v16, 0.0  ;;  %v6312_v1 = vadd.f32 %v6311_v13, %v13045_v42  ;;  %8361 = vmatpush1.bf16.msra.mxu1 %v9739_v23  ;;  %v9740_v16 = vld [vmem:[%s14426_s5 + $0x20] sm:$0xff]  }
 0x69b   : > { %v6494_v3 = vadd.f32 %v6310_v11, %v15023_v26  ;;  %v7306_v33 = vmax.f32 %v7021_v36, 0.0  ;;  %v6620_v63 = vmax.f32 %v6492_v25, 0.0  ;;  %8362 = vmatprep.subr.bf16.mxu1 %v15020_v10  ;;  %v15025_v36 = vld [vmem:[#allocation135_spill] sm:$0xff] }
 0x69c   : > { %v7421_v50 = vpack.c.bf16 %v7305_v41, %v7303_v14  ;;  %v6495_v53 = vadd.f32 %v6312_v1, %v15024_v12  ;;  %v6621_v47 = vmax.f32 %v6493_v27, 0.0  ;;  %v15026_v41 = vld [vmem:[#allocation136_spill] sm:$0xff] }
 0x69d   : > { %v6622_v38 = vmax.f32 %v6494_v3, 0.0  ;;  %v7422_v31 = vpack.c.bf16 %v7306_v33, %v7304_v60  ;;  %v7024_v6 = vpop.f32.mrb[24].mxu1  ;;  %v15027_v3 = vld [vmem:[#allocation137_spill] sm:$0xff] }
 0x69e   : > { %v6623_v54 = vmax.f32 %v6495_v53, 0.0  ;;  %v7025_v8 = vadd.f32 %v7024_v6, %v13785_v29  ;;  %v7026_v55 = vpop.f32.mrb[25].mxu1  ;;  %8363 = vmatpush1.bf16.msra.mxu1 %v9740_v16  ;;  %v9741_v53 = vld [vmem:[%s14426_s5 + $0x28] sm:$0xff]  }
 0x69f   : > { %v6704_v32 = vpack.c.bf16 %v6622_v38, %v6620_v63  ;;  %v7027_v35 = vadd.f32 %v7026_v55, %v13788_v7  ;;  %v7028_v2 = vpop.f32.mrb[26].mxu1  ;;  %7763 = vmatprep.mubr.bf16.mxu0 %v7422_v31  ;;  %v15028_v63 = vld [vmem:[#allocation138_spill] sm:$0xff]  ;;  %8364 = vmatprep.subr.bf16.mxu1 %v15020_v10 }
 0x6a0   : > { %v7029_v56 = vadd.f32 %v7028_v2, %v13785_v29  ;;  %v7030_v28 = vpop.f32.mrb[27].mxu1  ;;  %7764 = vmatmul.mubr.bf16.gmra.mrb[148].mxu0 %v7421_v50  ;;  %v6705_v24 = vpack.c.bf16 %v6623_v54, %v6621_v47  ;;  %v7307_v0 = vmax.f32 %v7025_v8, 0.0 }
 0x6a1   : > { %v7031_v48 = vadd.f32 %v7030_v28, %v13788_v7  ;;  %v7308_v19 = vmax.f32 %v7027_v35, 0.0 }
 0x6a2   : > { %v7309_v17 = vmax.f32 %v7029_v56, 0.0  ;;  %7182 = vmatprep.mubr.bf16.mxu1 %v6705_v24  ;;  %8365 = vmatpush1.bf16.msra.mxu1 %v9741_v53 }
 0x6a3   : > { %v7310_v44 = vmax.f32 %v7031_v48, 0.0  ;;  %7183 = vmatmul.mubr.bf16.gmra.mrb[88].mxu1 %v6704_v32  ;;  %8366 = vmatprep.subr.bf16.mxu1 %v15020_v10 }
 0x6a4   : > { %v7423_v59 = vpack.c.bf16 %v7309_v17, %v7307_v0 }
 0x6a5   : > { %v7424_v34 = vpack.c.bf16 %v7310_v44, %v7308_v19  ;;  %v7034_v40 = vpop.f32.mrb[28].mxu1  ;;  %v9742_v19 = vld [vmem:[%s14426_s5 + $0x30] sm:$0xff]  }
 0x6a6   : > { %v7035_v18 = vadd.f32 %v7034_v40, %v13785_v29  ;;  %v7036_v39 = vpop.f32.mrb[29].mxu1  ;;  %8367 = vmatpush1.bf16.msra.mxu1 %v9742_v19 }
 0x6a7   : > { %v7037_v15 = vadd.f32 %v7036_v39, %v13788_v7  ;;  %v7038_v61 = vpop.f32.mrb[30].mxu1  ;;  %7773 = vmatprep.mubr.bf16.mxu0 %v7424_v34  ;;  %v9743_v39 = vld [vmem:[%s14426_s5 + $0x38] sm:$0xff]   ;;  %8368 = vmatprep.subr.bf16.mxu1 %v15020_v10 }
 0x6a8   : > { %v7039_v37 = vadd.f32 %v7038_v61, %v13785_v29  ;;  %v7040_v45 = vpop.f32.mrb[31].mxu1  ;;  %7774 = vmatmul.mubr.bf16.gmra.mrb[152].mxu0 %v7423_v59  ;;  %v7311_v30 = vmax.f32 %v7035_v18, 0.0 }
 0x6a9   : > { %v7041_v57 = vadd.f32 %v7040_v45, %v13788_v7  ;;  %v7312_v21 = vmax.f32 %v7037_v15, 0.0 }
 0x6aa   : > { %v6315_v22 = vpop.f32.mrb[92].mxu0  ;;  %v7313_v52 = vmax.f32 %v7039_v37, 0.0  ;;  %8369 = vmatpush1.bf16.msra.mxu1 %v9743_v39 }
 0x6ab   : > { %v6316_v20 = vadd.f32 %v6315_v22, %v13040_v5  ;;  %v6317_v46 = vpop.f32.mrb[93].mxu0  ;;  %v7314_v62 = vmax.f32 %v7041_v57, 0.0  ;;  %8370 = vmatprep.subr.bf16.mxu1 %v15020_v10 }
 0x6ac   : > { %v6318_v4 = vadd.f32 %v6317_v46, %v13045_v42  ;;  %v6319_v25 = vpop.f32.mrb[94].mxu0  ;;  %v7425_v11 = vpack.c.bf16 %v7313_v52, %v7311_v30  ;;  %v9744_v52 = vld [vmem:[%s14426_s5 + $0x40] sm:$0xff]  }
 0x6ad   : > { %v6496_v13 = vadd.f32 %v6316_v20, %v15025_v36  ;;  %v6320_v14 = vadd.f32 %v6319_v25, %v13040_v5  ;;  %v6321_v49 = vpop.f32.mrb[95].mxu0  ;;  %v7426_v27 = vpack.c.bf16 %v7314_v62, %v7312_v21  ;;  %v7044_v26 = vpop.f32.mrb[32].mxu1 }
 0x6ae   : > { %v6497_v1 = vadd.f32 %v6318_v4, %v15026_v41  ;;  %v6322_v60 = vadd.f32 %v6321_v49, %v13045_v42  ;;  %v7045_v50 = vadd.f32 %v7044_v26, %v13785_v29  ;;  %v7046_v12 = vpop.f32.mrb[33].mxu1  ;;  %v15030_v41 = vld [vmem:[#allocation140_spill] sm:$0xff]  ;;  %8371 = vmatpush1.bf16.msra.mxu1 %v9744_v52 }
 0x6af   : > { %v6498_v33 = vadd.f32 %v6320_v14, %v15027_v3  ;;  %v7047_v31 = vadd.f32 %v7046_v12, %v13788_v7  ;;  %v7048_v6 = vpop.f32.mrb[34].mxu1  ;;  %7783 = vmatprep.mubr.bf16.mxu0 %v7426_v27  ;;  %v6624_v47 = vmax.f32 %v6496_v13, 0.0  ;;  %8372 = vmatprep.subr.bf16.mxu1 %v15020_v10 }
 0x6b0   : > { %v6499_v38 = vadd.f32 %v6322_v60, %v15028_v63  ;;  %v7049_v8 = vadd.f32 %v7048_v6, %v13785_v29  ;;  %v7050_v55 = vpop.f32.mrb[35].mxu1  ;;  %7784 = vmatmul.mubr.bf16.gmra.mrb[156].mxu0 %v7425_v11  ;;  %v6625_v32 = vmax.f32 %v6497_v1, 0.0  ;;  %v7315_v28 = vmax.f32 %v7045_v50, 0.0  ;;  %v15029_v11 = vld [vmem:[#allocation139_spill] sm:$0xff]  ;;  %v15031_v50 = vld [vmem:[#allocation141_spill] sm:$0xff] }
 0x6b1   : > { %v6626_v54 = vmax.f32 %v6498_v33, 0.0  ;;  %v7051_v2 = vadd.f32 %v7050_v55, %v13788_v7  ;;  %v7316_v58 = vmax.f32 %v7047_v31, 0.0  ;;  %v9745_v33 = vld [vmem:[%s14426_s5 + $0x48] sm:$0xff]  }
 0x6b2   : > { %v6627_v35 = vmax.f32 %v6499_v38, 0.0  ;;  %v7317_v24 = vmax.f32 %v7049_v8, 0.0  ;;  %v15032_v38 = vld [vmem:[#allocation142_spill] sm:$0xff]  ;;  %8373 = vmatpush1.bf16.msra.mxu1 %v9745_v33 }
 0x6b3   : > { %v6706_v56 = vpack.c.bf16 %v6626_v54, %v6624_v47  ;;  %v7318_v48 = vmax.f32 %v7051_v2, 0.0  ;;  %8374 = vmatprep.subr.bf16.mxu1 %v15020_v10 }
 0x6b4   : > { %v6707_v0 = vpack.c.bf16 %v6627_v35, %v6625_v32  ;;  %v7427_v17 = vpack.c.bf16 %v7317_v24, %v7315_v28 }
 0x6b5   : > { %v7428_v44 = vpack.c.bf16 %v7318_v48, %v7316_v58  ;;  %v7054_v59 = vpop.f32.mrb[36].mxu1 }
 0x6b6   : > { %7192 = vmatprep.mubr.bf16.mxu1 %v6707_v0  ;;  %v7055_v9 = vadd.f32 %v7054_v59, %v13785_v29  ;;  %v7056_v34 = vpop.f32.mrb[37].mxu1 }
 0x6b7   : > { %7193 = vmatmul.mubr.bf16.gmra.mrb[92].mxu1 %v6706_v56  ;;  %v7057_v40 = vadd.f32 %v7056_v34, %v13788_v7  ;;  %v7058_v18 = vpop.f32.mrb[38].mxu1  ;;  %7793 = vmatprep.mubr.bf16.mxu0 %v7428_v44 }
 0x6b8   : > { %v7059_v23 = vadd.f32 %v7058_v18, %v13785_v29  ;;  %v7060_v15 = vpop.f32.mrb[39].mxu1  ;;  %7794 = vmatmul.mubr.bf16.gmra.mrb[160].mxu0 %v7427_v17  ;;  %v7319_v37 = vmax.f32 %v7055_v9, 0.0  ;;  %v9746_v17 = vld [vmem:[%s14426_s5 + $0x50] sm:$0xff]  }
 0x6b9   : > { %v7061_v61 = vadd.f32 %v7060_v15, %v13788_v7  ;;  %v7320_v57 = vmax.f32 %v7057_v40, 0.0  ;;  %8375 = vmatpush1.bf16.msra.mxu1 %v9746_v17  ;;  %v9747_v15 = vld [vmem:[%s14426_s5 + $0x58] sm:$0xff]  }
 0x6ba   : > { %v7321_v45 = vmax.f32 %v7059_v23, 0.0  ;;  %8376 = vmatprep.subr.bf16.mxu1 %v15020_v10 }
 0x6bb   : > { %v7322_v22 = vmax.f32 %v7061_v61, 0.0 }
 0x6bc   : > { %v6325_v30 = vpop.f32.mrb[96].mxu0  ;;  %v7429_v20 = vpack.c.bf16 %v7321_v45, %v7319_v37 }
 0x6bd   : > { %v6326_v46 = vadd.f32 %v6325_v30, %v13040_v5  ;;  %v6327_v16 = vpop.f32.mrb[97].mxu0  ;;  %v7430_v21 = vpack.c.bf16 %v7322_v22, %v7320_v57  ;;  %v7064_v4 = vpop.f32.mrb[40].mxu1  ;;  %8377 = vmatpush1.bf16.msra.mxu1 %v9747_v15  ;;  %v9748_v30 = vld [vmem:[%s14426_s5 + $0x60] sm:$0xff]  }
 0x6be   : > { %v6328_v62 = vadd.f32 %v6327_v16, %v13045_v42  ;;  %v6329_v25 = vpop.f32.mrb[98].mxu0  ;;  %v7065_v13 = vadd.f32 %v7064_v4, %v13785_v29  ;;  %v7066_v49 = vpop.f32.mrb[41].mxu1  ;;  %8378 = vmatprep.subr.bf16.mxu1 %v15020_v10 }
 0x6bf   : > { %v6500_v36 = vadd.f32 %v6326_v46, %v15029_v11  ;;  %v6330_v14 = vadd.f32 %v6329_v25, %v13040_v5  ;;  %v6331_v27 = vpop.f32.mrb[99].mxu0  ;;  %v7067_v60 = vadd.f32 %v7066_v49, %v13788_v7  ;;  %v7068_v3 = vpop.f32.mrb[42].mxu1  ;;  %7803 = vmatprep.mubr.bf16.mxu0 %v7430_v21 }
 0x6c0   : > { %v6501_v1 = vadd.f32 %v6328_v62, %v15030_v41  ;;  %v6332_v26 = vadd.f32 %v6331_v27, %v13045_v42  ;;  %v7069_v53 = vadd.f32 %v7068_v3, %v13785_v29  ;;  %v7070_v63 = vpop.f32.mrb[43].mxu1  ;;  %7804 = vmatmul.mubr.bf16.gmra.mrb[164].mxu0 %v7429_v20  ;;  %v7323_v54 = vmax.f32 %v7065_v13, 0.0  ;;  %v9749_v13 = vld [vmem:[%s14426_s5 + $0x68] sm:$0xff]  }
 0x6c1   : > { %v6502_v12 = vadd.f32 %v6330_v14, %v15031_v50  ;;  %v7071_v6 = vadd.f32 %v7070_v63, %v13788_v7  ;;  %v6628_v47 = vmax.f32 %v6500_v36, 0.0  ;;  %v7324_v35 = vmax.f32 %v7067_v60, 0.0  ;;  %8379 = vmatpush1.bf16.msra.mxu1 %v9748_v30  ;;  %v15033_v60 = vld [vmem:[#allocation143_spill] sm:$0xff] }
 0x6c2   : > { %v6503_v31 = vadd.f32 %v6332_v26, %v15032_v38  ;;  %v7325_v55 = vmax.f32 %v7069_v53, 0.0  ;;  %v6629_v32 = vmax.f32 %v6501_v1, 0.0  ;;  %8380 = vmatprep.subr.bf16.mxu1 %v15020_v10  ;;  %v15034_v53 = vld [vmem:[#allocation144_spill] sm:$0xff] }
 0x6c3   : > { %v6630_v8 = vmax.f32 %v6502_v12, 0.0  ;;  %v7326_v56 = vmax.f32 %v7071_v6, 0.0  ;;  %v15035_v6 = vld [vmem:[#allocation145_spill] sm:$0xff] }
 0x6c4   : > { %v6631_v2 = vmax.f32 %v6503_v31, 0.0  ;;  %v7431_v24 = vpack.c.bf16 %v7325_v55, %v7323_v54  ;;  %v15036_v55 = vld [vmem:[#allocation146_spill] sm:$0xff] }
 0x6c5   : > { %v6708_v28 = vpack.c.bf16 %v6630_v8, %v6628_v47  ;;  %v7432_v58 = vpack.c.bf16 %v7326_v56, %v7324_v35  ;;  %v7074_v48 = vpop.f32.mrb[44].mxu1  ;;  %8381 = vmatpush1.bf16.msra.mxu1 %v9749_v13  ;;  %v9750_v8 = vld [vmem:[%s14426_s5 + $0x70] sm:$0xff]  }
 0x6c6   : > { %v6709_v0 = vpack.c.bf16 %v6631_v2, %v6629_v32  ;;  %v7075_v19 = vadd.f32 %v7074_v48, %v13785_v29  ;;  %v7076_v44 = vpop.f32.mrb[45].mxu1  ;;  %8382 = vmatprep.subr.bf16.mxu1 %v15020_v10 }
 0x6c7   : > { %v7077_v59 = vadd.f32 %v7076_v44, %v13788_v7  ;;  %v7078_v9 = vpop.f32.mrb[46].mxu1  ;;  %7813 = vmatprep.mubr.bf16.mxu0 %v7432_v58 }
 0x6c8   : > { %7202 = vmatprep.mubr.bf16.mxu1 %v6709_v0  ;;  %v7079_v34 = vadd.f32 %v7078_v9, %v13785_v29  ;;  %v7080_v40 = vpop.f32.mrb[47].mxu1  ;;  %7814 = vmatmul.mubr.bf16.gmra.mrb[168].mxu0 %v7431_v24  ;;  %v7327_v39 = vmax.f32 %v7075_v19, 0.0 }
 0x6c9   : > { %7203 = vmatmul.mubr.bf16.gmra.mrb[96].mxu1 %v6708_v28  ;;  %v7081_v18 = vadd.f32 %v7080_v40, %v13788_v7  ;;  %v7328_v61 = vmax.f32 %v7077_v59, 0.0 }
 0x6ca   : > { %v7329_v23 = vmax.f32 %v7079_v34, 0.0  ;;  %8383 = vmatpush1.bf16.msra.mxu1 %v9750_v8 }
 0x6cb   : > { %v7330_v37 = vmax.f32 %v7081_v18, 0.0  ;;  %8384 = vmatprep.subr.bf16.mxu1 %v15020_v10  ;;  %v9751_v18 = vld [vmem:[%s14426_s5 + $0x78] sm:$0xff]  }
 0x6cc   : > { %v7433_v45 = vpack.c.bf16 %v7329_v23, %v7327_v39 }
 0x6cd   : > { %v7434_v57 = vpack.c.bf16 %v7330_v37, %v7328_v61  ;;  %v7084_v22 = vpop.f32.mrb[48].mxu1 }
 0x6ce   : > { %v7085_v52 = vadd.f32 %v7084_v22, %v13785_v29  ;;  %v7086_v20 = vpop.f32.mrb[49].mxu1  ;;  %8385 = vmatpush1.bf16.msra.mxu1 %v9751_v18 }
 0x6cf   : > { %v7087_v46 = vadd.f32 %v7086_v20, %v13788_v7  ;;  %v7088_v16 = vpop.f32.mrb[50].mxu1  ;;  %7823 = vmatprep.mubr.bf16.mxu0 %v7434_v57 }
 0x6d0   : > { %v7089_v62 = vadd.f32 %v7088_v16, %v13785_v29  ;;  %v7090_v4 = vpop.f32.mrb[51].mxu1  ;;  %7824 = vmatmul.mubr.bf16.gmra.mrb[172].mxu0 %v7433_v45  ;;  %v7331_v14 = vmax.f32 %v7085_v52, 0.0 }
 0x6d1   : > { %v6335_v21 = vpop.f32.mrb[100].mxu0  ;;  %v7091_v36 = vadd.f32 %v7090_v4, %v13788_v7  ;;  %v7332_v1 = vmax.f32 %v7087_v46, 0.0 }
 0x6d2   : > { %v6336_v25 = vadd.f32 %v6335_v21, %v13040_v5  ;;  %v6337_v11 = vpop.f32.mrb[101].mxu0  ;;  %v7333_v49 = vmax.f32 %v7089_v62, 0.0 }
 0x6d3   : > { %v6338_v27 = vadd.f32 %v6337_v11, %v13045_v42  ;;  %v6339_v41 = vpop.f32.mrb[102].mxu0  ;;  %v7334_v3 = vmax.f32 %v7091_v36, 0.0 }
 0x6d4   : > { %v6504_v26 = vadd.f32 %v6336_v25, %v15033_v60  ;;  %v6340_v33 = vadd.f32 %v6339_v41, %v13040_v5  ;;  %v6341_v50 = vpop.f32.mrb[103].mxu0  ;;  %v7435_v12 = vpack.c.bf16 %v7333_v49, %v7331_v14  ;;  %v15037_v49 = vld [vmem:[#allocation147_spill] sm:$0xff] }
 0x6d5   : > { %v6505_v63 = vadd.f32 %v6338_v27, %v15034_v53  ;;  %v6342_v38 = vadd.f32 %v6341_v50, %v13045_v42  ;;  %v7436_v31 = vpack.c.bf16 %v7334_v3, %v7332_v1  ;;  %v7094_v54 = vpop.f32.mrb[52].mxu1  ;;  %v15039_v50 = vld [vmem:[#allocation149_spill] sm:$0xff]  ;;  %v15040_v53 = vld [vmem:[#allocation150_spill] sm:$0xff] }
 0x6d6   : > { %v6506_v47 = vadd.f32 %v6340_v33, %v15035_v6  ;;  %v7095_v35 = vadd.f32 %v7094_v54, %v13785_v29  ;;  %v7096_v2 = vpop.f32.mrb[53].mxu1  ;;  %v6632_v56 = vmax.f32 %v6504_v26, 0.0  ;;  %v15038_v26 = vld [vmem:[#allocation148_spill] sm:$0xff] }
 0x6d7   : > { %v6507_v32 = vadd.f32 %v6342_v38, %v15036_v55  ;;  %v7097_v24 = vadd.f32 %v7096_v2, %v13788_v7  ;;  %v7098_v58 = vpop.f32.mrb[54].mxu1  ;;  %7833 = vmatprep.mubr.bf16.mxu0 %v7436_v31  ;;  %v6633_v48 = vmax.f32 %v6505_v63, 0.0 }
 0x6d8   : > { %v6634_v28 = vmax.f32 %v6506_v47, 0.0  ;;  %v7099_v17 = vadd.f32 %v7098_v58, %v13785_v29  ;;  %v7100_v19 = vpop.f32.mrb[55].mxu1  ;;  %7834 = vmatmul.mubr.bf16.gmra.mrb[176].mxu0 %v7435_v12  ;;  %v7335_v9 = vmax.f32 %v7095_v35, 0.0 }
 0x6d9   : > { %v6635_v0 = vmax.f32 %v6507_v32, 0.0  ;;  %v7101_v59 = vadd.f32 %v7100_v19, %v13788_v7  ;;  %v7336_v39 = vmax.f32 %v7097_v24, 0.0 }
 0x6da   : > { %v6710_v44 = vpack.c.bf16 %v6634_v28, %v6632_v56  ;;  %v7337_v34 = vmax.f32 %v7099_v17, 0.0 }
 0x6db   : > { %v6711_v40 = vpack.c.bf16 %v6635_v0, %v6633_v48  ;;  %v7338_v23 = vmax.f32 %v7101_v59, 0.0 }
 0x6dc   : > { %v7437_v15 = vpack.c.bf16 %v7337_v34, %v7335_v9 }
 0x6dd   : > { %7212 = vmatprep.mubr.bf16.mxu1 %v6711_v40  ;;  %v7438_v61 = vpack.c.bf16 %v7338_v23, %v7336_v39  ;;  %v15041_v23 = vld [vmem:[#allocation151_spill] sm:$0xff] }
 0x6de   : > { %7213 = vmatmul.mubr.bf16.gmra.mrb[100].mxu1 %v6710_v44 }
 0x6df   : > { %v7104_v37 = vpop.f32.mrb[56].mxu1  ;;  %7843 = vmatprep.mubr.bf16.mxu0 %v7438_v61 }
 0x6e0   : > { %v7105_v45 = vadd.f32 %v7104_v37, %v13785_v29  ;;  %v7106_v57 = vpop.f32.mrb[57].mxu1  ;;  %7844 = vmatmul.mubr.bf16.gmra.mrb[180].mxu0 %v7437_v15 }
 0x6e1   : > { %v7107_v22 = vadd.f32 %v7106_v57, %v13788_v7  ;;  %v7108_v30 = vpop.f32.mrb[58].mxu1 }
 0x6e2   : > { %v7109_v10 = vadd.f32 %v7108_v30, %v13785_v29  ;;  %v7110_v52 = vpop.f32.mrb[59].mxu1  ;;  %v6345_v46 = vpop.f32.mrb[104].mxu0  ;;  %v7339_v16 = vmax.f32 %v7105_v45, 0.0  ;;  %v15042_v45 = vld [vmem:[#allocation152_spill] sm:$0xff]  ;;  %v15043_v30 = vld [vmem:[#allocation153_spill] sm:$0xff] }
 0x6e3   : > { %v7111_v20 = vadd.f32 %v7110_v52, %v13788_v7  ;;  %v6346_v62 = vadd.f32 %v6345_v46, %v13040_v5  ;;  %v6347_v4 = vpop.f32.mrb[105].mxu0  ;;  %v7340_v25 = vmax.f32 %v7107_v22, 0.0  ;;  %v15044_v52 = vld [vmem:[#allocation154_spill] sm:$0xff] }
 0x6e4   : > { %v7341_v21 = vmax.f32 %v7109_v10, 0.0  ;;  %v6348_v36 = vadd.f32 %v6347_v4, %v13045_v42  ;;  %v6349_v13 = vpop.f32.mrb[106].mxu0 }
 0x6e5   : > { %v7342_v11 = vmax.f32 %v7111_v20, 0.0  ;;  %v6508_v27 = vadd.f32 %v6346_v62, %v15037_v49  ;;  %v6350_v41 = vadd.f32 %v6349_v13, %v13040_v5  ;;  %v6351_v1 = vpop.f32.mrb[107].mxu0 }
 0x6e6   : > { %v7439_v14 = vpack.c.bf16 %v7341_v21, %v7339_v16  ;;  %v6509_v3 = vadd.f32 %v6348_v36, %v15038_v26  ;;  %v6352_v33 = vadd.f32 %v6351_v1, %v13045_v42 }
 0x6e7   : > { %v7440_v60 = vpack.c.bf16 %v7342_v11, %v7340_v25  ;;  %v6510_v12 = vadd.f32 %v6350_v41, %v15039_v50  ;;  %v6636_v38 = vmax.f32 %v6508_v27, 0.0 }
 0x6e8   : > { %v6511_v63 = vadd.f32 %v6352_v33, %v15040_v53  ;;  %v6637_v6 = vmax.f32 %v6509_v3, 0.0 }
 0x6e9   : > { %7853 = vmatprep.mubr.bf16.mxu0 %v7440_v60  ;;  %v6638_v31 = vmax.f32 %v6510_v12, 0.0 }
 0x6ea   : > { %7854 = vmatmul.mubr.bf16.gmra.mrb[184].mxu0 %v7439_v14  ;;  %v6639_v47 = vmax.f32 %v6511_v63, 0.0 }
 0x6eb   : > { %v6712_v54 = vpack.c.bf16 %v6638_v31, %v6636_v38 }
 0x6ec   : > { %v6713_v8 = vpack.c.bf16 %v6639_v47, %v6637_v6  ;;  %v15045_v47 = vld [vmem:[#allocation156_spill] sm:$0xff] }
 0x6ee   : > { %7222 = vmatprep.mubr.bf16.mxu1 %v6713_v8 }
 0x6ef   : > { %7223 = vmatmul.mubr.bf16.gmra.mrb[104].mxu1 %v6712_v54 }
 0x6f0   : > { %v7114_v55 = vpop.f32.mrb[60].mxu1 }
 0x6f1   : > { %v7115_v32 = vadd.f32 %v7114_v55, %v13785_v29  ;;  %v7116_v35 = vpop.f32.mrb[61].mxu1 }
 0x6f2   : > { %v7117_v2 = vadd.f32 %v7116_v35, %v13788_v7  ;;  %v7118_v56 = vpop.f32.mrb[62].mxu1 }
 0x6f3   : > { %v7119_v28 = vadd.f32 %v7118_v56, %v13785_v29  ;;  %v7120_v24 = vpop.f32.mrb[63].mxu1  ;;  %v7343_v48 = vmax.f32 %v7115_v32, 0.0  ;;  %v15046_v32 = vld [vmem:[#allocation157_spill] sm:$0xff]  ;;  %v15047_v56 = vld [vmem:[#allocation158_spill] sm:$0xff] }
 0x6f4   : > { %v7121_v58 = vadd.f32 %v7120_v24, %v13788_v7  ;;  %v7344_v19 = vmax.f32 %v7117_v2, 0.0  ;;  %v15048_v24 = vld [vmem:[#allocation159_spill] sm:$0xff] }
 0x6f5   : > { %v7345_v0 = vmax.f32 %v7119_v28, 0.0  ;;  %v6355_v17 = vpop.f32.mrb[108].mxu0 }
 0x6f6   : > { %v7346_v44 = vmax.f32 %v7121_v58, 0.0  ;;  %v6356_v59 = vadd.f32 %v6355_v17, %v13040_v5  ;;  %v6357_v9 = vpop.f32.mrb[109].mxu0 }
 0x6f7   : > { %v7441_v34 = vpack.c.bf16 %v7345_v0, %v7343_v48  ;;  %v6358_v40 = vadd.f32 %v6357_v9, %v13045_v42  ;;  %v6359_v18 = vpop.f32.mrb[110].mxu0 }
 0x6f8   : > { %v7442_v39 = vpack.c.bf16 %v7346_v44, %v7344_v19  ;;  %v6512_v15 = vadd.f32 %v6356_v59, %v15041_v23  ;;  %v6360_v61 = vadd.f32 %v6359_v18, %v13040_v5  ;;  %v6361_v37 = vpop.f32.mrb[111].mxu0 }
 0x6f9   : > { %v6513_v57 = vadd.f32 %v6358_v40, %v15042_v45  ;;  %v6362_v22 = vadd.f32 %v6361_v37, %v13045_v42 }
 0x6fa   : > { %v6514_v10 = vadd.f32 %v6360_v61, %v15043_v30  ;;  %7863 = vmatprep.mubr.bf16.mxu0 %v7442_v39  ;;  %v6640_v46 = vmax.f32 %v6512_v15, 0.0 }
 0x6fb   : > { %v6515_v20 = vadd.f32 %v6362_v22, %v15044_v52  ;;  %7864 = vmatmul.mubr.bf16.gmra.mrb[188].mxu0 %v7441_v34  ;;  %v6641_v21 = vmax.f32 %v6513_v57, 0.0 }
 0x6fc   : > { %v6642_v16 = vmax.f32 %v6514_v10, 0.0 }
 0x6fd   : > { %v6643_v62 = vmax.f32 %v6515_v20, 0.0 }
 0x6fe   : > { %v6714_v4 = vpack.c.bf16 %v6642_v16, %v6640_v46 }
 0x6ff   : > { %v6715_v25 = vpack.c.bf16 %v6643_v62, %v6641_v21  ;;  %v15049_v62 = vld [vmem:[#allocation162_spill] sm:$0xff] }
 0x701   : > { %7232 = vmatprep.mubr.bf16.mxu1 %v6715_v25 }
 0x702   : > { %7233 = vmatmul.mubr.bf16.gmra.mrb[108].mxu1 %v6714_v4 }
 0x703   : > { %v7124_v11 = vpop.f32.mrb[64].mxu1 }
 0x704   : > { %v7125_v36 = vadd.f32 %v7124_v11, %v13785_v29  ;;  %v7126_v13 = vpop.f32.mrb[65].mxu1 }
 0x705   : > { %v7127_v14 = vadd.f32 %v7126_v13, %v13788_v7  ;;  %v7128_v49 = vpop.f32.mrb[66].mxu1 }
 0x706   : > { %v7129_v27 = vadd.f32 %v7128_v49, %v13785_v29  ;;  %v7130_v41 = vpop.f32.mrb[67].mxu1  ;;  %v7347_v60 = vmax.f32 %v7125_v36, 0.0  ;;  %v15050_v36 = vld [vmem:[#allocation163_spill] sm:$0xff]  ;;  %v15051_v49 = vld [vmem:[#allocation164_spill] sm:$0xff] }
 0x707   : > { %v7131_v1 = vadd.f32 %v7130_v41, %v13788_v7  ;;  %v7348_v33 = vmax.f32 %v7127_v14, 0.0  ;;  %v15052_v41 = vld [vmem:[#allocation165_spill] sm:$0xff] }
 0x708   : > { %v7349_v26 = vmax.f32 %v7129_v27, 0.0  ;;  %v6365_v3 = vpop.f32.mrb[112].mxu0 }
 0x709   : > { %v7350_v50 = vmax.f32 %v7131_v1, 0.0  ;;  %v6366_v12 = vadd.f32 %v6365_v3, %v13040_v5  ;;  %v6367_v53 = vpop.f32.mrb[113].mxu0 }
 0x70a   : > { %v7443_v63 = vpack.c.bf16 %v7349_v26, %v7347_v60  ;;  %v6368_v38 = vadd.f32 %v6367_v53, %v13045_v42  ;;  %v6369_v31 = vpop.f32.mrb[114].mxu0 }
 0x70b   : > { %v7444_v6 = vpack.c.bf16 %v7350_v50, %v7348_v33  ;;  %v6516_v54 = vadd.f32 %v6366_v12, %v15045_v47  ;;  %v6370_v8 = vadd.f32 %v6369_v31, %v13040_v5  ;;  %v6371_v55 = vpop.f32.mrb[115].mxu0 }
 0x70c   : > { %v6517_v35 = vadd.f32 %v6368_v38, %v15046_v32  ;;  %v6372_v2 = vadd.f32 %v6371_v55, %v13045_v42 }
 0x70d   : > { %v6518_v28 = vadd.f32 %v6370_v8, %v15047_v56  ;;  %7873 = vmatprep.mubr.bf16.mxu0 %v7444_v6  ;;  %v6644_v48 = vmax.f32 %v6516_v54, 0.0 }
 0x70e   : > { %v6519_v58 = vadd.f32 %v6372_v2, %v15048_v24  ;;  %7874 = vmatmul.mubr.bf16.gmra.mrb[192].mxu0 %v7443_v63  ;;  %v6645_v17 = vmax.f32 %v6517_v35, 0.0 }
 0x70f   : > { %v6646_v0 = vmax.f32 %v6518_v28, 0.0 }
 0x710   : > { %v6647_v19 = vmax.f32 %v6519_v58, 0.0 }
 0x711   : > { %v6716_v44 = vpack.c.bf16 %v6646_v0, %v6644_v48 }
 0x712   : > { %v6717_v59 = vpack.c.bf16 %v6647_v19, %v6645_v17  ;;  %v15053_v19 = vld [vmem:[#allocation167_spill] sm:$0xff] }
 0x714   : > { %7242 = vmatprep.mubr.bf16.mxu1 %v6717_v59 }
 0x715   : > { %7243 = vmatmul.mubr.bf16.gmra.mrb[112].mxu1 %v6716_v44 }
 0x716   : > { %v7134_v9 = vpop.f32.mrb[68].mxu1 }
 0x717   : > { %v7135_v34 = vadd.f32 %v7134_v9, %v13785_v29  ;;  %v7136_v40 = vpop.f32.mrb[69].mxu1 }
 0x718   : > { %v7137_v18 = vadd.f32 %v7136_v40, %v13788_v7  ;;  %v7138_v39 = vpop.f32.mrb[70].mxu1 }
 0x719   : > { %v7139_v23 = vadd.f32 %v7138_v39, %v13785_v29  ;;  %v7140_v15 = vpop.f32.mrb[71].mxu1  ;;  %v7351_v37 = vmax.f32 %v7135_v34, 0.0  ;;  %v15054_v34 = vld [vmem:[#allocation168_spill] sm:$0xff]  ;;  %v15055_v39 = vld [vmem:[#allocation169_spill] sm:$0xff] }
 0x71a   : > { %v7141_v61 = vadd.f32 %v7140_v15, %v13788_v7  ;;  %v7352_v22 = vmax.f32 %v7137_v18, 0.0  ;;  %v15056_v15 = vld [vmem:[#allocation170_spill] sm:$0xff] }
 0x71b   : > { %v7353_v45 = vmax.f32 %v7139_v23, 0.0  ;;  %v6375_v57 = vpop.f32.mrb[116].mxu0 }
 0x71c   : > { %v7354_v30 = vmax.f32 %v7141_v61, 0.0  ;;  %v6376_v10 = vadd.f32 %v6375_v57, %v13040_v5  ;;  %v6377_v52 = vpop.f32.mrb[117].mxu0 }
 0x71d   : > { %v7445_v20 = vpack.c.bf16 %v7353_v45, %v7351_v37  ;;  %v6378_v46 = vadd.f32 %v6377_v52, %v13045_v42  ;;  %v6379_v16 = vpop.f32.mrb[118].mxu0 }
 0x71e   : > { %v7446_v21 = vpack.c.bf16 %v7354_v30, %v7352_v22  ;;  %v6520_v4 = vadd.f32 %v6376_v10, %v15049_v62  ;;  %v6380_v25 = vadd.f32 %v6379_v16, %v13040_v5  ;;  %v6381_v11 = vpop.f32.mrb[119].mxu0 }
 0x71f   : > { %v6521_v13 = vadd.f32 %v6378_v46, %v15050_v36  ;;  %v6382_v14 = vadd.f32 %v6381_v11, %v13045_v42 }
 0x720   : > { %v6522_v27 = vadd.f32 %v6380_v25, %v15051_v49  ;;  %7883 = vmatprep.mubr.bf16.mxu0 %v7446_v21  ;;  %v6648_v60 = vmax.f32 %v6520_v4, 0.0 }
 0x721   : > { %v6523_v1 = vadd.f32 %v6382_v14, %v15052_v41  ;;  %7884 = vmatmul.mubr.bf16.gmra.mrb[196].mxu0 %v7445_v20  ;;  %v6649_v3 = vmax.f32 %v6521_v13, 0.0 }
 0x722   : > { %v6650_v26 = vmax.f32 %v6522_v27, 0.0 }
 0x723   : > { %v6651_v33 = vmax.f32 %v6523_v1, 0.0 }
 0x724   : > { %v6718_v50 = vpack.c.bf16 %v6650_v26, %v6648_v60 }
 0x725   : > { %v6719_v12 = vpack.c.bf16 %v6651_v33, %v6649_v3  ;;  %v15057_v3 = vld [vmem:[#allocation171_spill] sm:$0xff] }
 0x727   : > { %7252 = vmatprep.mubr.bf16.mxu1 %v6719_v12 }
 0x728   : > { %7253 = vmatmul.mubr.bf16.gmra.mrb[116].mxu1 %v6718_v50 }
 0x729   : > { %v7144_v53 = vpop.f32.mrb[72].mxu1 }
 0x72a   : > { %v7145_v63 = vadd.f32 %v7144_v53, %v13785_v29  ;;  %v7146_v38 = vpop.f32.mrb[73].mxu1 }
 0x72b   : > { %v7147_v31 = vadd.f32 %v7146_v38, %v13788_v7  ;;  %v7148_v6 = vpop.f32.mrb[74].mxu1 }
 0x72c   : > { %v7149_v47 = vadd.f32 %v7148_v6, %v13785_v29  ;;  %v7150_v54 = vpop.f32.mrb[75].mxu1  ;;  %v7355_v55 = vmax.f32 %v7145_v63, 0.0  ;;  %v15058_v63 = vld [vmem:[#allocation172_spill] sm:$0xff]  ;;  %v9233_v6 = vld [vmem:[%s14425_s4 + $0xc] sm:$0x3] }
 0x72d   : > { %v7151_v8 = vadd.f32 %v7150_v54, %v13788_v7  ;;  %v7356_v2 = vmax.f32 %v7147_v31, 0.0 }
 0x72e   : > { %v7357_v32 = vmax.f32 %v7149_v47, 0.0  ;;  %v6385_v35 = vpop.f32.mrb[120].mxu0  ;;  %v15059_v47 = vld [vmem:[#allocation173_spill] sm:$0xff] }
 0x72f   : > { %v7358_v56 = vmax.f32 %v7151_v8, 0.0  ;;  %v6386_v28 = vadd.f32 %v6385_v35, %v13040_v5  ;;  %v6387_v24 = vpop.f32.mrb[121].mxu0  ;;  %v15060_v8 = vld [vmem:[#allocation174_spill] sm:$0xff] }
 0x730   : > { %v7447_v58 = vpack.c.bf16 %v7357_v32, %v7355_v55  ;;  %v6388_v48 = vadd.f32 %v6387_v24, %v13045_v42  ;;  %v6389_v0 = vpop.f32.mrb[122].mxu0 }
 0x731   : > { %v7448_v17 = vpack.c.bf16 %v7358_v56, %v7356_v2  ;;  %v6524_v44 = vadd.f32 %v6386_v28, %v15053_v19  ;;  %v6390_v59 = vadd.f32 %v6389_v0, %v13040_v5  ;;  %v6391_v9 = vpop.f32.mrb[123].mxu0  ;;  %v14036_v28 = vrot.slane %v9233_v6, %v15011_v51 }
 0x732   : > { %v6525_v40 = vadd.f32 %v6388_v48, %v15054_v34  ;;  %v6392_v18 = vadd.f32 %v6391_v9, %v13045_v42 }
 0x733   : > { %v6526_v23 = vadd.f32 %v6390_v59, %v15055_v39  ;;  %7893 = vmatprep.mubr.bf16.mxu0 %v7448_v17  ;;  %v6652_v37 = vmax.f32 %v6524_v44, 0.0 }
 0x734   : > { %v6527_v61 = vadd.f32 %v6392_v18, %v15056_v15  ;;  %7894 = vmatmul.mubr.bf16.gmra.mrb[200].mxu0 %v7447_v58  ;;  %v6653_v57 = vmax.f32 %v6525_v40, 0.0 }
 0x735   : > { %v6654_v45 = vmax.f32 %v6526_v23, 0.0 }
 0x736   : > { %v6655_v22 = vmax.f32 %v6527_v61, 0.0 }
 0x737   : > { %v6720_v30 = vpack.c.bf16 %v6654_v45, %v6652_v37 }
 0x738   : > { %v6721_v10 = vpack.c.bf16 %v6655_v22, %v6653_v57 }
 0x73a   : > { %7262 = vmatprep.mubr.bf16.mxu1 %v6721_v10 }
 0x73b   : > { %7263 = vmatmul.mubr.bf16.gmra.mrb[120].mxu1 %v6720_v30 }
 0x73d   : > { %v7154_v52 = vpop.f32.mrb[76].mxu1 }
 0x73e   : > { %v7155_v20 = vadd.f32 %v7154_v52, %v13785_v29  ;;  %v7156_v46 = vpop.f32.mrb[77].mxu1 }
 0x73f   : > { %v7157_v16 = vadd.f32 %v7156_v46, %v13788_v7  ;;  %v7158_v21 = vpop.f32.mrb[78].mxu1 }
 0x740   : > { %v7159_v62 = vadd.f32 %v7158_v21, %v13785_v29  ;;  %v7160_v4 = vpop.f32.mrb[79].mxu1  ;;  %v7359_v36 = vmax.f32 %v7155_v20, 0.0 }
 0x741   : > { %v7161_v25 = vadd.f32 %v7160_v4, %v13788_v7  ;;  %v6395_v11 = vpop.f32.mrb[124].mxu0  ;;  %v7360_v27 = vmax.f32 %v7157_v16, 0.0 }
 0x742   : > { %v7361_v13 = vmax.f32 %v7159_v62, 0.0  ;;  %v6396_v14 = vadd.f32 %v6395_v11, %v13040_v5  ;;  %v6397_v49 = vpop.f32.mrb[125].mxu0 }
 0x743   : > { %v7362_v41 = vmax.f32 %v7161_v25, 0.0  ;;  %v6398_v1 = vadd.f32 %v6397_v49, %v13045_v42  ;;  %v6399_v60 = vpop.f32.mrb[126].mxu0 }
 0x744   : > { %v7449_v26 = vpack.c.bf16 %v7361_v13, %v7359_v36  ;;  %v6528_v33 = vadd.f32 %v6396_v14, %v15057_v3  ;;  %v6400_v50 = vadd.f32 %v6399_v60, %v13040_v5  ;;  %v6401_v12 = vpop.f32.mrb[127].mxu0  ;;  %v14033_v5 = vrot.slane %v9233_v6, %v15010_v43 }
 0x745   : > { %v7450_v53 = vpack.c.bf16 %v7362_v41, %v7360_v27  ;;  %v6529_v38 = vadd.f32 %v6398_v1, %v15058_v63  ;;  %v6402_v31 = vadd.f32 %v6401_v12, %v13045_v42 }
 0x746   : > { %v6530_v54 = vadd.f32 %v6400_v50, %v15059_v47  ;;  %v6656_v32 = vmax.f32 %v6528_v33, 0.0 }
 0x747   : > { %v6531_v55 = vadd.f32 %v6402_v31, %v15060_v8  ;;  %7903 = vmatprep.mubr.bf16.mxu0 %v7450_v53  ;;  %v6657_v2 = vmax.f32 %v6529_v38, 0.0 }
 0x748   : > { %v6658_v35 = vmax.f32 %v6530_v54, 0.0  ;;  %7904 = vmatmul.mubr.bf16.gmra.mrb[204].mxu0 %v7449_v26 }
 0x749   : > { %v6659_v56 = vmax.f32 %v6531_v55, 0.0 }
 0x74a   : > { %v6722_v42 = vpack.c.bf16 %v6658_v35, %v6656_v32 }
 0x74b   : > { %v7715_v24 = vpop.f32.mrb[128].mxu0  ;;  %v6723_v58 = vpack.c.bf16 %v6659_v56, %v6657_v2 }
 0x74c   : > { %v7716_v48 = vadd.f32 %v7715_v24, %v14033_v5  ;;  %v7717_v0 = vpop.f32.mrb[129].mxu0 }
 0x74d   : > { %v7718_v17 = vadd.f32 %v7717_v0, %v14036_v28  ;;  %7272 = vmatprep.mubr.bf16.mxu1 %v6723_v58  ;;  %v7719_v19 = vpop.f32.mrb[130].mxu0 }
 0x74e   : > { %v7720_v44 = vadd.f32 %v7719_v19, %v14033_v5  ;;  %7273 = vmatmul.mubr.bf16.gmra.mrb[124].mxu1 %v6722_v42  ;;  %v7721_v43 = vpop.f32.mrb[131].mxu0  ;;  %v8034_v9 = vmax.f32 %v7716_v48, 0.0 }
 0x74f   : > { %v7722_v59 = vadd.f32 %v7721_v43, %v14036_v28  ;;  %v8035_v40 = vmax.f32 %v7718_v17, 0.0 }
 0x750   : > { %v8036_v34 = vmax.f32 %v7720_v44, 0.0  ;;  %v7164_v51 = vpop.f32.mrb[80].mxu1 }
 0x751   : > { %v8037_v18 = vmax.f32 %v7722_v59, 0.0  ;;  %v7165_v39 = vadd.f32 %v7164_v51, %v13785_v29  ;;  %v7166_v23 = vpop.f32.mrb[81].mxu1 }
 0x752   : > { %v8162_v15 = vpack.c.bf16 %v8036_v34, %v8034_v9  ;;  %v7167_v61 = vadd.f32 %v7166_v23, %v13788_v7  ;;  %v7168_v37 = vpop.f32.mrb[82].mxu1 }
 0x753   : > { %v8163_v45 = vpack.c.bf16 %v8037_v18, %v8035_v40  ;;  %v7169_v57 = vadd.f32 %v7168_v37, %v13785_v29  ;;  %v7170_v22 = vpop.f32.mrb[83].mxu1  ;;  %v7725_v30 = vpop.f32.mrb[132].mxu0  ;;  %v7363_v46 = vmax.f32 %v7165_v39, 0.0 }
 0x754   : > { %v7171_v10 = vadd.f32 %v7170_v22, %v13788_v7  ;;  %v7726_v52 = vadd.f32 %v7725_v30, %v14033_v5  ;;  %v7727_v20 = vpop.f32.mrb[133].mxu0  ;;  %v7364_v4 = vmax.f32 %v7167_v61, 0.0 }
 0x755   : > { %v7365_v16 = vmax.f32 %v7169_v57, 0.0  ;;  %v7728_v21 = vadd.f32 %v7727_v20, %v14036_v28  ;;  %v7729_v62 = vpop.f32.mrb[134].mxu0  ;;  %8386 = vmatprep.mubr.bf16.mxu1 %v8163_v45 }
 0x756   : > { %v7366_v25 = vmax.f32 %v7171_v10, 0.0  ;;  %v7730_v11 = vadd.f32 %v7729_v62, %v14033_v5  ;;  %v7731_v36 = vpop.f32.mrb[135].mxu0  ;;  %8387 = vmatmul.mubr.bf16.vlgmr.msra.gmra.mrb[128].mxu1 %v8162_v15  ;;  %v8038_v27 = vmax.f32 %v7726_v52, 0.0 }
 0x757   : > { %v7451_v13 = vpack.c.bf16 %v7365_v16, %v7363_v46  ;;  %v7732_v14 = vadd.f32 %v7731_v36, %v14036_v28  ;;  %v8039_v1 = vmax.f32 %v7728_v21, 0.0 }
 0x758   : > { %v7452_v49 = vpack.c.bf16 %v7366_v25, %v7364_v4  ;;  %v8040_v41 = vmax.f32 %v7730_v11, 0.0 }
 0x759   : > { %v8041_v60 = vmax.f32 %v7732_v14, 0.0 }
 0x75a   : > { %v8164_v26 = vpack.c.bf16 %v8040_v41, %v8038_v27  ;;  %7913 = vmatprep.mubr.bf16.mxu0 %v7452_v49 }
 0x75b   : > { %v8165_v3 = vpack.c.bf16 %v8041_v60, %v8039_v1  ;;  %v7735_v33 = vpop.f32.mrb[136].mxu0  ;;  %7914 = vmatmul.mubr.bf16.gmra.mrb[208].mxu0 %v7451_v13 }
 0x75c   : > { %v7736_v50 = vadd.f32 %v7735_v33, %v14033_v5  ;;  %v7737_v12 = vpop.f32.mrb[137].mxu0 }
 0x75d   : > { %v7738_v53 = vadd.f32 %v7737_v12, %v14036_v28  ;;  %v7739_v63 = vpop.f32.mrb[138].mxu0  ;;  %8394 = vmatprep.mubr.bf16.mxu1 %v8165_v3 }
 0x75e   : > { %v7740_v38 = vadd.f32 %v7739_v63, %v14033_v5  ;;  %v7741_v31 = vpop.f32.mrb[139].mxu0  ;;  %8395 = vmatmul.mubr.bf16.gmra.mrb[132].mxu1 %v8164_v26  ;;  %v8042_v47 = vmax.f32 %v7736_v50, 0.0 }
 0x75f   : > { %v7742_v6 = vadd.f32 %v7741_v31, %v14036_v28  ;;  %v8043_v8 = vmax.f32 %v7738_v53, 0.0 }
 0x760   : > { %v8044_v54 = vmax.f32 %v7740_v38, 0.0 }
 0x761   : > { %v8045_v55 = vmax.f32 %v7742_v6, 0.0 }
 0x762   : > { %v8166_v32 = vpack.c.bf16 %v8044_v54, %v8042_v47 }
 0x763   : > { %v8167_v35 = vpack.c.bf16 %v8045_v55, %v8043_v8  ;;  %v7745_v56 = vpop.f32.mrb[140].mxu0 }
 0x764   : > { %v7174_v2 = vpop.f32.mrb[84].mxu1  ;;  %v7746_v24 = vadd.f32 %v7745_v56, %v14033_v5  ;;  %v7747_v48 = vpop.f32.mrb[141].mxu0 }
 0x765   : > { %v7175_v42 = vadd.f32 %v7174_v2, %v13785_v29  ;;  %v7176_v58 = vpop.f32.mrb[85].mxu1  ;;  %v7748_v17 = vadd.f32 %v7747_v48, %v14036_v28  ;;  %v7749_v44 = vpop.f32.mrb[142].mxu0  ;;  %8402 = vmatprep.mubr.bf16.mxu1 %v8167_v35 }
 0x766   : > { %v7177_v0 = vadd.f32 %v7176_v58, %v13788_v7  ;;  %v7178_v19 = vpop.f32.mrb[86].mxu1  ;;  %v7750_v59 = vadd.f32 %v7749_v44, %v14033_v5  ;;  %v7751_v34 = vpop.f32.mrb[143].mxu0  ;;  %8403 = vmatmul.mubr.bf16.gmra.mrb[136].mxu1 %v8166_v32  ;;  %v8046_v39 = vmax.f32 %v7746_v24, 0.0 }
 0x767   : > { %v7179_v43 = vadd.f32 %v7178_v19, %v13785_v29  ;;  %v7180_v9 = vpop.f32.mrb[87].mxu1  ;;  %v7752_v40 = vadd.f32 %v7751_v34, %v14036_v28  ;;  %v7367_v18 = vmax.f32 %v7175_v42, 0.0  ;;  %v8047_v37 = vmax.f32 %v7748_v17, 0.0 }
 0x768   : > { %v7181_v51 = vadd.f32 %v7180_v9, %v13788_v7  ;;  %v8048_v15 = vmax.f32 %v7750_v59, 0.0  ;;  %v7368_v61 = vmax.f32 %v7177_v0, 0.0 }
 0x769   : > { %v7369_v23 = vmax.f32 %v7179_v43, 0.0  ;;  %v8049_v57 = vmax.f32 %v7752_v40, 0.0 }
 0x76a   : > { %v7370_v45 = vmax.f32 %v7181_v51, 0.0  ;;  %v8168_v30 = vpack.c.bf16 %v8048_v15, %v8046_v39 }
 0x76b   : > { %v7453_v22 = vpack.c.bf16 %v7369_v23, %v7367_v18  ;;  %v8169_v52 = vpack.c.bf16 %v8049_v57, %v8047_v37  ;;  %v7755_v20 = vpop.f32.mrb[144].mxu0 }
 0x76c   : > { %v7454_v10 = vpack.c.bf16 %v7370_v45, %v7368_v61  ;;  %v7756_v46 = vadd.f32 %v7755_v20, %v14033_v5  ;;  %v7757_v16 = vpop.f32.mrb[145].mxu0 }
 0x76d   : > { %v7758_v21 = vadd.f32 %v7757_v16, %v14036_v28  ;;  %v7759_v62 = vpop.f32.mrb[146].mxu0  ;;  %8410 = vmatprep.mubr.bf16.mxu1 %v8169_v52 }
 0x76e   : > { %7923 = vmatprep.mubr.bf16.mxu0 %v7454_v10  ;;  %v7760_v4 = vadd.f32 %v7759_v62, %v14033_v5  ;;  %v7761_v25 = vpop.f32.mrb[147].mxu0  ;;  %8411 = vmatmul.mubr.bf16.gmra.mrb[140].mxu1 %v8168_v30  ;;  %v8050_v36 = vmax.f32 %v7756_v46, 0.0 }
 0x76f   : > { %7924 = vmatmul.mubr.bf16.gmra.mrb[212].mxu0 %v7453_v22  ;;  %v7762_v11 = vadd.f32 %v7761_v25, %v14036_v28  ;;  %v8051_v14 = vmax.f32 %v7758_v21, 0.0 }
 0x770   : > { %v8052_v13 = vmax.f32 %v7760_v4, 0.0 }
 0x771   : > { %v8053_v49 = vmax.f32 %v7762_v11, 0.0 }
 0x772   : > { %v8170_v27 = vpack.c.bf16 %v8052_v13, %v8050_v36 }
 0x773   : > { %v8171_v41 = vpack.c.bf16 %v8053_v49, %v8051_v14  ;;  %v7765_v1 = vpop.f32.mrb[148].mxu0 }
 0x774   : > { %v7766_v60 = vadd.f32 %v7765_v1, %v14033_v5  ;;  %v7767_v26 = vpop.f32.mrb[149].mxu0 }
 0x775   : > { %v7768_v3 = vadd.f32 %v7767_v26, %v14036_v28  ;;  %v7769_v33 = vpop.f32.mrb[150].mxu0  ;;  %8418 = vmatprep.mubr.bf16.mxu1 %v8171_v41 }
 0x776   : > { %v7770_v50 = vadd.f32 %v7769_v33, %v14033_v5  ;;  %v7184_v12 = vpop.f32.mrb[88].mxu1  ;;  %v7771_v53 = vpop.f32.mrb[151].mxu0  ;;  %8419 = vmatmul.mubr.bf16.gmra.mrb[144].mxu1 %v8170_v27  ;;  %v8054_v6 = vmax.f32 %v7766_v60, 0.0 }
 0x777   : > { %v7185_v63 = vadd.f32 %v7184_v12, %v13785_v29  ;;  %v7772_v38 = vadd.f32 %v7771_v53, %v14036_v28  ;;  %v7186_v31 = vpop.f32.mrb[89].mxu1  ;;  %v8055_v55 = vmax.f32 %v7768_v3, 0.0 }
 0x778   : > { %v8056_v47 = vmax.f32 %v7770_v50, 0.0  ;;  %v7187_v54 = vadd.f32 %v7186_v31, %v13788_v7  ;;  %v7188_v8 = vpop.f32.mrb[90].mxu1 }
 0x779   : > { %v8057_v32 = vmax.f32 %v7772_v38, 0.0  ;;  %v7189_v35 = vadd.f32 %v7188_v8, %v13785_v29  ;;  %v7190_v2 = vpop.f32.mrb[91].mxu1  ;;  %v7371_v24 = vmax.f32 %v7185_v63, 0.0 }
 0x77a   : > { %v8172_v56 = vpack.c.bf16 %v8056_v47, %v8054_v6  ;;  %v7191_v42 = vadd.f32 %v7190_v2, %v13788_v7  ;;  %v7372_v17 = vmax.f32 %v7187_v54, 0.0 }
 0x77b   : > { %v8173_v58 = vpack.c.bf16 %v8057_v32, %v8055_v55  ;;  %v7373_v48 = vmax.f32 %v7189_v35, 0.0  ;;  %v7775_v0 = vpop.f32.mrb[152].mxu0 }
 0x77c   : > { %v7374_v19 = vmax.f32 %v7191_v42, 0.0  ;;  %v7776_v44 = vadd.f32 %v7775_v0, %v14033_v5  ;;  %v7777_v43 = vpop.f32.mrb[153].mxu0 }
 0x77d   : > { %v7455_v59 = vpack.c.bf16 %v7373_v48, %v7371_v24  ;;  %v7778_v9 = vadd.f32 %v7777_v43, %v14036_v28  ;;  %v7779_v34 = vpop.f32.mrb[154].mxu0  ;;  %8426 = vmatprep.mubr.bf16.mxu1 %v8173_v58 }
 0x77e   : > { %v7456_v51 = vpack.c.bf16 %v7374_v19, %v7372_v17  ;;  %v7780_v40 = vadd.f32 %v7779_v34, %v14033_v5  ;;  %v7781_v18 = vpop.f32.mrb[155].mxu0  ;;  %8427 = vmatmul.mubr.bf16.gmra.mrb[148].mxu1 %v8172_v56  ;;  %v8058_v23 = vmax.f32 %v7776_v44, 0.0 }
 0x77f   : > { %v7782_v39 = vadd.f32 %v7781_v18, %v14036_v28  ;;  %v8059_v61 = vmax.f32 %v7778_v9, 0.0 }
 0x780   : > { %v8060_v15 = vmax.f32 %v7780_v40, 0.0  ;;  %7933 = vmatprep.mubr.bf16.mxu0 %v7456_v51 }
 0x781   : > { %v8061_v37 = vmax.f32 %v7782_v39, 0.0  ;;  %7934 = vmatmul.mubr.bf16.gmra.mrb[216].mxu0 %v7455_v59 }
 0x782   : > { %v8174_v45 = vpack.c.bf16 %v8060_v15, %v8058_v23 }
 0x783   : > { %v8175_v57 = vpack.c.bf16 %v8061_v37, %v8059_v61  ;;  %v7785_v22 = vpop.f32.mrb[156].mxu0 }
 0x784   : > { %v7786_v30 = vadd.f32 %v7785_v22, %v14033_v5  ;;  %v7787_v10 = vpop.f32.mrb[157].mxu0 }
 0x785   : > { %v7788_v52 = vadd.f32 %v7787_v10, %v14036_v28  ;;  %v7789_v20 = vpop.f32.mrb[158].mxu0  ;;  %8434 = vmatprep.mubr.bf16.mxu1 %v8175_v57 }
 0x786   : > { %v7790_v46 = vadd.f32 %v7789_v20, %v14033_v5  ;;  %v7791_v16 = vpop.f32.mrb[159].mxu0  ;;  %8435 = vmatmul.mubr.bf16.gmra.mrb[152].mxu1 %v8174_v45  ;;  %v8062_v62 = vmax.f32 %v7786_v30, 0.0 }
 0x787   : > { %v7792_v21 = vadd.f32 %v7791_v16, %v14036_v28  ;;  %v8063_v25 = vmax.f32 %v7788_v52, 0.0 }
 0x788   : > { %v8064_v4 = vmax.f32 %v7790_v46, 0.0 }
 0x789   : > { %v8065_v11 = vmax.f32 %v7792_v21, 0.0 }
 0x78a   : > { %v7194_v36 = vpop.f32.mrb[92].mxu1  ;;  %v8176_v13 = vpack.c.bf16 %v8064_v4, %v8062_v62 }
 0x78b   : > { %v7195_v14 = vadd.f32 %v7194_v36, %v13785_v29  ;;  %v7196_v49 = vpop.f32.mrb[93].mxu1  ;;  %v8177_v27 = vpack.c.bf16 %v8065_v11, %v8063_v25  ;;  %v7795_v60 = vpop.f32.mrb[160].mxu0 }
 0x78c   : > { %v7197_v41 = vadd.f32 %v7196_v49, %v13788_v7  ;;  %v7198_v1 = vpop.f32.mrb[94].mxu1  ;;  %v7796_v3 = vadd.f32 %v7795_v60, %v14033_v5  ;;  %v7797_v50 = vpop.f32.mrb[161].mxu0 }
 0x78d   : > { %v7199_v26 = vadd.f32 %v7198_v1, %v13785_v29  ;;  %v7200_v33 = vpop.f32.mrb[95].mxu1  ;;  %v7798_v53 = vadd.f32 %v7797_v50, %v14036_v28  ;;  %v7799_v63 = vpop.f32.mrb[162].mxu0  ;;  %8442 = vmatprep.mubr.bf16.mxu1 %v8177_v27  ;;  %v7375_v38 = vmax.f32 %v7195_v14, 0.0 }
 0x78e   : > { %v7201_v12 = vadd.f32 %v7200_v33, %v13788_v7  ;;  %v7800_v6 = vadd.f32 %v7799_v63, %v14033_v5  ;;  %v7801_v47 = vpop.f32.mrb[163].mxu0  ;;  %8443 = vmatmul.mubr.bf16.gmra.mrb[156].mxu1 %v8176_v13  ;;  %v7376_v54 = vmax.f32 %v7197_v41, 0.0  ;;  %v8066_v35 = vmax.f32 %v7796_v3, 0.0 }
 0x78f   : > { %v7377_v31 = vmax.f32 %v7199_v26, 0.0  ;;  %v7802_v55 = vadd.f32 %v7801_v47, %v14036_v28  ;;  %v8067_v42 = vmax.f32 %v7798_v53, 0.0 }
 0x790   : > { %v7378_v8 = vmax.f32 %v7201_v12, 0.0  ;;  %v8068_v2 = vmax.f32 %v7800_v6, 0.0 }
 0x791   : > { %v7457_v32 = vpack.c.bf16 %v7377_v31, %v7375_v38  ;;  %v8069_v24 = vmax.f32 %v7802_v55, 0.0 }
 0x792   : > { %v7458_v56 = vpack.c.bf16 %v7378_v8, %v7376_v54  ;;  %v8178_v58 = vpack.c.bf16 %v8068_v2, %v8066_v35 }
 0x793   : > { %v8179_v48 = vpack.c.bf16 %v8069_v24, %v8067_v42  ;;  %v7805_v0 = vpop.f32.mrb[164].mxu0 }
 0x794   : > { %7943 = vmatprep.mubr.bf16.mxu0 %v7458_v56  ;;  %v7806_v17 = vadd.f32 %v7805_v0, %v14033_v5  ;;  %v7807_v19 = vpop.f32.mrb[165].mxu0 }
 0x795   : > { %7944 = vmatmul.mubr.bf16.gmra.mrb[220].mxu0 %v7457_v32  ;;  %v7808_v44 = vadd.f32 %v7807_v19, %v14036_v28  ;;  %v7809_v43 = vpop.f32.mrb[166].mxu0  ;;  %8450 = vmatprep.mubr.bf16.mxu1 %v8179_v48 }
 0x796   : > { %v7810_v59 = vadd.f32 %v7809_v43, %v14033_v5  ;;  %v7811_v9 = vpop.f32.mrb[167].mxu0  ;;  %8451 = vmatmul.mubr.bf16.gmra.mrb[160].mxu1 %v8178_v58  ;;  %v8070_v51 = vmax.f32 %v7806_v17, 0.0 }
 0x797   : > { %v7812_v34 = vadd.f32 %v7811_v9, %v14036_v28  ;;  %v8071_v18 = vmax.f32 %v7808_v44, 0.0 }
 0x798   : > { %v8072_v40 = vmax.f32 %v7810_v59, 0.0 }
 0x799   : > { %v8073_v39 = vmax.f32 %v7812_v34, 0.0 }
 0x79a   : > { %v8180_v23 = vpack.c.bf16 %v8072_v40, %v8070_v51 }
 0x79b   : > { %v8181_v15 = vpack.c.bf16 %v8073_v39, %v8071_v18  ;;  %v7815_v61 = vpop.f32.mrb[168].mxu0 }
 0x79c   : > { %v7204_v37 = vpop.f32.mrb[96].mxu1  ;;  %v7816_v45 = vadd.f32 %v7815_v61, %v14033_v5  ;;  %v7817_v22 = vpop.f32.mrb[169].mxu0 }
 0x79d   : > { %v7205_v57 = vadd.f32 %v7204_v37, %v13785_v29  ;;  %v7206_v30 = vpop.f32.mrb[97].mxu1  ;;  %v7818_v10 = vadd.f32 %v7817_v22, %v14036_v28  ;;  %v7819_v20 = vpop.f32.mrb[170].mxu0  ;;  %8458 = vmatprep.mubr.bf16.mxu1 %v8181_v15 }
 0x79e   : > { %v7207_v52 = vadd.f32 %v7206_v30, %v13788_v7  ;;  %v7208_v46 = vpop.f32.mrb[98].mxu1  ;;  %v7820_v16 = vadd.f32 %v7819_v20, %v14033_v5  ;;  %v7821_v62 = vpop.f32.mrb[171].mxu0  ;;  %8459 = vmatmul.mubr.bf16.gmra.mrb[164].mxu1 %v8180_v23  ;;  %v8074_v36 = vmax.f32 %v7816_v45, 0.0 }
 0x79f   : > { %v7209_v21 = vadd.f32 %v7208_v46, %v13785_v29  ;;  %v7210_v4 = vpop.f32.mrb[99].mxu1  ;;  %v7822_v25 = vadd.f32 %v7821_v62, %v14036_v28  ;;  %v7379_v13 = vmax.f32 %v7205_v57, 0.0  ;;  %v8075_v27 = vmax.f32 %v7818_v10, 0.0 }
 0x7a0   : > { %v7211_v11 = vadd.f32 %v7210_v4, %v13788_v7  ;;  %v8076_v14 = vmax.f32 %v7820_v16, 0.0  ;;  %v7380_v41 = vmax.f32 %v7207_v52, 0.0 }
 0x7a1   : > { %v7381_v49 = vmax.f32 %v7209_v21, 0.0  ;;  %v8077_v1 = vmax.f32 %v7822_v25, 0.0 }
 0x7a2   : > { %v7382_v60 = vmax.f32 %v7211_v11, 0.0  ;;  %v8182_v26 = vpack.c.bf16 %v8076_v14, %v8074_v36 }
 0x7a3   : > { %v7459_v3 = vpack.c.bf16 %v7381_v49, %v7379_v13  ;;  %v8183_v33 = vpack.c.bf16 %v8077_v1, %v8075_v27  ;;  %v7825_v12 = vpop.f32.mrb[172].mxu0 }
 0x7a4   : > { %v7460_v50 = vpack.c.bf16 %v7382_v60, %v7380_v41  ;;  %v7826_v53 = vadd.f32 %v7825_v12, %v14033_v5  ;;  %v7827_v63 = vpop.f32.mrb[173].mxu0 }
 0x7a5   : > { %v7828_v38 = vadd.f32 %v7827_v63, %v14036_v28  ;;  %v7829_v31 = vpop.f32.mrb[174].mxu0  ;;  %8466 = vmatprep.mubr.bf16.mxu1 %v8183_v33 }
 0x7a6   : > { %7953 = vmatprep.mubr.bf16.mxu0 %v7460_v50  ;;  %v7830_v6 = vadd.f32 %v7829_v31, %v14033_v5  ;;  %v7831_v47 = vpop.f32.mrb[175].mxu0  ;;  %8467 = vmatmul.mubr.bf16.gmra.mrb[168].mxu1 %v8182_v26  ;;  %v8078_v8 = vmax.f32 %v7826_v53, 0.0 }
 0x7a7   : > { %7954 = vmatmul.mubr.bf16.gmra.mrb[224].mxu0 %v7459_v3  ;;  %v7832_v54 = vadd.f32 %v7831_v47, %v14036_v28  ;;  %v8079_v32 = vmax.f32 %v7828_v38, 0.0 }
 0x7a8   : > { %v8080_v55 = vmax.f32 %v7830_v6, 0.0 }
 0x7a9   : > { %v8081_v35 = vmax.f32 %v7832_v54, 0.0 }
 0x7aa   : > { %v8184_v2 = vpack.c.bf16 %v8080_v55, %v8078_v8 }
 0x7ab   : > { %v8185_v56 = vpack.c.bf16 %v8081_v35, %v8079_v32  ;;  %v7835_v42 = vpop.f32.mrb[176].mxu0 }
 0x7ac   : > { %v7836_v24 = vadd.f32 %v7835_v42, %v14033_v5  ;;  %v7837_v58 = vpop.f32.mrb[177].mxu0 }
 0x7ad   : > { %v7838_v48 = vadd.f32 %v7837_v58, %v14036_v28  ;;  %v7839_v0 = vpop.f32.mrb[178].mxu0  ;;  %8474 = vmatprep.mubr.bf16.mxu1 %v8185_v56 }
 0x7ae   : > { %v7840_v17 = vadd.f32 %v7839_v0, %v14033_v5  ;;  %v7841_v19 = vpop.f32.mrb[179].mxu0  ;;  %8475 = vmatmul.mubr.bf16.gmra.mrb[172].mxu1 %v8184_v2  ;;  %v8082_v43 = vmax.f32 %v7836_v24, 0.0 }
 0x7af   : > { %v7842_v44 = vadd.f32 %v7841_v19, %v14036_v28  ;;  %v8083_v34 = vmax.f32 %v7838_v48, 0.0 }
 0x7b0   : > { %v8084_v59 = vmax.f32 %v7840_v17, 0.0 }
 0x7b1   : > { %v7214_v9 = vpop.f32.mrb[100].mxu1  ;;  %v8085_v51 = vmax.f32 %v7842_v44, 0.0 }
 0x7b2   : > { %v7215_v40 = vadd.f32 %v7214_v9, %v13785_v29  ;;  %v7216_v18 = vpop.f32.mrb[101].mxu1  ;;  %v8186_v39 = vpack.c.bf16 %v8084_v59, %v8082_v43 }
 0x7b3   : > { %v7217_v23 = vadd.f32 %v7216_v18, %v13788_v7  ;;  %v7218_v15 = vpop.f32.mrb[102].mxu1  ;;  %v8187_v61 = vpack.c.bf16 %v8085_v51, %v8083_v34  ;;  %v7845_v57 = vpop.f32.mrb[180].mxu0 }
 0x7b4   : > { %v7219_v37 = vadd.f32 %v7218_v15, %v13785_v29  ;;  %v7220_v45 = vpop.f32.mrb[103].mxu1  ;;  %v7846_v30 = vadd.f32 %v7845_v57, %v14033_v5  ;;  %v7847_v10 = vpop.f32.mrb[181].mxu0  ;;  %v7383_v52 = vmax.f32 %v7215_v40, 0.0 }
 0x7b5   : > { %v7221_v22 = vadd.f32 %v7220_v45, %v13788_v7  ;;  %v7848_v46 = vadd.f32 %v7847_v10, %v14036_v28  ;;  %v7849_v16 = vpop.f32.mrb[182].mxu0  ;;  %8482 = vmatprep.mubr.bf16.mxu1 %v8187_v61  ;;  %v7384_v21 = vmax.f32 %v7217_v23, 0.0 }
 0x7b6   : > { %v7385_v20 = vmax.f32 %v7219_v37, 0.0  ;;  %v7850_v4 = vadd.f32 %v7849_v16, %v14033_v5  ;;  %v7851_v25 = vpop.f32.mrb[183].mxu0  ;;  %8483 = vmatmul.mubr.bf16.gmra.mrb[176].mxu1 %v8186_v39  ;;  %v8086_v14 = vmax.f32 %v7846_v30, 0.0 }
 0x7b7   : > { %v7386_v62 = vmax.f32 %v7221_v22, 0.0  ;;  %v7852_v36 = vadd.f32 %v7851_v25, %v14036_v28  ;;  %v8087_v27 = vmax.f32 %v7848_v46, 0.0 }
 0x7b8   : > { %v7461_v11 = vpack.c.bf16 %v7385_v20, %v7383_v52  ;;  %v8088_v49 = vmax.f32 %v7850_v4, 0.0 }
 0x7b9   : > { %v7462_v13 = vpack.c.bf16 %v7386_v62, %v7384_v21  ;;  %v8089_v41 = vmax.f32 %v7852_v36, 0.0 }
 0x7ba   : > { %v8188_v1 = vpack.c.bf16 %v8088_v49, %v8086_v14 }
 0x7bb   : > { %7963 = vmatprep.mubr.bf16.mxu0 %v7462_v13  ;;  %v8189_v60 = vpack.c.bf16 %v8089_v41, %v8087_v27 }
 0x7bc   : > { %7964 = vmatmul.mubr.bf16.gmra.mrb[228].mxu0 %v7461_v11 }
 0x7bd   : > { %v7855_v26 = vpop.f32.mrb[184].mxu0  ;;  %8490 = vmatprep.mubr.bf16.mxu1 %v8189_v60 }
 0x7be   : > { %v7856_v3 = vadd.f32 %v7855_v26, %v14033_v5  ;;  %v7857_v33 = vpop.f32.mrb[185].mxu0  ;;  %8491 = vmatmul.mubr.bf16.gmra.mrb[180].mxu1 %v8188_v1 }
 0x7bf   : > { %v7858_v50 = vadd.f32 %v7857_v33, %v14036_v28  ;;  %v7859_v12 = vpop.f32.mrb[186].mxu0 }
 0x7c0   : > { %v7860_v53 = vadd.f32 %v7859_v12, %v14033_v5  ;;  %v7861_v63 = vpop.f32.mrb[187].mxu0  ;;  %v8090_v31 = vmax.f32 %v7856_v3, 0.0 }
 0x7c1   : > { %v7862_v38 = vadd.f32 %v7861_v63, %v14036_v28  ;;  %v8091_v47 = vmax.f32 %v7858_v50, 0.0 }
 0x7c2   : > { %v8092_v6 = vmax.f32 %v7860_v53, 0.0  ;;  %v7224_v8 = vpop.f32.mrb[104].mxu1 }
 0x7c3   : > { %v8093_v54 = vmax.f32 %v7862_v38, 0.0  ;;  %v7225_v32 = vadd.f32 %v7224_v8, %v13785_v29  ;;  %v7226_v35 = vpop.f32.mrb[105].mxu1 }
 0x7c4   : > { %v8190_v55 = vpack.c.bf16 %v8092_v6, %v8090_v31  ;;  %v7227_v56 = vadd.f32 %v7226_v35, %v13788_v7  ;;  %v7228_v42 = vpop.f32.mrb[106].mxu1 }
 0x7c5   : > { %v8191_v2 = vpack.c.bf16 %v8093_v54, %v8091_v47  ;;  %v7229_v24 = vadd.f32 %v7228_v42, %v13785_v29  ;;  %v7230_v58 = vpop.f32.mrb[107].mxu1  ;;  %v7387_v0 = vmax.f32 %v7225_v32, 0.0 }
 0x7c6   : > { %v7231_v48 = vadd.f32 %v7230_v58, %v13788_v7  ;;  %v7388_v19 = vmax.f32 %v7227_v56, 0.0 }
 0x7c7   : > { %8498 = vmatprep.mubr.bf16.mxu1 %v8191_v2  ;;  %v7389_v17 = vmax.f32 %v7229_v24, 0.0 }
 0x7c8   : > { %8499 = vmatmul.mubr.bf16.gmra.mrb[184].mxu1 %v8190_v55  ;;  %v7390_v44 = vmax.f32 %v7231_v48, 0.0 }
 0x7c9   : > { %v7463_v43 = vpack.c.bf16 %v7389_v17, %v7387_v0 }
 0x7ca   : > { %v7464_v59 = vpack.c.bf16 %v7390_v44, %v7388_v19 }
 0x7cc   : > { %7973 = vmatprep.mubr.bf16.mxu0 %v7464_v59 }
 0x7cd   : > { %7974 = vmatmul.mubr.bf16.gmra.mrb[232].mxu0 %v7463_v43 }
 0x7ce   : > { %v7865_v9 = vpop.f32.mrb[188].mxu0 }
 0x7cf   : > { %v7866_v34 = vadd.f32 %v7865_v9, %v14033_v5  ;;  %v7867_v51 = vpop.f32.mrb[189].mxu0 }
 0x7d0   : > { %v7868_v40 = vadd.f32 %v7867_v51, %v14036_v28  ;;  %v7869_v18 = vpop.f32.mrb[190].mxu0 }
 0x7d1   : > { %v7870_v39 = vadd.f32 %v7869_v18, %v14033_v5  ;;  %v7871_v23 = vpop.f32.mrb[191].mxu0  ;;  %v8094_v61 = vmax.f32 %v7866_v34, 0.0 }
 0x7d2   : > { %v7872_v15 = vadd.f32 %v7871_v23, %v14036_v28  ;;  %v8095_v45 = vmax.f32 %v7868_v40, 0.0 }
 0x7d3   : > { %v8096_v37 = vmax.f32 %v7870_v39, 0.0 }
 0x7d4   : > { %v8097_v57 = vmax.f32 %v7872_v15, 0.0 }
 0x7d5   : > { %v8192_v22 = vpack.c.bf16 %v8096_v37, %v8094_v61  ;;  %v7234_v30 = vpop.f32.mrb[108].mxu1 }
 0x7d6   : > { %v8193_v10 = vpack.c.bf16 %v8097_v57, %v8095_v45  ;;  %v7235_v52 = vadd.f32 %v7234_v30, %v13785_v29  ;;  %v7236_v20 = vpop.f32.mrb[109].mxu1 }
 0x7d7   : > { %v7237_v46 = vadd.f32 %v7236_v20, %v13788_v7  ;;  %v7238_v16 = vpop.f32.mrb[110].mxu1 }
 0x7d8   : > { %v7239_v21 = vadd.f32 %v7238_v16, %v13785_v29  ;;  %v7240_v62 = vpop.f32.mrb[111].mxu1  ;;  %8506 = vmatprep.mubr.bf16.mxu1 %v8193_v10  ;;  %v7391_v25 = vmax.f32 %v7235_v52, 0.0 }
 0x7d9   : > { %v7241_v4 = vadd.f32 %v7240_v62, %v13788_v7  ;;  %8507 = vmatmul.mubr.bf16.gmra.mrb[188].mxu1 %v8192_v22  ;;  %v7392_v36 = vmax.f32 %v7237_v46, 0.0 }
 0x7da   : > { %v7393_v11 = vmax.f32 %v7239_v21, 0.0 }
 0x7db   : > { %v7394_v13 = vmax.f32 %v7241_v4, 0.0 }
 0x7dc   : > { %v7465_v14 = vpack.c.bf16 %v7393_v11, %v7391_v25 }
 0x7dd   : > { %v7466_v49 = vpack.c.bf16 %v7394_v13, %v7392_v36 }
 0x7df   : > { %7983 = vmatprep.mubr.bf16.mxu0 %v7466_v49 }
 0x7e0   : > { %7984 = vmatmul.mubr.bf16.gmra.mrb[236].mxu0 %v7465_v14 }
 0x7e1   : > { %v7875_v27 = vpop.f32.mrb[192].mxu0 }
 0x7e2   : > { %v7876_v41 = vadd.f32 %v7875_v27, %v14033_v5  ;;  %v7877_v1 = vpop.f32.mrb[193].mxu0 }
 0x7e3   : > { %v7878_v60 = vadd.f32 %v7877_v1, %v14036_v28  ;;  %v7879_v26 = vpop.f32.mrb[194].mxu0 }
 0x7e4   : > { %v7880_v3 = vadd.f32 %v7879_v26, %v14033_v5  ;;  %v7881_v33 = vpop.f32.mrb[195].mxu0  ;;  %v8098_v12 = vmax.f32 %v7876_v41, 0.0 }
 0x7e5   : > { %v7882_v50 = vadd.f32 %v7881_v33, %v14036_v28  ;;  %v8099_v63 = vmax.f32 %v7878_v60, 0.0 }
 0x7e6   : > { %v8100_v53 = vmax.f32 %v7880_v3, 0.0 }
 0x7e7   : > { %v8101_v38 = vmax.f32 %v7882_v50, 0.0 }
 0x7e8   : > { %v8194_v31 = vpack.c.bf16 %v8100_v53, %v8098_v12  ;;  %v7244_v6 = vpop.f32.mrb[112].mxu1 }
 0x7e9   : > { %v8195_v47 = vpack.c.bf16 %v8101_v38, %v8099_v63  ;;  %v7245_v54 = vadd.f32 %v7244_v6, %v13785_v29  ;;  %v7246_v8 = vpop.f32.mrb[113].mxu1 }
 0x7ea   : > { %v7247_v55 = vadd.f32 %v7246_v8, %v13788_v7  ;;  %v7248_v32 = vpop.f32.mrb[114].mxu1 }
 0x7eb   : > { %v7249_v35 = vadd.f32 %v7248_v32, %v13785_v29  ;;  %v7250_v2 = vpop.f32.mrb[115].mxu1  ;;  %8514 = vmatprep.mubr.bf16.mxu1 %v8195_v47  ;;  %v7395_v42 = vmax.f32 %v7245_v54, 0.0 }
 0x7ec   : > { %v7251_v56 = vadd.f32 %v7250_v2, %v13788_v7  ;;  %8515 = vmatmul.mubr.bf16.gmra.mrb[192].mxu1 %v8194_v31  ;;  %v7396_v58 = vmax.f32 %v7247_v55, 0.0 }
 0x7ed   : > { %v7397_v24 = vmax.f32 %v7249_v35, 0.0 }
 0x7ee   : > { %v7398_v48 = vmax.f32 %v7251_v56, 0.0 }
 0x7ef   : > { %v7467_v0 = vpack.c.bf16 %v7397_v24, %v7395_v42 }
 0x7f0   : > { %v7468_v17 = vpack.c.bf16 %v7398_v48, %v7396_v58 }
 0x7f2   : > { %7993 = vmatprep.mubr.bf16.mxu0 %v7468_v17 }
 0x7f3   : > { %7994 = vmatmul.mubr.bf16.gmra.mrb[240].mxu0 %v7467_v0 }
 0x7f4   : > { %v7885_v19 = vpop.f32.mrb[196].mxu0 }
 0x7f5   : > { %v7886_v44 = vadd.f32 %v7885_v19, %v14033_v5  ;;  %v7887_v43 = vpop.f32.mrb[197].mxu0 }
 0x7f6   : > { %v7888_v59 = vadd.f32 %v7887_v43, %v14036_v28  ;;  %v7889_v9 = vpop.f32.mrb[198].mxu0 }
 0x7f7   : > { %v7890_v34 = vadd.f32 %v7889_v9, %v14033_v5  ;;  %v7891_v51 = vpop.f32.mrb[199].mxu0  ;;  %v8102_v18 = vmax.f32 %v7886_v44, 0.0 }
 0x7f8   : > { %v7892_v40 = vadd.f32 %v7891_v51, %v14036_v28  ;;  %v8103_v23 = vmax.f32 %v7888_v59, 0.0 }
 0x7f9   : > { %v8104_v39 = vmax.f32 %v7890_v34, 0.0 }
 0x7fa   : > { %v8105_v15 = vmax.f32 %v7892_v40, 0.0 }
 0x7fb   : > { %v8196_v61 = vpack.c.bf16 %v8104_v39, %v8102_v18  ;;  %v7254_v37 = vpop.f32.mrb[116].mxu1 }
 0x7fc   : > { %v8197_v45 = vpack.c.bf16 %v8105_v15, %v8103_v23  ;;  %v7255_v57 = vadd.f32 %v7254_v37, %v13785_v29  ;;  %v7256_v22 = vpop.f32.mrb[117].mxu1 }
 0x7fd   : > { %v7257_v30 = vadd.f32 %v7256_v22, %v13788_v7  ;;  %v7258_v10 = vpop.f32.mrb[118].mxu1 }
 0x7fe   : > { %v7259_v52 = vadd.f32 %v7258_v10, %v13785_v29  ;;  %v7260_v20 = vpop.f32.mrb[119].mxu1  ;;  %8522 = vmatprep.mubr.bf16.mxu1 %v8197_v45  ;;  %v7399_v16 = vmax.f32 %v7255_v57, 0.0 }
 0x7ff   : > { %v7261_v46 = vadd.f32 %v7260_v20, %v13788_v7  ;;  %8523 = vmatmul.mubr.bf16.gmra.mrb[196].mxu1 %v8196_v61  ;;  %v7400_v62 = vmax.f32 %v7257_v30, 0.0 }
 0x800   : > { %v7401_v21 = vmax.f32 %v7259_v52, 0.0 }
 0x801   : > { %v7402_v4 = vmax.f32 %v7261_v46, 0.0 }
 0x802   : > { %v7469_v25 = vpack.c.bf16 %v7401_v21, %v7399_v16  ;;  %v14169_v16 = vld [vmem:[%s14427_s6] ss:$0 sm:$0xff] }
 0x803   : > { %v7470_v11 = vpack.c.bf16 %v7402_v4, %v7400_v62 }
 0x805   : > { %8003 = vmatprep.mubr.bf16.mxu0 %v7470_v11 }
 0x806   : > { %8004 = vmatmul.mubr.bf16.gmra.mrb[244].mxu0 %v7469_v25 }
 0x807   : > { %v7895_v36 = vpop.f32.mrb[200].mxu0 }
 0x808   : > { %v7896_v13 = vadd.f32 %v7895_v36, %v14033_v5  ;;  %v7897_v14 = vpop.f32.mrb[201].mxu0 }
 0x809   : > { %v7898_v49 = vadd.f32 %v7897_v14, %v14036_v28  ;;  %v7899_v27 = vpop.f32.mrb[202].mxu0 }
 0x80a   : > { %v7900_v41 = vadd.f32 %v7899_v27, %v14033_v5  ;;  %v7901_v1 = vpop.f32.mrb[203].mxu0  ;;  %v8106_v26 = vmax.f32 %v7896_v13, 0.0 }
 0x80b   : > { %v7902_v60 = vadd.f32 %v7901_v1, %v14036_v28  ;;  %v8107_v33 = vmax.f32 %v7898_v49, 0.0 }
 0x80c   : > { %v8108_v3 = vmax.f32 %v7900_v41, 0.0 }
 0x80d   : > { %v8109_v50 = vmax.f32 %v7902_v60, 0.0 }
 0x80e   : > { %v8198_v12 = vpack.c.bf16 %v8108_v3, %v8106_v26  ;;  %v7264_v53 = vpop.f32.mrb[120].mxu1 }
 0x80f   : > { %v8199_v63 = vpack.c.bf16 %v8109_v50, %v8107_v33  ;;  %v7265_v38 = vadd.f32 %v7264_v53, %v13785_v29  ;;  %v7266_v31 = vpop.f32.mrb[121].mxu1 }
 0x810   : > { %v7267_v6 = vadd.f32 %v7266_v31, %v13788_v7  ;;  %v7268_v47 = vpop.f32.mrb[122].mxu1 }
 0x811   : > { %v7269_v54 = vadd.f32 %v7268_v47, %v13785_v29  ;;  %v7270_v8 = vpop.f32.mrb[123].mxu1  ;;  %8530 = vmatprep.mubr.bf16.mxu1 %v8199_v63  ;;  %v7403_v32 = vmax.f32 %v7265_v38, 0.0 }
 0x812   : > { %v7271_v55 = vadd.f32 %v7270_v8, %v13788_v7  ;;  %8531 = vmatmul.mubr.bf16.gmra.mrb[200].mxu1 %v8198_v12  ;;  %v7404_v2 = vmax.f32 %v7267_v6, 0.0 }
 0x813   : > { %v7405_v35 = vmax.f32 %v7269_v54, 0.0 }
 0x814   : > { %v7406_v56 = vmax.f32 %v7271_v55, 0.0 }
 0x815   : > { %v7471_v42 = vpack.c.bf16 %v7405_v35, %v7403_v32 }
 0x816   : > { %v7472_v24 = vpack.c.bf16 %v7406_v56, %v7404_v2 }
 0x818   : > { %8013 = vmatprep.mubr.bf16.mxu0 %v7472_v24 }
 0x819   : > { %8014 = vmatmul.mubr.bf16.gmra.mrb[248].mxu0 %v7471_v42 }
 0x81b   : > { %v7905_v58 = vpop.f32.mrb[204].mxu0 }
 0x81c   : > { %v7906_v48 = vadd.f32 %v7905_v58, %v14033_v5  ;;  %v7907_v0 = vpop.f32.mrb[205].mxu0 }
 0x81d   : > { %v7908_v17 = vadd.f32 %v7907_v0, %v14036_v28  ;;  %v7909_v19 = vpop.f32.mrb[206].mxu0 }
 0x81e   : > { %v7910_v44 = vadd.f32 %v7909_v19, %v14033_v5  ;;  %v7911_v43 = vpop.f32.mrb[207].mxu0  ;;  %v8110_v9 = vmax.f32 %v7906_v48, 0.0 }
 0x81f   : > { %v7912_v59 = vadd.f32 %v7911_v43, %v14036_v28  ;;  %v8111_v51 = vmax.f32 %v7908_v17, 0.0 }
 0x820   : > { %v8112_v34 = vmax.f32 %v7910_v44, 0.0 }
 0x821   : > { %v8113_v40 = vmax.f32 %v7912_v59, 0.0  ;;  %v7274_v18 = vpop.f32.mrb[124].mxu1 }
 0x822   : > { %v8200_v39 = vpack.c.bf16 %v8112_v34, %v8110_v9  ;;  %v7275_v23 = vadd.f32 %v7274_v18, %v13785_v29  ;;  %v7276_v15 = vpop.f32.mrb[125].mxu1 }
 0x823   : > { %v8201_v61 = vpack.c.bf16 %v8113_v40, %v8111_v51  ;;  %v7277_v37 = vadd.f32 %v7276_v15, %v13788_v7  ;;  %v7278_v45 = vpop.f32.mrb[126].mxu1 }
 0x824   : > { %v7279_v57 = vadd.f32 %v7278_v45, %v13785_v29  ;;  %v7280_v22 = vpop.f32.mrb[127].mxu1  ;;  %v7407_v10 = vmax.f32 %v7275_v23, 0.0 }
 0x825   : > { %v7281_v30 = vadd.f32 %v7280_v22, %v13788_v7  ;;  %8538 = vmatprep.mubr.bf16.mxu1 %v8201_v61  ;;  %v7408_v20 = vmax.f32 %v7277_v37, 0.0 }
 0x826   : > { %v7409_v52 = vmax.f32 %v7279_v57, 0.0  ;;  %8539 = vmatmul.mubr.bf16.gmra.mrb[204].mxu1 %v8200_v39 }
 0x827   : > { %v7410_v46 = vmax.f32 %v7281_v30, 0.0 }
 0x828   : > { %v7473_v21 = vpack.c.bf16 %v7409_v52, %v7407_v10 }
 0x829   : > { %v7474_v62 = vpack.c.bf16 %v7410_v46, %v7408_v20  ;;  %v8388_v29 = vpop.f32.mrb[128].mxu1 }
 0x82a   : > { %v8650_v7 = vadd.f32 %v14169_v16, %v8388_v29  ;;  %v8390_v4 = vpop.f32.mrb[129].mxu1 }
 0x82b   : > { %8023 = vmatprep.mubr.bf16.mxu0 %v7474_v62  ;;  %v8391_v25 = vpop.f32.mrb[130].mxu1 }
 0x82c   : > { %8715 = vst.msk [vmem:[%s14176_s25] sm:$0xff] %vm8714_vm0, %v8650_v7  ;;  %v8651_v11 = vadd.f32 %v14169_v16, %v8391_v25  ;;  %8024 = vmatmul.mubr.bf16.gmra.mrb[252].mxu0 %v7473_v21  ;;  %v8393_v36 = vpop.f32.mrb[131].mxu1 }
 0x82e   : > { %8716 = vst.msk [vmem:[%s14176_s25 + $0x8] sm:$0xff] %vm8714_vm0, %v8651_v11  ;;  %v7915_v13 = vpop.f32.mrb[208].mxu0 }
 0x82f   : > { %v7916_v14 = vadd.f32 %v7915_v13, %v14033_v5  ;;  %v7917_v49 = vpop.f32.mrb[209].mxu0 }
 0x830   : > { %v7918_v27 = vadd.f32 %v7917_v49, %v14036_v28  ;;  %v7919_v41 = vpop.f32.mrb[210].mxu0 }
 0x831   : > { %v7920_v1 = vadd.f32 %v7919_v41, %v14033_v5  ;;  %v7921_v60 = vpop.f32.mrb[211].mxu0  ;;  %v8396_v26 = vpop.f32.mrb[132].mxu1  ;;  %v8114_v12 = vmax.f32 %v7916_v14, 0.0 }
 0x832   : > { %v7922_v3 = vadd.f32 %v7921_v60, %v14036_v28  ;;  %v8652_v33 = vadd.f32 %v14169_v16, %v8396_v26  ;;  %v8398_v50 = vpop.f32.mrb[133].mxu1  ;;  %v8115_v38 = vmax.f32 %v7918_v27, 0.0 }
 0x833   : > { %v8116_v53 = vmax.f32 %v7920_v1, 0.0  ;;  %v8399_v63 = vpop.f32.mrb[134].mxu1 }
 0x834   : > { %v8117_v31 = vmax.f32 %v7922_v3, 0.0  ;;  %8717 = vst.msk [vmem:[%s14176_s25 + $0x10] sm:$0xff] %vm8714_vm0, %v8652_v33  ;;  %v8653_v6 = vadd.f32 %v14169_v16, %v8399_v63  ;;  %v8401_v47 = vpop.f32.mrb[135].mxu1 }
 0x835   : > { %v8202_v54 = vpack.c.bf16 %v8116_v53, %v8114_v12 }
 0x836   : > { %v8203_v8 = vpack.c.bf16 %v8117_v31, %v8115_v38  ;;  %8718 = vst.msk [vmem:[%s14176_s25 + $0x18] sm:$0xff] %vm8714_vm0, %v8653_v6 }
 0x838   : > { %8546 = vmatprep.mubr.bf16.mxu1 %v8203_v8 }
 0x839   : > { %v8404_v55 = vpop.f32.mrb[136].mxu1  ;;  %8547 = vmatmul.mubr.bf16.gmra.mrb[208].mxu1 %v8202_v54 }
 0x83a   : > { %v8654_v32 = vadd.f32 %v14169_v16, %v8404_v55  ;;  %v8406_v35 = vpop.f32.mrb[137].mxu1 }
 0x83b   : > { %v8407_v2 = vpop.f32.mrb[138].mxu1 }
 0x83c   : > { %8719 = vst.msk [vmem:[%s14176_s25 + $0x20] sm:$0xff] %vm8714_vm0, %v8654_v32  ;;  %v8655_v56 = vadd.f32 %v14169_v16, %v8407_v2  ;;  %v8409_v42 = vpop.f32.mrb[139].mxu1 }
 0x83e   : > { %8720 = vst.msk [vmem:[%s14176_s25 + $0x28] sm:$0xff] %vm8714_vm0, %v8655_v56 }
 0x841   : > { %v8412_v58 = vpop.f32.mrb[140].mxu1 }
 0x842   : > { %v7925_v24 = vpop.f32.mrb[212].mxu0  ;;  %v8656_v0 = vadd.f32 %v14169_v16, %v8412_v58  ;;  %v8414_v19 = vpop.f32.mrb[141].mxu1 }
 0x843   : > { %v7926_v48 = vadd.f32 %v7925_v24, %v14033_v5  ;;  %v7927_v17 = vpop.f32.mrb[213].mxu0  ;;  %v8415_v59 = vpop.f32.mrb[142].mxu1 }
 0x844   : > { %v7928_v44 = vadd.f32 %v7927_v17, %v14036_v28  ;;  %v7929_v43 = vpop.f32.mrb[214].mxu0  ;;  %8721 = vst.msk [vmem:[%s14176_s25 + $0x30] sm:$0xff] %vm8714_vm0, %v8656_v0  ;;  %v8657_v34 = vadd.f32 %v14169_v16, %v8415_v59  ;;  %v8417_v40 = vpop.f32.mrb[143].mxu1 }
 0x845   : > { %v7930_v9 = vadd.f32 %v7929_v43, %v14033_v5  ;;  %v7931_v51 = vpop.f32.mrb[215].mxu0  ;;  %v8118_v39 = vmax.f32 %v7926_v48, 0.0 }
 0x846   : > { %v7932_v18 = vadd.f32 %v7931_v51, %v14036_v28  ;;  %8722 = vst.msk [vmem:[%s14176_s25 + $0x38] sm:$0xff] %vm8714_vm0, %v8657_v34  ;;  %v8119_v15 = vmax.f32 %v7928_v44, 0.0 }
 0x847   : > { %v8120_v23 = vmax.f32 %v7930_v9, 0.0 }
 0x848   : > { %v8121_v61 = vmax.f32 %v7932_v18, 0.0 }
 0x849   : > { %v8204_v37 = vpack.c.bf16 %v8120_v23, %v8118_v39  ;;  %v8420_v57 = vpop.f32.mrb[144].mxu1 }
 0x84a   : > { %v8205_v45 = vpack.c.bf16 %v8121_v61, %v8119_v15  ;;  %v8658_v22 = vadd.f32 %v14169_v16, %v8420_v57  ;;  %v8422_v30 = vpop.f32.mrb[145].mxu1 }
 0x84b   : > { %v8423_v10 = vpop.f32.mrb[146].mxu1 }
 0x84c   : > { %8554 = vmatprep.mubr.bf16.mxu1 %v8205_v45  ;;  %8723 = vst.msk [vmem:[%s14176_s25 + $0x40] sm:$0xff] %vm8714_vm0, %v8658_v22  ;;  %v8659_v52 = vadd.f32 %v14169_v16, %v8423_v10  ;;  %v8425_v20 = vpop.f32.mrb[147].mxu1 }
 0x84d   : > { %8555 = vmatmul.mubr.bf16.gmra.mrb[212].mxu1 %v8204_v37 }
 0x84e   : > { %8724 = vst.msk [vmem:[%s14176_s25 + $0x48] sm:$0xff] %vm8714_vm0, %v8659_v52 }
 0x851   : > { %v8428_v46 = vpop.f32.mrb[148].mxu1 }
 0x852   : > { %v8660_v21 = vadd.f32 %v14169_v16, %v8428_v46  ;;  %v8430_v62 = vpop.f32.mrb[149].mxu1 }
 0x853   : > { %v8431_v29 = vpop.f32.mrb[150].mxu1 }
 0x854   : > { %8725 = vst.msk [vmem:[%s14176_s25 + $0x50] sm:$0xff] %vm8714_vm0, %v8660_v21  ;;  %v8661_v7 = vadd.f32 %v14169_v16, %v8431_v29  ;;  %v7935_v4 = vpop.f32.mrb[216].mxu0  ;;  %v8433_v25 = vpop.f32.mrb[151].mxu1 }
 0x855   : > { %v7936_v11 = vadd.f32 %v7935_v4, %v14033_v5  ;;  %v7937_v36 = vpop.f32.mrb[217].mxu0 }
 0x856   : > { %8726 = vst.msk [vmem:[%s14176_s25 + $0x58] sm:$0xff] %vm8714_vm0, %v8661_v7  ;;  %v7938_v13 = vadd.f32 %v7937_v36, %v14036_v28  ;;  %v7939_v14 = vpop.f32.mrb[218].mxu0 }
 0x857   : > { %v7940_v49 = vadd.f32 %v7939_v14, %v14033_v5  ;;  %v7941_v27 = vpop.f32.mrb[219].mxu0  ;;  %v8122_v1 = vmax.f32 %v7936_v11, 0.0 }
 0x858   : > { %v7942_v41 = vadd.f32 %v7941_v27, %v14036_v28  ;;  %v8123_v3 = vmax.f32 %v7938_v13, 0.0 }
 0x859   : > { %v8124_v60 = vmax.f32 %v7940_v49, 0.0  ;;  %v8436_v26 = vpop.f32.mrb[152].mxu1 }
 0x85a   : > { %v8125_v33 = vmax.f32 %v7942_v41, 0.0  ;;  %v8662_v50 = vadd.f32 %v14169_v16, %v8436_v26  ;;  %v8438_v12 = vpop.f32.mrb[153].mxu1 }
 0x85b   : > { %v8206_v53 = vpack.c.bf16 %v8124_v60, %v8122_v1  ;;  %v8439_v63 = vpop.f32.mrb[154].mxu1 }
 0x85c   : > { %v8207_v38 = vpack.c.bf16 %v8125_v33, %v8123_v3  ;;  %8727 = vst.msk [vmem:[%s14176_s25 + $0x60] sm:$0xff] %vm8714_vm0, %v8662_v50  ;;  %v8663_v31 = vadd.f32 %v14169_v16, %v8439_v63  ;;  %v8441_v6 = vpop.f32.mrb[155].mxu1 }
 0x85e   : > { %8728 = vst.msk [vmem:[%s14176_s25 + $0x68] sm:$0xff] %vm8714_vm0, %v8663_v31  ;;  %8562 = vmatprep.mubr.bf16.mxu1 %v8207_v38 }
 0x85f   : > { %8563 = vmatmul.mubr.bf16.gmra.mrb[216].mxu1 %v8206_v53 }
 0x861   : > { %v8444_v47 = vpop.f32.mrb[156].mxu1 }
 0x862   : > { %v8664_v54 = vadd.f32 %v14169_v16, %v8444_v47  ;;  %v8446_v8 = vpop.f32.mrb[157].mxu1 }
 0x863   : > { %v8447_v55 = vpop.f32.mrb[158].mxu1 }
 0x864   : > { %8729 = vst.msk [vmem:[%s14176_s25 + $0x70] sm:$0xff] %vm8714_vm0, %v8664_v54  ;;  %v8665_v32 = vadd.f32 %v14169_v16, %v8447_v55  ;;  %v8449_v35 = vpop.f32.mrb[159].mxu1 }
 0x866   : > { %8730 = vst.msk [vmem:[%s14176_s25 + $0x78] sm:$0xff] %vm8714_vm0, %v8665_v32 }
 0x868   : > { %v7945_v2 = vpop.f32.mrb[220].mxu0 }
 0x869   : > { %v7946_v56 = vadd.f32 %v7945_v2, %v14033_v5  ;;  %v7947_v42 = vpop.f32.mrb[221].mxu0  ;;  %v8452_v48 = vpop.f32.mrb[160].mxu1 }
 0x86a   : > { %v7948_v24 = vadd.f32 %v7947_v42, %v14036_v28  ;;  %v7949_v58 = vpop.f32.mrb[222].mxu0  ;;  %v8666_v17 = vadd.f32 %v14169_v16, %v8452_v48  ;;  %v8454_v44 = vpop.f32.mrb[161].mxu1 }
 0x86b   : > { %v7950_v0 = vadd.f32 %v7949_v58, %v14033_v5  ;;  %v7951_v19 = vpop.f32.mrb[223].mxu0  ;;  %v8455_v59 = vpop.f32.mrb[162].mxu1  ;;  %v8126_v9 = vmax.f32 %v7946_v56, 0.0 }
 0x86c   : > { %v7952_v43 = vadd.f32 %v7951_v19, %v14036_v28  ;;  %8731 = vst.msk [vmem:[%s14176_s25 + $0x80] sm:$0xff] %vm8714_vm0, %v8666_v17  ;;  %v8667_v51 = vadd.f32 %v14169_v16, %v8455_v59  ;;  %v8457_v40 = vpop.f32.mrb[163].mxu1  ;;  %v8127_v18 = vmax.f32 %v7948_v24, 0.0 }
 0x86d   : > { %v8128_v34 = vmax.f32 %v7950_v0, 0.0 }
 0x86e   : > { %v8129_v39 = vmax.f32 %v7952_v43, 0.0  ;;  %8732 = vst.msk [vmem:[%s14176_s25 + $0x88] sm:$0xff] %vm8714_vm0, %v8667_v51 }
 0x86f   : > { %v8208_v23 = vpack.c.bf16 %v8128_v34, %v8126_v9 }
 0x870   : > { %v8209_v15 = vpack.c.bf16 %v8129_v39, %v8127_v18 }
 0x871   : > { %v8460_v61 = vpop.f32.mrb[164].mxu1 }
 0x872   : > { %8570 = vmatprep.mubr.bf16.mxu1 %v8209_v15  ;;  %v8668_v37 = vadd.f32 %v14169_v16, %v8460_v61  ;;  %v8462_v45 = vpop.f32.mrb[165].mxu1 }
 0x873   : > { %8571 = vmatmul.mubr.bf16.gmra.mrb[220].mxu1 %v8208_v23  ;;  %v8463_v57 = vpop.f32.mrb[166].mxu1 }
 0x874   : > { %8733 = vst.msk [vmem:[%s14176_s25 + $0x90] sm:$0xff] %vm8714_vm0, %v8668_v37  ;;  %v8669_v22 = vadd.f32 %v14169_v16, %v8463_v57  ;;  %v8465_v30 = vpop.f32.mrb[167].mxu1 }
 0x876   : > { %8734 = vst.msk [vmem:[%s14176_s25 + $0x98] sm:$0xff] %vm8714_vm0, %v8669_v22 }
 0x879   : > { %v8468_v10 = vpop.f32.mrb[168].mxu1 }
 0x87a   : > { %v7955_v52 = vpop.f32.mrb[224].mxu0  ;;  %v8670_v20 = vadd.f32 %v14169_v16, %v8468_v10  ;;  %v8470_v21 = vpop.f32.mrb[169].mxu1 }
 0x87b   : > { %v7956_v46 = vadd.f32 %v7955_v52, %v14033_v5  ;;  %v7957_v62 = vpop.f32.mrb[225].mxu0  ;;  %v8471_v7 = vpop.f32.mrb[170].mxu1 }
 0x87c   : > { %v7958_v29 = vadd.f32 %v7957_v62, %v14036_v28  ;;  %v7959_v4 = vpop.f32.mrb[226].mxu0  ;;  %8735 = vst.msk [vmem:[%s14176_s25 + $0xa0] sm:$0xff] %vm8714_vm0, %v8670_v20  ;;  %v8671_v25 = vadd.f32 %v14169_v16, %v8471_v7  ;;  %v8473_v36 = vpop.f32.mrb[171].mxu1 }
 0x87d   : > { %v7960_v11 = vadd.f32 %v7959_v4, %v14033_v5  ;;  %v7961_v13 = vpop.f32.mrb[227].mxu0  ;;  %v8130_v49 = vmax.f32 %v7956_v46, 0.0 }
 0x87e   : > { %v7962_v14 = vadd.f32 %v7961_v13, %v14036_v28  ;;  %8736 = vst.msk [vmem:[%s14176_s25 + $0xa8] sm:$0xff] %vm8714_vm0, %v8671_v25  ;;  %v8131_v41 = vmax.f32 %v7958_v29, 0.0 }
 0x87f   : > { %v8132_v27 = vmax.f32 %v7960_v11, 0.0 }
 0x880   : > { %v8133_v1 = vmax.f32 %v7962_v14, 0.0 }
 0x881   : > { %v8210_v60 = vpack.c.bf16 %v8132_v27, %v8130_v49  ;;  %v8476_v3 = vpop.f32.mrb[172].mxu1 }
 0x882   : > { %v8211_v26 = vpack.c.bf16 %v8133_v1, %v8131_v41  ;;  %v8672_v33 = vadd.f32 %v14169_v16, %v8476_v3  ;;  %v8478_v50 = vpop.f32.mrb[173].mxu1 }
 0x883   : > { %v8479_v12 = vpop.f32.mrb[174].mxu1 }
 0x884   : > { %8578 = vmatprep.mubr.bf16.mxu1 %v8211_v26  ;;  %8737 = vst.msk [vmem:[%s14176_s25 + $0xb0] sm:$0xff] %vm8714_vm0, %v8672_v33  ;;  %v8673_v53 = vadd.f32 %v14169_v16, %v8479_v12  ;;  %v8481_v63 = vpop.f32.mrb[175].mxu1 }
 0x885   : > { %8579 = vmatmul.mubr.bf16.gmra.mrb[224].mxu1 %v8210_v60 }
 0x886   : > { %8738 = vst.msk [vmem:[%s14176_s25 + $0xb8] sm:$0xff] %vm8714_vm0, %v8673_v53 }
 0x889   : > { %v8484_v38 = vpop.f32.mrb[176].mxu1 }
 0x88a   : > { %v8674_v31 = vadd.f32 %v14169_v16, %v8484_v38  ;;  %v8486_v6 = vpop.f32.mrb[177].mxu1 }
 0x88b   : > { %v8487_v47 = vpop.f32.mrb[178].mxu1 }
 0x88c   : > { %8739 = vst.msk [vmem:[%s14176_s25 + $0xc0] sm:$0xff] %vm8714_vm0, %v8674_v31  ;;  %v8675_v54 = vadd.f32 %v14169_v16, %v8487_v47  ;;  %v8489_v8 = vpop.f32.mrb[179].mxu1 }
 0x88e   : > { %8740 = vst.msk [vmem:[%s14176_s25 + $0xc8] sm:$0xff] %vm8714_vm0, %v8675_v54 }
 0x88f   : > { %v7965_v55 = vpop.f32.mrb[228].mxu0 }
 0x890   : > { %v7966_v32 = vadd.f32 %v7965_v55, %v14033_v5  ;;  %v7967_v35 = vpop.f32.mrb[229].mxu0 }
 0x891   : > { %v7968_v2 = vadd.f32 %v7967_v35, %v14036_v28  ;;  %v7969_v56 = vpop.f32.mrb[230].mxu0  ;;  %v8492_v58 = vpop.f32.mrb[180].mxu1 }
 0x892   : > { %v7970_v42 = vadd.f32 %v7969_v56, %v14033_v5  ;;  %v7971_v24 = vpop.f32.mrb[231].mxu0  ;;  %v8676_v0 = vadd.f32 %v14169_v16, %v8492_v58  ;;  %v8494_v17 = vpop.f32.mrb[181].mxu1  ;;  %v8134_v19 = vmax.f32 %v7966_v32, 0.0 }
 0x893   : > { %v7972_v48 = vadd.f32 %v7971_v24, %v14036_v28  ;;  %v8495_v43 = vpop.f32.mrb[182].mxu1  ;;  %v8135_v59 = vmax.f32 %v7968_v2, 0.0 }
 0x894   : > { %v8136_v44 = vmax.f32 %v7970_v42, 0.0  ;;  %8741 = vst.msk [vmem:[%s14176_s25 + $0xd0] sm:$0xff] %vm8714_vm0, %v8676_v0  ;;  %v8677_v34 = vadd.f32 %v14169_v16, %v8495_v43  ;;  %v8497_v51 = vpop.f32.mrb[183].mxu1 }
 0x895   : > { %v8137_v9 = vmax.f32 %v7972_v48, 0.0 }
 0x896   : > { %v8212_v40 = vpack.c.bf16 %v8136_v44, %v8134_v19  ;;  %8742 = vst.msk [vmem:[%s14176_s25 + $0xd8] sm:$0xff] %vm8714_vm0, %v8677_v34 }
 0x897   : > { %v8213_v18 = vpack.c.bf16 %v8137_v9, %v8135_v59 }
 0x899   : > { %8586 = vmatprep.mubr.bf16.mxu1 %v8213_v18 }
 0x89a   : > { %8587 = vmatmul.mubr.bf16.gmra.mrb[228].mxu1 %v8212_v40 }
 0x89b   : > { %v8500_v39 = vpop.f32.mrb[184].mxu1 }
 0x89c   : > { %v8678_v23 = vadd.f32 %v14169_v16, %v8500_v39  ;;  %v8502_v15 = vpop.f32.mrb[185].mxu1 }
 0x89d   : > { %v8503_v61 = vpop.f32.mrb[186].mxu1 }
 0x89e   : > { %8743 = vst.msk [vmem:[%s14176_s25 + $0xe0] sm:$0xff] %vm8714_vm0, %v8678_v23  ;;  %v8679_v37 = vadd.f32 %v14169_v16, %v8503_v61  ;;  %v8505_v45 = vpop.f32.mrb[187].mxu1 }
 0x8a0   : > { %8744 = vst.msk [vmem:[%s14176_s25 + $0xe8] sm:$0xff] %vm8714_vm0, %v8679_v37  ;;  %v7975_v57 = vpop.f32.mrb[232].mxu0 }
 0x8a1   : > { %v7976_v22 = vadd.f32 %v7975_v57, %v14033_v5  ;;  %v7977_v30 = vpop.f32.mrb[233].mxu0 }
 0x8a2   : > { %v7978_v10 = vadd.f32 %v7977_v30, %v14036_v28  ;;  %v7979_v52 = vpop.f32.mrb[234].mxu0 }
 0x8a3   : > { %v7980_v20 = vadd.f32 %v7979_v52, %v14033_v5  ;;  %v7981_v46 = vpop.f32.mrb[235].mxu0  ;;  %v8138_v62 = vmax.f32 %v7976_v22, 0.0 }
 0x8a4   : > { %v7982_v21 = vadd.f32 %v7981_v46, %v14036_v28  ;;  %v8139_v7 = vmax.f32 %v7978_v10, 0.0 }
 0x8a5   : > { %v8140_v29 = vmax.f32 %v7980_v20, 0.0 }
 0x8a6   : > { %v8141_v4 = vmax.f32 %v7982_v21, 0.0 }
 0x8a7   : > { %v8214_v25 = vpack.c.bf16 %v8140_v29, %v8138_v62 }
 0x8a8   : > { %v8215_v11 = vpack.c.bf16 %v8141_v4, %v8139_v7 }
 0x8aa   : > { %8594 = vmatprep.mubr.bf16.mxu1 %v8215_v11 }
 0x8ab   : > { %8595 = vmatmul.mubr.bf16.gmra.mrb[232].mxu1 %v8214_v25 }
 0x8ac   : > { %v8508_v36 = vpop.f32.mrb[188].mxu1 }
 0x8ad   : > { %v8680_v13 = vadd.f32 %v14169_v16, %v8508_v36  ;;  %v8510_v14 = vpop.f32.mrb[189].mxu1 }
 0x8ae   : > { %v8511_v49 = vpop.f32.mrb[190].mxu1 }
 0x8af   : > { %8745 = vst.msk [vmem:[%s14176_s25 + $0xf0] sm:$0xff] %vm8714_vm0, %v8680_v13  ;;  %v8681_v27 = vadd.f32 %v14169_v16, %v8511_v49  ;;  %v8513_v41 = vpop.f32.mrb[191].mxu1 }
 0x8b1   : > { %8746 = vst.msk [vmem:[%s14176_s25 + $0xf8] sm:$0xff] %vm8714_vm0, %v8681_v27 }
 0x8b3   : > { %v7985_v1 = vpop.f32.mrb[236].mxu0 }
 0x8b4   : > { %v7986_v60 = vadd.f32 %v7985_v1, %v14033_v5  ;;  %v7987_v26 = vpop.f32.mrb[237].mxu0 }
 0x8b5   : > { %v7988_v3 = vadd.f32 %v7987_v26, %v14036_v28  ;;  %v7989_v33 = vpop.f32.mrb[238].mxu0 }
 0x8b6   : > { %v7990_v50 = vadd.f32 %v7989_v33, %v14033_v5  ;;  %v7991_v12 = vpop.f32.mrb[239].mxu0  ;;  %v8142_v63 = vmax.f32 %v7986_v60, 0.0 }
 0x8b7   : > { %v7992_v53 = vadd.f32 %v7991_v12, %v14036_v28  ;;  %v8143_v31 = vmax.f32 %v7988_v3, 0.0 }
 0x8b8   : > { %v8144_v38 = vmax.f32 %v7990_v50, 0.0 }
 0x8b9   : > { %v8145_v6 = vmax.f32 %v7992_v53, 0.0 }
 0x8ba   : > { %v8216_v47 = vpack.c.bf16 %v8144_v38, %v8142_v63 }
 0x8bb   : > { %v8217_v54 = vpack.c.bf16 %v8145_v6, %v8143_v31 }
 0x8bd   : > { %8602 = vmatprep.mubr.bf16.mxu1 %v8217_v54 }
 0x8be   : > { %8603 = vmatmul.mubr.bf16.gmra.mrb[236].mxu1 %v8216_v47 }
 0x8bf   : > { %v8516_v8 = vpop.f32.mrb[192].mxu1 }
 0x8c0   : > { %v8682_v55 = vadd.f32 %v14169_v16, %v8516_v8  ;;  %v8518_v32 = vpop.f32.mrb[193].mxu1 }
 0x8c1   : > { %v8519_v35 = vpop.f32.mrb[194].mxu1 }
 0x8c2   : > { %8747 = vst.msk [vmem:[%s14176_s25 + $0x100] sm:$0xff] %vm8714_vm0, %v8682_v55  ;;  %v8683_v2 = vadd.f32 %v14169_v16, %v8519_v35  ;;  %v8521_v56 = vpop.f32.mrb[195].mxu1 }
 0x8c4   : > { %8748 = vst.msk [vmem:[%s14176_s25 + $0x108] sm:$0xff] %vm8714_vm0, %v8683_v2 }
 0x8c6   : > { %v7995_v42 = vpop.f32.mrb[240].mxu0 }
 0x8c7   : > { %v7996_v24 = vadd.f32 %v7995_v42, %v14033_v5  ;;  %v7997_v58 = vpop.f32.mrb[241].mxu0 }
 0x8c8   : > { %v7998_v48 = vadd.f32 %v7997_v58, %v14036_v28  ;;  %v7999_v0 = vpop.f32.mrb[242].mxu0 }
 0x8c9   : > { %v8000_v17 = vadd.f32 %v7999_v0, %v14033_v5  ;;  %v8001_v19 = vpop.f32.mrb[243].mxu0  ;;  %v8146_v43 = vmax.f32 %v7996_v24, 0.0 }
 0x8ca   : > { %v8002_v44 = vadd.f32 %v8001_v19, %v14036_v28  ;;  %v8147_v9 = vmax.f32 %v7998_v48, 0.0 }
 0x8cb   : > { %v8148_v59 = vmax.f32 %v8000_v17, 0.0 }
 0x8cc   : > { %v8149_v34 = vmax.f32 %v8002_v44, 0.0 }
 0x8cd   : > { %v8218_v51 = vpack.c.bf16 %v8148_v59, %v8146_v43 }
 0x8ce   : > { %v8219_v40 = vpack.c.bf16 %v8149_v34, %v8147_v9 }
 0x8d0   : > { %8610 = vmatprep.mubr.bf16.mxu1 %v8219_v40 }
 0x8d1   : > { %8611 = vmatmul.mubr.bf16.gmra.mrb[240].mxu1 %v8218_v51 }
 0x8d2   : > { %v8524_v18 = vpop.f32.mrb[196].mxu1 }
 0x8d3   : > { %v8684_v39 = vadd.f32 %v14169_v16, %v8524_v18  ;;  %v8526_v23 = vpop.f32.mrb[197].mxu1 }
 0x8d4   : > { %v8527_v15 = vpop.f32.mrb[198].mxu1 }
 0x8d5   : > { %8749 = vst.msk [vmem:[%s14176_s25 + $0x110] sm:$0xff] %vm8714_vm0, %v8684_v39  ;;  %v8685_v61 = vadd.f32 %v14169_v16, %v8527_v15  ;;  %v8529_v37 = vpop.f32.mrb[199].mxu1 }
 0x8d7   : > { %8750 = vst.msk [vmem:[%s14176_s25 + $0x118] sm:$0xff] %vm8714_vm0, %v8685_v61 }
 0x8d9   : > { %v8005_v45 = vpop.f32.mrb[244].mxu0 }
 0x8da   : > { %v8006_v57 = vadd.f32 %v8005_v45, %v14033_v5  ;;  %v8007_v22 = vpop.f32.mrb[245].mxu0 }
 0x8db   : > { %v8008_v30 = vadd.f32 %v8007_v22, %v14036_v28  ;;  %v8009_v10 = vpop.f32.mrb[246].mxu0 }
 0x8dc   : > { %v8010_v52 = vadd.f32 %v8009_v10, %v14033_v5  ;;  %v8011_v20 = vpop.f32.mrb[247].mxu0  ;;  %v8150_v21 = vmax.f32 %v8006_v57, 0.0 }
 0x8dd   : > { %v8012_v46 = vadd.f32 %v8011_v20, %v14036_v28  ;;  %v8151_v29 = vmax.f32 %v8008_v30, 0.0 }
 0x8de   : > { %v8152_v62 = vmax.f32 %v8010_v52, 0.0 }
 0x8df   : > { %v8153_v7 = vmax.f32 %v8012_v46, 0.0 }
 0x8e0   : > { %v8220_v4 = vpack.c.bf16 %v8152_v62, %v8150_v21 }
 0x8e1   : > { %v8221_v25 = vpack.c.bf16 %v8153_v7, %v8151_v29 }
 0x8e3   : > { %8618 = vmatprep.mubr.bf16.mxu1 %v8221_v25 }
 0x8e4   : > { %8619 = vmatmul.mubr.bf16.gmra.mrb[244].mxu1 %v8220_v4 }
 0x8e5   : > { %v8532_v11 = vpop.f32.mrb[200].mxu1 }
 0x8e6   : > { %v8686_v36 = vadd.f32 %v14169_v16, %v8532_v11  ;;  %v8534_v13 = vpop.f32.mrb[201].mxu1 }
 0x8e7   : > { %v8535_v14 = vpop.f32.mrb[202].mxu1 }
 0x8e8   : > { %8751 = vst.msk [vmem:[%s14176_s25 + $0x120] sm:$0xff] %vm8714_vm0, %v8686_v36  ;;  %v8687_v49 = vadd.f32 %v14169_v16, %v8535_v14  ;;  %v8537_v27 = vpop.f32.mrb[203].mxu1 }
 0x8ea   : > { %8752 = vst.msk [vmem:[%s14176_s25 + $0x128] sm:$0xff] %vm8714_vm0, %v8687_v49 }
 0x8ec   : > { %v8015_v41 = vpop.f32.mrb[248].mxu0 }
 0x8ed   : > { %v8016_v1 = vadd.f32 %v8015_v41, %v14033_v5  ;;  %v8017_v60 = vpop.f32.mrb[249].mxu0 }
 0x8ee   : > { %v8018_v26 = vadd.f32 %v8017_v60, %v14036_v28  ;;  %v8019_v3 = vpop.f32.mrb[250].mxu0 }
 0x8ef   : > { %v8020_v33 = vadd.f32 %v8019_v3, %v14033_v5  ;;  %v8021_v50 = vpop.f32.mrb[251].mxu0  ;;  %v8154_v53 = vmax.f32 %v8016_v1, 0.0 }
 0x8f0   : > { %v8022_v12 = vadd.f32 %v8021_v50, %v14036_v28  ;;  %v8155_v38 = vmax.f32 %v8018_v26, 0.0 }
 0x8f1   : > { %v8156_v63 = vmax.f32 %v8020_v33, 0.0 }
 0x8f2   : > { %v8157_v31 = vmax.f32 %v8022_v12, 0.0 }
 0x8f3   : > { %v8222_v6 = vpack.c.bf16 %v8156_v63, %v8154_v53 }
 0x8f4   : > { %v8223_v47 = vpack.c.bf16 %v8157_v31, %v8155_v38 }
 0x8f6   : > { %8626 = vmatprep.mubr.bf16.mxu1 %v8223_v47 }
 0x8f7   : > { %8627 = vmatmul.mubr.bf16.gmra.mrb[248].mxu1 %v8222_v6 }
 0x8f9   : > { %v8540_v54 = vpop.f32.mrb[204].mxu1 }
 0x8fa   : > { %v8688_v8 = vadd.f32 %v14169_v16, %v8540_v54  ;;  %v8542_v55 = vpop.f32.mrb[205].mxu1 }
 0x8fb   : > { %v8543_v32 = vpop.f32.mrb[206].mxu1 }
 0x8fc   : > { %8753 = vst.msk [vmem:[%s14176_s25 + $0x130] sm:$0xff] %vm8714_vm0, %v8688_v8  ;;  %v8689_v35 = vadd.f32 %v14169_v16, %v8543_v32  ;;  %v8545_v2 = vpop.f32.mrb[207].mxu1 }
 0x8fe   : > { %8754 = vst.msk [vmem:[%s14176_s25 + $0x138] sm:$0xff] %vm8714_vm0, %v8689_v35 }
 0x8ff   : > { %v8025_v56 = vpop.f32.mrb[252].mxu0 }
 0x900   : > { %v8026_v42 = vadd.f32 %v8025_v56, %v14033_v5  ;;  %v8027_v24 = vpop.f32.mrb[253].mxu0 }
 0x901   : > { %v8028_v58 = vadd.f32 %v8027_v24, %v14036_v28  ;;  %v8029_v48 = vpop.f32.mrb[254].mxu0 }
 0x902   : > { %v8030_v0 = vadd.f32 %v8029_v48, %v14033_v5  ;;  %v8031_v17 = vpop.f32.mrb[255].mxu0  ;;  %v8158_v44 = vmax.f32 %v8026_v42, 0.0 }
 0x903   : > { %v8032_v19 = vadd.f32 %v8031_v17, %v14036_v28  ;;  %v8159_v59 = vmax.f32 %v8028_v58, 0.0 }
 0x904   : > { %v8160_v43 = vmax.f32 %v8030_v0, 0.0 }
 0x905   : > { %v8161_v9 = vmax.f32 %v8032_v19, 0.0 }
 0x906   : > { %v8224_v34 = vpack.c.bf16 %v8160_v43, %v8158_v44 }
 0x907   : > { %v8225_v51 = vpack.c.bf16 %v8161_v9, %v8159_v59 }
 0x909   : > { %8634 = vmatprep.mubr.bf16.mxu1 %v8225_v51 }
 0x90a   : > { %8635 = vmatmul.mubr.bf16.gmra.mrb[252].mxu1 %v8224_v34 }
 0x90c   : > { %v8548_v40 = vpop.f32.mrb[208].mxu1 }
 0x90d   : > { %v8690_v18 = vadd.f32 %v14169_v16, %v8548_v40  ;;  %v8550_v39 = vpop.f32.mrb[209].mxu1 }
 0x90e   : > { %v8551_v23 = vpop.f32.mrb[210].mxu1 }
 0x90f   : > { %8755 = vst.msk [vmem:[%s14176_s25 + $0x140] sm:$0xff] %vm8714_vm0, %v8690_v18  ;;  %v8691_v5 = vadd.f32 %v14169_v16, %v8551_v23  ;;  %v8553_v28 = vpop.f32.mrb[211].mxu1 }
 0x911   : > { %8756 = vst.msk [vmem:[%s14176_s25 + $0x148] sm:$0xff] %vm8714_vm0, %v8691_v5 }
 0x920   : > { %v8556_v15 = vpop.f32.mrb[212].mxu1 }
 0x921   : > { %v8692_v61 = vadd.f32 %v14169_v16, %v8556_v15  ;;  %v8558_v37 = vpop.f32.mrb[213].mxu1 }
 0x922   : > { %v8559_v45 = vpop.f32.mrb[214].mxu1 }
 0x923   : > { %8757 = vst.msk [vmem:[%s14176_s25 + $0x150] sm:$0xff] %vm8714_vm0, %v8692_v61  ;;  %v8693_v57 = vadd.f32 %v14169_v16, %v8559_v45  ;;  %v8561_v22 = vpop.f32.mrb[215].mxu1 }
 0x925   : > { %8758 = vst.msk [vmem:[%s14176_s25 + $0x158] sm:$0xff] %vm8714_vm0, %v8693_v57 }
 0x932   : > { %v8564_v30 = vpop.f32.mrb[216].mxu1 }
 0x933   : > { %v8694_v10 = vadd.f32 %v14169_v16, %v8564_v30  ;;  %v8566_v52 = vpop.f32.mrb[217].mxu1 }
 0x934   : > { %v8567_v20 = vpop.f32.mrb[218].mxu1 }
 0x935   : > { %8759 = vst.msk [vmem:[%s14176_s25 + $0x160] sm:$0xff] %vm8714_vm0, %v8694_v10  ;;  %v8695_v46 = vadd.f32 %v14169_v16, %v8567_v20  ;;  %v8569_v21 = vpop.f32.mrb[219].mxu1 }
 0x937   : > { %8760 = vst.msk [vmem:[%s14176_s25 + $0x168] sm:$0xff] %vm8714_vm0, %v8695_v46 }
 0x946   : > { %v8572_v62 = vpop.f32.mrb[220].mxu1 }
 0x947   : > { %v8696_v29 = vadd.f32 %v14169_v16, %v8572_v62  ;;  %v8574_v7 = vpop.f32.mrb[221].mxu1 }
 0x948   : > { %v8575_v4 = vpop.f32.mrb[222].mxu1 }
 0x949   : > { %8761 = vst.msk [vmem:[%s14176_s25 + $0x170] sm:$0xff] %vm8714_vm0, %v8696_v29  ;;  %v8697_v25 = vadd.f32 %v14169_v16, %v8575_v4  ;;  %v8577_v11 = vpop.f32.mrb[223].mxu1 }
 0x94b   : > { %8762 = vst.msk [vmem:[%s14176_s25 + $0x178] sm:$0xff] %vm8714_vm0, %v8697_v25 }
 0x958   : > { %v8580_v36 = vpop.f32.mrb[224].mxu1 }
 0x959   : > { %v8698_v13 = vadd.f32 %v14169_v16, %v8580_v36  ;;  %v8582_v14 = vpop.f32.mrb[225].mxu1 }
 0x95a   : > { %v8583_v49 = vpop.f32.mrb[226].mxu1 }
 0x95b   : > { %8763 = vst.msk [vmem:[%s14176_s25 + $0x180] sm:$0xff] %vm8714_vm0, %v8698_v13  ;;  %v8699_v27 = vadd.f32 %v14169_v16, %v8583_v49  ;;  %v8585_v41 = vpop.f32.mrb[227].mxu1 }
 0x95d   : > { %8764 = vst.msk [vmem:[%s14176_s25 + $0x188] sm:$0xff] %vm8714_vm0, %v8699_v27 }
 0x96d   : > { %v8588_v1 = vpop.f32.mrb[228].mxu1 }
 0x96e   : > { %v8700_v60 = vadd.f32 %v14169_v16, %v8588_v1  ;;  %v8590_v26 = vpop.f32.mrb[229].mxu1 }
 0x96f   : > { %v8591_v3 = vpop.f32.mrb[230].mxu1 }
 0x970   : > { %8765 = vst.msk [vmem:[%s14176_s25 + $0x190] sm:$0xff] %vm8714_vm0, %v8700_v60  ;;  %v8701_v33 = vadd.f32 %v14169_v16, %v8591_v3  ;;  %v8593_v50 = vpop.f32.mrb[231].mxu1 }
 0x972   : > { %8766 = vst.msk [vmem:[%s14176_s25 + $0x198] sm:$0xff] %vm8714_vm0, %v8701_v33 }
 0x97e   : > { %v8596_v12 = vpop.f32.mrb[232].mxu1 }
 0x97f   : > { %v8702_v53 = vadd.f32 %v14169_v16, %v8596_v12  ;;  %v8598_v63 = vpop.f32.mrb[233].mxu1 }
 0x980   : > { %v8599_v38 = vpop.f32.mrb[234].mxu1 }
 0x981   : > { %8767 = vst.msk [vmem:[%s14176_s25 + $0x1a0] sm:$0xff] %vm8714_vm0, %v8702_v53  ;;  %v8703_v31 = vadd.f32 %v14169_v16, %v8599_v38  ;;  %v8601_v6 = vpop.f32.mrb[235].mxu1 }
 0x983   : > { %8768 = vst.msk [vmem:[%s14176_s25 + $0x1a8] sm:$0xff] %vm8714_vm0, %v8703_v31 }
 0x991   : > { %v8604_v47 = vpop.f32.mrb[236].mxu1 }
 0x992   : > { %v8704_v54 = vadd.f32 %v14169_v16, %v8604_v47  ;;  %v8606_v8 = vpop.f32.mrb[237].mxu1 }
 0x993   : > { %v8607_v55 = vpop.f32.mrb[238].mxu1 }
 0x994   : > { %8769 = vst.msk [vmem:[%s14176_s25 + $0x1b0] sm:$0xff] %vm8714_vm0, %v8704_v54  ;;  %v8705_v32 = vadd.f32 %v14169_v16, %v8607_v55  ;;  %v8609_v35 = vpop.f32.mrb[239].mxu1 }
 0x996   : > { %8770 = vst.msk [vmem:[%s14176_s25 + $0x1b8] sm:$0xff] %vm8714_vm0, %v8705_v32 }
 0x9a4   : > { %v8612_v2 = vpop.f32.mrb[240].mxu1 }
 0x9a5   : > { %v8706_v56 = vadd.f32 %v14169_v16, %v8612_v2  ;;  %v8614_v42 = vpop.f32.mrb[241].mxu1 }
 0x9a6   : > { %v8615_v24 = vpop.f32.mrb[242].mxu1 }
 0x9a7   : > { %8771 = vst.msk [vmem:[%s14176_s25 + $0x1c0] sm:$0xff] %vm8714_vm0, %v8706_v56  ;;  %v8707_v58 = vadd.f32 %v14169_v16, %v8615_v24  ;;  %v8617_v48 = vpop.f32.mrb[243].mxu1 }
 0x9a9   : > { %8772 = vst.msk [vmem:[%s14176_s25 + $0x1c8] sm:$0xff] %vm8714_vm0, %v8707_v58 }
 0x9b7   : > { %v8620_v0 = vpop.f32.mrb[244].mxu1 }
 0x9b8   : > { %v8708_v17 = vadd.f32 %v14169_v16, %v8620_v0  ;;  %v8622_v19 = vpop.f32.mrb[245].mxu1 }
 0x9b9   : > { %v8623_v44 = vpop.f32.mrb[246].mxu1 }
 0x9ba   : > { %8773 = vst.msk [vmem:[%s14176_s25 + $0x1d0] sm:$0xff] %vm8714_vm0, %v8708_v17  ;;  %v8709_v43 = vadd.f32 %v14169_v16, %v8623_v44  ;;  %v8625_v59 = vpop.f32.mrb[247].mxu1 }
 0x9bc   : > { %8774 = vst.msk [vmem:[%s14176_s25 + $0x1d8] sm:$0xff] %vm8714_vm0, %v8709_v43 }
 0x9ca   : > { %v8628_v9 = vpop.f32.mrb[248].mxu1 }
 0x9cb   : > { %v8710_v34 = vadd.f32 %v14169_v16, %v8628_v9  ;;  %v8630_v51 = vpop.f32.mrb[249].mxu1 }
 0x9cc   : > { %v8631_v40 = vpop.f32.mrb[250].mxu1 }
 0x9cd   : > { %8775 = vst.msk [vmem:[%s14176_s25 + $0x1e0] sm:$0xff] %vm8714_vm0, %v8710_v34  ;;  %v8711_v18 = vadd.f32 %v14169_v16, %v8631_v40  ;;  %v8633_v39 = vpop.f32.mrb[251].mxu1 }
 0x9cf   : > { %8776 = vst.msk [vmem:[%s14176_s25 + $0x1e8] sm:$0xff] %vm8714_vm0, %v8711_v18 }
 0x9dd   : > { %v8636_v23 = vpop.f32.mrb[252].mxu1 }
 0x9de   : > { %v8712_v5 = vadd.f32 %v14169_v16, %v8636_v23  ;;  %v8638_v28 = vpop.f32.mrb[253].mxu1 }
 0x9df   : > { %v8639_v15 = vpop.f32.mrb[254].mxu1 }
 0x9e0   : > { %8777 = vst.msk [vmem:[%s14176_s25 + $0x1f0] sm:$0xff] %vm8714_vm0, %v8712_v5  ;;  %v8713_v61 = vadd.f32 %v14169_v16, %v8639_v15  ;;  %v8641_v37 = vpop.f32.mrb[255].mxu1 }
 0x9e2   : > { %8778 = vst.msk [vmem:[%s14176_s25 + $0x1f8] sm:$0xff] %vm8714_vm0, %v8713_v61 }
 0x9e3 PF: > { %s17_s24 = sadd.s32 1, %s9772_s24  }
 0x9e4   : > { %p14_p4 = scmp.ge.s32.totalorder %s17_s24, 4  }
 0x9e6   :  { %16 = sbr.rel (!%p14_p4) target bundleno = 1 (0x1), region = 90 }

</bundles_post_ra>
